<compile_context>
chip_gen: v5e
topology: v5e:2x2
jax: 0.10.0
libtpu: 0.0.40
codegen_flags: <defaults>
</compile_context>

<pallas_src>
import functools
import math

import numpy as np

import jax
import jax.numpy as jnp
from jax import lax
from jax.experimental import pallas as pl
from jax.experimental.pallas import tpu as pltpu


# Explicit scoped-VMEM budget.  Keep <= ~48 MiB when targeting v7x (64 MiB physical);
# can be raised toward ~96 MiB on v5e/v6e (128 MiB physical) when using larger q tiles.
_VMEM_LIMIT_BYTES = 48 * 1024 * 1024


def _rga_kernel(xq_ref, xk_ref, xv_ref, wq_ref, wk_ref, wv_ref, wo_ref, b_ref, e_ref,
                *rest, n_heads, dh, q_tiles, emit_attw):
    """Grid point = (batch b, query tile q).  Heads are a static in-kernel loop."""
    if emit_attw:
        out_ref, attw_ref, kec_ref, vc_ref = rest
    else:
        out_ref, kec_ref, vc_ref = rest
        attw_ref = None

    tq = xq_ref.shape[1]
    L = xk_ref.shape[1]
    bf = jnp.bfloat16
    q_idx = pl.program_id(1)

    # ---- Per-batch K / V cache fill (only at q tile 0; q axis is "arbitrary"). ----
    # Full-width projections on the MXU, then static per-head slicing into head-major
    # caches; E is stored adjacent to each head's K so the logits matmul can be fused.
    @pl.when(q_idx == 0)
    def _fill_kv_cache():
        ks = (jnp.dot(xk_ref[0], wk_ref[...], preferred_element_type=jnp.float32)
              + b_ref[1:2, :]).astype(bf)                                     # (L, d)
        vs = (jnp.dot(xv_ref[0], wv_ref[...], preferred_element_type=jnp.float32)
              + b_ref[2:3, :]).astype(bf)                                     # (L, d)
        e = e_ref[...]                                                        # (L, dh)
        for hh in range(n_heads):
            cols = slice(hh * dh, (hh + 1) * dh)
            kec_ref[hh, :L, :] = ks[:, cols]
            kec_ref[hh, L:, :] = e
            vc_ref[hh] = vs[:, cols]

    # ---- Q projection for this tile, all heads at once; 1/sqrt(dh) folded in. ----
    qs_all = (jnp.dot(xq_ref[0], wq_ref[...], preferred_element_type=jnp.float32)
              + b_ref[0:1, :]) * (1.0 / math.sqrt(dh))
    qs_all = qs_all.astype(bf)                                                # (tq, d)

    # Global row / column indices for the relative-position (lower-triangular) mask and
    # the skew shift.  Row with global query index g needs QE[g, L-1-g+j] at column j <= g;
    # rolling row g toward higher lanes by (g + 1) mod L places exactly those values and the
    # wrapped lanes (j > g) are zeroed by the mask -- this is _qe_masking + _skewing for
    # len_q == len_k.
    if q_tiles == 1:
        row0 = 0
        shift = 1
    else:
        row0 = q_idx * tq
        shift = row0 + 1
    rows = row0 + lax.broadcasted_iota(jnp.int32, (tq, L), 0)
    cols = lax.broadcasted_iota(jnp.int32, (tq, L), 1)
    keep = cols <= rows

    dn = (((1,), (1,)), ((), ()))   # contract last dim of both operands (A @ B^T)
    ctx_heads = []
    for h in range(n_heads):
        qh = qs_all[:, h * dh:(h + 1) * dh]                                   # (tq, dh)

        # One fused MXU call per head: [QK^T | QE] = qh @ [K_h ; E]^T  -> (tq, 2L).
        s = lax.dot_general(qh, kec_ref[h], dn, preferred_element_type=jnp.float32)
        qkt = s[:, :L]
        qe = s[:, L:]

        # Music-Transformer skew: per-row lane rotation (XLU) + triangular mask (VPU).
        srel = pltpu.roll(qe, shift, axis=1, stride=1, stride_axis=0)
        logits = qkt + jnp.where(keep, srel, 0.0)

        # Softmax over keys in f32; divide goes to the EUP via approx reciprocal.
        mx = jnp.max(logits, axis=-1, keepdims=True)
        ex = jnp.exp(logits - mx)
        w = ex * pl.reciprocal(jnp.sum(ex, axis=-1, keepdims=True), approx=True)

        if emit_attw:
            attw_ref[0, h] = w.astype(attw_ref.dtype)

        ctx_heads.append(jnp.dot(w.astype(bf), vc_ref[h],
                                 preferred_element_type=jnp.float32).astype(bf))

    # ---- Deferred output projection: one full-width (tq, d) x (d, d) matmul + bias. ----
    ctx = jnp.concatenate(ctx_heads, axis=-1)                                 # (tq, d)
    out_ref[0] = (jnp.dot(ctx, wo_ref[...], preferred_element_type=jnp.float32)
                  + b_ref[3:4, :]).astype(out_ref.dtype)


def relative_global_attention(xq, xk, xv, params, *, n_heads, max_seq,
                              tq=None, attw_dtype=jnp.bfloat16,
                              return_attention_weights=True,
                              vmem_limit_bytes=_VMEM_LIMIT_BYTES,
                              single_buffer_invariants=False):
    """Pallas wrapper reproducing RelativeGlobalAttention.forward([Q, K, V], mask=None)."""
    B, Lq, d = xq.shape
    assert xk.shape == xv.shape and xk.shape[0] == B and xk.shape[2] == d
    assert Lq == xk.shape[1], "TODO(synk): len_q != len_k branch of _skewing not wired"
    L = Lq
    assert d % n_heads == 0
    dh = d // n_heads
    assert L <= max_seq, "demo assumes len_q <= max_seq"
    assert d % 128 == 0 and L % 128 == 0, "lane-dense shapes assumed (d, L multiples of 128)"

    if tq is None:
        # Larger default tile amortizes the ~0.35us/grid-step overhead (v5e/v6e); keep VMEM
        # in mind on v7x when raising further.
        tq = 256 if L % 256 == 0 else 128
    tq = min(tq, L)
    assert L % tq == 0, "query tile must divide the sequence length"
    q_tiles = L // tq

    cdt = jnp.bfloat16  # MXU operand dtype

    # PyTorch Linear: y = x @ W.T + b with W of shape (out, in) -> pre-transpose once here.
    wq = jnp.transpose(params["Wq"]).astype(cdt)                   # (d_in, d_out)
    wk = jnp.transpose(params["Wk"]).astype(cdt)
    wv = jnp.transpose(params["Wv"]).astype(cdt)
    wo = jnp.transpose(params["Wo"]).astype(cdt)
    biases = jnp.stack([params["bq"], params["bk"], params["bv"], params["bo"]],
                       axis=0).astype(jnp.float32)                 # (4, d) packed
    e_slice = params["E"][max_seq - L:, :].astype(cdt)             # (L, dh): _get_left_embedding

    xq = xq.astype(cdt)
    xk = xk.astype(cdt)
    xv = xv.astype(cdt)

    kernel = functools.partial(_rga_kernel, n_heads=n_heads, dh=dh, q_tiles=q_tiles,
                               emit_attw=return_attention_weights)

    def invariant_spec(shape, index_map):
        # v7x VMEM knob: blocks whose index never changes across the inner grid axis do not
        # benefit from double buffering; pl.Buffered(1) halves their VMEM footprint.
        if single_buffer_invariants:
            return pl.BlockSpec(shape, index_map, pipeline_mode=pl.Buffered(1))
        return pl.BlockSpec(shape, index_map)

    in_specs = [
        pl.BlockSpec((1, tq, d), lambda b, q: (b, q, 0)),          # xq tile
        invariant_spec((1, L, d), lambda b, q: (b, 0, 0)),         # xk (per batch; used at q==0)
        invariant_spec((1, L, d), lambda b, q: (b, 0, 0)),         # xv (per batch; used at q==0)
        invariant_spec((d, d), lambda b, q: (0, 0)),               # Wq (full width)
        invariant_spec((d, d), lambda b, q: (0, 0)),               # Wk
        invariant_spec((d, d), lambda b, q: (0, 0)),               # Wv
        invariant_spec((d, d), lambda b, q: (0, 0)),               # Wo
        invariant_spec((4, d), lambda b, q: (0, 0)),               # packed biases [bq, bk, bv, bo]
        invariant_spec((L, dh), lambda b, q: (0, 0)),              # E slice
    ]

    if return_attention_weights:
        out_shape = (jax.ShapeDtypeStruct((B, L, d), jnp.float32),
                     jax.ShapeDtypeStruct((B, n_heads, L, L), attw_dtype))
        out_specs = (pl.BlockSpec((1, tq, d), lambda b, q: (b, q, 0)),
                     pl.BlockSpec((1, n_heads, tq, L), lambda b, q: (b, 0, q, 0)))
    else:
        out_shape = (jax.ShapeDtypeStruct((B, L, d), jnp.float32),)
        out_specs = (pl.BlockSpec((1, tq, d), lambda b, q: (b, q, 0)),)

    scratch_shapes = [
        pltpu.VMEM((n_heads, 2 * L, dh), cdt),   # per-head [K_h ; E] cache (fused logits operand)
        pltpu.VMEM((n_heads, L, dh), cdt),       # per-head V cache
    ]

    res = pl.pallas_call(
        kernel,
        out_shape=out_shape,
        grid_spec=pltpu.PrefetchScalarGridSpec(
            num_scalar_prefetch=0,
            grid=(B, q_tiles),
            in_specs=in_specs,
            out_specs=out_specs,
            scratch_shapes=scratch_shapes,
        ),
        compiler_params=pltpu.CompilerParams(
            # q axis must be "arbitrary": the K/V cache is filled at q == 0 and must stay on
            # the same core; batch supplies megacore parallelism (needs B >= 2 on v7x).
            dimension_semantics=("parallel", "arbitrary"),
            vmem_limit_bytes=vmem_limit_bytes,
        ),
    )(xq, xk, xv, wq, wk, wv, wo, biases, e_slice)

    if return_attention_weights:
        return res
    return res[0]


def _reference_forward(xq, xk, xv, params, *, n_heads, max_seq):
    """Pure-JAX transcription of the PyTorch forward (mask=None), for validation.

    Operands the kernel feeds to the MXU in bf16 (activations, weights, E) are rounded to
    bf16 here as well, so the comparison isolates kernel structure from dtype policy.
    """
    B, L, d = xq.shape
    dh = d // n_heads
    rd = lambda a: a.astype(jnp.bfloat16).astype(jnp.float32)
    xq, xk, xv = rd(xq), rd(xk), rd(xv)
    Wq, Wk, Wv, Wo, E_full = (rd(params[k]) for k in ("Wq", "Wk", "Wv", "Wo", "E"))
    bq, bk, bv, bo = (params[k].astype(jnp.float32) for k in ("bq", "bk", "bv", "bo"))

    def proj(x, W, b):
        y = x @ W.T + b
        return y.reshape(B, L, n_heads, dh).transpose(0, 2, 1, 3)   # (B, H, L, dh)

    q = proj(xq, Wq, bq)
    k = proj(xk, Wk, bk)
    v = proj(xv, Wv, bv)

    E = E_full[max(0, max_seq - L):, :]
    QE = jnp.einsum('bhld,md->bhlm', q, E)
    M = QE.shape[-1]
    lengths = jnp.arange(M - 1, M - L - 1, -1)
    seq_mask = jnp.arange(M)[None, :] < lengths[:, None]
    QE = QE * (~seq_mask).astype(QE.dtype)
    padded = jnp.pad(QE, ((0, 0), (0, 0), (0, 0), (1, 0)))
    Srel = padded.reshape(B, n_heads, M + 1, L)[:, :, 1:, :]

    QKt = jnp.einsum('bhld,bhmd->bhlm', q, k)
    logits = (QKt + Srel) / math.sqrt(dh)
    w = jax.nn.softmax(logits, axis=-1)
    att = jnp.einsum('bhlm,bhmd->bhld', w, v)
    out = att.transpose(0, 2, 1, 3).reshape(B, L, d)
    out = out @ Wo.T + bo
    return out, w


if __name__ == "__main__":
    # Module defaults h=4, d=256; small max_seq and lane-dense sequence lengths.
    H, D, MAX_SEQ = 4, 256, 512
    DH = D // H

    key = jax.random.PRNGKey(0)
    kp, kx = jax.random.split(key)
    kk = jax.random.split(kp, 9)
    w_scale = 1.0 / math.sqrt(D)

    params = {
        "Wq": jax.random.normal(kk[0], (D, D), jnp.float32) * w_scale,
        "bq": jax.random.normal(kk[1], (D,), jnp.float32) * 0.1,
        "Wk": jax.random.normal(kk[2], (D, D), jnp.float32) * w_scale,
        "bk": jax.random.normal(kk[3], (D,), jnp.float32) * 0.1,
        "Wv": jax.random.normal(kk[4], (D, D), jnp.float32) * w_scale,
        "bv": jax.random.normal(kk[5], (D,), jnp.float32) * 0.1,
        "Wo": jax.random.normal(kk[6], (D, D), jnp.float32) * w_scale,
        "bo": jax.random.normal(kk[7], (D,), jnp.float32) * 0.1,
        "E": jax.random.normal(kk[8], (MAX_SEQ, DH), jnp.float32),
    }

    xq = xk = xv = None
    ref_out = None
    tq = 128
    for (B, L, tq) in [(2, 128, 128),    # single q tile  (static skew shift)
                       (2, 256, 128)]:   # multiple q tiles (dynamic skew shift, cached K/V reuse)
        k1, k2, k3, kx = jax.random.split(kx, 4)
        xq = jax.random.normal(k1, (B, L, D), jnp.float32)
        xk = jax.random.normal(k2, (B, L, D), jnp.float32)
        xv = jax.random.normal(k3, (B, L, D), jnp.float32)

        out, attw = relative_global_attention(xq, xk, xv, params, n_heads=H,
                                              max_seq=MAX_SEQ, tq=tq)
        jax.block_until_ready((out, attw))

        ref_out, ref_w = _reference_forward(xq, xk, xv, params, n_heads=H, max_seq=MAX_SEQ)

        # Tolerances reflect bf16 MXU operands / bf16 attention weights (f32 accumulation)
        # and the EUP approx reciprocal in the softmax.
        np.testing.assert_allclose(np.asarray(out), np.asarray(ref_out), rtol=5e-2, atol=5e-2)
        np.testing.assert_allclose(np.asarray(attw.astype(jnp.float32)), np.asarray(ref_w),
                                   rtol=5e-2, atol=3e-2)

    # Fast path: no O(B*H*L^2) attention-weight HBM writeback.
    out_only = relative_global_attention(xq, xk, xv, params, n_heads=H, max_seq=MAX_SEQ,
                                         tq=tq, return_attention_weights=False)
    jax.block_until_ready(out_only)
    np.testing.assert_allclose(np.asarray(out_only), np.asarray(ref_out), rtol=5e-2, atol=5e-2)

    print("KERNEL_OK")
</pallas_src>

<mosaic_0001>
module attributes {stable_mosaic.version = 11 : i64} {
  func.func @_rga_kernel(%arg0: i32, %arg1: i32, %arg2: memref<1x128x256xbf16, #tpu.memory_space<vmem>>, %arg3: memref<1x128x256xbf16, #tpu.memory_space<vmem>>, %arg4: memref<1x128x256xbf16, #tpu.memory_space<vmem>>, %arg5: memref<256x256xbf16, #tpu.memory_space<vmem>>, %arg6: memref<256x256xbf16, #tpu.memory_space<vmem>>, %arg7: memref<256x256xbf16, #tpu.memory_space<vmem>>, %arg8: memref<256x256xbf16, #tpu.memory_space<vmem>>, %arg9: memref<4x256xf32, #tpu.memory_space<vmem>>, %arg10: memref<128x64xbf16, #tpu.memory_space<vmem>>, %arg11: memref<1x128x256xf32, #tpu.memory_space<vmem>>, %arg12: memref<1x4x128x128xbf16, #tpu.memory_space<vmem>>, %arg13: memref<4x256x64xbf16, #tpu.memory_space<vmem>>, %arg14: memref<4x128x64xbf16, #tpu.memory_space<vmem>>) attributes {dimension_semantics = [#tpu.dimension_semantics<parallel>, #tpu.dimension_semantics<arbitrary>], iteration_bounds = array<i64: 2, 1>, scalar_prefetch = 0 : i64, scratch_operands = 2 : i64, tpu.core_type = #tpu.core_type<tc>, window_params = [{transform_indices = @transform_0, window_bounds = array<i64: 1, 128, 256>}, {transform_indices = @transform_1, window_bounds = array<i64: 1, 128, 256>}, {transform_indices = @transform_2, window_bounds = array<i64: 1, 128, 256>}, {pipeline_mode = #tpu.pipeline_mode<synchronous>, transform_indices = @transform_3, window_bounds = array<i64: 256, 256>}, {pipeline_mode = #tpu.pipeline_mode<synchronous>, transform_indices = @transform_4, window_bounds = array<i64: 256, 256>}, {pipeline_mode = #tpu.pipeline_mode<synchronous>, transform_indices = @transform_5, window_bounds = array<i64: 256, 256>}, {pipeline_mode = #tpu.pipeline_mode<synchronous>, transform_indices = @transform_6, window_bounds = array<i64: 256, 256>}, {pipeline_mode = #tpu.pipeline_mode<synchronous>, transform_indices = @transform_7, window_bounds = array<i64: 4, 256>}, {pipeline_mode = #tpu.pipeline_mode<synchronous>, transform_indices = @transform_8, window_bounds = array<i64: 128, 64>}, {transform_indices = @transform_9, window_bounds = array<i64: 1, 128, 256>}, {transform_indices = @transform_10, window_bounds = array<i64: 1, 4, 128, 128>}]} {
    %c0_i32 = arith.constant 0 : i32
    %0 = arith.cmpi eq, %arg1, %c0_i32 : i32
    %1 = arith.extui %0 : i1 to i32
    %c0_i32_0 = arith.constant 0 : i32
    %2 = arith.cmpi ne, %1, %c0_i32_0 : i32
    scf.if %2 {
      %c0_77 = arith.constant 0 : index
      %c0_78 = arith.constant 0 : index
      %c0_79 = arith.constant 0 : index
      %143 = vector.load %arg3[%c0_77, %c0_78, %c0_79] : memref<1x128x256xbf16, #tpu.memory_space<vmem>>, vector<1x128x256xbf16>
      %144 = vector.shape_cast %143 : vector<1x128x256xbf16> to vector<128x256xbf16>
      %c0_80 = arith.constant 0 : index
      %c0_81 = arith.constant 0 : index
      %145 = vector.load %arg6[%c0_80, %c0_81] : memref<256x256xbf16, #tpu.memory_space<vmem>>, vector<256x256xbf16>
      %cst_82 = arith.constant dense<0.000000e+00> : vector<128x256xf32>
      %146 = tpu.matmul %144, %145, %cst_82 {dimension_numbers = #tpu.dot_dimension_numbers<[1], [0], [0], [1], [0, 0, 1, 1], [], []>} : vector<128x256xbf16>, vector<256x256xbf16>, vector<128x256xf32> -> vector<128x256xf32>
      %c1_83 = arith.constant 1 : index
      %c0_84 = arith.constant 0 : index
      %147 = vector.load %arg9[%c1_83, %c0_84] : memref<4x256xf32, #tpu.memory_space<vmem>>, vector<1x256xf32>
      %148 = vector.broadcast %147 : vector<1x256xf32> to vector<128x256xf32>
      %149 = arith.addf %146, %148 : vector<128x256xf32>
      %150 = arith.truncf %149 : vector<128x256xf32> to vector<128x256xbf16>
      %c0_85 = arith.constant 0 : index
      %c0_86 = arith.constant 0 : index
      %c0_87 = arith.constant 0 : index
      %151 = vector.load %arg4[%c0_85, %c0_86, %c0_87] : memref<1x128x256xbf16, #tpu.memory_space<vmem>>, vector<1x128x256xbf16>
      %152 = vector.shape_cast %151 : vector<1x128x256xbf16> to vector<128x256xbf16>
      %c0_88 = arith.constant 0 : index
      %c0_89 = arith.constant 0 : index
      %153 = vector.load %arg7[%c0_88, %c0_89] : memref<256x256xbf16, #tpu.memory_space<vmem>>, vector<256x256xbf16>
      %cst_90 = arith.constant dense<0.000000e+00> : vector<128x256xf32>
      %154 = tpu.matmul %152, %153, %cst_90 {dimension_numbers = #tpu.dot_dimension_numbers<[1], [0], [0], [1], [0, 0, 1, 1], [], []>} : vector<128x256xbf16>, vector<256x256xbf16>, vector<128x256xf32> -> vector<128x256xf32>
      %c2_91 = arith.constant 2 : index
      %c0_92 = arith.constant 0 : index
      %155 = vector.load %arg9[%c2_91, %c0_92] : memref<4x256xf32, #tpu.memory_space<vmem>>, vector<1x256xf32>
      %156 = vector.broadcast %155 : vector<1x256xf32> to vector<128x256xf32>
      %157 = arith.addf %154, %156 : vector<128x256xf32>
      %158 = arith.truncf %157 : vector<128x256xf32> to vector<128x256xbf16>
      %c0_93 = arith.constant 0 : index
      %c0_94 = arith.constant 0 : index
      %159 = vector.load %arg10[%c0_93, %c0_94] : memref<128x64xbf16, #tpu.memory_space<vmem>>, vector<128x64xbf16>
      %160 = vector.extract_strided_slice %150 {offsets = [0, 0], sizes = [128, 64], strides = [1, 1]} : vector<128x256xbf16> to vector<128x64xbf16>
      %c0_95 = arith.constant 0 : index
      %c0_96 = arith.constant 0 : index
      %c0_97 = arith.constant 0 : index
      %161 = vector.load %arg13[%c0_95, %c0_96, %c0_97] : memref<4x256x64xbf16, #tpu.memory_space<vmem>>, vector<1x128x64xbf16>
      %162 = vector.shape_cast %161 : vector<1x128x64xbf16> to vector<128x64xbf16>
      %163 = vector.shape_cast %160 : vector<128x64xbf16> to vector<1x128x64xbf16>
      tpu.vector_store %arg13[%c0_95, %c0_96, %c0_97], %163 {strides = array<i32>} : memref<4x256x64xbf16, #tpu.memory_space<vmem>>, vector<1x128x64xbf16>,
      %c0_98 = arith.constant 0 : index
      %c128 = arith.constant 128 : index
      %c0_99 = arith.constant 0 : index
      %164 = vector.load %arg13[%c0_98, %c128, %c0_99] : memref<4x256x64xbf16, #tpu.memory_space<vmem>>, vector<1x128x64xbf16>
      %165 = vector.shape_cast %164 : vector<1x128x64xbf16> to vector<128x64xbf16>
      %166 = vector.shape_cast %159 : vector<128x64xbf16> to vector<1x128x64xbf16>
      tpu.vector_store %arg13[%c0_98, %c128, %c0_99], %166 {strides = array<i32>} : memref<4x256x64xbf16, #tpu.memory_space<vmem>>, vector<1x128x64xbf16>,
      %167 = vector.extract_strided_slice %158 {offsets = [0, 0], sizes = [128, 64], strides = [1, 1]} : vector<128x256xbf16> to vector<128x64xbf16>
      %c0_100 = arith.constant 0 : index
      %c0_101 = arith.constant 0 : index
      %c0_102 = arith.constant 0 : index
      %168 = vector.load %arg14[%c0_100, %c0_101, %c0_102] : memref<4x128x64xbf16, #tpu.memory_space<vmem>>, vector<1x128x64xbf16>
      %169 = vector.shape_cast %168 : vector<1x128x64xbf16> to vector<128x64xbf16>
      %170 = vector.shape_cast %167 : vector<128x64xbf16> to vector<1x128x64xbf16>
      tpu.vector_store %arg14[%c0_100, %c0_101, %c0_102], %170 {strides = array<i32>} : memref<4x128x64xbf16, #tpu.memory_space<vmem>>, vector<1x128x64xbf16>,
      %171 = vector.extract_strided_slice %150 {offsets = [0, 64], sizes = [128, 64], strides = [1, 1]} : vector<128x256xbf16> to vector<128x64xbf16>
      %c1_103 = arith.constant 1 : index
      %c0_104 = arith.constant 0 : index
      %c0_105 = arith.constant 0 : index
      %172 = vector.load %arg13[%c1_103, %c0_104, %c0_105] : memref<4x256x64xbf16, #tpu.memory_space<vmem>>, vector<1x128x64xbf16>
      %173 = vector.shape_cast %172 : vector<1x128x64xbf16> to vector<128x64xbf16>
      %174 = vector.shape_cast %171 : vector<128x64xbf16> to vector<1x128x64xbf16>
      tpu.vector_store %arg13[%c1_103, %c0_104, %c0_105], %174 {strides = array<i32>} : memref<4x256x64xbf16, #tpu.memory_space<vmem>>, vector<1x128x64xbf16>,
      %c1_106 = arith.constant 1 : index
      %c128_107 = arith.constant 128 : index
      %c0_108 = arith.constant 0 : index
      %175 = vector.load %arg13[%c1_106, %c128_107, %c0_108] : memref<4x256x64xbf16, #tpu.memory_space<vmem>>, vector<1x128x64xbf16>
      %176 = vector.shape_cast %175 : vector<1x128x64xbf16> to vector<128x64xbf16>
      %177 = vector.shape_cast %159 : vector<128x64xbf16> to vector<1x128x64xbf16>
      tpu.vector_store %arg13[%c1_106, %c128_107, %c0_108], %177 {strides = array<i32>} : memref<4x256x64xbf16, #tpu.memory_space<vmem>>, vector<1x128x64xbf16>,
      %178 = vector.extract_strided_slice %158 {offsets = [0, 64], sizes = [128, 64], strides = [1, 1]} : vector<128x256xbf16> to vector<128x64xbf16>
      %c1_109 = arith.constant 1 : index
      %c0_110 = arith.constant 0 : index
      %c0_111 = arith.constant 0 : index
      %179 = vector.load %arg14[%c1_109, %c0_110, %c0_111] : memref<4x128x64xbf16, #tpu.memory_space<vmem>>, vector<1x128x64xbf16>
      %180 = vector.shape_cast %179 : vector<1x128x64xbf16> to vector<128x64xbf16>
      %181 = vector.shape_cast %178 : vector<128x64xbf16> to vector<1x128x64xbf16>
      tpu.vector_store %arg14[%c1_109, %c0_110, %c0_111], %181 {strides = array<i32>} : memref<4x128x64xbf16, #tpu.memory_space<vmem>>, vector<1x128x64xbf16>,
      %182 = vector.extract_strided_slice %150 {offsets = [0, 128], sizes = [128, 64], strides = [1, 1]} : vector<128x256xbf16> to vector<128x64xbf16>
      %c2_112 = arith.constant 2 : index
      %c0_113 = arith.constant 0 : index
      %c0_114 = arith.constant 0 : index
      %183 = vector.load %arg13[%c2_112, %c0_113, %c0_114] : memref<4x256x64xbf16, #tpu.memory_space<vmem>>, vector<1x128x64xbf16>
      %184 = vector.shape_cast %183 : vector<1x128x64xbf16> to vector<128x64xbf16>
      %185 = vector.shape_cast %182 : vector<128x64xbf16> to vector<1x128x64xbf16>
      tpu.vector_store %arg13[%c2_112, %c0_113, %c0_114], %185 {strides = array<i32>} : memref<4x256x64xbf16, #tpu.memory_space<vmem>>, vector<1x128x64xbf16>,
      %c2_115 = arith.constant 2 : index
      %c128_116 = arith.constant 128 : index
      %c0_117 = arith.constant 0 : index
      %186 = vector.load %arg13[%c2_115, %c128_116, %c0_117] : memref<4x256x64xbf16, #tpu.memory_space<vmem>>, vector<1x128x64xbf16>
      %187 = vector.shape_cast %186 : vector<1x128x64xbf16> to vector<128x64xbf16>
      %188 = vector.shape_cast %159 : vector<128x64xbf16> to vector<1x128x64xbf16>
      tpu.vector_store %arg13[%c2_115, %c128_116, %c0_117], %188 {strides = array<i32>} : memref<4x256x64xbf16, #tpu.memory_space<vmem>>, vector<1x128x64xbf16>,
      %189 = vector.extract_strided_slice %158 {offsets = [0, 128], sizes = [128, 64], strides = [1, 1]} : vector<128x256xbf16> to vector<128x64xbf16>
      %c2_118 = arith.constant 2 : index
      %c0_119 = arith.constant 0 : index
      %c0_120 = arith.constant 0 : index
      %190 = vector.load %arg14[%c2_118, %c0_119, %c0_120] : memref<4x128x64xbf16, #tpu.memory_space<vmem>>, vector<1x128x64xbf16>
      %191 = vector.shape_cast %190 : vector<1x128x64xbf16> to vector<128x64xbf16>
      %192 = vector.shape_cast %189 : vector<128x64xbf16> to vector<1x128x64xbf16>
      tpu.vector_store %arg14[%c2_118, %c0_119, %c0_120], %192 {strides = array<i32>} : memref<4x128x64xbf16, #tpu.memory_space<vmem>>, vector<1x128x64xbf16>,
      %193 = vector.extract_strided_slice %150 {offsets = [0, 192], sizes = [128, 64], strides = [1, 1]} : vector<128x256xbf16> to vector<128x64xbf16>
      %c3_121 = arith.constant 3 : index
      %c0_122 = arith.constant 0 : index
      %c0_123 = arith.constant 0 : index
      %194 = vector.load %arg13[%c3_121, %c0_122, %c0_123] : memref<4x256x64xbf16, #tpu.memory_space<vmem>>, vector<1x128x64xbf16>
      %195 = vector.shape_cast %194 : vector<1x128x64xbf16> to vector<128x64xbf16>
      %196 = vector.shape_cast %193 : vector<128x64xbf16> to vector<1x128x64xbf16>
      tpu.vector_store %arg13[%c3_121, %c0_122, %c0_123], %196 {strides = array<i32>} : memref<4x256x64xbf16, #tpu.memory_space<vmem>>, vector<1x128x64xbf16>,
      %c3_124 = arith.constant 3 : index
      %c128_125 = arith.constant 128 : index
      %c0_126 = arith.constant 0 : index
      %197 = vector.load %arg13[%c3_124, %c128_125, %c0_126] : memref<4x256x64xbf16, #tpu.memory_space<vmem>>, vector<1x128x64xbf16>
      %198 = vector.shape_cast %197 : vector<1x128x64xbf16> to vector<128x64xbf16>
      %199 = vector.shape_cast %159 : vector<128x64xbf16> to vector<1x128x64xbf16>
      tpu.vector_store %arg13[%c3_124, %c128_125, %c0_126], %199 {strides = array<i32>} : memref<4x256x64xbf16, #tpu.memory_space<vmem>>, vector<1x128x64xbf16>,
      %200 = vector.extract_strided_slice %158 {offsets = [0, 192], sizes = [128, 64], strides = [1, 1]} : vector<128x256xbf16> to vector<128x64xbf16>
      %c3_127 = arith.constant 3 : index
      %c0_128 = arith.constant 0 : index
      %c0_129 = arith.constant 0 : index
      %201 = vector.load %arg14[%c3_127, %c0_128, %c0_129] : memref<4x128x64xbf16, #tpu.memory_space<vmem>>, vector<1x128x64xbf16>
      %202 = vector.shape_cast %201 : vector<1x128x64xbf16> to vector<128x64xbf16>
      %203 = vector.shape_cast %200 : vector<128x64xbf16> to vector<1x128x64xbf16>
      tpu.vector_store %arg14[%c3_127, %c0_128, %c0_129], %203 {strides = array<i32>} : memref<4x128x64xbf16, #tpu.memory_space<vmem>>, vector<1x128x64xbf16>,
    } else {
    }
    %c0 = arith.constant 0 : index
    %c0_1 = arith.constant 0 : index
    %c0_2 = arith.constant 0 : index
    %3 = vector.load %arg2[%c0, %c0_1, %c0_2] : memref<1x128x256xbf16, #tpu.memory_space<vmem>>, vector<1x128x256xbf16>
    %4 = vector.shape_cast %3 : vector<1x128x256xbf16> to vector<128x256xbf16>
    %c0_3 = arith.constant 0 : index
    %c0_4 = arith.constant 0 : index
    %5 = vector.load %arg5[%c0_3, %c0_4] : memref<256x256xbf16, #tpu.memory_space<vmem>>, vector<256x256xbf16>
    %cst = arith.constant dense<0.000000e+00> : vector<128x256xf32>
    %6 = tpu.matmul %4, %5, %cst {dimension_numbers = #tpu.dot_dimension_numbers<[1], [0], [0], [1], [0, 0, 1, 1], [], []>} : vector<128x256xbf16>, vector<256x256xbf16>, vector<128x256xf32> -> vector<128x256xf32>
    %c0_5 = arith.constant 0 : index
    %c0_6 = arith.constant 0 : index
    %7 = vector.load %arg9[%c0_5, %c0_6] : memref<4x256xf32, #tpu.memory_space<vmem>>, vector<1x256xf32>
    %8 = vector.broadcast %7 : vector<1x256xf32> to vector<128x256xf32>
    %9 = arith.addf %6, %8 : vector<128x256xf32>
    %cst_7 = arith.constant 1.250000e-01 : f32
    %10 = vector.broadcast %cst_7 : f32 to vector<128x256xf32>
    %11 = arith.mulf %9, %10 : vector<128x256xf32>
    %12 = arith.truncf %11 : vector<128x256xf32> to vector<128x256xbf16>
    %13 = tpu.iota {dimensions = array<i32: 0>} : vector<128x128xi32>
    %c0_i32_8 = arith.constant 0 : i32
    %14 = vector.broadcast %c0_i32_8 : i32 to vector<128x128xi32>
    %15 = arith.addi %14, %13 : vector<128x128xi32>
    %16 = tpu.iota {dimensions = array<i32: 1>} : vector<128x128xi32>
    %17 = arith.cmpi sle, %16, %15 : vector<128x128xi32>
    %18 = vector.extract_strided_slice %12 {offsets = [0, 0], sizes = [128, 64], strides = [1, 1]} : vector<128x256xbf16> to vector<128x64xbf16>
    %c0_9 = arith.constant 0 : index
    %c0_10 = arith.constant 0 : index
    %c0_11 = arith.constant 0 : index
    %19 = vector.load %arg13[%c0_9, %c0_10, %c0_11] : memref<4x256x64xbf16, #tpu.memory_space<vmem>>, vector<1x256x64xbf16>
    %20 = vector.shape_cast %19 : vector<1x256x64xbf16> to vector<256x64xbf16>
    %cst_12 = arith.constant dense<0.000000e+00> : vector<128x256xf32>
    %21 = tpu.matmul %18, %20, %cst_12 {dimension_numbers = #tpu.dot_dimension_numbers<[1], [1], [0], [0], [0, 0, 1, 0], [], []>} : vector<128x64xbf16>, vector<256x64xbf16>, vector<128x256xf32> -> vector<128x256xf32>
    %22 = vector.extract_strided_slice %21 {offsets = [0, 0], sizes = [128, 128], strides = [1, 1]} : vector<128x256xf32> to vector<128x128xf32>
    %23 = vector.extract_strided_slice %21 {offsets = [0, 128], sizes = [128, 128], strides = [1, 1]} : vector<128x256xf32> to vector<128x128xf32>
    %c1_i32 = arith.constant 1 : i32
    %24 = tpu.dynamic_rotate %23 by %c1_i32 dim 1 {stride = 1 : si32, stride_dimension = 0 : si32} : vector<128x128xf32>, i32 -> vector<128x128xf32>
    %cst_13 = arith.constant 0.000000e+00 : f32
    %25 = vector.broadcast %cst_13 : f32 to vector<128x128xf32>
    %26 = arith.select %17, %24, %25 : vector<128x128xi1>, vector<128x128xf32>
    %27 = arith.addf %22, %26 : vector<128x128xf32>
    %cst_14 = arith.constant dense<0xFF800000> : vector<128xf32>
    %28 = vector.multi_reduction <maximumf>, %27, %cst_14 [1] : vector<128x128xf32> to vector<128xf32>
    %29 = vector.shape_cast %28 : vector<128xf32> to vector<128x1xf32>
    %30 = vector.broadcast %29 : vector<128x1xf32> to vector<128x128xf32>
    %31 = arith.subf %27, %30 : vector<128x128xf32>
    %32 = math.exp %31 : vector<128x128xf32>
    %cst_15 = arith.constant dense<0.000000e+00> : vector<128xf32>
    %33 = vector.multi_reduction <add>, %32, %cst_15 [1] : vector<128x128xf32> to vector<128xf32>
    %34 = vector.shape_cast %33 : vector<128xf32> to vector<128x1xf32>
    %35 = tpu.reciprocal %34 {approx = true} : vector<128x1xf32> -> vector<128x1xf32>
    %36 = vector.broadcast %35 : vector<128x1xf32> to vector<128x128xf32>
    %37 = arith.mulf %32, %36 : vector<128x128xf32>
    %38 = arith.truncf %37 : vector<128x128xf32> to vector<128x128xbf16>
    %c0_16 = arith.constant 0 : index
    %c0_17 = arith.constant 0 : index
    %c0_18 = arith.constant 0 : index
    %c0_19 = arith.constant 0 : index
    %39 = vector.load %arg12[%c0_16, %c0_17, %c0_18, %c0_19] : memref<1x4x128x128xbf16, #tpu.memory_space<vmem>>, vector<1x1x128x128xbf16>
    %40 = vector.shape_cast %39 : vector<1x1x128x128xbf16> to vector<128x128xbf16>
    %41 = vector.shape_cast %38 : vector<128x128xbf16> to vector<1x1x128x128xbf16>
    tpu.vector_store %arg12[%c0_16, %c0_17, %c0_18, %c0_19], %41 {strides = array<i32>} : memref<1x4x128x128xbf16, #tpu.memory_space<vmem>>, vector<1x1x128x128xbf16>,
    %42 = arith.truncf %37 : vector<128x128xf32> to vector<128x128xbf16>
    %c0_20 = arith.constant 0 : index
    %c0_21 = arith.constant 0 : index
    %c0_22 = arith.constant 0 : index
    %43 = vector.load %arg14[%c0_20, %c0_21, %c0_22] : memref<4x128x64xbf16, #tpu.memory_space<vmem>>, vector<1x128x64xbf16>
    %44 = vector.shape_cast %43 : vector<1x128x64xbf16> to vector<128x64xbf16>
    %cst_23 = arith.constant dense<0.000000e+00> : vector<128x64xf32>
    %45 = tpu.matmul %42, %44, %cst_23 {dimension_numbers = #tpu.dot_dimension_numbers<[1], [0], [0], [1], [0, 0, 1, 1], [], []>} : vector<128x128xbf16>, vector<128x64xbf16>, vector<128x64xf32> -> vector<128x64xf32>
    %46 = arith.truncf %45 : vector<128x64xf32> to vector<128x64xbf16>
    %47 = vector.extract_strided_slice %12 {offsets = [0, 64], sizes = [128, 64], strides = [1, 1]} : vector<128x256xbf16> to vector<128x64xbf16>
    %c1 = arith.constant 1 : index
    %c0_24 = arith.constant 0 : index
    %c0_25 = arith.constant 0 : index
    %48 = vector.load %arg13[%c1, %c0_24, %c0_25] : memref<4x256x64xbf16, #tpu.memory_space<vmem>>, vector<1x256x64xbf16>
    %49 = vector.shape_cast %48 : vector<1x256x64xbf16> to vector<256x64xbf16>
    %cst_26 = arith.constant dense<0.000000e+00> : vector<128x256xf32>
    %50 = tpu.matmul %47, %49, %cst_26 {dimension_numbers = #tpu.dot_dimension_numbers<[1], [1], [0], [0], [0, 0, 1, 0], [], []>} : vector<128x64xbf16>, vector<256x64xbf16>, vector<128x256xf32> -> vector<128x256xf32>
    %51 = vector.extract_strided_slice %50 {offsets = [0, 0], sizes = [128, 128], strides = [1, 1]} : vector<128x256xf32> to vector<128x128xf32>
    %52 = vector.extract_strided_slice %50 {offsets = [0, 128], sizes = [128, 128], strides = [1, 1]} : vector<128x256xf32> to vector<128x128xf32>
    %c1_i32_27 = arith.constant 1 : i32
    %53 = tpu.dynamic_rotate %52 by %c1_i32_27 dim 1 {stride = 1 : si32, stride_dimension = 0 : si32} : vector<128x128xf32>, i32 -> vector<128x128xf32>
    %cst_28 = arith.constant 0.000000e+00 : f32
    %54 = vector.broadcast %cst_28 : f32 to vector<128x128xf32>
    %55 = arith.select %17, %53, %54 : vector<128x128xi1>, vector<128x128xf32>
    %56 = arith.addf %51, %55 : vector<128x128xf32>
    %cst_29 = arith.constant dense<0xFF800000> : vector<128xf32>
    %57 = vector.multi_reduction <maximumf>, %56, %cst_29 [1] : vector<128x128xf32> to vector<128xf32>
    %58 = vector.shape_cast %57 : vector<128xf32> to vector<128x1xf32>
    %59 = vector.broadcast %58 : vector<128x1xf32> to vector<128x128xf32>
    %60 = arith.subf %56, %59 : vector<128x128xf32>
    %61 = math.exp %60 : vector<128x128xf32>
    %cst_30 = arith.constant dense<0.000000e+00> : vector<128xf32>
    %62 = vector.multi_reduction <add>, %61, %cst_30 [1] : vector<128x128xf32> to vector<128xf32>
    %63 = vector.shape_cast %62 : vector<128xf32> to vector<128x1xf32>
    %64 = tpu.reciprocal %63 {approx = true} : vector<128x1xf32> -> vector<128x1xf32>
    %65 = vector.broadcast %64 : vector<128x1xf32> to vector<128x128xf32>
    %66 = arith.mulf %61, %65 : vector<128x128xf32>
    %67 = arith.truncf %66 : vector<128x128xf32> to vector<128x128xbf16>
    %c0_31 = arith.constant 0 : index
    %c1_32 = arith.constant 1 : index
    %c0_33 = arith.constant 0 : index
    %c0_34 = arith.constant 0 : index
    %68 = vector.load %arg12[%c0_31, %c1_32, %c0_33, %c0_34] : memref<1x4x128x128xbf16, #tpu.memory_space<vmem>>, vector<1x1x128x128xbf16>
    %69 = vector.shape_cast %68 : vector<1x1x128x128xbf16> to vector<128x128xbf16>
    %70 = vector.shape_cast %67 : vector<128x128xbf16> to vector<1x1x128x128xbf16>
    tpu.vector_store %arg12[%c0_31, %c1_32, %c0_33, %c0_34], %70 {strides = array<i32>} : memref<1x4x128x128xbf16, #tpu.memory_space<vmem>>, vector<1x1x128x128xbf16>,
    %71 = arith.truncf %66 : vector<128x128xf32> to vector<128x128xbf16>
    %c1_35 = arith.constant 1 : index
    %c0_36 = arith.constant 0 : index
    %c0_37 = arith.constant 0 : index
    %72 = vector.load %arg14[%c1_35, %c0_36, %c0_37] : memref<4x128x64xbf16, #tpu.memory_space<vmem>>, vector<1x128x64xbf16>
    %73 = vector.shape_cast %72 : vector<1x128x64xbf16> to vector<128x64xbf16>
    %cst_38 = arith.constant dense<0.000000e+00> : vector<128x64xf32>
    %74 = tpu.matmul %71, %73, %cst_38 {dimension_numbers = #tpu.dot_dimension_numbers<[1], [0], [0], [1], [0, 0, 1, 1], [], []>} : vector<128x128xbf16>, vector<128x64xbf16>, vector<128x64xf32> -> vector<128x64xf32>
    %75 = arith.truncf %74 : vector<128x64xf32> to vector<128x64xbf16>
    %76 = vector.extract_strided_slice %12 {offsets = [0, 128], sizes = [128, 64], strides = [1, 1]} : vector<128x256xbf16> to vector<128x64xbf16>
    %c2 = arith.constant 2 : index
    %c0_39 = arith.constant 0 : index
    %c0_40 = arith.constant 0 : index
    %77 = vector.load %arg13[%c2, %c0_39, %c0_40] : memref<4x256x64xbf16, #tpu.memory_space<vmem>>, vector<1x256x64xbf16>
    %78 = vector.shape_cast %77 : vector<1x256x64xbf16> to vector<256x64xbf16>
    %cst_41 = arith.constant dense<0.000000e+00> : vector<128x256xf32>
    %79 = tpu.matmul %76, %78, %cst_41 {dimension_numbers = #tpu.dot_dimension_numbers<[1], [1], [0], [0], [0, 0, 1, 0], [], []>} : vector<128x64xbf16>, vector<256x64xbf16>, vector<128x256xf32> -> vector<128x256xf32>
    %80 = vector.extract_strided_slice %79 {offsets = [0, 0], sizes = [128, 128], strides = [1, 1]} : vector<128x256xf32> to vector<128x128xf32>
    %81 = vector.extract_strided_slice %79 {offsets = [0, 128], sizes = [128, 128], strides = [1, 1]} : vector<128x256xf32> to vector<128x128xf32>
    %c1_i32_42 = arith.constant 1 : i32
    %82 = tpu.dynamic_rotate %81 by %c1_i32_42 dim 1 {stride = 1 : si32, stride_dimension = 0 : si32} : vector<128x128xf32>, i32 -> vector<128x128xf32>
    %cst_43 = arith.constant 0.000000e+00 : f32
    %83 = vector.broadcast %cst_43 : f32 to vector<128x128xf32>
    %84 = arith.select %17, %82, %83 : vector<128x128xi1>, vector<128x128xf32>
    %85 = arith.addf %80, %84 : vector<128x128xf32>
    %cst_44 = arith.constant dense<0xFF800000> : vector<128xf32>
    %86 = vector.multi_reduction <maximumf>, %85, %cst_44 [1] : vector<128x128xf32> to vector<128xf32>
    %87 = vector.shape_cast %86 : vector<128xf32> to vector<128x1xf32>
    %88 = vector.broadcast %87 : vector<128x1xf32> to vector<128x128xf32>
    %89 = arith.subf %85, %88 : vector<128x128xf32>
    %90 = math.exp %89 : vector<128x128xf32>
    %cst_45 = arith.constant dense<0.000000e+00> : vector<128xf32>
    %91 = vector.multi_reduction <add>, %90, %cst_45 [1] : vector<128x128xf32> to vector<128xf32>
    %92 = vector.shape_cast %91 : vector<128xf32> to vector<128x1xf32>
    %93 = tpu.reciprocal %92 {approx = true} : vector<128x1xf32> -> vector<128x1xf32>
    %94 = vector.broadcast %93 : vector<128x1xf32> to vector<128x128xf32>
    %95 = arith.mulf %90, %94 : vector<128x128xf32>
    %96 = arith.truncf %95 : vector<128x128xf32> to vector<128x128xbf16>
    %c0_46 = arith.constant 0 : index
    %c2_47 = arith.constant 2 : index
    %c0_48 = arith.constant 0 : index
    %c0_49 = arith.constant 0 : index
    %97 = vector.load %arg12[%c0_46, %c2_47, %c0_48, %c0_49] : memref<1x4x128x128xbf16, #tpu.memory_space<vmem>>, vector<1x1x128x128xbf16>
    %98 = vector.shape_cast %97 : vector<1x1x128x128xbf16> to vector<128x128xbf16>
    %99 = vector.shape_cast %96 : vector<128x128xbf16> to vector<1x1x128x128xbf16>
    tpu.vector_store %arg12[%c0_46, %c2_47, %c0_48, %c0_49], %99 {strides = array<i32>} : memref<1x4x128x128xbf16, #tpu.memory_space<vmem>>, vector<1x1x128x128xbf16>,
    %100 = arith.truncf %95 : vector<128x128xf32> to vector<128x128xbf16>
    %c2_50 = arith.constant 2 : index
    %c0_51 = arith.constant 0 : index
    %c0_52 = arith.constant 0 : index
    %101 = vector.load %arg14[%c2_50, %c0_51, %c0_52] : memref<4x128x64xbf16, #tpu.memory_space<vmem>>, vector<1x128x64xbf16>
    %102 = vector.shape_cast %101 : vector<1x128x64xbf16> to vector<128x64xbf16>
    %cst_53 = arith.constant dense<0.000000e+00> : vector<128x64xf32>
    %103 = tpu.matmul %100, %102, %cst_53 {dimension_numbers = #tpu.dot_dimension_numbers<[1], [0], [0], [1], [0, 0, 1, 1], [], []>} : vector<128x128xbf16>, vector<128x64xbf16>, vector<128x64xf32> -> vector<128x64xf32>
    %104 = arith.truncf %103 : vector<128x64xf32> to vector<128x64xbf16>
    %105 = vector.extract_strided_slice %12 {offsets = [0, 192], sizes = [128, 64], strides = [1, 1]} : vector<128x256xbf16> to vector<128x64xbf16>
    %c3 = arith.constant 3 : index
    %c0_54 = arith.constant 0 : index
    %c0_55 = arith.constant 0 : index
    %106 = vector.load %arg13[%c3, %c0_54, %c0_55] : memref<4x256x64xbf16, #tpu.memory_space<vmem>>, vector<1x256x64xbf16>
    %107 = vector.shape_cast %106 : vector<1x256x64xbf16> to vector<256x64xbf16>
    %cst_56 = arith.constant dense<0.000000e+00> : vector<128x256xf32>
    %108 = tpu.matmul %105, %107, %cst_56 {dimension_numbers = #tpu.dot_dimension_numbers<[1], [1], [0], [0], [0, 0, 1, 0], [], []>} : vector<128x64xbf16>, vector<256x64xbf16>, vector<128x256xf32> -> vector<128x256xf32>
    %109 = vector.extract_strided_slice %108 {offsets = [0, 0], sizes = [128, 128], strides = [1, 1]} : vector<128x256xf32> to vector<128x128xf32>
    %110 = vector.extract_strided_slice %108 {offsets = [0, 128], sizes = [128, 128], strides = [1, 1]} : vector<128x256xf32> to vector<128x128xf32>
    %c1_i32_57 = arith.constant 1 : i32
    %111 = tpu.dynamic_rotate %110 by %c1_i32_57 dim 1 {stride = 1 : si32, stride_dimension = 0 : si32} : vector<128x128xf32>, i32 -> vector<128x128xf32>
    %cst_58 = arith.constant 0.000000e+00 : f32
    %112 = vector.broadcast %cst_58 : f32 to vector<128x128xf32>
    %113 = arith.select %17, %111, %112 : vector<128x128xi1>, vector<128x128xf32>
    %114 = arith.addf %109, %113 : vector<128x128xf32>
    %cst_59 = arith.constant dense<0xFF800000> : vector<128xf32>
    %115 = vector.multi_reduction <maximumf>, %114, %cst_59 [1] : vector<128x128xf32> to vector<128xf32>
    %116 = vector.shape_cast %115 : vector<128xf32> to vector<128x1xf32>
    %117 = vector.broadcast %116 : vector<128x1xf32> to vector<128x128xf32>
    %118 = arith.subf %114, %117 : vector<128x128xf32>
    %119 = math.exp %118 : vector<128x128xf32>
    %cst_60 = arith.constant dense<0.000000e+00> : vector<128xf32>
    %120 = vector.multi_reduction <add>, %119, %cst_60 [1] : vector<128x128xf32> to vector<128xf32>
    %121 = vector.shape_cast %120 : vector<128xf32> to vector<128x1xf32>
    %122 = tpu.reciprocal %121 {approx = true} : vector<128x1xf32> -> vector<128x1xf32>
    %123 = vector.broadcast %122 : vector<128x1xf32> to vector<128x128xf32>
    %124 = arith.mulf %119, %123 : vector<128x128xf32>
    %125 = arith.truncf %124 : vector<128x128xf32> to vector<128x128xbf16>
    %c0_61 = arith.constant 0 : index
    %c3_62 = arith.constant 3 : index
    %c0_63 = arith.constant 0 : index
    %c0_64 = arith.constant 0 : index
    %126 = vector.load %arg12[%c0_61, %c3_62, %c0_63, %c0_64] : memref<1x4x128x128xbf16, #tpu.memory_space<vmem>>, vector<1x1x128x128xbf16>
    %127 = vector.shape_cast %126 : vector<1x1x128x128xbf16> to vector<128x128xbf16>
    %128 = vector.shape_cast %125 : vector<128x128xbf16> to vector<1x1x128x128xbf16>
    tpu.vector_store %arg12[%c0_61, %c3_62, %c0_63, %c0_64], %128 {strides = array<i32>} : memref<1x4x128x128xbf16, #tpu.memory_space<vmem>>, vector<1x1x128x128xbf16>,
    %129 = arith.truncf %124 : vector<128x128xf32> to vector<128x128xbf16>
    %c3_65 = arith.constant 3 : index
    %c0_66 = arith.constant 0 : index
    %c0_67 = arith.constant 0 : index
    %130 = vector.load %arg14[%c3_65, %c0_66, %c0_67] : memref<4x128x64xbf16, #tpu.memory_space<vmem>>, vector<1x128x64xbf16>
    %131 = vector.shape_cast %130 : vector<1x128x64xbf16> to vector<128x64xbf16>
    %cst_68 = arith.constant dense<0.000000e+00> : vector<128x64xf32>
    %132 = tpu.matmul %129, %131, %cst_68 {dimension_numbers = #tpu.dot_dimension_numbers<[1], [0], [0], [1], [0, 0, 1, 1], [], []>} : vector<128x128xbf16>, vector<128x64xbf16>, vector<128x64xf32> -> vector<128x64xf32>
    %133 = arith.truncf %132 : vector<128x64xf32> to vector<128x64xbf16>
    %134 = tpu.concatenate %46, %75, %104, %133 in 1 : vector<128x64xbf16>, vector<128x64xbf16>, vector<128x64xbf16>, vector<128x64xbf16> -> vector<128x256xbf16>
    %c0_69 = arith.constant 0 : index
    %c0_70 = arith.constant 0 : index
    %135 = vector.load %arg8[%c0_69, %c0_70] : memref<256x256xbf16, #tpu.memory_space<vmem>>, vector<256x256xbf16>
    %cst_71 = arith.constant dense<0.000000e+00> : vector<128x256xf32>
    %136 = tpu.matmul %134, %135, %cst_71 {dimension_numbers = #tpu.dot_dimension_numbers<[1], [0], [0], [1], [0, 0, 1, 1], [], []>} : vector<128x256xbf16>, vector<256x256xbf16>, vector<128x256xf32> -> vector<128x256xf32>
    %c3_72 = arith.constant 3 : index
    %c0_73 = arith.constant 0 : index
    %137 = vector.load %arg9[%c3_72, %c0_73] : memref<4x256xf32, #tpu.memory_space<vmem>>, vector<1x256xf32>
    %138 = vector.broadcast %137 : vector<1x256xf32> to vector<128x256xf32>
    %139 = arith.addf %136, %138 : vector<128x256xf32>
    %c0_74 = arith.constant 0 : index
    %c0_75 = arith.constant 0 : index
    %c0_76 = arith.constant 0 : index
    %140 = vector.load %arg11[%c0_74, %c0_75, %c0_76] : memref<1x128x256xf32, #tpu.memory_space<vmem>>, vector<1x128x256xf32>
    %141 = vector.shape_cast %140 : vector<1x128x256xf32> to vector<128x256xf32>
    %142 = vector.shape_cast %139 : vector<128x256xf32> to vector<1x128x256xf32>
    tpu.vector_store %arg11[%c0_74, %c0_75, %c0_76], %142 {strides = array<i32>} : memref<1x128x256xf32, #tpu.memory_space<vmem>>, vector<1x128x256xf32>,
    return
  }
  func.func @transform_0(%arg0: i32, %arg1: i32) -> (i32, i32, i32) {
    %c0_i32 = arith.constant 0 : i32
    %c0_i32_0 = arith.constant 0 : i32
    return %arg0, %arg1, %c0_i32 : i32, i32, i32
  }
  func.func @transform_1(%arg0: i32, %arg1: i32) -> (i32, i32, i32) {
    %c0_i32 = arith.constant 0 : i32
    %c0_i32_0 = arith.constant 0 : i32
    %c0_i32_1 = arith.constant 0 : i32
    return %arg0, %c0_i32, %c0_i32_0 : i32, i32, i32
  }
  func.func @transform_2(%arg0: i32, %arg1: i32) -> (i32, i32, i32) {
    %c0_i32 = arith.constant 0 : i32
    %c0_i32_0 = arith.constant 0 : i32
    %c0_i32_1 = arith.constant 0 : i32
    return %arg0, %c0_i32, %c0_i32_0 : i32, i32, i32
  }
  func.func @transform_3(%arg0: i32, %arg1: i32) -> (i32, i32) {
    %c0_i32 = arith.constant 0 : i32
    %c0_i32_0 = arith.constant 0 : i32
    %c0_i32_1 = arith.constant 0 : i32
    return %c0_i32, %c0_i32_0 : i32, i32
  }
  func.func @transform_4(%arg0: i32, %arg1: i32) -> (i32, i32) {
    %c0_i32 = arith.constant 0 : i32
    %c0_i32_0 = arith.constant 0 : i32
    %c0_i32_1 = arith.constant 0 : i32
    return %c0_i32, %c0_i32_0 : i32, i32
  }
  func.func @transform_5(%arg0: i32, %arg1: i32) -> (i32, i32) {
    %c0_i32 = arith.constant 0 : i32
    %c0_i32_0 = arith.constant 0 : i32
    %c0_i32_1 = arith.constant 0 : i32
    return %c0_i32, %c0_i32_0 : i32, i32
  }
  func.func @transform_6(%arg0: i32, %arg1: i32) -> (i32, i32) {
    %c0_i32 = arith.constant 0 : i32
    %c0_i32_0 = arith.constant 0 : i32
    %c0_i32_1 = arith.constant 0 : i32
    return %c0_i32, %c0_i32_0 : i32, i32
  }
  func.func @transform_7(%arg0: i32, %arg1: i32) -> (i32, i32) {
    %c0_i32 = arith.constant 0 : i32
    %c0_i32_0 = arith.constant 0 : i32
    %c0_i32_1 = arith.constant 0 : i32
    return %c0_i32, %c0_i32_0 : i32, i32
  }
  func.func @transform_8(%arg0: i32, %arg1: i32) -> (i32, i32) {
    %c0_i32 = arith.constant 0 : i32
    %c0_i32_0 = arith.constant 0 : i32
    %c0_i32_1 = arith.constant 0 : i32
    return %c0_i32, %c0_i32_0 : i32, i32
  }
  func.func @transform_9(%arg0: i32, %arg1: i32) -> (i32, i32, i32) {
    %c0_i32 = arith.constant 0 : i32
    %c0_i32_0 = arith.constant 0 : i32
    return %arg0, %arg1, %c0_i32 : i32, i32, i32
  }
  func.func @transform_10(%arg0: i32, %arg1: i32) -> (i32, i32, i32, i32) {
    %c0_i32 = arith.constant 0 : i32
    %c0_i32_0 = arith.constant 0 : i32
    %c0_i32_1 = arith.constant 0 : i32
    return %arg0, %c0_i32, %arg1, %c0_i32_0 : i32, i32, i32, i32
  }
}

</mosaic_0001>

<bundles_post_ra>
// kernel: tpu_custom_call.1
= control target key start
LH: loop header
LB: loop body
LE: loop exit
PB: predicated region body
PF: predicated region fallthrough
CT: control target
= control target key end

     0   :  { %s11458_s0 = inlined_call_operand.hbm [shape: bf16[2,128,256], index: 0, kind: input, shape index: {}]   ;;  %s11459_s1 = inlined_call_operand.hbm [shape: bf16[2,128,256], index: 1, kind: input, shape index: {}]   ;;  %s11460_s2 = inlined_call_operand.hbm [shape: bf16[2,128,256], index: 2, kind: input, shape index: {}]   ;;  %s11461_s3 = inlined_call_operand.hbm [shape: bf16[256,256], index: 3, kind: input, shape index: {}]   ;;  %s11462_s4 = inlined_call_operand.hbm [shape: bf16[256,256], index: 4, kind: input, shape index: {}]   ;;  %s11463_s5 = inlined_call_operand.hbm [shape: bf16[256,256], index: 5, kind: input, shape index: {}]   ;;  %s11464_s6 = inlined_call_operand.hbm [shape: bf16[256,256], index: 6, kind: input, shape index: {}]   ;;  %s11465_s7 = inlined_call_operand.vmem [shape: f32[4,256], index: 7, kind: input, shape index: {}]   ;;  %s11466_s8 = inlined_call_operand.vmem [shape: bf16[128,64], index: 8, kind: input, shape index: {}]   ;;  %s11467_s9 = inlined_call_operand.hbm [shape: f32[2,128,256], index: 9, kind: output, shape index: {0}]   ;;  %s11468_s10 = inlined_call_operand.hbm [shape: bf16[2,4,128,128], index: 10, kind: output, shape index: {1}]  }
   0x1   :  { %11513 = sst [smem:[#allocation63_spill]] %s11458_s0 }
   0x2   :  { %11514 = sst [smem:[#allocation64_spill]] %s11459_s1 }
   0x3   :  { %11515 = sst [smem:[#allocation65_spill]] %s11461_s3 }
   0x4   :  { %11516 = sst [smem:[#allocation66_spill]] %s11462_s4 }
   0x5   :  { %11517 = sst [smem:[#allocation67_spill]] %s11463_s5 }
   0x6   :  { %11518 = sst [smem:[#allocation68_spill]] %s11467_s9 }
   0x7   :  { %16 = vsyncpa [#allocation5], 0 }
   0x8   :  { %18 = vsyncpa [#allocation5 + $0x1], 0 }
   0x9   :  { %19 = vsyncpa [#allocation8], 0 }
   0xa   :  { %21 = vsyncpa [#allocation8 + $0x1], 0 }
   0xb   :  { %22 = vsyncpa [#allocation11], 0 }
   0xc   :  { %23 = vsyncpa [#allocation14], 0 }
   0xd   :  { %24 = vsyncpa [#allocation6], 0 }
   0xe   :  { %26 = vsyncpa [#allocation6 + $0x1], 0 }
   0xf   :  { %27 = vsyncpa [#allocation18], 0 }
  0x10   :  { %29 = vsyncpa [#allocation18 + $0x1], 0  ;;  %s9105_s13 = smov 0   ;;  %s9107_s14 = smov 0  }
  0x11   :  { %s9109_s15 = smov 0   ;;  %s9111_s16 = smov 0  }
  0x12   :  { %s9113_s17 = smov 0   ;;  %s9115_s18 = smov 0  }
  0x13 LB: > { %11519 = sst [smem:[#allocation25_spill]] %s9002_s13  ;;  %s9136_s19 = sadd.s32 4294967295, %s9022_s18   ;;  %s9022_s18 = sphi %s9115_s18, %s35_s18   ;;  %s9018_s17 = sphi %s9113_s17, %s11644_s17   ;;  %s9014_s16 = sphi %s9111_s16, %s11643_s16   ;;  %s9010_s15 = sphi %s9109_s15, %s11647_s15   ;;  %s9006_s14 = sphi %s9107_s14, %s11646_s14   ;;  %s9002_s13 = sphi %s9105_s13, %s11645_s13  }
  0x14   : > { %11520 = sst [smem:[#allocation26_spill]] %s9018_s17  ;;  %s6585_s20 = sadd.s32 4294967294, %s9022_s18  }
  0x15   : > { %11521 = sst [smem:[#allocation27_spill]] %s9022_s18  ;;  %p69_p0 = scmp.ne.s32.totalorder %s9006_s14, %s9002_s13 }
  0x16   : > { %p70_p1 = scmp.eq.s32.totalorder %s9136_s19, 0  ;;  %p273_p2 = scmp.eq.s32.totalorder %s9136_s19, 1 }
  0x17   : > { %p279_p3 = scmp.eq.s32.totalorder %s6585_s20, 1  ;;  %p6586_p5 = scmp.ge.s32.totalorder %s9022_s18, 1 }
  0x18   : > { %p9145_p4 = por %p70_p1, %p69_p0  ;;  %p314_p7 = scmp.lt.s32.totalorder %s9022_s18, 3 }
  0x19   : > { %p9150_p6 = por %p279_p3, %p69_p0  ;;  %s11525_s3 = sld [smem:[#allocation65_spill]] }
  0x1a   : > { %p9158_p8 = pnand %p6586_p5, %p314_p7  ;;  %s9024_s27 = smov [#allocation10]  }
  0x1b   : > { %s11523_s22 = scalar_select %p9150_p6, 1, 0 }
  0x1c   : > { %p8316_p9 = pneg %p9158_p8  ;;  %s327_s28 = sshll.u32 %s9024_s27, 4  ;;  %s328_s28 = int_to_ptr.vmem [resolvable:$true] %s327_s28 }
  0x1d   : > { %11524 = sst [smem:[#allocation28_spill]] %s11523_s22  ;;  %s11469_s20 = smov 128  }
  0x1e   : > { %p9166_p10 = pnand %p8316_p9, %p70_p1  ;;  %s11528_s5 = sld [smem:[#allocation67_spill]] }
  0x1f   : > { %s325_s25 = sshll.u32 %s11525_s3, 4  ;;  %s11471_s23 = smov 8   ;;  %s326_s25 = int_to_ptr.hbm [resolvable:$true] %s325_s25 }
  0x20   : > { %8319 = dma.hbm_to_vmem [thread:$0]  (!%p9166_p10), %s326_s25, 4096, %s328_s28, [#allocation11], %s11469_s20, %s11469_s20, %s11471_s23  }
  0x21   : > { %s9027_s24 = smov [#allocation13]   ;;  %s47_s30 = sadd.s32 1, %s9018_s17 }
  0x22   : > { %s355_s27 = sshll.u32 %s9027_s24, 4  ;;  %s56_s11 = sadd.s32 1, %s9010_s15  ;;  %s356_s27 = int_to_ptr.vmem [resolvable:$true] %s355_s27 }
  0x23   : > { %p49_p12 = scmp.ge.s32.totalorder %s47_s30, 2  ;;  %p63_p13 = scmp.ne.s32.totalorder %s9010_s15, %s9006_s14 }
  0x24   : > { %s353_s12 = sshll.u32 %s11528_s5, 4  ;;  %p64_p0 = scmp.eq.s32.totalorder %s9022_s18, 0  ;;  %s354_s12 = int_to_ptr.hbm [resolvable:$true] %s353_s12 }
  0x25   : > { %8325 = dma.hbm_to_vmem [thread:$0]  (!%p9166_p10), %s354_s12, 4096, %s356_s27, [#allocation14], %s11469_s20, %s11469_s20, %s11471_s23  }
  0x26   : > { %p8350_p3 = scmp.lt.s32.totalorder %s9022_s18, 2  ;;  %s11649_s30 = smov (%p49_p12, %s47_s30), 0 }
  0x27   : > { %11529 = sst [smem:[#allocation29_spill]] %s11649_s30  ;;  %p65_p5 = por %p64_p0, %p63_p13 }
  0x28   : > { %p9194_p7 = por %p273_p2, %p63_p13  ;;  %s51_s28 = ssub.s32 %s9018_s17, %s11649_s30 }
  0x29   : > { %s11475_s24 = sand.u32 1, %s9010_s15   ;;  %p54_p9 = scmp.eq.s32.totalorder %s51_s28, 0 }
  0x2a   : > { %s11530_s25 = scalar_select %p9194_p7, 1, 0 }
  0x2b   : > { %s9203_s12 = sshll.u32 %s11475_s24, 7  ;;  %s9206_s27 = sshll.u32 %s9018_s17, 7 }
  0x2c   : > { %11531 = sst [smem:[#allocation30_spill]] %s11530_s25  ;;  %p9208_p11 = pnand %p8350_p3, %p65_p5 }
  0x2d   : > { %s9213_s23 = scalar_select %p54_p9, %s9010_s15, %s56_s11  }
  0x2e   : > { %s414_s3 = sand.u32 1, %s9022_s18   ;;  %s11534_s1 = sld [smem:[#allocation64_spill]] }
  0x2f   : > { %11533 = sst [smem:[#allocation31_spill]] %s9213_s23  ;;  %s418_s30 = scalar_lea.vmem [#allocation7], %s9203_s12 }
  0x30   : > { %s426_s24 = sshll.u32 %s418_s30, 4  ;;  %s11535_s4 = sld [smem:[#allocation66_spill]]  ;;  %s427_s24 = int_to_ptr.vmem [resolvable:$true] %s426_s24 }
  0x31   : > { %s9224_s11 = scalar_lea.sflag [#allocation8], %s414_s3  ;;  %s11536_s23 = smov 8  }
  0x32   : > { %s11537_s18 = smov 128   ;;  %s9028_s5 = smov [#allocation12]  }
  0x33   : > { %s341_s22 = sshll.u32 %s9028_s5, 4  ;;  %s9029_s3 = smov [#allocation15]   ;;  %s342_s22 = int_to_ptr.vmem [resolvable:$true] %s341_s22 }
  0x34   : > { %s423_s28 = scalar_lea.hbm %s11534_s1, %s9206_s27  ;;  %s367_s1 = sshll.u32 %s11464_s6, 4  ;;  %s368_s1 = int_to_ptr.hbm [resolvable:$true] %s367_s1 }
  0x35   : > { %s424_s13 = sshll.u32 %s423_s28, 4  ;;  %s369_s9 = sshll.u32 %s9029_s3, 4  ;;  %s425_s13 = int_to_ptr.hbm [resolvable:$true] %s424_s13  ;;  %s370_s9 = int_to_ptr.vmem [resolvable:$true] %s369_s9 }
  0x36   : > { %s339_s25 = sshll.u32 %s11535_s4, 4  ;;  %s11538_s0 = sld [smem:[#allocation63_spill]]  ;;  %s340_s25 = int_to_ptr.hbm [resolvable:$true] %s339_s25 }
  0x37   : > { %8335 = dma.hbm_to_vmem [thread:$0]  (!%p9208_p11), %s425_s13, 2048, %s427_s24, %s9224_s11, %s11537_s18, %s11537_s18, %s11536_s23  }
  0x38   : > { %8322 = dma.hbm_to_vmem [thread:$0]  (!%p9166_p10), %s340_s25, 4096, %s342_s22, [#allocation11], %s11537_s18, %s11537_s18, %s11536_s23  }
  0x39   : > { %8328 = dma.hbm_to_vmem [thread:$0]  (!%p9166_p10), %s368_s1, 4096, %s370_s9, [#allocation14], %s11537_s18, %s11537_s18, %s11536_s23  }
  0x3a   : > { %s393_s30 = scalar_lea.vmem [#allocation4], %s9203_s12  ;;  %s11539_s25 = sand.u32 1, %s9010_s15  }
  0x3b   : > { %s404_s28 = sshll.u32 %s393_s30, 4  ;;  %s390_s22 = scalar_lea.sflag [#allocation5], %s11539_s25  ;;  %s405_s28 = int_to_ptr.vmem [resolvable:$true] %s404_s28 }
  0x3c   : > { %s401_s24 = scalar_lea.hbm %s11538_s0, %s9206_s27  ;;  %s445_s29 = scalar_lea.hbm %s11460_s2, %s9206_s27 }
  0x3d   : > { %s402_s5 = sshll.u32 %s401_s24, 4  ;;  %s446_s17 = sshll.u32 %s445_s29, 4  ;;  %s403_s5 = int_to_ptr.hbm [resolvable:$true] %s402_s5  ;;  %s447_s17 = int_to_ptr.hbm [resolvable:$true] %s446_s17 }
  0x3e   : > { %8332 = dma.hbm_to_vmem [thread:$0]  (!%p9208_p11), %s403_s5, 2048, %s405_s28, %s390_s22, %s11537_s18, %s11537_s18, %s11536_s23  }
  0x3f   : > { %s440_s0 = scalar_lea.vmem [#allocation9], %s9203_s12  ;;  %460 = sbr.rel (%p9158_p8) target bundleno = 2705 (0xa91), region = 56 }
  0x40   : > { %s448_s4 = sshll.u32 %s440_s0, 4  ;;  %s449_s4 = int_to_ptr.vmem [resolvable:$true] %s448_s4 }
  0x41   : > { %8338 = dma.hbm_to_vmem [thread:$0]  (!%p9208_p11), %s447_s17, 2048, %s449_s4, %s9224_s11, %s11537_s18, %s11537_s18, %s11536_s23  }
  0x44   : > { %s9271_s1 = sand.u32 1, %s9006_s14  }
  0x45   : > { %s6602_s27 = sshll.u32 %s9271_s1, 7  ;;  %s463_s9 = scalar_lea.sflag [#allocation5], %s9271_s1 }
  0x46   : > { %s9275_s12 = scalar_lea.vmem [#allocation4], %s6602_s27 }
  0x47   : > { %8977 = dma.done.wait (%p9145_p4), %s463_s9, 2048  }
  0x48   : > { %8979 = vsyncadd (%p9145_p4), %s463_s9, 4294965248  ;;  %s472_s0 = sand.u32 1, %s9136_s19   ;;  %s9282_s18 = scalar_lea.vmem [#allocation7], %s6602_s27 }
  0x49   : > { %s473_s4 = scalar_lea.sflag [#allocation8], %s472_s0 }
  0x4a   : > { %8981 = dma.done.wait (%p9145_p4), %s473_s4, 4096  }
  0x4b   : > { %8983 = vsyncadd (%p9145_p4), %s473_s4, 4294963200  ;;  %s9288_s26 = scalar_lea.vmem [#allocation9], %s6602_s27 }
  0x4c   : > { %8985 = dma.done.wait (%p70_p1), [#allocation11], 8192  }
  0x4d   : > { %8987 = vsyncadd (%p70_p1), [#allocation11], 4294959104 }
  0x4e   : > { %8989 = dma.done.wait (%p70_p1), [#allocation14], 8192  }
  0x4f   : > { %8991 = vsyncadd (%p70_p1), [#allocation14], 4294959104  ;;  %v6734_v0 = vld [vmem:[#allocation12 + $0x70] sm:$0xf]  ;;  %v7856_v1 = vld [vmem:[#allocation12 + $0x74] sm:$0xf0] }
  0x50   : > { %v6798_v2 = vld [vmem:[#allocation12 + $0xf0] sm:$0xf]  ;;  %v6735_v3 = vor.u32 %v7856_v1, %v6734_v0  ;;  %v7872_v4 = vld [vmem:[#allocation12 + $0xf4] sm:$0xf0]  ;;  %v7855_v5 = vld [vmem:[#allocation12 + $0x74] sm:$0xf] }
  0x51   : > { %v6736_v6 = vld [vmem:[#allocation12 + $0x78] sm:$0xf0]  ;;  %v6799_v7 = vor.u32 %v7872_v4, %v6798_v2  ;;  %v7871_v9 = vld [vmem:[#allocation12 + $0xf4] sm:$0xf]  ;;  %v6726_v11 = vld [vmem:[#allocation12 + $0x60] sm:$0xf] }
  0x52   : > { %v6739_v8 = vor.u32 %v7855_v5, %v6736_v6  ;;  %v6800_v10 = vld [vmem:[#allocation12 + $0xf8] sm:$0xf0]  ;;  %861 = vmatpush.bf16.msra.mxu0 %v6735_v3  ;;  %v7854_v13 = vld [vmem:[#allocation12 + $0x64] sm:$0xf0]  ;;  %v6790_v14 = vld [vmem:[#allocation12 + $0xe0] sm:$0xf] }
  0x53   : > { %v6803_v12 = vor.u32 %v7871_v9, %v6800_v10  ;;  %v7870_v15 = vld [vmem:[#allocation12 + $0xe4] sm:$0xf0]  ;;  %910 = vmatpush.bf16.msra.mxu1 %v6799_v7  ;;  %v6727_v16 = vor.u32 %v7854_v13, %v6726_v11  ;;  %v7853_v18 = vld [vmem:[#allocation12 + $0x64] sm:$0xf]  ;;  %v6728_v19 = vld [vmem:[#allocation12 + $0x68] sm:$0xf0] }
  0x54   : > { %959 = vmatpush.bf16.msra.mxu2 %v6739_v8  ;;  %v6791_v17 = vor.u32 %v7870_v15, %v6790_v14  ;;  %v7869_v20 = vld [vmem:[#allocation12 + $0xe4] sm:$0xf]  ;;  %v6731_v21 = vor.u32 %v7853_v18, %v6728_v19  ;;  %v6792_v22 = vld [vmem:[#allocation12 + $0xe8] sm:$0xf0]  ;;  %v6718_v23 = vld [vmem:[#allocation12 + $0x50] sm:$0xf] }
  0x55   : > { %1008 = vmatpush.bf16.msra.mxu3 %v6803_v12  ;;  %v7852_v24 = vld [vmem:[#allocation12 + $0x54] sm:$0xf0]  ;;  %v6795_v25 = vor.u32 %v7869_v20, %v6792_v22  ;;  %v6782_v26 = vld [vmem:[#allocation12 + $0xd0] sm:$0xf]  ;;  %v7851_v28 = vld [vmem:[#allocation12 + $0x54] sm:$0xf] }
  0x56   : > { %v7868_v27 = vld [vmem:[#allocation12 + $0xd4] sm:$0xf0]  ;;  %862 = vmatpush.bf16.msra.mxu0 %v6727_v16  ;;  %v6719_v29 = vor.u32 %v7852_v24, %v6718_v23  ;;  %v6720_v30 = vld [vmem:[#allocation12 + $0x58] sm:$0xf0]  ;;  %v7867_v31 = vld [vmem:[#allocation12 + $0xd4] sm:$0xf] }
  0x57   : > { %v6784_v32 = vld [vmem:[#allocation12 + $0xd8] sm:$0xf0]  ;;  %911 = vmatpush.bf16.msra.mxu1 %v6791_v17  ;;  %v6783_v33 = vor.u32 %v7868_v27, %v6782_v26  ;;  %v6723_v34 = vor.u32 %v7851_v28, %v6720_v30  ;;  %v6710_v35 = vld [vmem:[#allocation12 + $0x40] sm:$0xf]  ;;  %v7850_v36 = vld [vmem:[#allocation12 + $0x44] sm:$0xf0] }
  0x58   : > { %960 = vmatpush.bf16.msra.mxu2 %v6731_v21  ;;  %v6774_v37 = vld [vmem:[#allocation12 + $0xc0] sm:$0xf]  ;;  %v6787_v38 = vor.u32 %v7867_v31, %v6784_v32  ;;  %v7866_v39 = vld [vmem:[#allocation12 + $0xc4] sm:$0xf0]  ;;  %v7849_v40 = vld [vmem:[#allocation12 + $0x44] sm:$0xf]  ;;  %v6711_v44 = vor.u32 %v7850_v36, %v6710_v35 }
  0x59   : > { %1009 = vmatpush.bf16.msra.mxu3 %v6795_v25  ;;  %v6712_v41 = vld [vmem:[#allocation12 + $0x48] sm:$0xf0]  ;;  %v7865_v42 = vld [vmem:[#allocation12 + $0xc4] sm:$0xf]  ;;  %v6775_v45 = vor.u32 %v7866_v39, %v6774_v37  ;;  %v6702_v47 = vld [vmem:[#allocation12 + $0x30] sm:$0xf] }
  0x5a   : > { %v6776_v43 = vld [vmem:[#allocation12 + $0xc8] sm:$0xf0]  ;;  %863 = vmatpush.bf16.msra.mxu0 %v6719_v29  ;;  %v6715_v46 = vor.u32 %v7849_v40, %v6712_v41  ;;  %v7848_v48 = vld [vmem:[#allocation12 + $0x34] sm:$0xf0]  ;;  %v6766_v49 = vld [vmem:[#allocation12 + $0xb0] sm:$0xf] }
  0x5b   : > { %912 = vmatpush.bf16.msra.mxu1 %v6783_v33  ;;  %v6779_v50 = vor.u32 %v7865_v42, %v6776_v43  ;;  %v7864_v51 = vld [vmem:[#allocation12 + $0xb4] sm:$0xf0]  ;;  %v7847_v52 = vld [vmem:[#allocation12 + $0x34] sm:$0xf]  ;;  %v6704_v53 = vld [vmem:[#allocation12 + $0x38] sm:$0xf0]  ;;  %v6703_v56 = vor.u32 %v7848_v48, %v6702_v47 }
  0x5c   : > { %961 = vmatpush.bf16.msra.mxu2 %v6723_v34  ;;  %v7863_v54 = vld [vmem:[#allocation12 + $0xb4] sm:$0xf]  ;;  %v6768_v55 = vld [vmem:[#allocation12 + $0xb8] sm:$0xf0]  ;;  %v6767_v57 = vor.u32 %v7864_v51, %v6766_v49  ;;  %v6707_v58 = vor.u32 %v7847_v52, %v6704_v53  ;;  %v6694_v59 = vld [vmem:[#allocation12 + $0x20] sm:$0xf] }
  0x5d   : > { %1010 = vmatpush.bf16.msra.mxu3 %v6787_v38  ;;  %v7846_v60 = vld [vmem:[#allocation12 + $0x24] sm:$0xf0]  ;;  %v6758_v61 = vld [vmem:[#allocation12 + $0xa0] sm:$0xf]  ;;  %v6771_v62 = vor.u32 %v7863_v54, %v6768_v55  ;;  %v7845_v0 = vld [vmem:[#allocation12 + $0x24] sm:$0xf] }
  0x5e   : > { %864 = vmatpush.bf16.msra.mxu0 %v6711_v44  ;;  %v7862_v63 = vld [vmem:[#allocation12 + $0xa4] sm:$0xf0]  ;;  %v6696_v1 = vld [vmem:[#allocation12 + $0x28] sm:$0xf0]  ;;  %v7861_v2 = vld [vmem:[#allocation12 + $0xa4] sm:$0xf]  ;;  %v6695_v4 = vor.u32 %v7846_v60, %v6694_v59 }
  0x5f   : > { %913 = vmatpush.bf16.msra.mxu1 %v6775_v45  ;;  %v6760_v3 = vld [vmem:[#allocation12 + $0xa8] sm:$0xf0]  ;;  %v6759_v5 = vor.u32 %v7862_v63, %v6758_v61  ;;  %v6699_v6 = vor.u32 %v7845_v0, %v6696_v1  ;;  %v6686_v7 = vld [vmem:[#allocation12 + $0x10] sm:$0xf]  ;;  %v7844_v8 = vld [vmem:[#allocation12 + $0x14] sm:$0xf0] }
  0x60   : > { %962 = vmatpush.bf16.msra.mxu2 %v6715_v46  ;;  %v6750_v9 = vld [vmem:[#allocation12 + $0x90] sm:$0xf]  ;;  %v6763_v10 = vor.u32 %v7861_v2, %v6760_v3  ;;  %v7860_v11 = vld [vmem:[#allocation12 + $0x94] sm:$0xf0]  ;;  %v7843_v12 = vld [vmem:[#allocation12 + $0x14] sm:$0xf]  ;;  %v6687_v16 = vor.u32 %v7844_v8, %v6686_v7 }
  0x61   : > { %1011 = vmatpush.bf16.msra.mxu3 %v6779_v50  ;;  %v6688_v13 = vld [vmem:[#allocation12 + $0x18] sm:$0xf0]  ;;  %v7859_v14 = vld [vmem:[#allocation12 + $0x94] sm:$0xf]  ;;  %v6678_v17 = vld [vmem:[#allocation12] sm:$0xf]  ;;  %v6751_v19 = vor.u32 %v7860_v11, %v6750_v9 }
  0x62   : > { %865 = vmatpush.bf16.msra.mxu0 %v6703_v56  ;;  %v6752_v15 = vld [vmem:[#allocation12 + $0x98] sm:$0xf0]  ;;  %v7842_v18 = vld [vmem:[#allocation12 + $0x4] sm:$0xf0]  ;;  %v6691_v20 = vor.u32 %v7843_v12, %v6688_v13  ;;  %v6742_v21 = vld [vmem:[#allocation12 + $0x80] sm:$0xf] }
  0x63   : > { %914 = vmatpush.bf16.msra.mxu1 %v6767_v57  ;;  %v7858_v22 = vld [vmem:[#allocation12 + $0x84] sm:$0xf0]  ;;  %v7841_v23 = vld [vmem:[#allocation12 + $0x4] sm:$0xf]  ;;  %v6755_v24 = vor.u32 %v7859_v14, %v6752_v15  ;;  %v6680_v25 = vld [vmem:[#allocation12 + $0x8] sm:$0xf0]  ;;  %v6679_v31 = vor.u32 %v7842_v18, %v6678_v17 }
  0x64   : > { %963 = vmatpush.bf16.msra.mxu2 %v6707_v58  ;;  %v7857_v26 = vld [vmem:[#allocation12 + $0x84] sm:$0xf]  ;;  %v6744_v27 = vld [vmem:[#allocation12 + $0x88] sm:$0xf0]  ;;  %v6614_v28 = vld [vmem:[%s9282_s18] sm:$0xf]  ;;  %v6743_v35 = vor.u32 %v7858_v22, %v6742_v21  ;;  %v6683_v36 = vor.u32 %v7841_v23, %v6680_v25 }
  0x65   : > { %1012 = vmatpush.bf16.msra.mxu3 %v6771_v62  ;;  %v7903_v29 = vld [vmem:[#allocation13 + $0x74] sm:$0xf]  ;;  %v6929_v30 = vld [vmem:[#allocation13 + $0x78] sm:$0xf0]  ;;  %v7826_v32 = vld [vmem:[%s9282_s18 + $0x4] sm:$0xf0]  ;;  %v6747_v39 = vor.u32 %v7857_v26, %v6744_v27 }
  0x66   : > { %866 = vmatpush.bf16.msra.mxu0 %v6695_v4  ;;  %v7919_v33 = vld [vmem:[#allocation13 + $0xf4] sm:$0xf]  ;;  %v6993_v34 = vld [vmem:[#allocation13 + $0xf8] sm:$0xf0]  ;;  %v7825_v37 = vld [vmem:[%s9282_s18 + $0x4] sm:$0xf]  ;;  %v6932_v40 = vor.u32 %v7903_v29, %v6929_v30  ;;  %v6615_v44 = vor.u32 %v7826_v32, %v6614_v28 }
  0x67   : > { %915 = vmatpush.bf16.msra.mxu1 %v6759_v5  ;;  %v6616_v38 = vld [vmem:[%s9282_s18 + $0x8] sm:$0xf0]  ;;  %v6927_v41 = vld [vmem:[#allocation13 + $0x70] sm:$0xf]  ;;  %v7904_v42 = vld [vmem:[#allocation13 + $0x74] sm:$0xf0]  ;;  %v6996_v45 = vor.u32 %v7919_v33, %v6993_v34 }
  0x68   : > { %964 = vmatpush.bf16.msra.mxu2 %v6699_v6  ;;  %v6991_v43 = vld [vmem:[#allocation13 + $0xf0] sm:$0xf]  ;;  %v7920_v46 = vld [vmem:[#allocation13 + $0xf4] sm:$0xf0]  ;;  %v7901_v47 = vld [vmem:[#allocation13 + $0x64] sm:$0xf]  ;;  %v6619_v49 = vor.u32 %v7825_v37, %v6616_v38  ;;  %v6928_v52 = vor.u32 %v7904_v42, %v6927_v41 }
  0x69   : > { %1013 = vmatpush.bf16.msra.mxu3 %v6763_v10  ;;  %v6921_v48 = vld [vmem:[#allocation13 + $0x68] sm:$0xf0]  ;;  %v7917_v50 = vld [vmem:[#allocation13 + $0xe4] sm:$0xf]  ;;  %v6992_v53 = vor.u32 %v7920_v46, %v6991_v43  ;;  %v6919_v55 = vld [vmem:[#allocation13 + $0x60] sm:$0xf] }
  0x6a   : > { %867 = vmatpush.bf16.msra.mxu0 %v6687_v16  ;;  %v6985_v51 = vld [vmem:[#allocation13 + $0xe8] sm:$0xf0]  ;;  %v6924_v54 = vor.u32 %v7901_v47, %v6921_v48  ;;  %v7902_v56 = vld [vmem:[#allocation13 + $0x64] sm:$0xf0]  ;;  %v6983_v58 = vld [vmem:[#allocation13 + $0xe0] sm:$0xf] }
  0x6b   : > { %916 = vmatpush.bf16.msra.mxu1 %v6751_v19  ;;  %v6988_v57 = vor.u32 %v7917_v50, %v6985_v51  ;;  %v7918_v59 = vld [vmem:[#allocation13 + $0xe4] sm:$0xf0]  ;;  %v6920_v60 = vor.u32 %v7902_v56, %v6919_v55  ;;  %v7899_v61 = vld [vmem:[#allocation13 + $0x54] sm:$0xf]  ;;  %v6913_v62 = vld [vmem:[#allocation13 + $0x58] sm:$0xf0] }
  0x6c   : > { %965 = vmatpush.bf16.msra.mxu2 %v6691_v20  ;;  %v7915_v63 = vld [vmem:[#allocation13 + $0xd4] sm:$0xf]  ;;  %v6984_v0 = vor.u32 %v7918_v59, %v6983_v58  ;;  %v6916_v1 = vor.u32 %v7899_v61, %v6913_v62  ;;  %v6977_v2 = vld [vmem:[#allocation13 + $0xd8] sm:$0xf0]  ;;  %v6911_v3 = vld [vmem:[#allocation13 + $0x50] sm:$0xf] }
  0x6d   : > { %1014 = vmatpush.bf16.msra.mxu3 %v6755_v24  ;;  %v7900_v4 = vld [vmem:[#allocation13 + $0x54] sm:$0xf0]  ;;  %v6980_v5 = vor.u32 %v7915_v63, %v6977_v2  ;;  %v6975_v6 = vld [vmem:[#allocation13 + $0xd0] sm:$0xf]  ;;  %v7827_v12 = vld [vmem:[%s9282_s18 + $0x14] sm:$0xf] }
  0x6e   : > { %868 = vmatpush.bf16.msra.mxu0 %v6679_v31  ;;  %v7916_v7 = vld [vmem:[#allocation13 + $0xd4] sm:$0xf0]  ;;  %v6912_v8 = vor.u32 %v7900_v4, %v6911_v3  ;;  %v6622_v10 = vld [vmem:[%s9282_s18 + $0x10] sm:$0xf]  ;;  %v6624_v13 = vld [vmem:[%s9282_s18 + $0x18] sm:$0xf0] }
  0x6f   : > { %917 = vmatpush.bf16.msra.mxu1 %v6743_v35  ;;  %v6976_v9 = vor.u32 %v7916_v7, %v6975_v6  ;;  %v7828_v11 = vld [vmem:[%s9282_s18 + $0x14] sm:$0xf0]  ;;  %v6627_v15 = vor.u32 %v7827_v12, %v6624_v13  ;;  %v7897_v16 = vld [vmem:[#allocation13 + $0x44] sm:$0xf]  ;;  %v6905_v17 = vld [vmem:[#allocation13 + $0x48] sm:$0xf0] }
  0x70   : > { %966 = vmatpush.bf16.msra.mxu2 %v6683_v36  ;;  %v6623_v14 = vor.u32 %v7828_v11, %v6622_v10  ;;  %v7913_v18 = vld [vmem:[#allocation13 + $0xc4] sm:$0xf]  ;;  %v6908_v19 = vor.u32 %v7897_v16, %v6905_v17  ;;  %v6969_v20 = vld [vmem:[#allocation13 + $0xc8] sm:$0xf0]  ;;  %v6903_v21 = vld [vmem:[#allocation13 + $0x40] sm:$0xf] }
  0x71   : > { %1015 = vmatpush.bf16.msra.mxu3 %v6747_v39  ;;  %869 = vmatmul.bf16.vlgmr.msra.gmra.mxu0 %v6615_v44  ;;  %v7898_v22 = vld [vmem:[#allocation13 + $0x44] sm:$0xf0]  ;;  %v6972_v23 = vor.u32 %v7913_v18, %v6969_v20  ;;  %v6967_v25 = vld [vmem:[#allocation13 + $0xc0] sm:$0xf]  ;;  %v7829_v30 = vld [vmem:[%s9282_s18 + $0x24] sm:$0xf] }
  0x72   : > { %918 = vmatmul.bf16.vlgmr.msra.gmra.mxu1 %v6619_v49  ;;  %1368 = vmatpush.bf16.msrb.mxu0 %v6928_v52  ;;  %v6904_v24 = vor.u32 %v7898_v22, %v6903_v21  ;;  %v7914_v26 = vld [vmem:[#allocation13 + $0xc4] sm:$0xf0]  ;;  %v6630_v28 = vld [vmem:[%s9282_s18 + $0x20] sm:$0xf]  ;;  %v6632_v31 = vld [vmem:[%s9282_s18 + $0x28] sm:$0xf0] }
  0x73   : > { %967 = vmatmul.bf16.vlgmr.msra.gmra.mxu2 %v6615_v44  ;;  %1417 = vmatpush.bf16.msrb.mxu1 %v6992_v53  ;;  %v6968_v27 = vor.u32 %v7914_v26, %v6967_v25  ;;  %v7830_v29 = vld [vmem:[%s9282_s18 + $0x24] sm:$0xf0]  ;;  %v6635_v33 = vor.u32 %v7829_v30, %v6632_v31  ;;  %v7895_v34 = vld [vmem:[#allocation13 + $0x34] sm:$0xf]  ;;  %v6897_v35 = vld [vmem:[#allocation13 + $0x38] sm:$0xf0] }
  0x74   : > { %1466 = vmatpush.bf16.msrb.mxu2 %v6932_v40  ;;  %1016 = vmatmul.bf16.vlgmr.msra.gmra.mxu3 %v6619_v49  ;;  %v6631_v32 = vor.u32 %v7830_v29, %v6630_v28  ;;  %v7911_v36 = vld [vmem:[#allocation13 + $0xb4] sm:$0xf]  ;;  %v6900_v37 = vor.u32 %v7895_v34, %v6897_v35  ;;  %v6961_v38 = vld [vmem:[#allocation13 + $0xb8] sm:$0xf0]  ;;  %v6895_v39 = vld [vmem:[#allocation13 + $0x30] sm:$0xf] }
  0x75   : > { %1515 = vmatpush.bf16.msrb.mxu3 %v6996_v45  ;;  %v7896_v40 = vld [vmem:[#allocation13 + $0x34] sm:$0xf0]  ;;  %v6964_v41 = vor.u32 %v7911_v36, %v6961_v38  ;;  %v6959_v43 = vld [vmem:[#allocation13 + $0xb0] sm:$0xf]  ;;  %v7831_v48 = vld [vmem:[%s9282_s18 + $0x34] sm:$0xf] }
  0x76   : > { %1369 = vmatpush.bf16.msrb.mxu0 %v6920_v60  ;;  %v6896_v42 = vor.u32 %v7896_v40, %v6895_v39  ;;  %v7912_v44 = vld [vmem:[#allocation13 + $0xb4] sm:$0xf0]  ;;  %v6638_v46 = vld [vmem:[%s9282_s18 + $0x30] sm:$0xf]  ;;  %v6640_v49 = vld [vmem:[%s9282_s18 + $0x38] sm:$0xf0] }
  0x77   : > { %1418 = vmatpush.bf16.msrb.mxu1 %v6984_v0  ;;  %v6960_v45 = vor.u32 %v7912_v44, %v6959_v43  ;;  %v7832_v47 = vld [vmem:[%s9282_s18 + $0x34] sm:$0xf0]  ;;  %v6643_v51 = vor.u32 %v7831_v48, %v6640_v49  ;;  %v7893_v52 = vld [vmem:[#allocation13 + $0x24] sm:$0xf]  ;;  %v6889_v53 = vld [vmem:[#allocation13 + $0x28] sm:$0xf0] }
  0x78   : > { %1467 = vmatpush.bf16.msrb.mxu2 %v6924_v54  ;;  %v6639_v50 = vor.u32 %v7832_v47, %v6638_v46  ;;  %v7909_v54 = vld [vmem:[#allocation13 + $0xa4] sm:$0xf]  ;;  %v6892_v55 = vor.u32 %v7893_v52, %v6889_v53  ;;  %v6953_v56 = vld [vmem:[#allocation13 + $0xa8] sm:$0xf0]  ;;  %v7894_v58 = vld [vmem:[#allocation13 + $0x24] sm:$0xf0] }
  0x79   : > { %1516 = vmatpush.bf16.msrb.mxu3 %v6988_v57  ;;  %v6887_v57 = vld [vmem:[#allocation13 + $0x20] sm:$0xf]  ;;  %v6956_v59 = vor.u32 %v7909_v54, %v6953_v56  ;;  %v7910_v62 = vld [vmem:[#allocation13 + $0xa4] sm:$0xf0]  ;;  %v7833_v2 = vld [vmem:[%s9282_s18 + $0x44] sm:$0xf] }
  0x7a   : > { %1370 = vmatpush.bf16.msrb.mxu0 %v6912_v8  ;;  %v6888_v60 = vor.u32 %v7894_v58, %v6887_v57  ;;  %v6951_v61 = vld [vmem:[#allocation13 + $0xa0] sm:$0xf]  ;;  %v6648_v3 = vld [vmem:[%s9282_s18 + $0x48] sm:$0xf0]  ;;  %v7891_v6 = vld [vmem:[#allocation13 + $0x14] sm:$0xf] }
  0x7b   : > { %1419 = vmatpush.bf16.msrb.mxu1 %v6976_v9  ;;  %v6952_v63 = vor.u32 %v7910_v62, %v6951_v61  ;;  %v6646_v0 = vld [vmem:[%s9282_s18 + $0x40] sm:$0xf]  ;;  %v6881_v7 = vld [vmem:[#allocation13 + $0x18] sm:$0xf0]  ;;  %v7907_v8 = vld [vmem:[#allocation13 + $0x94] sm:$0xf] }
  0x7c   : > { %1468 = vmatpush.bf16.msrb.mxu2 %v6916_v1  ;;  %v7834_v1 = vld [vmem:[%s9282_s18 + $0x44] sm:$0xf0]  ;;  %v6884_v9 = vor.u32 %v7891_v6, %v6881_v7  ;;  %v6945_v10 = vld [vmem:[#allocation13 + $0x98] sm:$0xf0]  ;;  %v6879_v11 = vld [vmem:[#allocation13 + $0x10] sm:$0xf] }
  0x7d   : > { %1517 = vmatpush.bf16.msrb.mxu3 %v6980_v5  ;;  %v6647_v4 = vor.u32 %v7834_v1, %v6646_v0  ;;  %v6651_v5 = vor.u32 %v7833_v2, %v6648_v3  ;;  %v7892_v12 = vld [vmem:[#allocation13 + $0x14] sm:$0xf0]  ;;  %v6948_v13 = vor.u32 %v7907_v8, %v6945_v10  ;;  %v6654_v18 = vld [vmem:[%s9282_s18 + $0x50] sm:$0xf]  ;;  %v7835_v20 = vld [vmem:[%s9282_s18 + $0x54] sm:$0xf] }
  0x7e   : > { %1371 = vmatpush.bf16.msrb.mxu0 %v6904_v24  ;;  %v7908_v16 = vld [vmem:[#allocation13 + $0x94] sm:$0xf0]  ;;  %v6656_v21 = vld [vmem:[%s9282_s18 + $0x58] sm:$0xf0]  ;;  %v7889_v24 = vld [vmem:[#allocation13 + $0x4] sm:$0xf] }
  0x7f   : > { %1420 = vmatpush.bf16.msrb.mxu1 %v6968_v27  ;;  %v6873_v25 = vld [vmem:[#allocation13 + $0x8] sm:$0xf0]  ;;  %v7905_v26 = vld [vmem:[#allocation13 + $0x84] sm:$0xf]  ;;  %v6871_v29 = vld [vmem:[#allocation13] sm:$0xf] }
  0x80   : > { %1469 = vmatpush.bf16.msrb.mxu2 %v6908_v19  ;;  %v7836_v19 = vld [vmem:[%s9282_s18 + $0x54] sm:$0xf0]  ;;  %v6876_v27 = vor.u32 %v7889_v24, %v6873_v25  ;;  %v6937_v28 = vld [vmem:[#allocation13 + $0x88] sm:$0xf0]  ;;  %v7890_v30 = vld [vmem:[#allocation13 + $0x4] sm:$0xf0] }
  0x81   : > { %874 = vmatmul.bf16.gmra.mxu0 %v6623_v14  ;;  %1518 = vmatpush.bf16.msrb.mxu3 %v6972_v23  ;;  %v6655_v22 = vor.u32 %v7836_v19, %v6654_v18  ;;  %v6659_v23 = vor.u32 %v7835_v20, %v6656_v21  ;;  %v6940_v31 = vor.u32 %v7905_v26, %v6937_v28  ;;  %v7906_v34 = vld [vmem:[#allocation13 + $0x84] sm:$0xf0]  ;;  %v6662_v36 = vld [vmem:[%s9282_s18 + $0x60] sm:$0xf]  ;;  %v7837_v38 = vld [vmem:[%s9282_s18 + $0x64] sm:$0xf] }
  0x82   : > { %923 = vmatmul.bf16.gmra.mxu1 %v6627_v15  ;;  %1372 = vmatpush.bf16.msrb.mxu0 %v6896_v42  ;;  %v6664_v39 = vld [vmem:[%s9282_s18 + $0x68] sm:$0xf0]  ;;  %v7951_v42 = vld [vmem:[#allocation10 + $0x74] sm:$0xf]  ;;  %v7121_v43 = vld [vmem:[#allocation10 + $0x78] sm:$0xf0] }
  0x83   : > { %972 = vmatmul.bf16.gmra.mxu2 %v6623_v14  ;;  %1421 = vmatpush.bf16.msrb.mxu1 %v6960_v45  ;;  %v6880_v14 = vor.u32 %v7892_v12, %v6879_v11  ;;  %v7967_v44 = vld [vmem:[#allocation10 + $0xf4] sm:$0xf]  ;;  %v7124_v45 = vor.u32 %v7951_v42, %v7121_v43  ;;  %v7185_v46 = vld [vmem:[#allocation10 + $0xf8] sm:$0xf0]  ;;  %v6670_v48 = vld [vmem:[%s9282_s18 + $0x70] sm:$0xf] }
  0x84   : > { %1021 = vmatmul.bf16.gmra.mxu3 %v6627_v15  ;;  %1470 = vmatpush.bf16.msrb.mxu2 %v6900_v37  ;;  %v6943_v15 = vld [vmem:[#allocation13 + $0x90] sm:$0xf]  ;;  %v7838_v37 = vld [vmem:[%s9282_s18 + $0x64] sm:$0xf0]  ;;  %v7188_v47 = vor.u32 %v7967_v44, %v7185_v46  ;;  %v7840_v49 = vld [vmem:[%s9282_s18 + $0x74] sm:$0xf0] }
  0x85   : > { %1519 = vmatpush.bf16.msrb.mxu3 %v6964_v41  ;;  %v6944_v17 = vor.u32 %v7908_v16, %v6943_v15  ;;  %v6663_v40 = vor.u32 %v7838_v37, %v6662_v36  ;;  %v6667_v41 = vor.u32 %v7837_v38, %v6664_v39  ;;  %v6671_v52 = vor.u32 %v7840_v49, %v6670_v48  ;;  %v7119_v54 = vld [vmem:[#allocation10 + $0x70] sm:$0xf]  ;;  %v7968_v58 = vld [vmem:[#allocation10 + $0xf4] sm:$0xf0]  ;;  %v7113_v61 = vld [vmem:[#allocation10 + $0x68] sm:$0xf0] }
  0x86   : > { %1373 = vmatpush.bf16.msrb.mxu0 %v6888_v60  ;;  %v7183_v56 = vld [vmem:[#allocation10 + $0xf0] sm:$0xf]  ;;  %v7949_v60 = vld [vmem:[#allocation10 + $0x64] sm:$0xf]  ;;  %v7177_v0 = vld [vmem:[#allocation10 + $0xe8] sm:$0xf0] }
  0x87   : > { %1422 = vmatpush.bf16.msrb.mxu1 %v6952_v63  ;;  %v7965_v62 = vld [vmem:[#allocation10 + $0xe4] sm:$0xf]  ;;  %v7116_v63 = vor.u32 %v7949_v60, %v7113_v61  ;;  %v6807_v3 = vld [vmem:[%s9288_s26] sm:$0xf]  ;;  %v6809_v6 = vld [vmem:[%s9288_s26 + $0x8] sm:$0xf0] }
  0x88   : > { %1471 = vmatpush.bf16.msrb.mxu2 %v6892_v55  ;;  %v7952_v55 = vld [vmem:[#allocation10 + $0x74] sm:$0xf0]  ;;  %v7180_v1 = vor.u32 %v7965_v62, %v7177_v0  ;;  %v6611_v2 = vld [vmem:[%s11465_s7 + $0x1] ss:$4 sm:$0x3]  ;;  %vm1596_vm0 = vcmask 519168  }
  0x89   : > { %1520 = vmatpush.bf16.msrb.mxu3 %v6956_v59  ;;  %v7120_v57 = vor.u32 %v7952_v55, %v7119_v54  ;;  %v7184_v59 = vor.u32 %v7968_v58, %v7183_v56  ;;  %v9337_v7 = vperm.slane %v6611_v2, 0  ;;  %v7111_v11 = vld [vmem:[#allocation10 + $0x60] sm:$0xf]  ;;  %v7950_v12 = vld [vmem:[#allocation10 + $0x64] sm:$0xf0]  ;;  %v9340_v19 = vperm.slane %v6611_v2, 1 }
  0x8a   : > { %1374 = vmatpush.bf16.msrb.mxu0 %v6880_v14  ;;  %v7112_v15 = vor.u32 %v7950_v12, %v7111_v11  ;;  %v7966_v16 = vld [vmem:[#allocation10 + $0xe4] sm:$0xf0]  ;;  %v7947_v25 = vld [vmem:[#allocation10 + $0x54] sm:$0xf]  ;;  %v7105_v26 = vld [vmem:[#allocation10 + $0x58] sm:$0xf0] }
  0x8b   : > { %1423 = vmatpush.bf16.msrb.mxu1 %v6944_v17  ;;  %v7875_v36 = vld [vmem:[%s9288_s26 + $0x14] sm:$0xf]  ;;  %v6817_v37 = vld [vmem:[%s9288_s26 + $0x18] sm:$0xf0]  ;;  %s9030_s20 = smov 64   ;;  %vm11512_vm1 = vcmask 523264  }
  0x8c   : > { %1472 = vmatpush.bf16.msrb.mxu2 %v6884_v9  ;;  %v7103_v46 = vld [vmem:[#allocation10 + $0x50] sm:$0xf]  ;;  %v7097_v0 = vld [vmem:[#allocation10 + $0x48] sm:$0xf0]  ;;  %v7877_v11 = vld [vmem:[%s9288_s26 + $0x24] sm:$0xf] }
  0x8d   : > { %1521 = vmatpush.bf16.msrb.mxu3 %v6948_v13  ;;  %v7175_v13 = vld [vmem:[#allocation10 + $0xe0] sm:$0xf]  ;;  %v6825_v12 = vld [vmem:[%s9288_s26 + $0x28] sm:$0xf0]  ;;  %s9031_s4 = smov 257   ;;  %s9034_s19 = smov 281  }
  0x8e   : > { %v7176_v17 = vor.u32 %v7966_v16, %v7175_v13  ;;  %s9035_s21 = smov 289   ;;  %s9036_s23 = smov 297  }
  0x8f   : > { %s9037_s11 = smov 305   ;;  %s9038_s24 = smov 313  }
  0x90   : > { %1473 = vmatpush.bf16.msrb.mxu2 %v6876_v27  ;;  %v7963_v27 = vld [vmem:[#allocation10 + $0xd4] sm:$0xf]  ;;  %s9039_s5 = smov 321   ;;  %s9040_s30 = smov 329  }
  0x91   : > { %879 = vmatmul.bf16.gmra.mxu0 %v6631_v32  ;;  %1522 = vmatpush.bf16.msrb.mxu3 %v6940_v31  ;;  %s9041_s28 = smov 337   ;;  %s9042_s25 = smov 345  }
  0x92   : > { %928 = vmatmul.bf16.gmra.mxu1 %v6635_v33  ;;  %s9043_s22 = smov 353   ;;  %s9044_s3 = smov 361  }
  0x93   : > { %977 = vmatmul.bf16.gmra.mxu2 %v6631_v32  ;;  %v6872_v32 = vor.u32 %v7890_v30, %v6871_v29  ;;  %v7108_v29 = vor.u32 %v7947_v25, %v7105_v26  ;;  %v7169_v30 = vld [vmem:[#allocation10 + $0xd8] sm:$0xf0]  ;;  %v7159_v26 = vld [vmem:[#allocation10 + $0xc0] sm:$0xf]  ;;  %s9045_s13 = smov 369   ;;  %s9046_s29 = smov 377  }
  0x94   : > { %1026 = vmatmul.bf16.gmra.mxu3 %v6635_v33  ;;  %v6935_v33 = vld [vmem:[#allocation13 + $0x80] sm:$0xf]  ;;  %2443 = vmatpush.bf16.msra.mxu2 %v7124_v45  ;;  %v6820_v45 = vor.u32 %v7875_v36, %v6817_v37  ;;  %s6609_s17 = sshll.u32 %s9271_s1, 8 }
  0x95   : > { %v6936_v35 = vor.u32 %v7906_v34, %v6935_v33  ;;  %1375 = vmatpush.bf16.msrb.mxu0 %v6872_v32  ;;  %2492 = vmatpush.bf16.msra.mxu3 %v7188_v47  ;;  %v7172_v32 = vor.u32 %v7963_v27, %v7169_v30  ;;  %v6815_v34 = vld [vmem:[%s9288_s26 + $0x10] sm:$0xf]  ;;  %v7948_v47 = vld [vmem:[#allocation10 + $0x54] sm:$0xf0]  ;;  %v7962_v27 = vld [vmem:[#allocation10 + $0xc4] sm:$0xf0] }
  0x96   : > { %v7104_v49 = vor.u32 %v7948_v47, %v7103_v46  ;;  %v7160_v30 = vor.u32 %v7962_v27, %v7159_v26  ;;  %v7881_v26 = vld [vmem:[%s9288_s26 + $0x44] sm:$0xf]  ;;  %v6841_v27 = vld [vmem:[%s9288_s26 + $0x48] sm:$0xf0]  ;;  %s11332_s0 = scalar_lea.vmem [#allocation16], %s6609_s17 }
  0x97   : > { %1424 = vmatpush.bf16.msrb.mxu1 %v6936_v35  ;;  %v7876_v35 = vld [vmem:[%s9288_s26 + $0x14] sm:$0xf0] }
  0x98   : > { %2444 = vmatpush.bf16.msra.mxu2 %v7116_v63  ;;  %v7945_v63 = vld [vmem:[#allocation10 + $0x44] sm:$0xf] }
  0x99   : > { %2345 = vmatpush.bf16.msra.mxu0 %v7120_v57  ;;  %2493 = vmatpush.bf16.msra.mxu3 %v7180_v1  ;;  %v7100_v2 = vor.u32 %v7945_v63, %v7097_v0  ;;  %v7151_v0 = vld [vmem:[#allocation10 + $0xb0] sm:$0xf] }
  0x9b   : > { %2394 = vmatpush.bf16.msra.mxu1 %v7184_v59 }
  0x9c   : > { %2445 = vmatpush.bf16.msra.mxu2 %v7108_v29 }
  0x9d   : > { %2346 = vmatpush.bf16.msra.mxu0 %v7112_v15  ;;  %2494 = vmatpush.bf16.msra.mxu3 %v7172_v32 }
  0x9f   : > { %2395 = vmatpush.bf16.msra.mxu1 %v7176_v17 }
  0xa0   : > { %2446 = vmatpush.bf16.msra.mxu2 %v7100_v2 }
  0xa1   : > { %884 = vmatmul.bf16.gmra.mxu0 %v6639_v50 }
  0xa2   : > { %933 = vmatmul.bf16.gmra.mxu1 %v6643_v51  ;;  %2347 = vmatpush.bf16.msra.mxu0 %v7104_v49  ;;  %v7880_v49 = vld [vmem:[%s9288_s26 + $0x34] sm:$0xf0] }
  0xa3   : > { %982 = vmatmul.bf16.gmra.mxu2 %v6639_v50  ;;  %v7839_v50 = vld [vmem:[%s9282_s18 + $0x74] sm:$0xf] }
  0xa4   : > { %1031 = vmatmul.bf16.gmra.mxu3 %v6643_v51  ;;  %v6672_v51 = vld [vmem:[%s9282_s18 + $0x78] sm:$0xf0]  ;;  %s9032_s18 = smov 265  }
  0xa5   : > { %v6675_v53 = vor.u32 %v7839_v50, %v6672_v51  ;;  %v7167_v50 = vld [vmem:[#allocation10 + $0xd0] sm:$0xf]  ;;  %v7964_v51 = vld [vmem:[#allocation10 + $0xd4] sm:$0xf0] }
  0xa6   : > { %v7168_v54 = vor.u32 %v7964_v51, %v7167_v50  ;;  %v7879_v50 = vld [vmem:[%s9288_s26 + $0x34] sm:$0xf]  ;;  %v6833_v51 = vld [vmem:[%s9288_s26 + $0x38] sm:$0xf0] }
  0xa8   : > { %2396 = vmatpush.bf16.msra.mxu1 %v7168_v54 }
  0xac   : > { %2397 = vmatpush.bf16.msra.mxu1 %v7160_v30 }
  0xb1   : > { %889 = vmatmul.bf16.gmra.mxu0 %v6647_v4 }
  0xb2   : > { %938 = vmatmul.bf16.gmra.mxu1 %v6651_v5 }
  0xb3   : > { %987 = vmatmul.bf16.gmra.mxu2 %v6647_v4  ;;  %v7874_v4 = vld [vmem:[%s9288_s26 + $0x4] sm:$0xf0] }
  0xb4   : > { %1036 = vmatmul.bf16.gmra.mxu3 %v6651_v5  ;;  %v7873_v5 = vld [vmem:[%s9288_s26 + $0x4] sm:$0xf]  ;;  %v6808_v8 = vor.u32 %v7874_v4, %v6807_v3  ;;  %v7161_v4 = vld [vmem:[#allocation10 + $0xc8] sm:$0xf0] }
  0xb5   : > { %v6812_v10 = vor.u32 %v7873_v5, %v6809_v6  ;;  %v7961_v3 = vld [vmem:[#allocation10 + $0xc4] sm:$0xf] }
  0xb6   : > { %v7164_v6 = vor.u32 %v7961_v3, %v7161_v4 }
  0xb8   : > { %2495 = vmatpush.bf16.msra.mxu3 %v7164_v6 }
  0xc1   : > { %894 = vmatmul.bf16.gmra.mxu0 %v6655_v22 }
  0xc2   : > { %943 = vmatmul.bf16.gmra.mxu1 %v6659_v23 }
  0xc3   : > { %992 = vmatmul.bf16.gmra.mxu2 %v6655_v22 }
  0xc4   : > { %1041 = vmatmul.bf16.gmra.mxu3 %v6659_v23 }
  0xd1   : > { %899 = vmatmul.bf16.gmra.mxu0 %v6663_v40 }
  0xd2   : > { %948 = vmatmul.bf16.gmra.mxu1 %v6667_v41 }
  0xd3   : > { %997 = vmatmul.bf16.gmra.mxu2 %v6663_v40 }
  0xd4   : > { %1046 = vmatmul.bf16.gmra.mxu3 %v6667_v41  ;;  %v6816_v41 = vor.u32 %v7876_v35, %v6815_v34 }
  0xe1   : > { %904 = vmatmul.bf16.gmra.mxu0 %v6671_v52 }
  0xe2   : > { %953 = vmatmul.bf16.gmra.mxu1 %v6675_v53 }
  0xe3   : > { %1002 = vmatmul.bf16.gmra.mxu2 %v6671_v52 }
  0xe4   : > { %1051 = vmatmul.bf16.gmra.mxu3 %v6675_v53 }
  0xee   : > { %v870_v9 = vpop.f32.mrf.mxu0 }
  0xef   : > { %v919_v14 = vpop.f32.mrf.mxu1  ;;  %v871_v18 = vadd.f32 %v870_v9, %v9337_v7  ;;  %v6823_v9 = vld [vmem:[%s9288_s26 + $0x20] sm:$0xf] }
  0xf1   : > { %1376 = vmatmul.bf16.vlgmr.msrb.gmra.mxu0 %v6808_v8  ;;  %v920_v21 = vadd.f32 %v919_v14, %v871_v18 }
  0xf2   : > { %1425 = vmatmul.bf16.vlgmr.msrb.gmra.mxu1 %v6812_v10 }
  0xf3   : > { %1474 = vmatmul.bf16.vlgmr.msrb.gmra.mxu2 %v6808_v8 }
  0xf4   : > { %1523 = vmatmul.bf16.vlgmr.msrb.gmra.mxu3 %v6812_v10  ;;  %v7878_v10 = vld [vmem:[%s9288_s26 + $0x24] sm:$0xf0] }
  0xf5   : > { %v6824_v16 = vor.u32 %v7878_v10, %v6823_v9 }
  0xf6   : > { %v968_v20 = vpop.f32.mrf.mxu2  ;;  %v872_v24 = vpop.f32.mrf.mxu0 }
  0xf7   : > { %v969_v22 = vadd.f32 %v968_v20, %v9340_v19  ;;  %v1017_v23 = vpop.f32.mrf.mxu3  ;;  %v921_v28 = vpop.f32.mrf.mxu1  ;;  %v873_v39 = vadd.f32 %v872_v24, %v9337_v7 }
  0xf9   : > { %v1018_v31 = vadd.f32 %v1017_v23, %v969_v22  ;;  %v922_v52 = vadd.f32 %v921_v28, %v873_v39  ;;  %v7095_v22 = vld [vmem:[#allocation10 + $0x40] sm:$0xf]  ;;  %v7946_v23 = vld [vmem:[#allocation10 + $0x44] sm:$0xf0]  ;;  %v7943_v39 = vld [vmem:[#allocation10 + $0x34] sm:$0xf] }
  0xfa   : > { %v7096_v25 = vor.u32 %v7946_v23, %v7095_v22 }
  0xfb   : > { %v1057_v33 = vpack.c.bf16 %v1018_v31, %v920_v21  ;;  %v6828_v21 = vor.u32 %v7877_v11, %v6825_v12 }
  0xfc   : > { %2348 = vmatpush.bf16.msra.mxu0 %v7096_v25  ;;  %v7882_v25 = vld [vmem:[%s9288_s26 + $0x44] sm:$0xf0] }
  0xfd   : > { %1597 = vst.msk [vmem:[#allocation2] sm:$0xf] %vm1596_vm0, %v1057_v33  ;;  %v1823_v38 = vrot.slane %v1057_v33, 4  ;;  %1661 = vrot.lane.b32.xlu1 %v1057_v33, %s9030_s20 }
  0xfe   : > { %v970_v40 = vpop.f32.mrf.mxu2  ;;  %v875_v44 = vpop.f32.mrf.mxu0 }
  0xff   : > { %1856 = vst.msk [vmem:[#allocation2 + $0x100] sm:$0xf] %vm1596_vm0, %v1823_v38  ;;  %v971_v42 = vadd.f32 %v970_v40, %v9340_v19  ;;  %v1019_v43 = vpop.f32.mrf.mxu3  ;;  %v924_v48 = vpop.f32.mrf.mxu1  ;;  %v876_v56 = vadd.f32 %v875_v44, %v9337_v7  ;;  %v7089_v40 = vld [vmem:[#allocation10 + $0x38] sm:$0xf0] }
 0x100   : > { %v7153_v44 = vld [vmem:[#allocation10 + $0xb8] sm:$0xf0] }
 0x101   : > { %v1020_v53 = vadd.f32 %v1019_v43, %v971_v42  ;;  %1381 = vmatmul.bf16.gmra.mxu0 %v6816_v41  ;;  %v925_v59 = vadd.f32 %v924_v48, %v876_v56  ;;  %v7092_v42 = vor.u32 %v7943_v39, %v7089_v40  ;;  %v7959_v43 = vld [vmem:[#allocation10 + $0xb4] sm:$0xf]  ;;  %v6831_v48 = vld [vmem:[%s9288_s26 + $0x30] sm:$0xf]  ;;  %v7143_v40 = vld [vmem:[#allocation10 + $0xa0] sm:$0xf] }
 0x102   : > { %1430 = vmatmul.bf16.gmra.mxu1 %v6820_v45  ;;  %v7156_v46 = vor.u32 %v7959_v43, %v7153_v44 }
 0x103   : > { %v1058_v55 = vpack.c.bf16 %v1020_v53, %v922_v52  ;;  %1479 = vmatmul.bf16.gmra.mxu2 %v6816_v41 }
 0x104   : > { %1528 = vmatmul.bf16.gmra.mxu3 %v6820_v45  ;;  %2447 = vmatpush.bf16.msra.mxu2 %v7092_v42 }
 0x105   : > { %1598 = vst.msk [vmem:[#allocation2 + $0x4] sm:$0xf] %vm1596_vm0, %v1058_v55  ;;  %v1824_v57 = vrot.slane %v1058_v55, 4  ;;  %1663 = vrot.lane.b32.xlu2 %v1058_v55, %s9030_s20  ;;  %2496 = vmatpush.bf16.msra.mxu3 %v7156_v46  ;;  %v6832_v55 = vor.u32 %v7880_v49, %v6831_v48 }
 0x106   : > { %v973_v58 = vpop.f32.mrf.mxu2  ;;  %v877_v62 = vpop.f32.mrf.mxu0 }
 0x107   : > { %1857 = vst.msk [vmem:[#allocation2 + $0x104] sm:$0xf] %vm1596_vm0, %v1824_v57  ;;  %v974_v60 = vadd.f32 %v973_v58, %v9340_v19  ;;  %v1022_v61 = vpop.f32.mrf.mxu3  ;;  %v926_v1 = vpop.f32.mrf.mxu1  ;;  %v878_v14 = vadd.f32 %v877_v62, %v9337_v7 }
 0x109   : > { %v1023_v5 = vadd.f32 %v1022_v61, %v974_v60  ;;  %v927_v28 = vadd.f32 %v926_v1, %v878_v14  ;;  %v7087_v60 = vld [vmem:[#allocation10 + $0x30] sm:$0xf]  ;;  %v7944_v61 = vld [vmem:[#allocation10 + $0x34] sm:$0xf0]  ;;  %v7941_v14 = vld [vmem:[#allocation10 + $0x24] sm:$0xf] }
 0x10a   : > { %v7088_v63 = vor.u32 %v7944_v61, %v7087_v60  ;;  %v7960_v1 = vld [vmem:[#allocation10 + $0xb4] sm:$0xf0] }
 0x10b   : > { %v1059_v8 = vpack.c.bf16 %v1023_v5, %v925_v59  ;;  %v6836_v59 = vor.u32 %v7879_v50, %v6833_v51  ;;  %v7152_v4 = vor.u32 %v7960_v1, %v7151_v0  ;;  %v7883_v0 = vld [vmem:[%s9288_s26 + $0x54] sm:$0xf]  ;;  %v6849_v1 = vld [vmem:[%s9288_s26 + $0x58] sm:$0xf0] }
 0x10c   : > { %2349 = vmatpush.bf16.msra.mxu0 %v7088_v63  ;;  %v7884_v63 = vld [vmem:[%s9288_s26 + $0x54] sm:$0xf0] }
 0x10d   : > { %1599 = vst.msk [vmem:[#allocation2 + $0x8] sm:$0xf] %vm1596_vm0, %v1059_v8  ;;  %v1825_v13 = vrot.slane %v1059_v8, 4  ;;  %1665 = vrot.lane.b32.xlu0 %v1059_v8, %s9030_s20  ;;  %2398 = vmatpush.bf16.msra.mxu1 %v7152_v4 }
 0x10e   : > { %v975_v15 = vpop.f32.mrf.mxu2  ;;  %v880_v20 = vpop.f32.mrf.mxu0 }
 0x10f   : > { %1858 = vst.msk [vmem:[#allocation2 + $0x108] sm:$0xf] %vm1596_vm0, %v1825_v13  ;;  %v976_v17 = vadd.f32 %v975_v15, %v9340_v19  ;;  %v1024_v18 = vpop.f32.mrf.mxu3  ;;  %v929_v24 = vpop.f32.mrf.mxu1  ;;  %v881_v32 = vadd.f32 %v880_v20, %v9337_v7  ;;  %v7081_v15 = vld [vmem:[#allocation10 + $0x28] sm:$0xf0] }
 0x110   : > { %v7145_v20 = vld [vmem:[#allocation10 + $0xa8] sm:$0xf0] }
 0x111   : > { %v1025_v29 = vadd.f32 %v1024_v18, %v976_v17  ;;  %1386 = vmatmul.bf16.gmra.mxu0 %v6824_v16  ;;  %v930_v35 = vadd.f32 %v929_v24, %v881_v32  ;;  %v7084_v17 = vor.u32 %v7941_v14, %v7081_v15  ;;  %v7957_v18 = vld [vmem:[#allocation10 + $0xa4] sm:$0xf]  ;;  %v6839_v24 = vld [vmem:[%s9288_s26 + $0x40] sm:$0xf]  ;;  %v7135_v15 = vld [vmem:[#allocation10 + $0x90] sm:$0xf] }
 0x112   : > { %1435 = vmatmul.bf16.gmra.mxu1 %v6828_v21  ;;  %v7148_v22 = vor.u32 %v7957_v18, %v7145_v20 }
 0x113   : > { %v1060_v31 = vpack.c.bf16 %v1025_v29, %v927_v28  ;;  %1484 = vmatmul.bf16.gmra.mxu2 %v6824_v16 }
 0x114   : > { %1533 = vmatmul.bf16.gmra.mxu3 %v6828_v21  ;;  %2448 = vmatpush.bf16.msra.mxu2 %v7084_v17 }
 0x115   : > { %1600 = vst.msk [vmem:[#allocation2 + $0xc] sm:$0xf] %vm1596_vm0, %v1060_v31  ;;  %v1826_v33 = vrot.slane %v1060_v31, 4  ;;  %1667 = vrot.lane.b32.xlu1 %v1060_v31, %s9030_s20  ;;  %2497 = vmatpush.bf16.msra.mxu3 %v7148_v22  ;;  %v6840_v31 = vor.u32 %v7882_v25, %v6839_v24 }
 0x116   : > { %v978_v34 = vpop.f32.mrf.mxu2  ;;  %v882_v38 = vpop.f32.mrf.mxu0 }
 0x117   : > { %1859 = vst.msk [vmem:[#allocation2 + $0x10c] sm:$0xf] %vm1596_vm0, %v1826_v33  ;;  %v979_v36 = vadd.f32 %v978_v34, %v9340_v19  ;;  %v1027_v37 = vpop.f32.mrf.mxu3  ;;  %v931_v41 = vpop.f32.mrf.mxu1  ;;  %v883_v53 = vadd.f32 %v882_v38, %v9337_v7 }
 0x119   : > { %v1028_v45 = vadd.f32 %v1027_v37, %v979_v36  ;;  %v932_v2 = vadd.f32 %v931_v41, %v883_v53  ;;  %v7079_v36 = vld [vmem:[#allocation10 + $0x20] sm:$0xf]  ;;  %v7942_v37 = vld [vmem:[#allocation10 + $0x24] sm:$0xf0]  ;;  %v7939_v53 = vld [vmem:[#allocation10 + $0x14] sm:$0xf] }
 0x11a   : > { %v7080_v39 = vor.u32 %v7942_v37, %v7079_v36  ;;  %v7958_v41 = vld [vmem:[#allocation10 + $0xa4] sm:$0xf0] }
 0x11b   : > { %v1061_v47 = vpack.c.bf16 %v1028_v45, %v930_v35  ;;  %v6844_v35 = vor.u32 %v7881_v26, %v6841_v27  ;;  %v7144_v44 = vor.u32 %v7958_v41, %v7143_v40  ;;  %v7885_v40 = vld [vmem:[%s9288_s26 + $0x64] sm:$0xf]  ;;  %v6857_v41 = vld [vmem:[%s9288_s26 + $0x68] sm:$0xf0] }
 0x11c   : > { %2350 = vmatpush.bf16.msra.mxu0 %v7080_v39  ;;  %v7886_v39 = vld [vmem:[%s9288_s26 + $0x64] sm:$0xf0] }
 0x11d   : > { %1601 = vst.msk [vmem:[#allocation2 + $0x10] sm:$0xf] %vm1596_vm0, %v1061_v47  ;;  %v1827_v52 = vrot.slane %v1061_v47, 4  ;;  %1669 = vrot.lane.b32.xlu0 %v1061_v47, %s9030_s20  ;;  %2399 = vmatpush.bf16.msra.mxu1 %v7144_v44 }
 0x11e   : > { %v980_v54 = vpop.f32.mrf.mxu2  ;;  %v885_v58 = vpop.f32.mrf.mxu0 }
 0x11f   : > { %1860 = vst.msk [vmem:[#allocation2 + $0x110] sm:$0xf] %vm1596_vm0, %v1827_v52  ;;  %v981_v56 = vadd.f32 %v980_v54, %v9340_v19  ;;  %v1029_v57 = vpop.f32.mrf.mxu3  ;;  %v934_v62 = vpop.f32.mrf.mxu1  ;;  %v886_v6 = vadd.f32 %v885_v58, %v9337_v7  ;;  %v7073_v54 = vld [vmem:[#allocation10 + $0x18] sm:$0xf0] }
 0x120   : > { %v7137_v58 = vld [vmem:[#allocation10 + $0x98] sm:$0xf0] }
 0x121   : > { %v1030_v3 = vadd.f32 %v1029_v57, %v981_v56  ;;  %1391 = vmatmul.bf16.gmra.mxu0 %v6832_v55  ;;  %v935_v10 = vadd.f32 %v934_v62, %v886_v6  ;;  %v7076_v56 = vor.u32 %v7939_v53, %v7073_v54  ;;  %v7955_v57 = vld [vmem:[#allocation10 + $0x94] sm:$0xf]  ;;  %v6847_v62 = vld [vmem:[%s9288_s26 + $0x50] sm:$0xf]  ;;  %v7954_v54 = vld [vmem:[#allocation10 + $0x84] sm:$0xf0] }
 0x122   : > { %1440 = vmatmul.bf16.gmra.mxu1 %v6836_v59  ;;  %v7140_v60 = vor.u32 %v7955_v57, %v7137_v58 }
 0x123   : > { %v1062_v5 = vpack.c.bf16 %v1030_v3, %v932_v2  ;;  %1489 = vmatmul.bf16.gmra.mxu2 %v6832_v55 }
 0x124   : > { %1538 = vmatmul.bf16.gmra.mxu3 %v6836_v59  ;;  %2449 = vmatpush.bf16.msra.mxu2 %v7076_v56 }
 0x125   : > { %1602 = vst.msk [vmem:[#allocation2 + $0x14] sm:$0xf] %vm1596_vm0, %v1062_v5  ;;  %v1828_v8 = vrot.slane %v1062_v5, 4  ;;  %1671 = vrot.lane.b32.xlu1 %v1062_v5, %s9030_s20  ;;  %2498 = vmatpush.bf16.msra.mxu3 %v7140_v60  ;;  %v6848_v5 = vor.u32 %v7884_v63, %v6847_v62 }
 0x126   : > { %v983_v9 = vpop.f32.mrf.mxu2  ;;  %v887_v13 = vpop.f32.mrf.mxu0 }
 0x127   : > { %1861 = vst.msk [vmem:[#allocation2 + $0x114] sm:$0xf] %vm1596_vm0, %v1828_v8  ;;  %v984_v11 = vadd.f32 %v983_v9, %v9340_v19  ;;  %v1032_v12 = vpop.f32.mrf.mxu3  ;;  %v936_v16 = vpop.f32.mrf.mxu1  ;;  %v888_v29 = vadd.f32 %v887_v13, %v9337_v7 }
 0x129   : > { %v1033_v21 = vadd.f32 %v1032_v12, %v984_v11  ;;  %v937_v42 = vadd.f32 %v936_v16, %v888_v29  ;;  %v7071_v11 = vld [vmem:[#allocation10 + $0x10] sm:$0xf]  ;;  %v7940_v12 = vld [vmem:[#allocation10 + $0x14] sm:$0xf0]  ;;  %v7937_v29 = vld [vmem:[#allocation10 + $0x4] sm:$0xf] }
 0x12a   : > { %v7072_v14 = vor.u32 %v7940_v12, %v7071_v11  ;;  %v7956_v16 = vld [vmem:[#allocation10 + $0x94] sm:$0xf0] }
 0x12b   : > { %v1063_v23 = vpack.c.bf16 %v1033_v21, %v935_v10  ;;  %v6852_v10 = vor.u32 %v7883_v0, %v6849_v1  ;;  %v7136_v20 = vor.u32 %v7956_v16, %v7135_v15 }
 0x12c   : > { %2351 = vmatpush.bf16.msra.mxu0 %v7072_v14 }
 0x12d   : > { %1603 = vst.msk [vmem:[#allocation2 + $0x18] sm:$0xf] %vm1596_vm0, %v1063_v23  ;;  %v1829_v28 = vrot.slane %v1063_v23, 4  ;;  %1673 = vrot.lane.b32.xlu2 %v1063_v23, %s9030_s20  ;;  %2400 = vmatpush.bf16.msra.mxu1 %v7136_v20 }
 0x12e   : > { %v985_v30 = vpop.f32.mrf.mxu2  ;;  %v890_v34 = vpop.f32.mrf.mxu0 }
 0x12f   : > { %1862 = vst.msk [vmem:[#allocation2 + $0x118] sm:$0xf] %vm1596_vm0, %v1829_v28  ;;  %v986_v32 = vadd.f32 %v985_v30, %v9340_v19  ;;  %v1034_v33 = vpop.f32.mrf.mxu3  ;;  %v939_v38 = vpop.f32.mrf.mxu1  ;;  %v891_v46 = vadd.f32 %v890_v34, %v9337_v7  ;;  %v7065_v30 = vld [vmem:[#allocation10 + $0x8] sm:$0xf0] }
 0x130   : > { %v7129_v34 = vld [vmem:[#allocation10 + $0x88] sm:$0xf0] }
 0x131   : > { %v1035_v43 = vadd.f32 %v1034_v33, %v986_v32  ;;  %1396 = vmatmul.bf16.gmra.mxu0 %v6840_v31  ;;  %v940_v49 = vadd.f32 %v939_v38, %v891_v46  ;;  %v7068_v32 = vor.u32 %v7937_v29, %v7065_v30  ;;  %v7953_v33 = vld [vmem:[#allocation10 + $0x84] sm:$0xf]  ;;  %v6855_v38 = vld [vmem:[%s9288_s26 + $0x60] sm:$0xf] }
 0x132   : > { %1445 = vmatmul.bf16.gmra.mxu1 %v6844_v35  ;;  %v7132_v36 = vor.u32 %v7953_v33, %v7129_v34  ;;  %v7063_v46 = vld [vmem:[#allocation10] sm:$0xf] }
 0x133   : > { %v1064_v45 = vpack.c.bf16 %v1035_v43, %v937_v42  ;;  %1494 = vmatmul.bf16.gmra.mxu2 %v6840_v31 }
 0x134   : > { %1543 = vmatmul.bf16.gmra.mxu3 %v6844_v35  ;;  %2450 = vmatpush.bf16.msra.mxu2 %v7068_v32 }
 0x135   : > { %1604 = vst.msk [vmem:[#allocation2 + $0x1c] sm:$0xf] %vm1596_vm0, %v1064_v45  ;;  %v1830_v47 = vrot.slane %v1064_v45, 4  ;;  %1675 = vrot.lane.b32.xlu0 %v1064_v45, %s9030_s20  ;;  %2499 = vmatpush.bf16.msra.mxu3 %v7132_v36  ;;  %v6856_v45 = vor.u32 %v7886_v39, %v6855_v38  ;;  %v6999_v36 = vld [vmem:[%s9275_s12] sm:$0xf] }
 0x136   : > { %v988_v48 = vpop.f32.mrf.mxu2  ;;  %v892_v52 = vpop.f32.mrf.mxu0  ;;  %v7921_v38 = vld [vmem:[%s9275_s12 + $0x4] sm:$0xf] }
 0x137   : > { %1863 = vst.msk [vmem:[#allocation2 + $0x11c] sm:$0xf] %vm1596_vm0, %v1830_v47  ;;  %v989_v50 = vadd.f32 %v988_v48, %v9340_v19  ;;  %v1037_v51 = vpop.f32.mrf.mxu3  ;;  %v941_v55 = vpop.f32.mrf.mxu1  ;;  %v893_v3 = vadd.f32 %v892_v52, %v9337_v7  ;;  %v7938_v47 = vld [vmem:[#allocation10 + $0x4] sm:$0xf0]  ;;  %v7127_v48 = vld [vmem:[#allocation10 + $0x80] sm:$0xf]  ;;  %v6860_v52 = vor.u32 %v7885_v40, %v6857_v41 }
 0x138   : > { %v7064_v53 = vor.u32 %v7938_v47, %v7063_v46  ;;  %v7128_v56 = vor.u32 %v7954_v54, %v7127_v48  ;;  %v6804_v39 = vld [vmem:[%s11465_s7 + $0x2] ss:$4 sm:$0x3]  ;;  %v7001_v40 = vld [vmem:[%s9275_s12 + $0x8] sm:$0xf0] }
 0x139   : > { %v1038_v59 = vadd.f32 %v1037_v51, %v989_v50  ;;  %v942_v17 = vadd.f32 %v941_v55, %v893_v3  ;;  %v9455_v48 = vperm.slane %v6804_v39, 0 }
 0x13a   : > { %2352 = vmatpush.bf16.msra.mxu0 %v7064_v53  ;;  %2401 = vmatpush.bf16.msra.mxu1 %v7128_v56  ;;  %v1595_v53 = vld [vmem:[%s11466_s8 + $0x3c] sm:$0xf] }
 0x13b   : > { %v1065_v61 = vpack.c.bf16 %v1038_v59, %v940_v49  ;;  %1628 = vst.msk [vmem:[#allocation2 + $0x7c] sm:$0xf] %vm1596_vm0, %v1595_v53 }
 0x13c   : > { %1741 = vst.msk [vmem:[#allocation2 + $0xfc] sm:$0xf] %vm1596_vm0, %v1595_v53 }
 0x13d   : > { %1605 = vst.msk [vmem:[#allocation2 + $0x20] sm:$0xf] %vm1596_vm0, %v1065_v61  ;;  %v1831_v2 = vrot.slane %v1065_v61, 4  ;;  %1677 = vrot.lane.b32.xlu0 %v1065_v61, %s9030_s20 }
 0x13e   : > { %v990_v4 = vpop.f32.mrf.mxu2  ;;  %v895_v9 = vpop.f32.mrf.mxu0  ;;  %1887 = vst.msk [vmem:[#allocation2 + $0x17c] sm:$0xf] %vm1596_vm0, %v1595_v53 }
 0x13f   : > { %1864 = vst.msk [vmem:[#allocation2 + $0x120] sm:$0xf] %vm1596_vm0, %v1831_v2  ;;  %v991_v6 = vadd.f32 %v990_v4, %v9340_v19  ;;  %v1039_v8 = vpop.f32.mrf.mxu3  ;;  %v944_v13 = vpop.f32.mrf.mxu1  ;;  %v896_v22 = vadd.f32 %v895_v9, %v9337_v7  ;;  %v7887_v9 = vld [vmem:[%s9288_s26 + $0x74] sm:$0xf] }
 0x140   : > { %2001 = vst.msk [vmem:[#allocation2 + $0x1fc] sm:$0xf] %vm1596_vm0, %v1595_v53 }
 0x141   : > { %v1040_v18 = vadd.f32 %v1039_v8, %v991_v6  ;;  %1401 = vmatmul.bf16.gmra.mxu0 %v6848_v5  ;;  %v945_v25 = vadd.f32 %v944_v13, %v896_v22  ;;  %v6863_v6 = vld [vmem:[%s9288_s26 + $0x70] sm:$0xf]  ;;  %v7888_v8 = vld [vmem:[%s9288_s26 + $0x74] sm:$0xf0] }
 0x142   : > { %1450 = vmatmul.bf16.gmra.mxu1 %v6852_v10  ;;  %v6864_v14 = vor.u32 %v7888_v8, %v6863_v6  ;;  %v7923_v8 = vld [vmem:[%s9275_s12 + $0x14] sm:$0xf] }
 0x143   : > { %v1066_v21 = vpack.c.bf16 %v1040_v18, %v942_v17  ;;  %1499 = vmatmul.bf16.gmra.mxu2 %v6848_v5 }
 0x144   : > { %1548 = vmatmul.bf16.gmra.mxu3 %v6852_v10  ;;  %v6865_v10 = vld [vmem:[%s9288_s26 + $0x78] sm:$0xf0]  ;;  %s9033_s26 = smov 273  }
 0x145   : > { %1606 = vst.msk [vmem:[#allocation2 + $0x24] sm:$0xf] %vm1596_vm0, %v1066_v21  ;;  %v1832_v23 = vrot.slane %v1066_v21, 4  ;;  %1679 = vrot.lane.b32.xlu1 %v1066_v21, %s9030_s20  ;;  %v6868_v18 = vor.u32 %v7887_v9, %v6865_v10  ;;  %v7009_v9 = vld [vmem:[%s9275_s12 + $0x18] sm:$0xf0] }
 0x146   : > { %v993_v24 = vpop.f32.mrf.mxu2  ;;  %v897_v28 = vpop.f32.mrf.mxu0 }
 0x147   : > { %1865 = vst.msk [vmem:[#allocation2 + $0x124] sm:$0xf] %vm1596_vm0, %v1832_v23  ;;  %v994_v26 = vadd.f32 %v993_v24, %v9340_v19  ;;  %v1042_v27 = vpop.f32.mrf.mxu3  ;;  %v946_v31 = vpop.f32.mrf.mxu1  ;;  %v898_v43 = vadd.f32 %v897_v28, %v9337_v7 }
 0x149   : > { %v1043_v35 = vadd.f32 %v1042_v27, %v994_v26  ;;  %v947_v57 = vadd.f32 %v946_v31, %v898_v43 }
 0x14b   : > { %v1067_v37 = vpack.c.bf16 %v1043_v35, %v945_v25 }
 0x14d   : > { %1607 = vst.msk [vmem:[#allocation2 + $0x28] sm:$0xf] %vm1596_vm0, %v1067_v37  ;;  %v1833_v42 = vrot.slane %v1067_v37, 4  ;;  %1681 = vrot.lane.b32.xlu2 %v1067_v37, %s9030_s20  ;;  %v7922_v37 = vld [vmem:[%s9275_s12 + $0x4] sm:$0xf0] }
 0x14e   : > { %v995_v44 = vpop.f32.mrf.mxu2  ;;  %v900_v51 = vpop.f32.mrf.mxu0 }
 0x14f   : > { %1866 = vst.msk [vmem:[#allocation2 + $0x128] sm:$0xf] %vm1596_vm0, %v1833_v42  ;;  %v996_v49 = vadd.f32 %v995_v44, %v9340_v19  ;;  %v1044_v50 = vpop.f32.mrf.mxu3  ;;  %v949_v55 = vpop.f32.mrf.mxu1  ;;  %v901_v60 = vadd.f32 %v900_v51, %v9337_v7  ;;  %v7000_v44 = vor.u32 %v7922_v37, %v6999_v36 }
 0x151   : > { %v1045_v58 = vadd.f32 %v1044_v50, %v996_v49  ;;  %1406 = vmatmul.bf16.gmra.mxu0 %v6856_v45  ;;  %v950_v63 = vadd.f32 %v949_v55, %v901_v60  ;;  %v7004_v49 = vor.u32 %v7921_v38, %v7001_v40  ;;  %v1594_v50 = vld [vmem:[%s11466_s8 + $0x38] sm:$0xf] }
 0x152   : > { %1455 = vmatmul.bf16.gmra.mxu1 %v6860_v52  ;;  %1627 = vst.msk [vmem:[#allocation2 + $0x78] sm:$0xf] %vm1596_vm0, %v1594_v50 }
 0x153   : > { %v1068_v59 = vpack.c.bf16 %v1045_v58, %v947_v57  ;;  %1504 = vmatmul.bf16.gmra.mxu2 %v6856_v45  ;;  %v9467_v57 = vperm.slane %v6804_v39, 1  ;;  %1740 = vst.msk [vmem:[#allocation2 + $0xf8] sm:$0xf] %vm1596_vm0, %v1594_v50 }
 0x154   : > { %1553 = vmatmul.bf16.gmra.mxu3 %v6860_v52  ;;  %1886 = vst.msk [vmem:[#allocation2 + $0x178] sm:$0xf] %vm1596_vm0, %v1594_v50 }
 0x155   : > { %1608 = vst.msk [vmem:[#allocation2 + $0x2c] sm:$0xf] %vm1596_vm0, %v1068_v59  ;;  %v1834_v61 = vrot.slane %v1068_v59, 4  ;;  %1683 = vrot.lane.b32.xlu2 %v1068_v59, %s9030_s20 }
 0x156   : > { %v998_v62 = vpop.f32.mrf.mxu2  ;;  %v902_v2 = vpop.f32.mrf.mxu0  ;;  %2000 = vst.msk [vmem:[#allocation2 + $0x1f8] sm:$0xf] %vm1596_vm0, %v1594_v50  ;;  %v7925_v50 = vld [vmem:[%s9275_s12 + $0x24] sm:$0xf] }
 0x157   : > { %1867 = vst.msk [vmem:[#allocation2 + $0x12c] sm:$0xf] %vm1596_vm0, %v1834_v61  ;;  %v999_v0 = vadd.f32 %v998_v62, %v9340_v19  ;;  %v1047_v1 = vpop.f32.mrf.mxu3  ;;  %v951_v3 = vpop.f32.mrf.mxu1  ;;  %v903_v12 = vadd.f32 %v902_v2, %v9337_v7 }
 0x159   : > { %v1048_v4 = vadd.f32 %v1047_v1, %v999_v0  ;;  %v952_v23 = vadd.f32 %v951_v3, %v903_v12  ;;  %v7984_v2 = vld [vmem:[#allocation2 + $0x78] sm:$0xff] }
 0x15a   : > { %v2847_v10 = vsel %vm11512_vm1, %v7984_v2, 0  ;;  %v1590_v2 = vld [vmem:[%s11466_s8 + $0x28] sm:$0xf] }
 0x15b   : > { %v1069_v5 = vpack.c.bf16 %v1048_v4, %v950_v63  ;;  %v7007_v4 = vld [vmem:[%s9275_s12 + $0x10] sm:$0xf]  ;;  %2898 = vmatpush.bf16.xpose.msrb.mxu1 %v2847_v10  ;;  %1623 = vst.msk [vmem:[#allocation2 + $0x68] sm:$0xf] %vm1596_vm0, %v1590_v2 }
 0x15c   : > { %1736 = vst.msk [vmem:[#allocation2 + $0xe8] sm:$0xf] %vm1596_vm0, %v1590_v2 }
 0x15d   : > { %1609 = vst.msk [vmem:[#allocation2 + $0x30] sm:$0xf] %vm1596_vm0, %v1069_v5  ;;  %v1835_v11 = vrot.slane %v1069_v5, 4  ;;  %1685 = vrot.lane.b32.xlu1 %v1069_v5, %s9030_s20  ;;  %v7924_v5 = vld [vmem:[%s9275_s12 + $0x14] sm:$0xf0] }
 0x15e   : > { %v1000_v13 = vpop.f32.mrf.mxu2  ;;  %v905_v21 = vpop.f32.mrf.mxu0  ;;  %1882 = vst.msk [vmem:[#allocation2 + $0x168] sm:$0xf] %vm1596_vm0, %v1590_v2 }
 0x15f   : > { %1868 = vst.msk [vmem:[#allocation2 + $0x130] sm:$0xf] %vm1596_vm0, %v1835_v11  ;;  %v1001_v15 = vadd.f32 %v1000_v13, %v9340_v19  ;;  %v1049_v16 = vpop.f32.mrf.mxu3  ;;  %v1664_v17 = vpop.permute.xlu2 %1663  ;;  %v906_v26 = vadd.f32 %v905_v21, %v9337_v7  ;;  %v9494_v21 = vld [vmem:[%s11466_s8 + $0x30] sm:$0xf] }
 0x160   : > { %1711 = vst.msk [vmem:[#allocation2 + $0x84] sm:$0xf] %vm1596_vm0, %v1664_v17  ;;  %v1938_v20 = vrot.slane %v1664_v17, 4  ;;  %v954_v22 = vpop.f32.mrf.mxu1 }
 0x161   : > { %v1050_v24 = vadd.f32 %v1049_v16, %v1001_v15  ;;  %1411 = vmatmul.bf16.gmra.mxu0 %v6864_v14  ;;  %v955_v29 = vadd.f32 %v954_v22, %v906_v26  ;;  %v7008_v15 = vor.u32 %v7924_v5, %v7007_v4  ;;  %1625 = vst.msk [vmem:[#allocation2 + $0x70] sm:$0xf] %vm1596_vm0, %v9494_v21 }
 0x162   : > { %1971 = vst.msk [vmem:[#allocation2 + $0x184] sm:$0xf] %vm1596_vm0, %v1938_v20  ;;  %1460 = vmatmul.bf16.gmra.mxu1 %v6868_v18  ;;  %v7012_v20 = vor.u32 %v7923_v8, %v7009_v9 }
 0x163   : > { %v1070_v25 = vpack.c.bf16 %v1050_v24, %v952_v23  ;;  %1509 = vmatmul.bf16.gmra.mxu2 %v6864_v14  ;;  %1738 = vst.msk [vmem:[#allocation2 + $0xf0] sm:$0xf] %vm1596_vm0, %v9494_v21 }
 0x164   : > { %1558 = vmatmul.bf16.gmra.mxu3 %v6868_v18  ;;  %1884 = vst.msk [vmem:[#allocation2 + $0x170] sm:$0xf] %vm1596_vm0, %v9494_v21 }
 0x165   : > { %1610 = vst.msk [vmem:[#allocation2 + $0x34] sm:$0xf] %vm1596_vm0, %v1070_v25  ;;  %v1836_v27 = vrot.slane %v1070_v25, 4  ;;  %1687 = vrot.lane.b32.xlu1 %v1070_v25, %s9030_s20  ;;  %v9500_v25 = vld [vmem:[%s11466_s8 + $0x34] sm:$0xf] }
 0x166   : > { %v1003_v28 = vpop.f32.mrf.mxu2  ;;  %v907_v32 = vpop.f32.mrf.mxu0  ;;  %1626 = vst.msk [vmem:[#allocation2 + $0x74] sm:$0xf] %vm1596_vm0, %v9500_v25 }
 0x167   : > { %1869 = vst.msk [vmem:[#allocation2 + $0x134] sm:$0xf] %vm1596_vm0, %v1836_v27  ;;  %v1004_v30 = vadd.f32 %v1003_v28, %v9340_v19  ;;  %v1052_v31 = vpop.f32.mrf.mxu3  ;;  %v908_v42 = vadd.f32 %v907_v32, %v9337_v7 }
 0x168   : > { %v956_v33 = vpop.f32.mrf.mxu1  ;;  %1739 = vst.msk [vmem:[#allocation2 + $0xf4] sm:$0xf] %vm1596_vm0, %v9500_v25 }
 0x169   : > { %v1053_v34 = vadd.f32 %v1052_v31, %v1004_v30  ;;  %v957_v54 = vadd.f32 %v956_v33, %v908_v42  ;;  %1885 = vst.msk [vmem:[#allocation2 + $0x174] sm:$0xf] %vm1596_vm0, %v9500_v25 }
 0x16a   : > { %1998 = vst.msk [vmem:[#allocation2 + $0x1f0] sm:$0xf] %vm1596_vm0, %v9494_v21 }
 0x16b   : > { %v1071_v35 = vpack.c.bf16 %v1053_v34, %v955_v29  ;;  %1999 = vst.msk [vmem:[#allocation2 + $0x1f4] sm:$0xf] %vm1596_vm0, %v9500_v25  ;;  %v7025_v25 = vld [vmem:[%s9275_s12 + $0x38] sm:$0xf0] }
 0x16c   : > { %v7975_v28 = vld [vmem:[#allocation2 + $0x30] sm:$0xff]  ;;  %1996 = vst.msk [vmem:[#allocation2 + $0x1e8] sm:$0xf] %vm1596_vm0, %v1590_v2 }
 0x16d   : > { %1611 = vst.msk [vmem:[#allocation2 + $0x38] sm:$0xf] %vm1596_vm0, %v1071_v35  ;;  %v1837_v41 = vrot.slane %v1071_v35, 4  ;;  %1689 = vrot.lane.b32.xlu0 %v1071_v35, %s9030_s20  ;;  %v2820_v33 = vsel %vm11512_vm1, %v7975_v28, 0 }
 0x16e   : > { %v1005_v43 = vpop.f32.mrf.mxu2  ;;  %v1377_v51 = vpop.f32.mrf.mxu0 }
 0x16f   : > { %1870 = vst.msk [vmem:[#allocation2 + $0x138] sm:$0xf] %vm1596_vm0, %v1837_v41  ;;  %v1006_v45 = vadd.f32 %v1005_v43, %v9340_v19  ;;  %v1054_v46 = vpop.f32.mrf.mxu3  ;;  %v1662_v47 = vpop.permute.xlu1 %1661  ;;  %v1378_v56 = vadd.f32 %v1377_v51, %v9455_v48 }
 0x170   : > { %1710 = vst.msk [vmem:[#allocation2 + $0x80] sm:$0xf] %vm1596_vm0, %v1662_v47  ;;  %v1937_v7 = vrot.slane %v1662_v47, 4  ;;  %v1426_v52 = vpop.f32.mrf.mxu1 }
 0x171   : > { %v1055_v19 = vadd.f32 %v1054_v46, %v1006_v45  ;;  %2353 = vmatmul.bf16.vlgmr.msra.gmra.mxu0 %v7000_v44  ;;  %v1427_v60 = vadd.f32 %v1426_v52, %v1378_v56  ;;  %v7015_v45 = vld [vmem:[%s9275_s12 + $0x20] sm:$0xf]  ;;  %v7983_v46 = vld [vmem:[#allocation2 + $0x70] sm:$0xff] }
 0x172   : > { %1970 = vst.msk [vmem:[#allocation2 + $0x180] sm:$0xf] %vm1596_vm0, %v1937_v7  ;;  %2402 = vmatmul.bf16.vlgmr.msra.gmra.mxu1 %v7004_v49  ;;  %v7017_v7 = vld [vmem:[%s9275_s12 + $0x28] sm:$0xf0]  ;;  %v2844_v51 = vsel %vm11512_vm1, %v7983_v46, 0 }
 0x173   : > { %v1072_v55 = vpack.c.bf16 %v1055_v19, %v957_v54  ;;  %2451 = vmatmul.bf16.vlgmr.msra.gmra.mxu2 %v7000_v44  ;;  %v7974_v44 = vld [vmem:[#allocation2 + $0x28] sm:$0xff]  ;;  %2899 = vmatpush.bf16.xpose.msrb.mxu1 %v2844_v51 }
 0x174   : > { %2500 = vmatmul.bf16.vlgmr.msra.gmra.mxu3 %v7004_v49  ;;  %v7926_v49 = vld [vmem:[%s9275_s12 + $0x24] sm:$0xf0]  ;;  %v2817_v19 = vsel %vm11512_vm1, %v7974_v44, 0 }
 0x175   : > { %1612 = vst.msk [vmem:[#allocation2 + $0x3c] sm:$0xf] %vm1596_vm0, %v1072_v55  ;;  %v1838_v58 = vrot.slane %v1072_v55, 4  ;;  %1691 = vrot.lane.b32.xlu0 %v1072_v55, %s9030_s20  ;;  %v7016_v55 = vor.u32 %v7926_v49, %v7015_v45 }
 0x176   : > { %v1475_v59 = vpop.f32.mrf.mxu2  ;;  %v1379_v63 = vpop.f32.mrf.mxu0 }
 0x177   : > { %1871 = vst.msk [vmem:[#allocation2 + $0x13c] sm:$0xf] %vm1596_vm0, %v1838_v58  ;;  %v1476_v61 = vadd.f32 %v1475_v59, %v9467_v57  ;;  %v1524_v62 = vpop.f32.mrf.mxu3  ;;  %v1380_v12 = vadd.f32 %v1379_v63, %v9455_v48 }
 0x178   : > { %v1428_v0 = vpop.f32.mrf.mxu1 }
 0x179   : > { %v1525_v1 = vadd.f32 %v1524_v62, %v1476_v61  ;;  %v1429_v26 = vadd.f32 %v1428_v0, %v1380_v12 }
 0x17b   : > { %v1564_v3 = vpack.c.bf16 %v1525_v1, %v1427_v60  ;;  %v7020_v60 = vor.u32 %v7925_v50, %v7017_v7 }
 0x17c   : > { %v7976_v6 = vld [vmem:[#allocation2 + $0x38] sm:$0xff] }
 0x17d   : > { %1629 = vst.msk [vmem:[#allocation3] sm:$0xf] %vm1596_vm0, %v1564_v3  ;;  %v1888_v11 = vrot.slane %v1564_v3, 4  ;;  %1758 = vrot.lane.b32.xlu0 %v1564_v3, %s9030_s20  ;;  %v2823_v14 = vsel %vm11512_vm1, %v7976_v6, 0  ;;  %v7973_v3 = vld [vmem:[#allocation2 + $0x20] sm:$0xff] }
 0x17e   : > { %v1477_v13 = vpop.f32.mrf.mxu2  ;;  %2849 = vmatpush.bf16.xpose.msrb.mxu0 %v2823_v14  ;;  %v1382_v23 = vpop.f32.mrf.mxu0  ;;  %v1591_v6 = vld [vmem:[%s11466_s8 + $0x2c] sm:$0xf]  ;;  %v2814_v10 = vsel %vm11512_vm1, %v7973_v3, 0 }
 0x17f   : > { %1921 = vst.msk [vmem:[#allocation3 + $0x80] sm:$0xf] %vm1596_vm0, %v1888_v11  ;;  %v1478_v16 = vadd.f32 %v1477_v13, %v9467_v57  ;;  %v1526_v17 = vpop.f32.mrf.mxu3  ;;  %v1666_v18 = vpop.permute.xlu0 %1665  ;;  %v1383_v30 = vadd.f32 %v1382_v23, %v9455_v48  ;;  %v7928_v23 = vld [vmem:[%s9275_s12 + $0x34] sm:$0xf0] }
 0x180   : > { %1712 = vst.msk [vmem:[#allocation2 + $0x88] sm:$0xf] %vm1596_vm0, %v1666_v18  ;;  %v1939_v22 = vrot.slane %v1666_v18, 4  ;;  %v1431_v24 = vpop.f32.mrf.mxu1 }
 0x181   : > { %v1527_v27 = vadd.f32 %v1526_v17, %v1478_v16  ;;  %2358 = vmatmul.bf16.gmra.mxu0 %v7008_v15  ;;  %v1432_v34 = vadd.f32 %v1431_v24, %v1383_v30  ;;  %1624 = vst.msk [vmem:[#allocation2 + $0x6c] sm:$0xf] %vm1596_vm0, %v1591_v6  ;;  %v7927_v24 = vld [vmem:[%s9275_s12 + $0x34] sm:$0xf] }
 0x182   : > { %1972 = vst.msk [vmem:[#allocation2 + $0x188] sm:$0xf] %vm1596_vm0, %v1939_v22  ;;  %2407 = vmatmul.bf16.gmra.mxu1 %v7012_v20  ;;  %v7023_v22 = vld [vmem:[%s9275_s12 + $0x30] sm:$0xf] }
 0x183   : > { %v1565_v29 = vpack.c.bf16 %v1527_v27, %v1429_v26  ;;  %2456 = vmatmul.bf16.gmra.mxu2 %v7008_v15  ;;  %1737 = vst.msk [vmem:[#allocation2 + $0xec] sm:$0xf] %vm1596_vm0, %v1591_v6 }
 0x184   : > { %2505 = vmatmul.bf16.gmra.mxu3 %v7012_v20  ;;  %v7972_v20 = vld [vmem:[#allocation2 + $0x18] sm:$0xff]  ;;  %1883 = vst.msk [vmem:[#allocation2 + $0x16c] sm:$0xf] %vm1596_vm0, %v1591_v6 }
 0x185   : > { %1630 = vst.msk [vmem:[#allocation3 + $0x4] sm:$0xf] %vm1596_vm0, %v1565_v29  ;;  %v1889_v31 = vrot.slane %v1565_v29, 4  ;;  %1760 = vrot.lane.b32.xlu1 %v1565_v29, %s9030_s20  ;;  %v2811_v30 = vsel %vm11512_vm1, %v7972_v20, 0  ;;  %v8008_v20 = vld [vmem:[#allocation2 + $0xf8] sm:$0xff] }
 0x186   : > { %v1480_v32 = vpop.f32.mrf.mxu2  ;;  %2850 = vmatpush.bf16.xpose.msrb.mxu0 %v2820_v33  ;;  %v1384_v40 = vpop.f32.mrf.mxu0  ;;  %1997 = vst.msk [vmem:[#allocation2 + $0x1ec] sm:$0xf] %vm1596_vm0, %v1591_v6 }
 0x187   : > { %1922 = vst.msk [vmem:[#allocation3 + $0x84] sm:$0xf] %vm1596_vm0, %v1889_v31  ;;  %v1481_v35 = vadd.f32 %v1480_v32, %v9467_v57  ;;  %v1529_v36 = vpop.f32.mrf.mxu3  ;;  %v1674_v37 = vpop.permute.xlu2 %1673  ;;  %v1385_v53 = vadd.f32 %v1384_v40, %v9455_v48  ;;  %v7024_v31 = vor.u32 %v7928_v23, %v7023_v22 }
 0x188   : > { %1716 = vst.msk [vmem:[#allocation2 + $0x98] sm:$0xf] %vm1596_vm0, %v1674_v37  ;;  %v1943_v38 = vrot.slane %v1674_v37, 4  ;;  %v1668_v39 = vpop.permute.xlu1 %1667  ;;  %v1433_v43 = vpop.f32.mrf.mxu1  ;;  %v7982_v28 = vld [vmem:[#allocation2 + $0x68] sm:$0xff] }
 0x189   : > { %v1530_v41 = vadd.f32 %v1529_v36, %v1481_v35  ;;  %1713 = vst.msk [vmem:[#allocation2 + $0x8c] sm:$0xf] %vm1596_vm0, %v1668_v39  ;;  %v1940_v42 = vrot.slane %v1668_v39, 4  ;;  %v1434_v63 = vadd.f32 %v1433_v43, %v1385_v53  ;;  %v2841_v35 = vsel %vm11512_vm1, %v7982_v28, 0  ;;  %v9576_v36 = vld [vmem:[%s11466_s8 + $0x20] sm:$0xf] }
 0x18a   : > { %1976 = vst.msk [vmem:[#allocation2 + $0x198] sm:$0xf] %vm1596_vm0, %v1943_v38  ;;  %2900 = vmatpush.bf16.xpose.msrb.mxu1 %v2841_v35  ;;  %v9582_v38 = vld [vmem:[%s11466_s8 + $0x24] sm:$0xf]  ;;  %v1586_v28 = vld [vmem:[%s11466_s8 + $0x18] sm:$0xf] }
 0x18b   : > { %v1566_v47 = vpack.c.bf16 %v1530_v41, %v1432_v34  ;;  %1973 = vst.msk [vmem:[#allocation2 + $0x18c] sm:$0xf] %vm1596_vm0, %v1940_v42  ;;  %v7028_v34 = vor.u32 %v7927_v24, %v7025_v25  ;;  %v7971_v42 = vld [vmem:[#allocation2 + $0x10] sm:$0xff]  ;;  %v3595_v25 = vsel %vm11512_vm1, %v8008_v20, 0  ;;  %v1587_v35 = vld [vmem:[%s11466_s8 + $0x1c] sm:$0xf] }
 0x18c   : > { %1621 = vst.msk [vmem:[#allocation2 + $0x60] sm:$0xf] %vm1596_vm0, %v9576_v36 }
 0x18d   : > { %1631 = vst.msk [vmem:[#allocation3 + $0x8] sm:$0xf] %vm1596_vm0, %v1566_v47  ;;  %v1890_v52 = vrot.slane %v1566_v47, 4  ;;  %1762 = vrot.lane.b32.xlu2 %v1566_v47, %s9030_s20  ;;  %v2808_v47 = vsel %vm11512_vm1, %v7971_v42, 0  ;;  %v7931_v42 = vld [vmem:[%s9275_s12 + $0x54] sm:$0xf] }
 0x18e   : > { %v1482_v54 = vpop.f32.mrf.mxu2  ;;  %2851 = vmatpush.bf16.xpose.msrb.mxu0 %v2817_v19  ;;  %v1387_v62 = vpop.f32.mrf.mxu0  ;;  %1622 = vst.msk [vmem:[#allocation2 + $0x64] sm:$0xf] %vm1596_vm0, %v9582_v38 }
 0x18f   : > { %1923 = vst.msk [vmem:[#allocation3 + $0x88] sm:$0xf] %vm1596_vm0, %v1890_v52  ;;  %v1483_v56 = vadd.f32 %v1482_v54, %v9467_v57  ;;  %v1531_v58 = vpop.f32.mrf.mxu3  ;;  %v1670_v59 = vpop.permute.xlu0 %1669  ;;  %v1388_v5 = vadd.f32 %v1387_v62, %v9455_v48  ;;  %v7930_v62 = vld [vmem:[%s9275_s12 + $0x44] sm:$0xf0] }
 0x190   : > { %1714 = vst.msk [vmem:[#allocation2 + $0x90] sm:$0xf] %vm1596_vm0, %v1670_v59  ;;  %v1941_v61 = vrot.slane %v1670_v59, 4  ;;  %v1436_v1 = vpop.f32.mrf.mxu1  ;;  %v7031_v59 = vld [vmem:[%s9275_s12 + $0x40] sm:$0xf] }
 0x191   : > { %v1532_v0 = vadd.f32 %v1531_v58, %v1483_v56  ;;  %2363 = vmatmul.bf16.gmra.mxu0 %v7016_v55  ;;  %v1437_v11 = vadd.f32 %v1436_v1, %v1388_v5  ;;  %1734 = vst.msk [vmem:[#allocation2 + $0xe0] sm:$0xf] %vm1596_vm0, %v9576_v36  ;;  %v7970_v58 = vld [vmem:[#allocation2 + $0x8] sm:$0xff]  ;;  %v7032_v6 = vor.u32 %v7930_v62, %v7031_v59 }
 0x192   : > { %1974 = vst.msk [vmem:[#allocation2 + $0x190] sm:$0xf] %vm1596_vm0, %v1941_v61  ;;  %2412 = vmatmul.bf16.gmra.mxu1 %v7020_v60  ;;  %v2805_v5 = vsel %vm11512_vm1, %v7970_v58, 0 }
 0x193   : > { %v1567_v4 = vpack.c.bf16 %v1532_v0, %v1434_v63  ;;  %2461 = vmatmul.bf16.gmra.mxu2 %v7016_v55  ;;  %1735 = vst.msk [vmem:[#allocation2 + $0xe4] sm:$0xf] %vm1596_vm0, %v9582_v38  ;;  %v7929_v63 = vld [vmem:[%s9275_s12 + $0x44] sm:$0xf]  ;;  %v7033_v0 = vld [vmem:[%s9275_s12 + $0x48] sm:$0xf0] }
 0x194   : > { %2510 = vmatmul.bf16.gmra.mxu3 %v7020_v60  ;;  %1880 = vst.msk [vmem:[#allocation2 + $0x160] sm:$0xf] %vm1596_vm0, %v9576_v36 }
 0x195   : > { %1632 = vst.msk [vmem:[#allocation3 + $0xc] sm:$0xf] %vm1596_vm0, %v1567_v4  ;;  %v1891_v8 = vrot.slane %v1567_v4, 4  ;;  %1764 = vrot.lane.b32.xlu2 %v1567_v4, %s9030_s20  ;;  %v7981_v60 = vld [vmem:[#allocation2 + $0x60] sm:$0xff] }
 0x196   : > { %v1485_v9 = vpop.f32.mrf.mxu2  ;;  %2852 = vmatpush.bf16.xpose.msrb.mxu0 %v2814_v10  ;;  %v1389_v16 = vpop.f32.mrf.mxu0  ;;  %v2838_v1 = vsel %vm11512_vm1, %v7981_v60, 0  ;;  %1881 = vst.msk [vmem:[#allocation2 + $0x164] sm:$0xf] %vm1596_vm0, %v9582_v38 }
 0x197   : > { %1924 = vst.msk [vmem:[#allocation3 + $0x8c] sm:$0xf] %vm1596_vm0, %v1891_v8  ;;  %v1486_v12 = vadd.f32 %v1485_v9, %v9467_v57  ;;  %v1534_v13 = vpop.f32.mrf.mxu3  ;;  %v1672_v14 = vpop.permute.xlu1 %1671  ;;  %v1390_v27 = vadd.f32 %v1389_v16, %v9455_v48  ;;  %2901 = vmatpush.bf16.xpose.msrb.mxu1 %v2838_v1 }
 0x198   : > { %1715 = vst.msk [vmem:[#allocation2 + $0x94] sm:$0xf] %vm1596_vm0, %v1672_v14  ;;  %v1942_v15 = vrot.slane %v1672_v14, 4  ;;  %v1438_v18 = vpop.f32.mrf.mxu1 }
 0x199   : > { %v1535_v17 = vadd.f32 %v1534_v13, %v1486_v12  ;;  %v1439_v39 = vadd.f32 %v1438_v18, %v1390_v27  ;;  %1994 = vst.msk [vmem:[#allocation2 + $0x1e0] sm:$0xf] %vm1596_vm0, %v9576_v36 }
 0x19a   : > { %1975 = vst.msk [vmem:[#allocation2 + $0x194] sm:$0xf] %vm1596_vm0, %v1942_v15 }
 0x19b   : > { %v1568_v21 = vpack.c.bf16 %v1535_v17, %v1437_v11  ;;  %v7036_v11 = vor.u32 %v7929_v63, %v7033_v0  ;;  %1995 = vst.msk [vmem:[#allocation2 + $0x1e4] sm:$0xf] %vm1596_vm0, %v9582_v38  ;;  %v8007_v38 = vld [vmem:[#allocation2 + $0xf0] sm:$0xff] }
 0x19c   : > { %1619 = vst.msk [vmem:[#allocation2 + $0x58] sm:$0xf] %vm1596_vm0, %v1586_v28 }
 0x19d   : > { %1633 = vst.msk [vmem:[#allocation3 + $0x10] sm:$0xf] %vm1596_vm0, %v1568_v21  ;;  %v1892_v26 = vrot.slane %v1568_v21, 4  ;;  %1766 = vrot.lane.b32.xlu0 %v1568_v21, %s9030_s20  ;;  %v7969_v21 = vld [vmem:[#allocation2] sm:$0xff] }
 0x19e   : > { %v1487_v29 = vpop.f32.mrf.mxu2  ;;  %2853 = vmatpush.bf16.xpose.msrb.mxu0 %v2811_v30  ;;  %v1392_v37 = vpop.f32.mrf.mxu0  ;;  %v2802_v27 = vsel %vm11512_vm1, %v7969_v21, 0  ;;  %1620 = vst.msk [vmem:[#allocation2 + $0x5c] sm:$0xf] %vm1596_vm0, %v1587_v35 }
 0x19f   : > { %1925 = vst.msk [vmem:[#allocation3 + $0x90] sm:$0xf] %vm1596_vm0, %v1892_v26  ;;  %v1488_v32 = vadd.f32 %v1487_v29, %v9467_v57  ;;  %v1536_v33 = vpop.f32.mrf.mxu3  ;;  %v1393_v44 = vadd.f32 %v1392_v37, %v9455_v48 }
 0x1a0   : > { %v1441_v41 = vpop.f32.mrf.mxu1  ;;  %1732 = vst.msk [vmem:[#allocation2 + $0xd8] sm:$0xf] %vm1596_vm0, %v1586_v28 }
 0x1a1   : > { %v1537_v40 = vadd.f32 %v1536_v33, %v1488_v32  ;;  %2368 = vmatmul.bf16.gmra.mxu0 %v7024_v31  ;;  %v1442_v49 = vadd.f32 %v1441_v41, %v1393_v44  ;;  %v7932_v41 = vld [vmem:[%s9275_s12 + $0x54] sm:$0xf0]  ;;  %1733 = vst.msk [vmem:[#allocation2 + $0xdc] sm:$0xf] %vm1596_vm0, %v1587_v35 }
 0x1a2   : > { %2417 = vmatmul.bf16.gmra.mxu1 %v7028_v34  ;;  %1878 = vst.msk [vmem:[#allocation2 + $0x158] sm:$0xf] %vm1596_vm0, %v1586_v28 }
 0x1a3   : > { %v1569_v43 = vpack.c.bf16 %v1537_v40, %v1439_v39  ;;  %2466 = vmatmul.bf16.gmra.mxu2 %v7024_v31  ;;  %v7039_v40 = vld [vmem:[%s9275_s12 + $0x50] sm:$0xf]  ;;  %1879 = vst.msk [vmem:[#allocation2 + $0x15c] sm:$0xf] %vm1596_vm0, %v1587_v35 }
 0x1a4   : > { %2515 = vmatmul.bf16.gmra.mxu3 %v7028_v34  ;;  %1992 = vst.msk [vmem:[#allocation2 + $0x1d8] sm:$0xf] %vm1596_vm0, %v1586_v28 }
 0x1a5   : > { %1634 = vst.msk [vmem:[#allocation3 + $0x14] sm:$0xf] %vm1596_vm0, %v1569_v43  ;;  %v1893_v45 = vrot.slane %v1569_v43, 4  ;;  %1768 = vrot.lane.b32.xlu2 %v1569_v43, %s9030_s20  ;;  %v7041_v43 = vld [vmem:[%s9275_s12 + $0x58] sm:$0xf0] }
 0x1a6   : > { %v1490_v46 = vpop.f32.mrf.mxu2  ;;  %2854 = vmatpush.bf16.xpose.msrb.mxu0 %v2808_v47  ;;  %v1394_v54 = vpop.f32.mrf.mxu0  ;;  %v7980_v58 = vld [vmem:[#allocation2 + $0x58] sm:$0xff]  ;;  %1993 = vst.msk [vmem:[#allocation2 + $0x1dc] sm:$0xf] %vm1596_vm0, %v1587_v35 }
 0x1a7   : > { %1926 = vst.msk [vmem:[#allocation3 + $0x94] sm:$0xf] %vm1596_vm0, %v1893_v45  ;;  %v1491_v50 = vadd.f32 %v1490_v46, %v9467_v57  ;;  %v1539_v7 = vpop.f32.mrf.mxu3  ;;  %v1676_v51 = vpop.permute.xlu0 %1675  ;;  %v1395_v3 = vadd.f32 %v1394_v54, %v9455_v48  ;;  %v3592_v46 = vsel %vm11512_vm1, %v8007_v38, 0  ;;  %v2835_v62 = vsel %vm11512_vm1, %v7980_v58, 0 }
 0x1a8   : > { %1717 = vst.msk [vmem:[#allocation2 + $0x9c] sm:$0xf] %vm1596_vm0, %v1676_v51  ;;  %v1944_v52 = vrot.slane %v1676_v51, 4  ;;  %v1682_v53 = vpop.permute.xlu2 %1681  ;;  %v1443_v56 = vpop.f32.mrf.mxu1  ;;  %v7044_v51 = vor.u32 %v7931_v42, %v7041_v43  ;;  %2902 = vmatpush.bf16.xpose.msrb.mxu1 %v2835_v62 }
 0x1a9   : > { %v1540_v19 = vadd.f32 %v1539_v7, %v1491_v50  ;;  %1720 = vst.msk [vmem:[#allocation2 + $0xa8] sm:$0xf] %vm1596_vm0, %v1682_v53  ;;  %v1947_v55 = vrot.slane %v1682_v53, 4  ;;  %v1444_v15 = vadd.f32 %v1443_v56, %v1395_v3  ;;  %v8006_v56 = vld [vmem:[#allocation2 + $0xe8] sm:$0xff] }
 0x1aa   : > { %1977 = vst.msk [vmem:[#allocation2 + $0x19c] sm:$0xf] %vm1596_vm0, %v1944_v52  ;;  %v3589_v0 = vsel %vm11512_vm1, %v8006_v56, 0  ;;  %v7057_v56 = vld [vmem:[%s9275_s12 + $0x78] sm:$0xf0] }
 0x1ab   : > { %v1570_v61 = vpack.c.bf16 %v1540_v19, %v1442_v49  ;;  %1980 = vst.msk [vmem:[#allocation2 + $0x1a8] sm:$0xf] %vm1596_vm0, %v1947_v55  ;;  %v7040_v49 = vor.u32 %v7932_v41, %v7039_v40  ;;  %v1584_v55 = vld [vmem:[%s11466_s8 + $0x10] sm:$0xf] }
 0x1ac   : > { %1617 = vst.msk [vmem:[#allocation2 + $0x50] sm:$0xf] %vm1596_vm0, %v1584_v55 }
 0x1ad   : > { %1635 = vst.msk [vmem:[#allocation3 + $0x18] sm:$0xf] %vm1596_vm0, %v1570_v61  ;;  %v1894_v2 = vrot.slane %v1570_v61, 4  ;;  %1770 = vrot.lane.b32.xlu1 %v1570_v61, %s9030_s20  ;;  %v1585_v61 = vld [vmem:[%s11466_s8 + $0x14] sm:$0xf] }
 0x1ae   : > { %v1492_v4 = vpop.f32.mrf.mxu2  ;;  %2855 = vmatpush.bf16.xpose.msrb.mxu0 %v2805_v5  ;;  %v1397_v14 = vpop.f32.mrf.mxu0  ;;  %1618 = vst.msk [vmem:[#allocation2 + $0x54] sm:$0xf] %vm1596_vm0, %v1585_v61 }
 0x1af   : > { %1927 = vst.msk [vmem:[#allocation3 + $0x98] sm:$0xf] %vm1596_vm0, %v1894_v2  ;;  %v1493_v8 = vadd.f32 %v1492_v4, %v9467_v57  ;;  %v1541_v9 = vpop.f32.mrf.mxu3  ;;  %v1678_v10 = vpop.permute.xlu0 %1677  ;;  %v1398_v23 = vadd.f32 %v1397_v14, %v9455_v48  ;;  %v7049_v14 = vld [vmem:[%s9275_s12 + $0x68] sm:$0xf0] }
 0x1b0   : > { %1718 = vst.msk [vmem:[#allocation2 + $0xa0] sm:$0xf] %vm1596_vm0, %v1678_v10  ;;  %v1945_v12 = vrot.slane %v1678_v10, 4  ;;  %v1684_v13 = vpop.permute.xlu2 %1683  ;;  %v1446_v18 = vpop.f32.mrf.mxu1 }
 0x1b1   : > { %v1542_v16 = vadd.f32 %v1541_v9, %v1493_v8  ;;  %1721 = vst.msk [vmem:[#allocation2 + $0xac] sm:$0xf] %vm1596_vm0, %v1684_v13  ;;  %v1948_v17 = vrot.slane %v1684_v13, 4  ;;  %2373 = vmatmul.bf16.gmra.mxu0 %v7032_v6  ;;  %v1447_v29 = vadd.f32 %v1446_v18, %v1398_v23  ;;  %v8005_v9 = vld [vmem:[#allocation2 + $0xe0] sm:$0xff] }
 0x1b2   : > { %1978 = vst.msk [vmem:[#allocation2 + $0x1a0] sm:$0xf] %vm1596_vm0, %v1945_v12  ;;  %2422 = vmatmul.bf16.gmra.mxu1 %v7036_v11  ;;  %v7934_v12 = vld [vmem:[%s9275_s12 + $0x64] sm:$0xf0]  ;;  %v7933_v13 = vld [vmem:[%s9275_s12 + $0x64] sm:$0xf] }
 0x1b3   : > { %v1571_v22 = vpack.c.bf16 %v1542_v16, %v1444_v15  ;;  %1981 = vst.msk [vmem:[#allocation2 + $0x1ac] sm:$0xf] %vm1596_vm0, %v1948_v17  ;;  %2471 = vmatmul.bf16.gmra.mxu2 %v7032_v6  ;;  %v3586_v18 = vsel %vm11512_vm1, %v8005_v9, 0 }
 0x1b4   : > { %2520 = vmatmul.bf16.gmra.mxu3 %v7036_v11  ;;  %1730 = vst.msk [vmem:[#allocation2 + $0xd0] sm:$0xf] %vm1596_vm0, %v1584_v55  ;;  %v7047_v11 = vld [vmem:[%s9275_s12 + $0x60] sm:$0xf] }
 0x1b5   : > { %1636 = vst.msk [vmem:[#allocation3 + $0x1c] sm:$0xf] %vm1596_vm0, %v1571_v22  ;;  %v1895_v24 = vrot.slane %v1571_v22, 4  ;;  %1772 = vrot.lane.b32.xlu1 %v1571_v22, %s9030_s20  ;;  %v7979_v17 = vld [vmem:[#allocation2 + $0x50] sm:$0xff] }
 0x1b6   : > { %v1495_v26 = vpop.f32.mrf.mxu2  ;;  %2856 = vmatpush.bf16.xpose.msrb.mxu0 %v2802_v27  ;;  %v1399_v34 = vpop.f32.mrf.mxu0  ;;  %1731 = vst.msk [vmem:[#allocation2 + $0xd4] sm:$0xf] %vm1596_vm0, %v1585_v61 }
 0x1b7   : > { %1928 = vst.msk [vmem:[#allocation3 + $0x9c] sm:$0xf] %vm1596_vm0, %v1895_v24  ;;  %v1496_v30 = vadd.f32 %v1495_v26, %v9467_v57  ;;  %v1544_v31 = vpop.f32.mrf.mxu3  ;;  %v1680_v32 = vpop.permute.xlu1 %1679  ;;  %v1400_v45 = vadd.f32 %v1399_v34, %v9455_v48  ;;  %v7048_v24 = vor.u32 %v7934_v12, %v7047_v11  ;;  %v1582_v26 = vld [vmem:[%s11466_s8 + $0x8] sm:$0xf]  ;;  %v8004_v34 = vld [vmem:[#allocation2 + $0xd8] sm:$0xff] }
 0x1b8   : > { %1719 = vst.msk [vmem:[#allocation2 + $0xa4] sm:$0xf] %vm1596_vm0, %v1680_v32  ;;  %v1946_v33 = vrot.slane %v1680_v32, 4  ;;  %v1448_v37 = vpop.f32.mrf.mxu1  ;;  %v3583_v38 = vsel %vm11512_vm1, %v8004_v34, 0 }
 0x1b9   : > { %v1545_v36 = vadd.f32 %v1544_v31, %v1496_v30  ;;  %v1449_v53 = vadd.f32 %v1448_v37, %v1400_v45  ;;  %1876 = vst.msk [vmem:[#allocation2 + $0x150] sm:$0xf] %vm1596_vm0, %v1584_v55  ;;  %v1583_v30 = vld [vmem:[%s11466_s8 + $0xc] sm:$0xf] }
 0x1ba   : > { %1979 = vst.msk [vmem:[#allocation2 + $0x1a4] sm:$0xf] %vm1596_vm0, %v1946_v33 }
 0x1bb   : > { %v1572_v39 = vpack.c.bf16 %v1545_v36, %v1447_v29  ;;  %1877 = vst.msk [vmem:[#allocation2 + $0x154] sm:$0xf] %vm1596_vm0, %v1585_v61  ;;  %v7052_v29 = vor.u32 %v7933_v13, %v7049_v14 }
 0x1bc   : > { %1990 = vst.msk [vmem:[#allocation2 + $0x1d0] sm:$0xf] %vm1596_vm0, %v1584_v55 }
 0x1bd   : > { %1637 = vst.msk [vmem:[#allocation3 + $0x20] sm:$0xf] %vm1596_vm0, %v1572_v39  ;;  %v1896_v44 = vrot.slane %v1572_v39, 4  ;;  %1774 = vrot.lane.b32.xlu1 %v1572_v39, %s9030_s20 }
 0x1be   : > { %3646 = vmatpush.bf16.xpose.msra.mxu0 %v3595_v25  ;;  %v1497_v47 = vpop.f32.mrf.mxu2  ;;  %v1402_v52 = vpop.f32.mrf.mxu0  ;;  %1991 = vst.msk [vmem:[#allocation2 + $0x1d4] sm:$0xf] %vm1596_vm0, %v1585_v61  ;;  %v2832_v25 = vsel %vm11512_vm1, %v7979_v17, 0 }
 0x1bf   : > { %1929 = vst.msk [vmem:[#allocation3 + $0xa0] sm:$0xf] %vm1596_vm0, %v1896_v44  ;;  %v1498_v50 = vadd.f32 %v1497_v47, %v9467_v57  ;;  %v1546_v7 = vpop.f32.mrf.mxu3  ;;  %v1403_v60 = vadd.f32 %v1402_v52, %v9455_v48  ;;  %2903 = vmatpush.bf16.xpose.msrb.mxu1 %v2832_v25  ;;  %v7936_v52 = vld [vmem:[%s9275_s12 + $0x74] sm:$0xf0] }
 0x1c0   : > { %v1451_v19 = vpop.f32.mrf.mxu1  ;;  %1615 = vst.msk [vmem:[#allocation2 + $0x48] sm:$0xf] %vm1596_vm0, %v1582_v26 }
 0x1c1   : > { %v1547_v54 = vadd.f32 %v1546_v7, %v1498_v50  ;;  %2378 = vmatmul.bf16.gmra.mxu0 %v7040_v49  ;;  %v1452_v2 = vadd.f32 %v1451_v19, %v1403_v60  ;;  %1616 = vst.msk [vmem:[#allocation2 + $0x4c] sm:$0xf] %vm1596_vm0, %v1583_v30  ;;  %v9727_v60 = vld [vmem:[%s11466_s8] sm:$0xf] }
 0x1c2   : > { %2427 = vmatmul.bf16.gmra.mxu1 %v7044_v51  ;;  %1728 = vst.msk [vmem:[#allocation2 + $0xc8] sm:$0xf] %vm1596_vm0, %v1582_v26 }
 0x1c3   : > { %v1573_v59 = vpack.c.bf16 %v1547_v54, %v1449_v53  ;;  %2476 = vmatmul.bf16.gmra.mxu2 %v7040_v49  ;;  %1729 = vst.msk [vmem:[#allocation2 + $0xcc] sm:$0xf] %vm1596_vm0, %v1583_v30  ;;  %v8003_v49 = vld [vmem:[#allocation2 + $0xd0] sm:$0xff] }
 0x1c4   : > { %2525 = vmatmul.bf16.gmra.mxu3 %v7044_v51  ;;  %1874 = vst.msk [vmem:[#allocation2 + $0x148] sm:$0xf] %vm1596_vm0, %v1582_v26  ;;  %v7055_v51 = vld [vmem:[%s9275_s12 + $0x70] sm:$0xf]  ;;  %v7935_v53 = vld [vmem:[%s9275_s12 + $0x74] sm:$0xf] }
 0x1c5   : > { %1638 = vst.msk [vmem:[#allocation3 + $0x24] sm:$0xf] %vm1596_vm0, %v1573_v59  ;;  %v1897_v63 = vrot.slane %v1573_v59, 4  ;;  %1776 = vrot.lane.b32.xlu2 %v1573_v59, %s9030_s20  ;;  %v3580_v58 = vsel %vm11512_vm1, %v8003_v49, 0  ;;  %s10415_s12 = scalar_lea.vmem [#allocation17], %s6609_s17 }
 0x1c6   : > { %3647 = vmatpush.bf16.xpose.msra.mxu0 %v3592_v46  ;;  %v1500_v1 = vpop.f32.mrf.mxu2  ;;  %v1404_v5 = vpop.f32.mrf.mxu0  ;;  %1875 = vst.msk [vmem:[#allocation2 + $0x14c] sm:$0xf] %vm1596_vm0, %v1583_v30 }
 0x1c7   : > { %1930 = vst.msk [vmem:[#allocation3 + $0xa4] sm:$0xf] %vm1596_vm0, %v1897_v63  ;;  %v1501_v3 = vadd.f32 %v1500_v1, %v9467_v57  ;;  %v1549_v4 = vpop.f32.mrf.mxu3  ;;  %v1405_v16 = vadd.f32 %v1404_v5, %v9455_v48 }
 0x1c8   : > { %v1453_v8 = vpop.f32.mrf.mxu1  ;;  %v7978_v50 = vld [vmem:[#allocation2 + $0x48] sm:$0xff]  ;;  %1988 = vst.msk [vmem:[#allocation2 + $0x1c8] sm:$0xf] %vm1596_vm0, %v1582_v26 }
 0x1c9   : > { %v1550_v6 = vadd.f32 %v1549_v4, %v1501_v3  ;;  %v1454_v31 = vadd.f32 %v1453_v8, %v1405_v16  ;;  %v2829_v54 = vsel %vm11512_vm1, %v7978_v50, 0  ;;  %1989 = vst.msk [vmem:[#allocation2 + $0x1cc] sm:$0xf] %vm1596_vm0, %v1583_v30  ;;  %v7060_v3 = vor.u32 %v7935_v53, %v7057_v56  ;;  %v9735_v4 = vld [vmem:[%s11466_s8 + $0x4] sm:$0xf] }
 0x1ca   : > { %2904 = vmatpush.bf16.xpose.msrb.mxu1 %v2829_v54  ;;  %1613 = vst.msk [vmem:[#allocation2 + $0x40] sm:$0xf] %vm1596_vm0, %v9727_v60  ;;  %v8002_v9 = vld [vmem:[#allocation2 + $0xc8] sm:$0xff] }
 0x1cb   : > { %v1574_v10 = vpack.c.bf16 %v1550_v6, %v1452_v2  ;;  %1614 = vst.msk [vmem:[#allocation2 + $0x44] sm:$0xf] %vm1596_vm0, %v9735_v4  ;;  %v3577_v13 = vsel %vm11512_vm1, %v8002_v9, 0 }
 0x1cc   : > { %1726 = vst.msk [vmem:[#allocation2 + $0xc0] sm:$0xf] %vm1596_vm0, %v9727_v60 }
 0x1cd   : > { %1639 = vst.msk [vmem:[#allocation3 + $0x28] sm:$0xf] %vm1596_vm0, %v1574_v10  ;;  %v1898_v15 = vrot.slane %v1574_v10, 4  ;;  %1778 = vrot.lane.b32.xlu1 %v1574_v10, %s9030_s20 }
 0x1ce   : > { %3648 = vmatpush.bf16.xpose.msra.mxu0 %v3589_v0  ;;  %v1502_v20 = vpop.f32.mrf.mxu2  ;;  %v1407_v28 = vpop.f32.mrf.mxu0  ;;  %v7056_v0 = vor.u32 %v7936_v52, %v7055_v51  ;;  %1727 = vst.msk [vmem:[#allocation2 + $0xc4] sm:$0xf] %vm1596_vm0, %v9735_v4 }
 0x1cf   : > { %1931 = vst.msk [vmem:[#allocation3 + $0xa8] sm:$0xf] %vm1596_vm0, %v1898_v15  ;;  %v1503_v21 = vadd.f32 %v1502_v20, %v9467_v57  ;;  %v1551_v22 = vpop.f32.mrf.mxu3  ;;  %v1686_v23 = vpop.permute.xlu1 %1685  ;;  %v1408_v36 = vadd.f32 %v1407_v28, %v9455_v48 }
 0x1d0   : > { %1722 = vst.msk [vmem:[#allocation2 + $0xb0] sm:$0xf] %vm1596_vm0, %v1686_v23  ;;  %v1949_v27 = vrot.slane %v1686_v23, 4  ;;  %v1456_v33 = vpop.f32.mrf.mxu1 }
 0x1d1   : > { %v1552_v32 = vadd.f32 %v1551_v22, %v1503_v21  ;;  %2383 = vmatmul.bf16.gmra.mxu0 %v7048_v24  ;;  %v1457_v40 = vadd.f32 %v1456_v33, %v1408_v36  ;;  %1872 = vst.msk [vmem:[#allocation2 + $0x140] sm:$0xf] %vm1596_vm0, %v9727_v60  ;;  %v2099_v33 = vld [vmem:[%s11465_s7] ss:$4 sm:$0x3] }
 0x1d2   : > { %1982 = vst.msk [vmem:[#allocation2 + $0x1b0] sm:$0xf] %vm1596_vm0, %v1949_v27  ;;  %2432 = vmatmul.bf16.gmra.mxu1 %v7052_v29  ;;  %v7977_v26 = vld [vmem:[#allocation2 + $0x40] sm:$0xff] }
 0x1d3   : > { %v1575_v35 = vpack.c.bf16 %v1552_v32, %v1454_v31  ;;  %2481 = vmatmul.bf16.gmra.mxu2 %v7048_v24  ;;  %v2826_v28 = vsel %vm11512_vm1, %v7977_v26, 0  ;;  %1873 = vst.msk [vmem:[#allocation2 + $0x144] sm:$0xf] %vm1596_vm0, %v9735_v4 }
 0x1d4   : > { %2530 = vmatmul.bf16.gmra.mxu3 %v7052_v29  ;;  %2905 = vmatpush.bf16.xpose.msrb.mxu1 %v2826_v28  ;;  %1986 = vst.msk [vmem:[#allocation2 + $0x1c0] sm:$0xf] %vm1596_vm0, %v9727_v60 }
 0x1d5   : > { %1640 = vst.msk [vmem:[#allocation3 + $0x2c] sm:$0xf] %vm1596_vm0, %v1575_v35  ;;  %v1899_v37 = vrot.slane %v1575_v35, 4  ;;  %1780 = vrot.lane.b32.xlu1 %v1575_v35, %s9030_s20  ;;  %v8001_v31 = vld [vmem:[#allocation2 + $0xc0] sm:$0xff] }
 0x1d6   : > { %3649 = vmatpush.bf16.xpose.msra.mxu0 %v3586_v18  ;;  %v1505_v39 = vpop.f32.mrf.mxu2  ;;  %v1409_v45 = vpop.f32.mrf.mxu0  ;;  %1987 = vst.msk [vmem:[#allocation2 + $0x1c4] sm:$0xf] %vm1596_vm0, %v9735_v4 }
 0x1d7   : > { %1932 = vst.msk [vmem:[#allocation3 + $0xac] sm:$0xf] %vm1596_vm0, %v1899_v37  ;;  %v1506_v41 = vadd.f32 %v1505_v39, %v9467_v57  ;;  %v1554_v42 = vpop.f32.mrf.mxu3  ;;  %v1688_v43 = vpop.permute.xlu1 %1687  ;;  %v1410_v55 = vadd.f32 %v1409_v45, %v9455_v48 }
 0x1d8   : > { %1723 = vst.msk [vmem:[#allocation2 + $0xb4] sm:$0xf] %vm1596_vm0, %v1688_v43  ;;  %v1950_v44 = vrot.slane %v1688_v43, 4  ;;  %v1458_v47 = vpop.f32.mrf.mxu1 }
 0x1d9   : > { %v1555_v46 = vadd.f32 %v1554_v42, %v1506_v41  ;;  %v1459_v5 = vadd.f32 %v1458_v47, %v1410_v55  ;;  %v9777_v47 = vperm.slane %v2099_v33, 1 }
 0x1da   : > { %1983 = vst.msk [vmem:[#allocation2 + $0x1b4] sm:$0xf] %vm1596_vm0, %v1950_v44 }
 0x1db   : > { %v1576_v7 = vpack.c.bf16 %v1555_v46, %v1457_v40 }
 0x1dd   : > { %1641 = vst.msk [vmem:[#allocation3 + $0x30] sm:$0xf] %vm1596_vm0, %v1576_v7  ;;  %v1900_v19 = vrot.slane %v1576_v7, 4  ;;  %1782 = vrot.lane.b32.xlu2 %v1576_v7, %s9030_s20 }
 0x1de   : > { %3650 = vmatpush.bf16.xpose.msra.mxu0 %v3583_v38  ;;  %v1507_v59 = vpop.f32.mrf.mxu2  ;;  %v1412_v2 = vpop.f32.mrf.mxu0 }
 0x1df   : > { %1933 = vst.msk [vmem:[#allocation3 + $0xb0] sm:$0xf] %vm1596_vm0, %v1900_v19  ;;  %v1508_v61 = vadd.f32 %v1507_v59, %v9467_v57  ;;  %v1556_v62 = vpop.f32.mrf.mxu3  ;;  %v1690_v63 = vpop.permute.xlu0 %1689  ;;  %v1413_v11 = vadd.f32 %v1412_v2, %v9455_v48  ;;  %v7999_v50 = vld [vmem:[#allocation2 + $0xb0] sm:$0xff] }
 0x1e0   : > { %1724 = vst.msk [vmem:[#allocation2 + $0xb8] sm:$0xf] %vm1596_vm0, %v1690_v63  ;;  %v1951_v1 = vrot.slane %v1690_v63, 4  ;;  %v1461_v8 = vpop.f32.mrf.mxu1  ;;  %v7998_v63 = vld [vmem:[#allocation2 + $0xa8] sm:$0xff] }
 0x1e1   : > { %v1557_v6 = vadd.f32 %v1556_v62, %v1508_v61  ;;  %2388 = vmatmul.bf16.gmra.mxu0 %v7056_v0  ;;  %v1462_v15 = vadd.f32 %v1461_v8, %v1413_v11 }
 0x1e2   : > { %1984 = vst.msk [vmem:[#allocation2 + $0x1b8] sm:$0xf] %vm1596_vm0, %v1951_v1  ;;  %2437 = vmatmul.bf16.gmra.mxu1 %v7060_v3 }
 0x1e3   : > { %v1577_v10 = vpack.c.bf16 %v1557_v6, %v1459_v5  ;;  %2486 = vmatmul.bf16.gmra.mxu2 %v7056_v0 }
 0x1e4   : > { %2535 = vmatmul.bf16.gmra.mxu3 %v7060_v3 }
 0x1e5   : > { %1642 = vst.msk [vmem:[#allocation3 + $0x34] sm:$0xf] %vm1596_vm0, %v1577_v10  ;;  %v1901_v12 = vrot.slane %v1577_v10, 4  ;;  %1784 = vrot.lane.b32.xlu0 %v1577_v10, %s9030_s20 }
 0x1e6   : > { %3651 = vmatpush.bf16.xpose.msra.mxu0 %v3580_v58  ;;  %v1510_v14 = vpop.f32.mrf.mxu2  ;;  %v1414_v22 = vpop.f32.mrf.mxu0  ;;  %v3568_v58 = vsel %vm11512_vm1, %v7999_v50, 0 }
 0x1e7   : > { %1934 = vst.msk [vmem:[#allocation3 + $0xb4] sm:$0xf] %vm1596_vm0, %v1901_v12  ;;  %v1511_v16 = vadd.f32 %v1510_v14, %v9467_v57  ;;  %v1559_v17 = vpop.f32.mrf.mxu3  ;;  %v1692_v18 = vpop.permute.xlu0 %1691  ;;  %v1415_v30 = vadd.f32 %v1414_v22, %v9455_v48  ;;  %v3574_v48 = vsel %vm11512_vm1, %v8001_v31, 0 }
 0x1e8   : > { %1725 = vst.msk [vmem:[#allocation2 + $0xbc] sm:$0xf] %vm1596_vm0, %v1692_v18  ;;  %v1952_v20 = vrot.slane %v1692_v18, 4  ;;  %v1763_v21 = vpop.permute.xlu2 %1762  ;;  %v1463_v25 = vpop.f32.mrf.mxu1 }
 0x1e9   : > { %v1560_v23 = vadd.f32 %v1559_v17, %v1511_v16  ;;  %1809 = vst.msk [vmem:[#allocation3 + $0x48] sm:$0xf] %vm1596_vm0, %v1763_v21  ;;  %v2004_v24 = vrot.slane %v1763_v21, 4  ;;  %v1464_v41 = vadd.f32 %v1463_v25, %v1415_v30  ;;  %v7990_v17 = vld [vmem:[#allocation3 + $0x28] sm:$0xff]  ;;  %v7989_v30 = vld [vmem:[#allocation3 + $0x20] sm:$0xff] }
 0x1ea   : > { %1985 = vst.msk [vmem:[#allocation2 + $0x1bc] sm:$0xf] %vm1596_vm0, %v1952_v20  ;;  %v7997_v20 = vld [vmem:[#allocation2 + $0xa0] sm:$0xff] }
 0x1eb   : > { %v1578_v27 = vpack.c.bf16 %v1560_v23, %v1462_v15  ;;  %2037 = vst.msk [vmem:[#allocation3 + $0xc8] sm:$0xf] %vm1596_vm0, %v2004_v24 }
 0x1ec   : > { %v7991_v10 = vld [vmem:[#allocation3 + $0x30] sm:$0xff] }
 0x1ed   : > { %1643 = vst.msk [vmem:[#allocation3 + $0x38] sm:$0xf] %vm1596_vm0, %v1578_v27  ;;  %v1902_v29 = vrot.slane %v1578_v27, 4  ;;  %1786 = vrot.lane.b32.xlu2 %v1578_v27, %s9030_s20 }
 0x1ee   : > { %3652 = vmatpush.bf16.xpose.msra.mxu0 %v3577_v13  ;;  %v1512_v32 = vpop.f32.mrf.mxu2  ;;  %v2354_v40 = vpop.f32.mrf.mxu0  ;;  %v3565_v13 = vsel %vm11512_vm1, %v7998_v63, 0 }
 0x1ef   : > { %1935 = vst.msk [vmem:[#allocation3 + $0xb8] sm:$0xf] %vm1596_vm0, %v1902_v29  ;;  %v1513_v34 = vadd.f32 %v1512_v32, %v9467_v57  ;;  %v1561_v35 = vpop.f32.mrf.mxu3  ;;  %v1759_v36 = vpop.permute.xlu0 %1758  ;;  %v8000_v37 = vld [vmem:[#allocation2 + $0xb8] sm:$0xff]  ;;  %v9774_v57 = vperm.slane %v2099_v33, 0 }
 0x1f0   : > { %1807 = vst.msk [vmem:[#allocation3 + $0x40] sm:$0xf] %vm1596_vm0, %v1759_v36  ;;  %v2002_v38 = vrot.slane %v1759_v36, 4  ;;  %v1765_v39 = vpop.permute.xlu2 %1764  ;;  %v2403_v44 = vpop.f32.mrf.mxu1  ;;  %v3571_v45 = vsel %vm11512_vm1, %v8000_v37, 0 }
 0x1f1   : > { %v1562_v42 = vadd.f32 %v1561_v35, %v1513_v34  ;;  %1810 = vst.msk [vmem:[#allocation3 + $0x4c] sm:$0xf] %vm1596_vm0, %v1765_v39  ;;  %v2005_v43 = vrot.slane %v1765_v39, 4  ;;  %3597 = vmatpush.bf16.xpose.msrb.mxu3 %v3571_v45  ;;  %v2355_v7 = vadd.f32 %v2354_v40, %v9774_v57  ;;  %v3562_v34 = vsel %vm11512_vm1, %v7997_v20, 0  ;;  %v7996_v39 = vld [vmem:[#allocation2 + $0x98] sm:$0xff] }
 0x1f2   : > { %2035 = vst.msk [vmem:[#allocation3 + $0xc0] sm:$0xf] %vm1596_vm0, %v2002_v38  ;;  %v7988_v38 = vld [vmem:[#allocation3 + $0x18] sm:$0xff] }
 0x1f3   : > { %v1579_v46 = vpack.c.bf16 %v1562_v42, %v1464_v41  ;;  %2038 = vst.msk [vmem:[#allocation3 + $0xcc] sm:$0xf] %vm1596_vm0, %v2005_v43  ;;  %v2404_v59 = vadd.f32 %v2403_v44, %v2355_v7 }
 0x1f5   : > { %1644 = vst.msk [vmem:[#allocation3 + $0x3c] sm:$0xf] %vm1596_vm0, %v1579_v46  ;;  %v1903_v49 = vrot.slane %v1579_v46, 4  ;;  %1788 = vrot.lane.b32.xlu2 %v1579_v46, %s9030_s20  ;;  %v2541_v0 = vmul.f32 0.125, %v2404_v59  ;;  %v7986_v59 = vld [vmem:[#allocation3 + $0x8] sm:$0xff] }
 0x1f6   : > { %3653 = vmatpush.bf16.xpose.msra.mxu0 %v3574_v48  ;;  %v2452_v51 = vpop.f32.mrf.mxu2  ;;  %v2356_v55 = vpop.f32.mrf.mxu0 }
 0x1f7   : > { %1936 = vst.msk [vmem:[#allocation3 + $0xbc] sm:$0xf] %vm1596_vm0, %v1903_v49  ;;  %v2453_v52 = vadd.f32 %v2452_v51, %v9777_v47  ;;  %v2501_v53 = vpop.f32.mrf.mxu3  ;;  %v1761_v54 = vpop.permute.xlu1 %1760  ;;  %v2357_v61 = vadd.f32 %v2356_v55, %v9774_v57  ;;  %v8039_v49 = vld [vmem:[#allocation3 + $0xb0] sm:$0xff] }
 0x1f8   : > { %1808 = vst.msk [vmem:[#allocation3 + $0x44] sm:$0xf] %vm1596_vm0, %v1761_v54  ;;  %v2003_v19 = vrot.slane %v1761_v54, 4  ;;  %v2405_v56 = vpop.f32.mrf.mxu1  ;;  %v7987_v51 = vld [vmem:[#allocation3 + $0x10] sm:$0xff]  ;;  %v3559_v54 = vsel %vm11512_vm1, %v7996_v39, 0 }
 0x1f9   : > { %v2502_v60 = vadd.f32 %v2501_v53, %v2453_v52  ;;  %3598 = vmatpush.bf16.xpose.msrb.mxu3 %v3568_v58  ;;  %v2406_v3 = vadd.f32 %v2405_v56, %v2357_v61  ;;  %v8038_v58 = vld [vmem:[#allocation3 + $0xa8] sm:$0xff]  ;;  %v7995_v61 = vld [vmem:[#allocation2 + $0x90] sm:$0xff] }
 0x1fa   : > { %2036 = vst.msk [vmem:[#allocation3 + $0xc4] sm:$0xf] %vm1596_vm0, %v2003_v19 }
 0x1fb   : > { %v2542_v1 = vmul.f32 0.125, %v2502_v60  ;;  %v2543_v15 = vmul.f32 0.125, %v2406_v3 }
 0x1fc   : > { %v7992_v62 = vld [vmem:[#allocation3 + $0x38] sm:$0xff] }
 0x1fd   : > { %3331 = vmatpush.bf16.msrb.mxu2 %v7992_v62  ;;  %v2573_v14 = vpack.c.bf16 %v2542_v1, %v2541_v0 }
 0x1fe   : > { %v2454_v2 = vpop.f32.mrf.mxu2  ;;  %v2359_v9 = vpop.f32.mrf.mxu0  ;;  %v8040_v48 = vld [vmem:[#allocation3 + $0xb8] sm:$0xff] }
 0x1ff   : > { %v2455_v4 = vadd.f32 %v2454_v2, %v9777_v47  ;;  %v2503_v5 = vpop.f32.mrf.mxu3  ;;  %v1769_v6 = vpop.permute.xlu2 %1768  ;;  %v2672_v21 = vunpack.c.l.b16 %v2573_v14  ;;  %v2360_v22 = vadd.f32 %v2359_v9, %v9774_v57  ;;  %v4179_v24 = vunpack.c.h.b16 %v2573_v14 }
 0x200   : > { %1812 = vst.msk [vmem:[#allocation3 + $0x54] sm:$0xf] %vm1596_vm0, %v1769_v6  ;;  %v2007_v8 = vrot.slane %v1769_v6, 4  ;;  %v2408_v12 = vpop.f32.mrf.mxu1  ;;  %v8037_v6 = vld [vmem:[#allocation3 + $0xa0] sm:$0xff] }
 0x201   : > { %v2504_v11 = vadd.f32 %v2503_v5, %v2455_v4  ;;  %3332 = vmatpush.bf16.msrb.mxu2 %v7991_v10  ;;  %3599 = vmatpush.bf16.xpose.msrb.mxu3 %v3565_v13  ;;  %v2409_v35 = vadd.f32 %v2408_v12, %v2360_v22  ;;  %v7985_v10 = vld [vmem:[#allocation3] sm:$0xff]  ;;  %v3556_v13 = vsel %vm11512_vm1, %v7995_v61, 0 }
 0x202   : > { %2040 = vst.msk [vmem:[#allocation3 + $0xd4] sm:$0xf] %vm1596_vm0, %v2007_v8  ;;  %v8024_v8 = vld [vmem:[#allocation2 + $0x138] sm:$0xff] }
 0x203   : > { %v2544_v16 = vmul.f32 0.125, %v2504_v11  ;;  %v2545_v40 = vmul.f32 0.125, %v2409_v35  ;;  %v4329_v20 = vsel %vm11512_vm1, %v8024_v8, 0 }
 0x205   : > { %v2574_v18 = vpack.c.bf16 %v2544_v16, %v2543_v15  ;;  %3333 = vmatpush.bf16.msrb.mxu2 %v7990_v17 }
 0x206   : > { %v2457_v23 = vpop.f32.mrf.mxu2  ;;  %v2361_v29 = vpop.f32.mrf.mxu0 }
 0x207   : > { %v2673_v25 = vunpack.c.l.b16 %v2574_v18  ;;  %v4180_v26 = vunpack.c.h.b16 %v2574_v18  ;;  %v2458_v27 = vadd.f32 %v2457_v23, %v9777_v47  ;;  %v2506_v28 = vpop.f32.mrf.mxu3  ;;  %v2362_v37 = vadd.f32 %v2361_v29, %v9774_v57  ;;  %v8036_v18 = vld [vmem:[#allocation3 + $0x98] sm:$0xff]  ;;  %v8035_v29 = vld [vmem:[#allocation3 + $0x90] sm:$0xff] }
 0x208   : > { %v2410_v33 = vpop.f32.mrf.mxu1 }
 0x209   : > { %v2688_v31 = vpack.c.b16 %v2673_v25, %v2672_v21  ;;  %v9798_v32 = vpack.c.b16 %v4180_v26, %v4179_v24  ;;  %v2507_v36 = vadd.f32 %v2506_v28, %v2458_v27  ;;  %3334 = vmatpush.bf16.msrb.mxu2 %v7989_v30  ;;  %3600 = vmatpush.bf16.xpose.msrb.mxu3 %v3562_v34  ;;  %v7994_v21 = vld [vmem:[#allocation2 + $0x88] sm:$0xff]  ;;  %v8023_v30 = vld [vmem:[#allocation2 + $0x130] sm:$0xff] }
 0x20a   : > { %v2411_v43 = vadd.f32 %v2410_v33, %v2362_v37 }
 0x20b   : > { %7261 = vmatmul.msk.bf16.vlgmr.msrb.gmra.mxu1 %vm11512_vm1, %v2688_v31  ;;  %3429 = vrot.lane.b32.xlu2 %v2688_v31, %s9030_s20  ;;  %v2546_v41 = vmul.f32 0.125, %v2507_v36 }
 0x20c   : > { %7253 = vmatmul.msk.bf16.vlgmr.msrb.gmra.mxu0 %vm11512_vm1, %v2688_v31  ;;  %v2547_v55 = vmul.f32 0.125, %v2411_v43 }
 0x20d   : > { %4839 = vmatpush.bf16.msrb.mxu0 %v8040_v48  ;;  %3335 = vmatpush.bf16.msrb.mxu2 %v7988_v38  ;;  %v2575_v19 = vpack.c.bf16 %v2546_v41, %v2545_v40  ;;  %v3553_v48 = vsel %vm11512_vm1, %v7994_v21, 0  ;;  %v8034_v41 = vld [vmem:[#allocation3 + $0x88] sm:$0xff] }
 0x20e   : > { %v2459_v42 = vpop.f32.mrf.mxu2  ;;  %v2364_v7 = vpop.f32.mrf.mxu0 }
 0x20f   : > { %v2460_v44 = vadd.f32 %v2459_v42, %v9777_v47  ;;  %v2508_v45 = vpop.f32.mrf.mxu3  ;;  %v1767_v46 = vpop.permute.xlu0 %1766  ;;  %v2674_v62 = vunpack.c.l.b16 %v2575_v19  ;;  %v4181_v63 = vunpack.c.h.b16 %v2575_v19  ;;  %v2365_v3 = vadd.f32 %v2364_v7, %v9774_v57  ;;  %v8022_v19 = vld [vmem:[#allocation2 + $0x128] sm:$0xff] }
 0x210   : > { %1811 = vst.msk [vmem:[#allocation3 + $0x50] sm:$0xf] %vm1596_vm0, %v1767_v46  ;;  %v2006_v50 = vrot.slane %v1767_v46, 4  ;;  %v2413_v53 = vpop.f32.mrf.mxu1  ;;  %v4326_v42 = vsel %vm11512_vm1, %v8023_v30, 0  ;;  %v8030_v30 = vld [vmem:[#allocation2 + $0x168] sm:$0xff] }
 0x211   : > { %v2509_v52 = vadd.f32 %v2508_v45, %v2460_v44  ;;  %4840 = vmatpush.bf16.msrb.mxu0 %v8039_v49  ;;  %3336 = vmatpush.bf16.msrb.mxu2 %v7987_v51  ;;  %v2414_v15 = vadd.f32 %v2413_v53, %v2365_v3  ;;  %v7993_v44 = vld [vmem:[#allocation2 + $0x80] sm:$0xff]  ;;  %v8032_v49 = vld [vmem:[#allocation2 + $0x178] sm:$0xff] }
 0x212   : > { %2039 = vst.msk [vmem:[#allocation3 + $0xd0] sm:$0xf] %vm1596_vm0, %v2006_v50  ;;  %3601 = vmatpush.bf16.xpose.msrb.mxu3 %v3559_v54  ;;  %v8033_v54 = vld [vmem:[#allocation3 + $0x80] sm:$0xff] }
 0x213   : > { %v2548_v56 = vmul.f32 0.125, %v2509_v52  ;;  %v2549_v23 = vmul.f32 0.125, %v2414_v15 }
 0x215   : > { %v2576_v60 = vpack.c.bf16 %v2548_v56, %v2547_v55  ;;  %4841 = vmatpush.bf16.msrb.mxu0 %v8038_v58  ;;  %3337 = vmatpush.bf16.msrb.mxu2 %v7986_v59 }
 0x216   : > { %v2462_v0 = vpop.f32.mrf.mxu2  ;;  %v2366_v9 = vpop.f32.mrf.mxu0 }
 0x217   : > { %v2675_v1 = vunpack.c.l.b16 %v2576_v60  ;;  %v4182_v2 = vunpack.c.h.b16 %v2576_v60  ;;  %v2463_v4 = vadd.f32 %v2462_v0, %v9777_v47  ;;  %v2511_v5 = vpop.f32.mrf.mxu3  ;;  %v2367_v17 = vadd.f32 %v2366_v9, %v9774_v57  ;;  %v8031_v9 = vld [vmem:[#allocation2 + $0x170] sm:$0xff] }
 0x218   : > { %v2415_v11 = vpop.f32.mrf.mxu1 }
 0x219   : > { %4842 = vmatpush.bf16.msrb.mxu0 %v8037_v6  ;;  %v2689_v12 = vpack.c.b16 %v2675_v1, %v2674_v62  ;;  %v9812_v14 = vpack.c.b16 %v4182_v2, %v4181_v63  ;;  %3338 = vmatpush.bf16.msrb.mxu2 %v7985_v10  ;;  %v2512_v16 = vadd.f32 %v2511_v5, %v2463_v4  ;;  %v3550_v62 = vsel %vm11512_vm1, %v7993_v44, 0 }
 0x21a   : > { %3602 = vmatpush.bf16.xpose.msrb.mxu3 %v3556_v13  ;;  %v2416_v25 = vadd.f32 %v2415_v11, %v2367_v17  ;;  %v4353_v1 = vsel %vm11512_vm1, %v8032_v49, 0  ;;  %v4323_v4 = vsel %vm11512_vm1, %v8022_v19, 0  ;;  %v8021_v13 = vld [vmem:[#allocation2 + $0x120] sm:$0xff] }
 0x21b   : > { %7262 = vmatmul.msk.bf16.gmra.mxu1 %vm11512_vm1, %v2689_v12  ;;  %3431 = vrot.lane.b32.xlu0 %v2689_v12, %s9030_s20  ;;  %v2550_v24 = vmul.f32 0.125, %v2512_v16 }
 0x21c   : > { %7254 = vmatmul.msk.bf16.gmra.mxu0 %vm11512_vm1, %v2689_v12  ;;  %v2551_v39 = vmul.f32 0.125, %v2416_v25  ;;  %v4320_v25 = vsel %vm11512_vm1, %v8021_v13, 0 }
 0x21d   : > { %4355 = vmatpush.bf16.xpose.msra.mxu2 %v4329_v20  ;;  %4843 = vmatpush.bf16.msrb.mxu0 %v8036_v18  ;;  %v2577_v38 = vpack.c.bf16 %v2550_v24, %v2549_v23 }
 0x21e   : > { %v2464_v22 = vpop.f32.mrf.mxu2  ;;  %v2369_v34 = vpop.f32.mrf.mxu0 }
 0x21f   : > { %v2465_v26 = vadd.f32 %v2464_v22, %v9777_v47  ;;  %v2513_v27 = vpop.f32.mrf.mxu3  ;;  %v1777_v28 = vpop.permute.xlu2 %1776  ;;  %v2370_v45 = vadd.f32 %v2369_v34, %v9774_v57  ;;  %v2676_v50 = vunpack.c.l.b16 %v2577_v38  ;;  %v4183_v55 = vunpack.c.h.b16 %v2577_v38 }
 0x220   : > { %1816 = vst.msk [vmem:[#allocation3 + $0x64] sm:$0xf] %vm1596_vm0, %v1777_v28  ;;  %v2011_v31 = vrot.slane %v1777_v28, 4  ;;  %v1771_v33 = vpop.permute.xlu1 %1770  ;;  %v2418_v37 = vpop.f32.mrf.mxu1  ;;  %v4350_v22 = vsel %vm11512_vm1, %v8031_v9, 0 }
 0x221   : > { %v2514_v35 = vadd.f32 %v2513_v27, %v2465_v26  ;;  %1813 = vst.msk [vmem:[#allocation3 + $0x58] sm:$0xf] %vm1596_vm0, %v1771_v33  ;;  %v2008_v36 = vrot.slane %v1771_v33, 4  ;;  %4844 = vmatpush.bf16.msrb.mxu0 %v8035_v29  ;;  %v2419_v63 = vadd.f32 %v2418_v37, %v2370_v45 }
 0x222   : > { %2044 = vst.msk [vmem:[#allocation3 + $0xe4] sm:$0xf] %vm1596_vm0, %v2011_v31  ;;  %3603 = vmatpush.bf16.xpose.msrb.mxu3 %v3553_v48  ;;  %v8020_v48 = vld [vmem:[#allocation2 + $0x118] sm:$0xff] }
 0x223   : > { %v2552_v40 = vmul.f32 0.125, %v2514_v35  ;;  %2041 = vst.msk [vmem:[#allocation3 + $0xd8] sm:$0xf] %vm1596_vm0, %v2008_v36  ;;  %v2553_v5 = vmul.f32 0.125, %v2419_v63  ;;  %v4317_v49 = vsel %vm11512_vm1, %v8020_v48, 0 }
 0x225   : > { %4356 = vmatpush.bf16.xpose.msra.mxu2 %v4326_v42  ;;  %v2578_v43 = vpack.c.bf16 %v2552_v40, %v2551_v39  ;;  %4845 = vmatpush.bf16.msrb.mxu0 %v8034_v41 }
 0x226   : > { %v2467_v46 = vpop.f32.mrf.mxu2  ;;  %v2371_v58 = vpop.f32.mrf.mxu0 }
 0x227   : > { %v2677_v7 = vunpack.c.l.b16 %v2578_v43  ;;  %v4184_v51 = vunpack.c.h.b16 %v2578_v43  ;;  %v2468_v52 = vadd.f32 %v2467_v46, %v9777_v47  ;;  %v2516_v53 = vpop.f32.mrf.mxu3  ;;  %v2372_v3 = vadd.f32 %v2371_v58, %v9774_v57 }
 0x228   : > { %v1773_v56 = vpop.permute.xlu1 %1772  ;;  %v2420_v60 = vpop.f32.mrf.mxu1  ;;  %v4347_v43 = vsel %vm11512_vm1, %v8030_v30, 0 }
 0x229   : > { %1814 = vst.msk [vmem:[#allocation3 + $0x5c] sm:$0xf] %vm1596_vm0, %v1773_v56  ;;  %v2009_v59 = vrot.slane %v1773_v56, 4  ;;  %4846 = vmatpush.bf16.msrb.mxu0 %v8033_v54  ;;  %v2690_v61 = vpack.c.b16 %v2677_v7, %v2676_v50  ;;  %v2517_v0 = vadd.f32 %v2516_v53, %v2468_v52  ;;  %v9831_v2 = vpack.c.b16 %v4184_v51, %v4183_v55  ;;  %v8029_v7 = vld [vmem:[#allocation2 + $0x160] sm:$0xff]  ;;  %v8019_v56 = vld [vmem:[#allocation2 + $0x110] sm:$0xff] }
 0x22a   : > { %3604 = vmatpush.bf16.xpose.msrb.mxu3 %v3550_v62  ;;  %v2421_v10 = vadd.f32 %v2420_v60, %v2372_v3  ;;  %v4344_v62 = vsel %vm11512_vm1, %v8029_v7, 0  ;;  %v4314_v3 = vsel %vm11512_vm1, %v8019_v56, 0 }
 0x22b   : > { %2042 = vst.msk [vmem:[#allocation3 + $0xdc] sm:$0xf] %vm1596_vm0, %v2009_v59  ;;  %7263 = vmatmul.msk.bf16.gmra.mxu1 %vm11512_vm1, %v2690_v61  ;;  %3433 = vrot.lane.b32.xlu0 %v2690_v61, %s9030_s20  ;;  %v2554_v6 = vmul.f32 0.125, %v2517_v0 }
 0x22c   : > { %7255 = vmatmul.msk.bf16.gmra.mxu0 %vm11512_vm1, %v2690_v61  ;;  %v2555_v23 = vmul.f32 0.125, %v2421_v10 }
 0x22d   : > { %4357 = vmatpush.bf16.xpose.msra.mxu2 %v4323_v4  ;;  %v2579_v21 = vpack.c.bf16 %v2554_v6, %v2553_v5 }
 0x22e   : > { %v2469_v8 = vpop.f32.mrf.mxu2  ;;  %v2374_v16 = vpop.f32.mrf.mxu0 }
 0x22f   : > { %v2470_v11 = vadd.f32 %v2469_v8, %v9777_v47  ;;  %v2518_v12 = vpop.f32.mrf.mxu3  ;;  %v2678_v27 = vunpack.c.l.b16 %v2579_v21  ;;  %v4185_v28 = vunpack.c.h.b16 %v2579_v21  ;;  %v2375_v34 = vadd.f32 %v2374_v16, %v9774_v57  ;;  %v8028_v8 = vld [vmem:[#allocation2 + $0x158] sm:$0xff]  ;;  %v8018_v16 = vld [vmem:[#allocation2 + $0x108] sm:$0xff] }
 0x230   : > { %v1775_v15 = vpop.permute.xlu1 %1774  ;;  %v2423_v20 = vpop.f32.mrf.mxu1  ;;  %v4311_v30 = vsel %vm11512_vm1, %v8018_v16, 0 }
 0x231   : > { %v2519_v17 = vadd.f32 %v2518_v12, %v2470_v11  ;;  %1815 = vst.msk [vmem:[#allocation3 + $0x60] sm:$0xf] %vm1596_vm0, %v1775_v15  ;;  %v2010_v18 = vrot.slane %v1775_v15, 4  ;;  %v2424_v44 = vadd.f32 %v2423_v20, %v2375_v34 }
 0x232   : > { %4404 = vmatpush.bf16.xpose.msra.mxu3 %v4353_v1 }
 0x233   : > { %v2556_v24 = vmul.f32 0.125, %v2519_v17  ;;  %2043 = vst.msk [vmem:[#allocation3 + $0xe0] sm:$0xf] %vm1596_vm0, %v2010_v18  ;;  %v2557_v51 = vmul.f32 0.125, %v2424_v44 }
 0x235   : > { %4358 = vmatpush.bf16.xpose.msra.mxu2 %v4320_v25  ;;  %v2580_v26 = vpack.c.bf16 %v2556_v24, %v2555_v23 }
 0x236   : > { %v2472_v29 = vpop.f32.mrf.mxu2  ;;  %v2376_v39 = vpop.f32.mrf.mxu0 }
 0x237   : > { %v2679_v31 = vunpack.c.l.b16 %v2580_v26  ;;  %v4186_v33 = vunpack.c.h.b16 %v2580_v26  ;;  %v2473_v35 = vadd.f32 %v2472_v29, %v9777_v47  ;;  %v2521_v36 = vpop.f32.mrf.mxu3  ;;  %v1783_v37 = vpop.permute.xlu2 %1782  ;;  %v2377_v46 = vadd.f32 %v2376_v39, %v9774_v57  ;;  %v8017_v39 = vld [vmem:[#allocation2 + $0x100] sm:$0xff] }
 0x238   : > { %1819 = vst.msk [vmem:[#allocation3 + $0x70] sm:$0xf] %vm1596_vm0, %v1783_v37  ;;  %v2014_v38 = vrot.slane %v1783_v37, 4  ;;  %v2425_v40 = vpop.f32.mrf.mxu1  ;;  %v4308_v7 = vsel %vm11512_vm1, %v8017_v39, 0 }
 0x239   : > { %v2691_v41 = vpack.c.b16 %v2679_v31, %v2678_v27  ;;  %v9847_v42 = vpack.c.b16 %v4186_v33, %v4185_v28  ;;  %v2522_v45 = vadd.f32 %v2521_v36, %v2473_v35  ;;  %v2426_v53 = vadd.f32 %v2425_v40, %v2377_v46  ;;  %v8027_v35 = vld [vmem:[#allocation2 + $0x150] sm:$0xff] }
 0x23a   : > { %4405 = vmatpush.bf16.xpose.msra.mxu3 %v4350_v22  ;;  %2047 = vst.msk [vmem:[#allocation3 + $0xf0] sm:$0xf] %vm1596_vm0, %v2014_v38  ;;  %v4341_v27 = vsel %vm11512_vm1, %v8028_v8, 0  ;;  %v4338_v46 = vsel %vm11512_vm1, %v8027_v35, 0 }
 0x23b   : > { %7264 = vmatmul.msk.bf16.gmra.mxu1 %vm11512_vm1, %v2691_v41  ;;  %3435 = vrot.lane.b32.xlu0 %v2691_v41, %s9030_s20  ;;  %v2558_v52 = vmul.f32 0.125, %v2522_v45  ;;  %v2559_v0 = vmul.f32 0.125, %v2426_v53 }
 0x23c   : > { %7256 = vmatmul.msk.bf16.gmra.mxu0 %vm11512_vm1, %v2691_v41 }
 0x23d   : > { %4359 = vmatpush.bf16.xpose.msra.mxu2 %v4317_v49  ;;  %v2581_v63 = vpack.c.bf16 %v2558_v52, %v2557_v51 }
 0x23e   : > { %v2474_v50 = vpop.f32.mrf.mxu2  ;;  %v2379_v59 = vpop.f32.mrf.mxu0 }
 0x23f   : > { %v2475_v54 = vadd.f32 %v2474_v50, %v9777_v47  ;;  %v2523_v19 = vpop.f32.mrf.mxu3  ;;  %v1779_v55 = vpop.permute.xlu1 %1778  ;;  %v2380_v5 = vadd.f32 %v2379_v59, %v9774_v57  ;;  %v2680_v9 = vunpack.c.l.b16 %v2581_v63  ;;  %v4187_v17 = vunpack.c.h.b16 %v2581_v63 }
 0x240   : > { %1817 = vst.msk [vmem:[#allocation3 + $0x68] sm:$0xf] %vm1596_vm0, %v1779_v55  ;;  %v2012_v58 = vrot.slane %v1779_v55, 4  ;;  %v2428_v61 = vpop.f32.mrf.mxu1 }
 0x241   : > { %v2524_v60 = vadd.f32 %v2523_v19, %v2475_v54  ;;  %v2429_v25 = vadd.f32 %v2428_v61, %v2380_v5  ;;  %v8026_v19 = vld [vmem:[#allocation2 + $0x148] sm:$0xff] }
 0x242   : > { %4406 = vmatpush.bf16.xpose.msra.mxu3 %v4347_v43  ;;  %2045 = vst.msk [vmem:[#allocation3 + $0xe8] sm:$0xf] %vm1596_vm0, %v2012_v58  ;;  %v4335_v8 = vsel %vm11512_vm1, %v8026_v19, 0 }
 0x243   : > { %v2560_v1 = vmul.f32 0.125, %v2524_v60  ;;  %v2561_v31 = vmul.f32 0.125, %v2429_v25 }
 0x245   : > { %4360 = vmatpush.bf16.xpose.msra.mxu2 %v4314_v3  ;;  %v2582_v4 = vpack.c.bf16 %v2560_v1, %v2559_v0 }
 0x246   : > { %v2477_v6 = vpop.f32.mrf.mxu2  ;;  %v2381_v21 = vpop.f32.mrf.mxu0 }
 0x247   : > { %v2681_v10 = vunpack.c.l.b16 %v2582_v4  ;;  %v4188_v11 = vunpack.c.h.b16 %v2582_v4  ;;  %v2478_v12 = vadd.f32 %v2477_v6, %v9777_v47  ;;  %v2526_v13 = vpop.f32.mrf.mxu3  ;;  %v1787_v15 = vpop.permute.xlu2 %1786  ;;  %v2382_v29 = vadd.f32 %v2381_v21, %v9774_v57 }
 0x248   : > { %1821 = vst.msk [vmem:[#allocation3 + $0x78] sm:$0xf] %vm1596_vm0, %v1787_v15  ;;  %v2016_v18 = vrot.slane %v1787_v15, 4  ;;  %v1781_v20 = vpop.permute.xlu1 %1780  ;;  %v2430_v23 = vpop.f32.mrf.mxu1 }
 0x249   : > { %1818 = vst.msk [vmem:[#allocation3 + $0x6c] sm:$0xf] %vm1596_vm0, %v1781_v20  ;;  %v2013_v22 = vrot.slane %v1781_v20, 4  ;;  %v2692_v24 = vpack.c.b16 %v2681_v10, %v2680_v9  ;;  %v2527_v26 = vadd.f32 %v2526_v13, %v2478_v12  ;;  %v9867_v28 = vpack.c.b16 %v4188_v11, %v4187_v17  ;;  %v8025_v13 = vld [vmem:[#allocation2 + $0x140] sm:$0xff] }
 0x24a   : > { %4407 = vmatpush.bf16.xpose.msra.mxu3 %v4344_v62  ;;  %2049 = vst.msk [vmem:[#allocation3 + $0xf8] sm:$0xf] %vm1596_vm0, %v2016_v18  ;;  %v2431_v36 = vadd.f32 %v2430_v23, %v2382_v29  ;;  %v4332_v23 = vsel %vm11512_vm1, %v8025_v13, 0 }
 0x24b   : > { %2046 = vst.msk [vmem:[#allocation3 + $0xec] sm:$0xf] %vm1596_vm0, %v2013_v22  ;;  %7265 = vmatmul.msk.bf16.gmra.mxu1 %vm11512_vm1, %v2692_v24  ;;  %3437 = vrot.lane.b32.xlu1 %v2692_v24, %s9030_s20  ;;  %v2562_v33 = vmul.f32 0.125, %v2527_v26 }
 0x24c   : > { %7257 = vmatmul.msk.bf16.gmra.mxu0 %vm11512_vm1, %v2692_v24  ;;  %v2563_v49 = vmul.f32 0.125, %v2431_v36 }
 0x24d   : > { %4361 = vmatpush.bf16.xpose.msra.mxu2 %v4311_v30  ;;  %v2583_v45 = vpack.c.bf16 %v2562_v33, %v2561_v31 }
 0x24e   : > { %v2479_v34 = vpop.f32.mrf.mxu2  ;;  %v2384_v41 = vpop.f32.mrf.mxu0 }
 0x24f   : > { %v2480_v37 = vadd.f32 %v2479_v34, %v9777_v47  ;;  %v2528_v48 = vpop.f32.mrf.mxu3  ;;  %v1789_v38 = vpop.permute.xlu2 %1788  ;;  %v2682_v52 = vunpack.c.l.b16 %v2583_v45  ;;  %v2385_v53 = vadd.f32 %v2384_v41, %v9774_v57  ;;  %v4189_v55 = vunpack.c.h.b16 %v2583_v45 }
 0x250   : > { %1822 = vst.msk [vmem:[#allocation3 + $0x7c] sm:$0xf] %vm1596_vm0, %v1789_v38  ;;  %v2017_v40 = vrot.slane %v1789_v38, 4  ;;  %v2433_v44 = vpop.f32.mrf.mxu1 }
 0x251   : > { %v2529_v43 = vadd.f32 %v2528_v48, %v2480_v37  ;;  %v2434_v5 = vadd.f32 %v2433_v44, %v2385_v53 }
 0x252   : > { %4408 = vmatpush.bf16.xpose.msra.mxu3 %v4341_v27  ;;  %2050 = vst.msk [vmem:[#allocation3 + $0xfc] sm:$0xf] %vm1596_vm0, %v2017_v40  ;;  %v8014_v27 = vld [vmem:[#allocation3 + $0x68] sm:$0xff]  ;;  %v8013_v40 = vld [vmem:[#allocation3 + $0x60] sm:$0xff] }
 0x253   : > { %v2564_v50 = vmul.f32 0.125, %v2529_v43  ;;  %v2565_v10 = vmul.f32 0.125, %v2434_v5  ;;  %v8048_v5 = vld [vmem:[#allocation2 + $0x1b8] sm:$0xff] }
 0x254   : > { %v5079_v13 = vsel %vm11512_vm1, %v8048_v5, 0 }
 0x255   : > { %4362 = vmatpush.bf16.xpose.msra.mxu2 %v4308_v7  ;;  %v2584_v51 = vpack.c.bf16 %v2564_v50, %v2563_v49  ;;  %v8012_v7 = vld [vmem:[#allocation3 + $0x58] sm:$0xff] }
 0x256   : > { %v2482_v54 = vpop.f32.mrf.mxu2  ;;  %v2386_v0 = vpop.f32.mrf.mxu0 }
 0x257   : > { %v2683_v56 = vunpack.c.l.b16 %v2584_v51  ;;  %v4190_v58 = vunpack.c.h.b16 %v2584_v51  ;;  %v2483_v59 = vadd.f32 %v2482_v54, %v9777_v47  ;;  %v2531_v60 = vpop.f32.mrf.mxu3  ;;  %v1785_v61 = vpop.permute.xlu0 %1784  ;;  %v8016_v62 = vld [vmem:[#allocation3 + $0x78] sm:$0xff]  ;;  %v2387_v9 = vadd.f32 %v2386_v0, %v9774_v57  ;;  %v8010_v0 = vld [vmem:[#allocation3 + $0x48] sm:$0xff] }
 0x258   : > { %1820 = vst.msk [vmem:[#allocation3 + $0x74] sm:$0xf] %vm1596_vm0, %v1785_v61  ;;  %v2015_v63 = vrot.slane %v1785_v61, 4  ;;  %4081 = vmatpush.bf16.msra.mxu1 %v8016_v62  ;;  %v2435_v3 = vpop.f32.mrf.mxu1 }
 0x259   : > { %v2693_v1 = vpack.c.b16 %v2683_v56, %v2682_v52  ;;  %v9883_v4 = vpack.c.b16 %v4190_v58, %v4189_v55  ;;  %v2532_v6 = vadd.f32 %v2531_v60, %v2483_v59  ;;  %v2436_v15 = vadd.f32 %v2435_v3, %v2387_v9  ;;  %v8064_v31 = vld [vmem:[#allocation3 + $0xf8] sm:$0xff]  ;;  %v8062_v52 = vld [vmem:[#allocation3 + $0xe8] sm:$0xff]  ;;  %v8011_v58 = vld [vmem:[#allocation3 + $0x50] sm:$0xff] }
 0x25a   : > { %4409 = vmatpush.bf16.xpose.msra.mxu3 %v4338_v46  ;;  %2048 = vst.msk [vmem:[#allocation3 + $0xf4] sm:$0xf] %vm1596_vm0, %v2015_v63  ;;  %v8060_v3 = vld [vmem:[#allocation3 + $0xd8] sm:$0xff] }
 0x25b   : > { %7266 = vmatmul.msk.bf16.gmra.mxu1 %vm11512_vm1, %v2693_v1  ;;  %3439 = vrot.lane.b32.xlu1 %v2693_v1, %s9030_s20  ;;  %v2566_v11 = vmul.f32 0.125, %v2532_v6  ;;  %v2567_v25 = vmul.f32 0.125, %v2436_v15 }
 0x25c   : > { %7258 = vmatmul.msk.bf16.gmra.mxu0 %vm11512_vm1, %v2693_v1 }
 0x25d   : > { %v2585_v22 = vpack.c.bf16 %v2566_v11, %v2565_v10  ;;  %v8059_v11 = vld [vmem:[#allocation3 + $0xd0] sm:$0xff] }
 0x25e   : > { %v2484_v12 = vpop.f32.mrf.mxu2  ;;  %v2389_v20 = vpop.f32.mrf.mxu0 }
 0x25f   : > { %v2485_v16 = vadd.f32 %v2484_v12, %v9777_v47  ;;  %v2533_v17 = vpop.f32.mrf.mxu3  ;;  %v8015_v18 = vld [vmem:[#allocation3 + $0x70] sm:$0xff]  ;;  %v2684_v33 = vunpack.c.l.b16 %v2585_v22  ;;  %v4191_v34 = vunpack.c.h.b16 %v2585_v22  ;;  %v2390_v48 = vadd.f32 %v2389_v20, %v9774_v57 }
 0x260   : > { %4082 = vmatpush.bf16.msra.mxu1 %v8015_v18  ;;  %v2438_v24 = vpop.f32.mrf.mxu1  ;;  %v8057_v18 = vld [vmem:[#allocation3 + $0xc0] sm:$0xff] }
 0x261   : > { %v2534_v21 = vadd.f32 %v2533_v17, %v2485_v16  ;;  %v8063_v43 = vld [vmem:[#allocation3 + $0xf0] sm:$0xff]  ;;  %v2439_v46 = vadd.f32 %v2438_v24, %v2390_v48  ;;  %v8058_v16 = vld [vmem:[#allocation3 + $0xc8] sm:$0xff] }
 0x262   : > { %4410 = vmatpush.bf16.xpose.msra.mxu3 %v4335_v8  ;;  %v8047_v17 = vld [vmem:[#allocation2 + $0x1b0] sm:$0xff] }
 0x263   : > { %v2568_v26 = vmul.f32 0.125, %v2534_v21  ;;  %v2569_v54 = vmul.f32 0.125, %v2439_v46  ;;  %v5076_v20 = vsel %vm11512_vm1, %v8047_v17, 0  ;;  %v8046_v21 = vld [vmem:[#allocation2 + $0x1a8] sm:$0xff] }
 0x264   : > { %4083 = vmatpush.bf16.msra.mxu1 %v8014_v27  ;;  %v5073_v24 = vsel %vm11512_vm1, %v8046_v21, 0 }
 0x265   : > { %v2586_v29 = vpack.c.bf16 %v2568_v26, %v2567_v25  ;;  %v9893_v30 = vpop.permute.xlu2 %3429  ;;  %v8045_v26 = vld [vmem:[#allocation2 + $0x1a0] sm:$0xff] }
 0x266   : > { %v2487_v35 = vpop.f32.mrf.mxu2  ;;  %7365 = vmatmul.msk.bf16.vlgmr.msrb.gmra.mxu3 %vm11512_vm1, %v9893_v30  ;;  %v2391_v41 = vpop.f32.mrf.mxu0 }
 0x267   : > { %v2685_v36 = vunpack.c.l.b16 %v2586_v29  ;;  %v4192_v37 = vunpack.c.h.b16 %v2586_v29  ;;  %v2488_v38 = vadd.f32 %v2487_v35, %v9777_v47  ;;  %v2536_v39 = vpop.f32.mrf.mxu3  ;;  %v2392_v50 = vadd.f32 %v2391_v41, %v9774_v57  ;;  %v8061_v57 = vld [vmem:[#allocation3 + $0xe0] sm:$0xff] }
 0x268   : > { %4084 = vmatpush.bf16.msra.mxu1 %v8013_v40  ;;  %v2440_v51 = vpop.f32.mrf.mxu1  ;;  %v8042_v40 = vld [vmem:[#allocation2 + $0x188] sm:$0xff] }
 0x269   : > { %v2694_v44 = vpack.c.b16 %v2685_v36, %v2684_v33  ;;  %v9899_v45 = vpack.c.b16 %v4192_v37, %v4191_v34  ;;  %v2537_v49 = vadd.f32 %v2536_v39, %v2488_v38  ;;  %v2441_v55 = vadd.f32 %v2440_v51, %v2392_v50  ;;  %v8044_v33 = vld [vmem:[#allocation2 + $0x198] sm:$0xff]  ;;  %v8043_v37 = vld [vmem:[#allocation2 + $0x190] sm:$0xff] }
 0x26a   : > { %4411 = vmatpush.bf16.xpose.msra.mxu3 %v4332_v23  ;;  %v5064_v39 = vsel %vm11512_vm1, %v8043_v37, 0 }
 0x26b   : > { %7267 = vmatmul.msk.bf16.gmra.mxu1 %vm11512_vm1, %v2694_v44  ;;  %3441 = vrot.lane.b32.xlu0 %v2694_v44, %s9030_s20  ;;  %v2570_v19 = vmul.f32 0.125, %v2537_v49  ;;  %v2571_v62 = vmul.f32 0.125, %v2441_v55  ;;  %v8041_v49 = vld [vmem:[#allocation2 + $0x180] sm:$0xff] }
 0x26c   : > { %7259 = vmatmul.msk.bf16.gmra.mxu0 %vm11512_vm1, %v2694_v44  ;;  %4085 = vmatpush.bf16.msra.mxu1 %v8012_v7  ;;  %v5061_v44 = vsel %vm11512_vm1, %v8042_v40, 0  ;;  %v5058_v51 = vsel %vm11512_vm1, %v8041_v49, 0 }
 0x26d   : > { %v2587_v61 = vpack.c.bf16 %v2570_v19, %v2569_v54 }
 0x26e   : > { %v2489_v53 = vpop.f32.mrf.mxu2 }
 0x26f   : > { %v2490_v56 = vadd.f32 %v2489_v53, %v9777_v47  ;;  %v2538_v59 = vpop.f32.mrf.mxu3  ;;  %v2686_v6 = vunpack.c.l.b16 %v2587_v61  ;;  %v4193_v8 = vunpack.c.h.b16 %v2587_v61  ;;  %v8009_v47 = vld [vmem:[#allocation3 + $0x40] sm:$0xff] }
 0x270   : > { %4086 = vmatpush.bf16.msra.mxu1 %v8011_v58 }
 0x271   : > { %v2539_v60 = vadd.f32 %v2538_v59, %v2490_v56 }
 0x272   : > { %5589 = vmatpush.bf16.msrb.mxu3 %v8064_v31  ;;  %v5070_v31 = vsel %vm11512_vm1, %v8045_v26, 0 }
 0x273   : > { %v2572_v63 = vmul.f32 0.125, %v2539_v60 }
 0x274   : > { %4087 = vmatpush.bf16.msra.mxu1 %v8010_v0 }
 0x275   : > { %v2588_v1 = vpack.c.bf16 %v2572_v63, %v2571_v62 }
 0x276   : > { %5590 = vmatpush.bf16.msrb.mxu3 %v8063_v43 }
 0x277   : > { %v2687_v9 = vunpack.c.l.b16 %v2588_v1  ;;  %v4194_v10 = vunpack.c.h.b16 %v2588_v1 }
 0x278   : > { %4088 = vmatpush.bf16.msra.mxu1 %v8009_v47  ;;  %v2589_v47 = vlaneseq }
 0x279   : > { %v2695_v12 = vpack.c.b16 %v2687_v9, %v2686_v6  ;;  %v9907_v15 = vpack.c.b16 %v4194_v10, %v4193_v8 }
 0x27a   : > { %5591 = vmatpush.bf16.msrb.mxu3 %v8062_v52 }
 0x27b   : > { %7268 = vmatmul.msk.bf16.gmra.mxu1 %vm11512_vm1, %v2695_v12  ;;  %3443 = vrot.lane.b32.xlu0 %v2695_v12, %s9030_s20 }
 0x27c   : > { %5105 = vmatpush.bf16.xpose.msrb.mxu1 %v5079_v13  ;;  %7260 = vmatmul.msk.bf16.gmra.mxu0 %vm11512_vm1, %v2695_v12  ;;  %v9980_v13 = vshrl.u32 %v2589_v47, 7 }
 0x27e   : > { %5592 = vmatpush.bf16.msrb.mxu3 %v8061_v57 }
 0x282   : > { %5593 = vmatpush.bf16.msrb.mxu3 %v8060_v3 }
 0x284   : > { %5106 = vmatpush.bf16.xpose.msrb.mxu1 %v5076_v20 }
 0x286   : > { %5594 = vmatpush.bf16.msrb.mxu3 %v8059_v11 }
 0x288   : > { %v2907_v22 = vpop.f32.mrf.mxu1 }
 0x289   : > { %v9913_v23 = vpop.f32.mrf.mxu0  ;;  %2949 = vrot.lane.b32.xlu1 %v2907_v22, %s9031_s4 }
 0x28a   : > { %5595 = vmatpush.bf16.msrb.mxu3 %v8058_v16  ;;  %v9983_v16 = vadd.s32 16, %v9980_v13 }
 0x28c   : > { %5107 = vmatpush.bf16.xpose.msrb.mxu1 %v5073_v24  ;;  %7373 = vmatmul.msk.bf16.vlgmr.msra.gmra.mxu0 %vm11512_vm1, %v9893_v30  ;;  %v5067_v30 = vsel %vm11512_vm1, %v8044_v33, 0  ;;  %11540 = vst [vmem:[#allocation32_spill] sm:$0xff] %v9983_v16 }
 0x28d   : > { %v3432_v25 = vpop.permute.xlu0 %3431 }
 0x28e   : > { %5596 = vmatpush.bf16.msrb.mxu3 %v8057_v18  ;;  %v9987_v18 = vand.u32 127, %v2589_v47  ;;  %v10107_v47 = vadd.s32 56, %v9980_v13 }
 0x28f   : > { %7366 = vmatmul.msk.bf16.gmra.mxu3 %vm11512_vm1, %v3432_v25 }
 0x290   : > { %v2909_v27 = vpop.f32.mrf.mxu1  ;;  %vm2610_vm2 = vcmp.le.s32.totalorder %v9987_v18, %v9983_v16  ;;  %vm2608_vm3 = vcmp.le.s32.totalorder %v9987_v18, %v9980_v13  ;;  %11546 = vst [vmem:[#allocation38_spill] sm:$0xff] %v10107_v47  ;;  %vm2615_vm9 = vcmp.le.s32.totalorder %v9987_v18, %v10107_v47 }
 0x291   : > { %v9920_v29 = vpop.f32.mrf.mxu0  ;;  %2953 = vrot.lane.b32.xlu2 %v2909_v27, %s9032_s18 }
 0x294   : > { %5108 = vmatpush.bf16.xpose.msrb.mxu1 %v5070_v31  ;;  %v10006_v31 = vadd.s32 8, %v9980_v13 }
 0x296   : > { %11541 = vst [vmem:[#allocation33_spill] sm:$0xff] %v10006_v31  ;;  %vm2609_vm4 = vcmp.le.s32.totalorder %v9987_v18, %v10006_v31 }
 0x298   : > { %v2912_v34 = vpop.f32.mrf.mxu1 }
 0x299   : > { %v9924_v35 = vpop.f32.mrf.mxu0  ;;  %2957 = vrot.lane.b32.xlu2 %v2912_v34, %s9033_s26 }
 0x29c   : > { %5109 = vmatpush.bf16.xpose.msrb.mxu1 %v5067_v30  ;;  %7374 = vmatmul.msk.bf16.gmra.mxu0 %vm11512_vm1, %v3432_v25 }
 0x29d   : > { %v3434_v36 = vpop.permute.xlu0 %3433 }
 0x29f   : > { %7367 = vmatmul.msk.bf16.gmra.mxu3 %vm11512_vm1, %v3434_v36 }
 0x2a0   : > { %v2914_v48 = vpop.f32.mrf.mxu1 }
 0x2a1   : > { %v9930_v38 = vpop.f32.mrf.mxu0  ;;  %2961 = vrot.lane.b32.xlu0 %v2914_v48, %s9034_s19  ;;  %v10035_v48 = vadd.s32 40, %v9980_v13 }
 0x2a3   : > { %11542 = vst [vmem:[#allocation34_spill] sm:$0xff] %v10035_v48  ;;  %vm2613_vm5 = vcmp.le.s32.totalorder %v9987_v18, %v10035_v48 }
 0x2a4   : > { %5110 = vmatpush.bf16.xpose.msrb.mxu1 %v5064_v39 }
 0x2a8   : > { %v2917_v41 = vpop.f32.mrf.mxu1 }
 0x2a9   : > { %v9934_v43 = vpop.f32.mrf.mxu0  ;;  %2965 = vrot.lane.b32.xlu1 %v2917_v41, %s9035_s21 }
 0x2ac   : > { %5111 = vmatpush.bf16.xpose.msrb.mxu1 %v5061_v44  ;;  %7375 = vmatmul.msk.bf16.gmra.mxu0 %vm11512_vm1, %v3434_v36 }
 0x2ad   : > { %v3436_v46 = vpop.permute.xlu0 %3435 }
 0x2af   : > { %7368 = vmatmul.msk.bf16.gmra.mxu3 %vm11512_vm1, %v3436_v46 }
 0x2b0   : > { %v2919_v50 = vpop.f32.mrf.mxu1 }
 0x2b1   : > { %v9940_v7 = vpop.f32.mrf.mxu0  ;;  %2969 = vrot.lane.b32.xlu2 %v2919_v50, %s9036_s23 }
 0x2b4   : > { %5112 = vmatpush.bf16.xpose.msrb.mxu1 %v5058_v51 }
 0x2b8   : > { %v2922_v52 = vpop.f32.mrf.mxu1 }
 0x2b9   : > { %v9944_v53 = vpop.f32.mrf.mxu0  ;;  %2973 = vrot.lane.b32.xlu0 %v2922_v52, %s9037_s11  ;;  %v10058_v52 = vadd.s32 48, %v9980_v13 }
 0x2bb   : > { %11543 = vst [vmem:[#allocation35_spill] sm:$0xff] %v10058_v52  ;;  %vm2614_vm6 = vcmp.le.s32.totalorder %v9987_v18, %v10058_v52 }
 0x2bc   : > { %7376 = vmatmul.msk.bf16.gmra.mxu0 %vm11512_vm1, %v3436_v46 }
 0x2bd   : > { %v3438_v54 = vpop.permute.xlu1 %3437 }
 0x2bf   : > { %7369 = vmatmul.msk.bf16.gmra.mxu3 %vm11512_vm1, %v3438_v54 }
 0x2c0   : > { %v2924_v19 = vpop.f32.mrf.mxu1 }
 0x2c1   : > { %v9949_v55 = vpop.f32.mrf.mxu0  ;;  %2977 = vrot.lane.b32.xlu0 %v2924_v19, %s9038_s24  ;;  %v10066_v19 = vadd.s32 24, %v9980_v13 }
 0x2c3   : > { %11544 = vst [vmem:[#allocation36_spill] sm:$0xff] %v10066_v19  ;;  %vm2611_vm7 = vcmp.le.s32.totalorder %v9987_v18, %v10066_v19 }
 0x2c8   : > { %v2927_v56 = vpop.f32.mrf.mxu1 }
 0x2c9   : > { %v9952_v58 = vpop.f32.mrf.mxu0  ;;  %2981 = vrot.lane.b32.xlu1 %v2927_v56, %s9039_s5 }
 0x2cc   : > { %7377 = vmatmul.msk.bf16.gmra.mxu0 %vm11512_vm1, %v3438_v54 }
 0x2cd   : > { %v3440_v59 = vpop.permute.xlu1 %3439 }
 0x2cf   : > { %7370 = vmatmul.msk.bf16.gmra.mxu3 %vm11512_vm1, %v3440_v59 }
 0x2d0   : > { %v2929_v60 = vpop.f32.mrf.mxu1 }
 0x2d1   : > { %v9957_v57 = vpop.f32.mrf.mxu0  ;;  %2985 = vrot.lane.b32.xlu2 %v2929_v60, %s9040_s30 }
 0x2d8   : > { %v2932_v61 = vpop.f32.mrf.mxu1 }
 0x2d9   : > { %v9960_v62 = vpop.f32.mrf.mxu0  ;;  %2989 = vrot.lane.b32.xlu1 %v2932_v61, %s9041_s28 }
 0x2dc   : > { %7378 = vmatmul.msk.bf16.gmra.mxu0 %vm11512_vm1, %v3440_v59 }
 0x2dd   : > { %v3442_v63 = vpop.permute.xlu0 %3441 }
 0x2df   : > { %7371 = vmatmul.msk.bf16.gmra.mxu3 %vm11512_vm1, %v3442_v63 }
 0x2e0   : > { %v2934_v0 = vpop.f32.mrf.mxu1 }
 0x2e1   : > { %v9965_v1 = vpop.f32.mrf.mxu0  ;;  %2993 = vrot.lane.b32.xlu0 %v2934_v0, %s9042_s25  ;;  %v10086_v0 = vadd.s32 32, %v9980_v13 }
 0x2e3   : > { %11545 = vst [vmem:[#allocation37_spill] sm:$0xff] %v10086_v0  ;;  %vm2612_vm8 = vcmp.le.s32.totalorder %v9987_v18, %v10086_v0 }
 0x2e8   : > { %v2937_v3 = vpop.f32.mrf.mxu1 }
 0x2e9   : > { %v9968_v5 = vpop.f32.mrf.mxu0  ;;  %2997 = vrot.lane.b32.xlu2 %v2937_v3, %s9043_s22  ;;  %v10027_v37 = vpop.f32.mrf.mxu3 }
 0x2eb   : > { %v2954_v11 = vpop.permute.xlu2 %2953 }
 0x2ec   : > { %7379 = vmatmul.msk.bf16.gmra.mxu0 %vm11512_vm1, %v3442_v63  ;;  %v3012_v30 = vsel %vm2609_vm4, %v2954_v11, 0.0 }
 0x2ed   : > { %v3444_v6 = vpop.permute.xlu0 %3443  ;;  %v10024_v36 = vadd.f32 %v3012_v30, %v9920_v29 }
 0x2ef   : > { %7372 = vmatmul.msk.bf16.gmra.mxu3 %vm11512_vm1, %v3444_v6 }
 0x2f0   : > { %v2939_v8 = vpop.f32.mrf.mxu1 }
 0x2f1   : > { %v9973_v9 = vpop.f32.mrf.mxu0  ;;  %3001 = vrot.lane.b32.xlu1 %v2939_v8, %s9044_s3 }
 0x2f3   : > { %v2958_v21 = vpop.permute.xlu2 %2957 }
 0x2f4   : > { %v3013_v22 = vsel %vm2610_vm2, %v2958_v21, 0.0 }
 0x2f5   : > { %v9998_v24 = vadd.f32 %v3013_v22, %v9924_v35 }
 0x2f8   : > { %v2942_v10 = vpop.f32.mrf.mxu1 }
 0x2f9   : > { %v9976_v12 = vpop.f32.mrf.mxu0  ;;  %3005 = vrot.lane.b32.xlu1 %v2942_v10, %s9045_s13 }
 0x2fb   : > { %v2950_v27 = vpop.permute.xlu1 %2949 }
 0x2fc   : > { %7380 = vmatmul.msk.bf16.gmra.mxu0 %vm11512_vm1, %v3444_v6  ;;  %v3011_v33 = vsel %vm2608_vm3, %v2950_v27, 0.0 }
 0x2fd   : > { %v10015_v35 = vadd.f32 %v3011_v33, %v9913_v23  ;;  %v10031_v23 = vpop.f32.mrf.mxu3 }
 0x2ff   : > { %7501 = vmatmul.msk.bf16.vlgmr.msra.gmra.mxu3 %vm11512_vm1, %v9798_v32 }
 0x300   : > { %v2944_v17 = vpop.f32.mrf.mxu1 }
 0x301   : > { %v9989_v20 = vpop.f32.mrf.mxu0  ;;  %3009 = vrot.lane.b32.xlu2 %v2944_v17, %s9046_s29 }
 0x309   : > { %v3655_v25 = vpop.f32.mrf.mxu0 }
 0x30b   : > { %3047 = vmax.xlane.f32.xlu0 %v9998_v24  ;;  %v2970_v29 = vpop.permute.xlu2 %2969 }
 0x30c   : > { %v3016_v40 = vsel %vm2613_vm5, %v2970_v29, 0.0  ;;  %v10135_v29 = vadd.s32 64, %v9980_v13 }
 0x30d   : > { %v10050_v44 = vadd.f32 %v3016_v40, %v9940_v7 }
 0x30e   : > { %11549 = vst [vmem:[#allocation41_spill] sm:$0xff] %v10135_v29  ;;  %vm2616_vm12 = vcmp.le.s32.totalorder %v9987_v18, %v10135_v29 }
 0x30f   : > { %7502 = vmatmul.msk.bf16.gmra.mxu3 %vm11512_vm1, %v9812_v14 }
 0x311   : > { %v3657_v26 = vpop.f32.mrf.mxu0 }
 0x312   : > { %v10037_v39 = vpop.f32.mrf.mxu3 }
 0x313   : > { %v2962_v50 = vpop.permute.xlu0 %2961 }
 0x314   : > { %v3014_v63 = vsel %vm2611_vm7, %v2962_v50, 0.0 }
 0x315   : > { %v10089_v3 = vadd.f32 %v3014_v63, %v9930_v38 }
 0x319   : > { %v3660_v34 = vpop.f32.mrf.mxu0 }
 0x31a   : > { %v10047_v41 = vpop.f32.mrf.mxu3 }
 0x31f   : > { %7503 = vmatmul.msk.bf16.gmra.mxu3 %vm11512_vm1, %v9831_v2  ;;  %3705 = vrot.lane.b32.xlu0 %v3660_v34, %s9033_s26  ;;  %v10129_v34 = vadd.s32 80, %v9980_v13 }
 0x321   : > { %v3662_v46 = vpop.f32.mrf.mxu0  ;;  %11548 = vst [vmem:[#allocation40_spill] sm:$0xff] %v10129_v34  ;;  %vm2618_vm11 = vcmp.le.s32.totalorder %v9987_v18, %v10129_v34 }
 0x322   : > { %v10055_v49 = vpop.f32.mrf.mxu3 }
 0x323   : > { %3043 = vmax.xlane.f32.xlu1 %v10015_v35 }
 0x329   : > { %v3665_v51 = vpop.f32.mrf.mxu0 }
 0x32a   : > { %3045 = vmax.xlane.f32.xlu2 %v10024_v36  ;;  %v10060_v54 = vpop.f32.mrf.mxu3 }
 0x32b   : > { %v2974_v7 = vpop.permute.xlu0 %2973 }
 0x32c   : > { %v3017_v56 = vsel %vm2614_vm6, %v2974_v7, 0.0 }
 0x32d   : > { %v10076_v60 = vadd.f32 %v3017_v56, %v9944_v53  ;;  %v2966_v53 = vpop.permute.xlu1 %2965  ;;  %v10157_v56 = vadd.s32 88, %v9980_v13 }
 0x32e   : > { %v3015_v6 = vsel %vm2612_vm8, %v2966_v53, 0.0 }
 0x32f   : > { %7504 = vmatmul.msk.bf16.gmra.mxu3 %vm11512_vm1, %v9847_v42  ;;  %v10102_v10 = vadd.f32 %v3015_v6, %v9934_v43  ;;  %11550 = vst [vmem:[#allocation42_spill] sm:$0xff] %v10157_v56  ;;  %vm2619_vm13 = vcmp.le.s32.totalorder %v9987_v18, %v10157_v56 }
 0x331   : > { %v3667_v59 = vpop.f32.mrf.mxu0 }
 0x332   : > { %v10078_v61 = vpop.f32.mrf.mxu3 }
 0x333   : > { %v2978_v11 = vpop.permute.xlu0 %2977 }
 0x334   : > { %v3018_v17 = vsel %vm2615_vm9, %v2978_v11, 0.0 }
 0x335   : > { %v10116_v43 = vadd.f32 %v3018_v17, %v9949_v55  ;;  %v10175_v17 = vadd.s32 120, %v9980_v13 }
 0x337   : > { %vm2623_vm14 = vcmp.le.s32.totalorder %v9987_v18, %v10175_v17 }
 0x339   : > { %v3670_v38 = vpop.f32.mrf.mxu0 }
 0x33a   : > { %v10097_v8 = vpop.f32.mrf.mxu3 }
 0x33b   : > { %v2982_v27 = vpop.permute.xlu1 %2981 }
 0x33c   : > { %3701 = vrot.lane.b32.xlu1 %v3657_v26, %s9032_s18  ;;  %v2986_v26 = vpop.permute.xlu2 %2985 }
 0x33f   : > { %7505 = vmatmul.msk.bf16.gmra.mxu3 %vm11512_vm1, %v9867_v28 }
 0x341   : > { %v3672_v21 = vpop.f32.mrf.mxu0 }
 0x342   : > { %3697 = vrot.lane.b32.xlu2 %v3655_v25, %s9031_s4  ;;  %v10120_v25 = vadd.s32 72, %v9980_v13 }
 0x344   : > { %11547 = vst [vmem:[#allocation39_spill] sm:$0xff] %v10120_v25  ;;  %vm11487_vm10 = vcmp.le.s32.totalorder %v9987_v18, %v10120_v25  ;;  %v2998_v11 = vpop.permute.xlu2 %2997 }
 0x345   : > { %v3020_v55 = vsel %vm11487_vm10, %v2986_v26, 0.0 }
 0x346   : > { %v10132_v30 = vadd.f32 %v3020_v55, %v9957_v57  ;;  %v3019_v57 = vsel %vm2616_vm12, %v2982_v27, 0.0 }
 0x349   : > { %3053 = vmax.xlane.f32.xlu0 %v10050_v44  ;;  %v3675_v22 = vpop.f32.mrf.mxu0 }
 0x34b   : > { %v2990_v40 = vpop.permute.xlu1 %2989 }
 0x34f   : > { %7506 = vmatmul.msk.bf16.gmra.mxu3 %vm11512_vm1, %v9883_v4 }
 0x351   : > { %v3677_v33 = vpop.f32.mrf.mxu0 }
 0x359   : > { %v3680_v7 = vpop.f32.mrf.mxu0 }
 0x35d   : > { %3713 = vrot.lane.b32.xlu0 %v3665_v51, %s9035_s21  ;;  %v10153_v51 = vadd.f32 %v3019_v57, %v9952_v58 }
 0x35f   : > { %7507 = vmatmul.msk.bf16.gmra.mxu3 %vm11512_vm1, %v9899_v45 }
 0x361   : > { %v3682_v63 = vpop.f32.mrf.mxu0 }
 0x363   : > { %v3002_v53 = vpop.permute.xlu1 %3001 }
 0x365   : > { %3717 = vrot.lane.b32.xlu0 %v3667_v59, %s9036_s23  ;;  %v2994_v59 = vpop.permute.xlu0 %2993 }
 0x366   : > { %3055 = vmax.xlane.f32.xlu1 %v10076_v60 }
 0x36b   : > { %3049 = vmax.xlane.f32.xlu2 %v10089_v3  ;;  %v10172_v6 = vpop.permute.xlu1 %3005 }
 0x36f   : > { %7508 = vmatmul.msk.bf16.gmra.mxu3 %vm11512_vm1, %v9907_v15 }
 0x373   : > { %3051 = vmax.xlane.f32.xlu2 %v10102_v10 }
 0x37f   : > { %3721 = vrot.lane.b32.xlu1 %v3670_v38, %s9037_s11  ;;  %v3048_v38 = vpop.xlane.xlu0 %3047 }
 0x38b   : > { %3709 = vrot.lane.b32.xlu2 %v3662_v46, %s9034_s19  ;;  %v3021_v46 = vsel %vm2618_vm11, %v2990_v40, 0.0 }
 0x38c   : > { %v10149_v50 = vadd.f32 %v3021_v46, %v9960_v62  ;;  %v3022_v62 = vsel %vm2619_vm13, %v2994_v59, 0.0 }
 0x38d   : > { %v10166_v58 = vadd.f32 %v3022_v62, %v9965_v1  ;;  %v3010_v1 = vpop.permute.xlu2 %3009 }
 0x38f   : > { %3057 = vmax.xlane.f32.xlu0 %v10116_v43 }
 0x391   : > { %v3706_v26 = vpop.permute.xlu0 %3705 }
 0x392   : > { %v3761_v57 = vsel %vm2610_vm2, %v3706_v26, 0.0  ;;  %v10214_v26 = vadd.s32 96, %v9980_v13 }
 0x394   : > { %11552 = vst [vmem:[#allocation44_spill] sm:$0xff] %v10214_v26  ;;  %vm2620_vm0 = vcmp.le.s32.totalorder %v9987_v18, %v10214_v26 }
 0x396   : > { %v10177_v27 = vpop.xlane.xlu1 %3043 }
 0x3a3   : > { %3733 = vrot.lane.b32.xlu0 %v3677_v33, %s9040_s30 }
 0x3a9   : > { %3061 = vmax.xlane.f32.xlu1 %v10132_v30 }
 0x3ae   : > { %v10187_v33 = vpop.permute.xlu1 %3701 }
 0x3b1   : > { %3063 = vmax.xlane.f32.xlu1 %v10149_v50 }
 0x3b4   : > { %3059 = vmax.xlane.f32.xlu2 %v10153_v51 }
 0x3bc   : > { %v3054_v55 = vpop.xlane.xlu0 %3053 }
 0x3bd   : > { %v3080_v46 = vsub.f32 %v10050_v44, %v3054_v55 }
 0x3bf   : > { %v3101_v59 = vmul.f32 1.442695, %v3080_v46 }
 0x3c1   : > { %8430 = vpow2.f32 %v3101_v59 }
 0x3c7   : > { %v10216_v55 = vpop.eup %8430 }
 0x3ca   : > { %3741 = vrot.lane.b32.xlu1 %v3682_v63, %s9042_s25 }
 0x3cc   : > { %3725 = vrot.lane.b32.xlu2 %v3672_v21, %s9038_s24  ;;  %v3026_v21 = vsel %vm2623_vm14, %v3010_v1, 0.0 }
 0x3cd   : > { %3065 = vmax.xlane.f32.xlu0 %v10166_v58  ;;  %v10190_v40 = vadd.f32 %v3026_v21, %v9989_v20  ;;  %v10203_v20 = vadd.f32 %v3761_v57, %v10037_v39  ;;  %v3023_v39 = vsel %vm2620_vm0, %v2998_v11, 0.0 }
 0x3cf   : > { %v10205_v63 = vpop.permute.xlu0 %3713 }
 0x3d4   : > { %3729 = vrot.lane.b32.xlu2 %v3675_v22, %s9039_s5  ;;  %v10185_v22 = vadd.s32 104, %v9980_v13 }
 0x3d6   : > { %11551 = vst [vmem:[#allocation43_spill] sm:$0xff] %v10185_v22  ;;  %vm2621_vm15 = vcmp.le.s32.totalorder %v9987_v18, %v10185_v22 }
 0x3d9   : > { %v3056_v62 = vpop.xlane.xlu1 %3055 }
 0x3da   : > { %v3081_v44 = vsub.f32 %v10076_v60, %v3056_v62  ;;  %v10227_v60 = vadd.f32 %v3023_v39, %v9968_v5 }
 0x3dc   : > { %v3103_v21 = vmul.f32 1.442695, %v3081_v44 }
 0x3de   : > { %8432 = vpow2.f32 %v3103_v21  ;;  %v10237_v21 = vpop.f32.mrf.mxu3 }
 0x3e1   : > { %3737 = vrot.lane.b32.xlu0 %v3680_v7, %s9041_s28  ;;  %v3024_v7 = vsel %vm2621_vm15, %v3002_v53, 0.0  ;;  %v3046_v53 = vpop.xlane.xlu2 %3045 }
 0x3e2   : > { %v10208_v1 = vadd.f32 %v3024_v7, %v9973_v9  ;;  %v10221_v9 = vpop.permute.xlu0 %3717  ;;  %v3077_v7 = vsub.f32 %v9998_v24, %v3048_v38  ;;  %v3685_v38 = vpop.f32.mrf.mxu0 }
 0x3e4   : > { %v10229_v46 = vpop.eup %8432  ;;  %v3095_v11 = vmul.f32 1.442695, %v3077_v7 }
 0x3e6   : > { %8434 = vpow2.f32 %v3095_v11  ;;  %v3628_v7 = vpop.f32.mrf.mxu3 }
 0x3e9   : > { %v3698_v57 = vpop.permute.xlu2 %3697 }
 0x3ea   : > { %v3759_v44 = vsel %vm2608_vm3, %v3698_v57, 0.0 }
 0x3eb   : > { %v10243_v39 = vadd.f32 %v3759_v44, %v10027_v37 }
 0x3ec   : > { %v10254_v52 = vpop.eup %8434 }
 0x3f1   : > { %v3722_v59 = vpop.permute.xlu1 %3721 }
 0x3f2   : > { %v3765_v5 = vsel %vm2614_vm6, %v3722_v59, 0.0 }
 0x3f3   : > { %v10246_v24 = vadd.f32 %v3765_v5, %v10078_v61 }
 0x3f4   : > { %3073 = vmax.xlane.f32.xlu1 %v10190_v40 }
 0x3fc   : > { %3795 = vmax.xlane.f32.xlu1 %v10203_v20 }
 0x3fd   : > { %3069 = vmax.xlane.f32.xlu2 %v10208_v1 }
 0x402   : > { %v3058_v62 = vpop.xlane.xlu0 %3057 }
 0x404   : > { %3133 = vadd.xlane.f32.xlu1 %v10216_v55 }
 0x40b   : > { %3067 = vmax.xlane.f32.xlu0 %v10227_v60 }
 0x40c   : > { %3135 = vadd.xlane.f32.xlu1 %v10229_v46 }
 0x413   : > { %3791 = vmax.xlane.f32.xlu0 %v10243_v39 }
 0x414   : > { %3803 = vmax.xlane.f32.xlu1 %v10246_v24 }
 0x415   : > { %v3734_v57 = vpop.permute.xlu0 %3733  ;;  %3745 = vrot.lane.b32.xlu2 %v3685_v38, %s9043_s22  ;;  %v3687_v38 = vpop.f32.mrf.mxu0 }
 0x416   : > { %v3768_v59 = vsel %vm11487_vm10, %v3734_v57, 0.0  ;;  %v10266_v57 = vadd.s32 112, %v9980_v13 }
 0x417   : > { %v10256_v37 = vadd.f32 %v3768_v59, %v3628_v7  ;;  %v3075_v59 = vsub.f32 %v10015_v35, %v10177_v27 }
 0x418   : > { %vm2622_vm10 = vcmp.le.s32.totalorder %v9987_v18, %v10266_v57 }
 0x419   : > { %v3091_v7 = vmul.f32 1.442695, %v3075_v59 }
 0x41b   : > { %3127 = vadd.xlane.f32.xlu0 %v10254_v52 }
 0x41c   : > { %v3062_v61 = vpop.xlane.xlu1 %3061  ;;  %3809 = vmax.xlane.f32.xlu1 %v10256_v37 }
 0x41d   : > { %v3690_v27 = vpop.f32.mrf.mxu0 }
 0x424   : > { %v3064_v44 = vpop.xlane.xlu1 %3063 }
 0x425   : > { %v3085_v5 = vsub.f32 %v10149_v50, %v3064_v44  ;;  %v3025_v50 = vsel %vm2622_vm10, %v10172_v6, 0.0 }
 0x426   : > { %v10277_v44 = vadd.f32 %v3025_v50, %v9976_v12 }
 0x427   : > { %v3111_v11 = vmul.f32 1.442695, %v3085_v5  ;;  %v3050_v5 = vpop.xlane.xlu2 %3049 }
 0x428   : > { %v3078_v12 = vsub.f32 %v10089_v3, %v3050_v5 }
 0x429   : > { %8436 = vpow2.f32 %v3111_v11  ;;  %v3076_v11 = vsub.f32 %v10024_v36, %v3046_v53  ;;  %v3760_v36 = vsel %vm2609_vm4, %v10187_v33, 0.0  ;;  %v3082_v33 = vsub.f32 %v10116_v43, %v3058_v62 }
 0x42a   : > { %8438 = vpow2.f32 %v3091_v7  ;;  %v3097_v59 = vmul.f32 1.442695, %v3078_v12  ;;  %v10297_v7 = vadd.f32 %v3760_v36, %v10031_v23  ;;  %v3084_v62 = vsub.f32 %v10132_v30, %v3062_v61 }
 0x42c   : > { %v3109_v36 = vmul.f32 1.442695, %v3084_v62 }
 0x42f   : > { %v10261_v16 = vpop.eup %8436  ;;  %3749 = vrot.lane.b32.xlu0 %v3687_v38, %s9044_s3  ;;  %v3093_v38 = vmul.f32 1.442695, %v3076_v11  ;;  %v3052_v35 = vpop.xlane.xlu2 %3051 }
 0x430   : > { %3143 = vadd.xlane.f32.xlu1 %v10261_v16  ;;  %v10281_v25 = vpop.eup %8438  ;;  %v3079_v11 = vsub.f32 %v10102_v10, %v3052_v35  ;;  %v3763_v35 = vsel %vm2612_vm8, %v10205_v63, 0.0 }
 0x431   : > { %8440 = vpow2.f32 %v3093_v38  ;;  %v3764_v38 = vsel %vm2613_vm5, %v10221_v9, 0.0 }
 0x432   : > { %8442 = vpow2.f32 %v3097_v59  ;;  %v3099_v5 = vmul.f32 1.442695, %v3079_v11  ;;  %v10333_v59 = vadd.f32 %v3763_v35, %v10055_v49 }
 0x434   : > { %8444 = vpow2.f32 %v3099_v5 }
 0x437   : > { %v10285_v6 = vpop.eup %8440  ;;  %v3710_v53 = vpop.permute.xlu2 %3709 }
 0x438   : > { %v3762_v50 = vsel %vm2611_vm7, %v3710_v53, 0.0  ;;  %v10310_v23 = vpop.eup %8442 }
 0x439   : > { %v10302_v3 = vadd.f32 %v3762_v50, %v10047_v41  ;;  %v10314_v41 = vadd.f32 %v3764_v38, %v10060_v54 }
 0x43a   : > { %v10317_v43 = vpop.eup %8444 }
 0x43c   : > { %v3742_v62 = vpop.permute.xlu1 %3741 }
 0x43e   : > { %3071 = vmax.xlane.f32.xlu2 %v10277_v44 }
 0x43f   : > { %v3060_v10 = vpop.xlane.xlu2 %3059 }
 0x440   : > { %v3083_v54 = vsub.f32 %v10153_v51, %v3060_v10  ;;  %v3066_v61 = vpop.xlane.xlu0 %3065 }
 0x442   : > { %v3107_v30 = vmul.f32 1.442695, %v3083_v54 }
 0x446   : > { %3123 = vadd.xlane.f32.xlu2 %v10281_v25 }
 0x447   : > { %v3726_v12 = vpop.permute.xlu2 %3725 }
 0x448   : > { %v3766_v53 = vsel %vm2615_vm9, %v3726_v12, 0.0 }
 0x449   : > { %3753 = vrot.lane.b32.xlu1 %v3690_v27, %s9045_s13  ;;  %v3105_v27 = vmul.f32 1.442695, %v3082_v33  ;;  %v10337_v63 = vadd.f32 %v3766_v53, %v10097_v8  ;;  %v3631_v33 = vpop.f32.mrf.mxu3  ;;  %v3086_v8 = vsub.f32 %v10166_v58, %v3066_v61  ;;  %v3770_v58 = vsel %vm2619_vm13, %v3742_v62, 0.0 }
 0x44b   : > { %8446 = vpow2.f32 %v3105_v27  ;;  %v3113_v35 = vmul.f32 1.442695, %v3086_v8 }
 0x44c   : > { %8448 = vpow2.f32 %v3109_v36 }
 0x44d   : > { %8450 = vpow2.f32 %v3107_v30 }
 0x44e   : > { %3125 = vadd.xlane.f32.xlu2 %v10285_v6  ;;  %8452 = vpow2.f32 %v3113_v35 }
 0x44f   : > { %v3730_v51 = vpop.permute.xlu2 %3729 }
 0x450   : > { %v3767_v38 = vsel %vm2616_vm12, %v3730_v51, 0.0 }
 0x451   : > { %v10321_v9 = vpop.eup %8446  ;;  %v10357_v54 = vadd.f32 %v3767_v38, %v10237_v21  ;;  %v3633_v36 = vpop.f32.mrf.mxu3 }
 0x452   : > { %v10340_v50 = vpop.eup %8448  ;;  %v10364_v30 = vadd.f32 %v3770_v58, %v3633_v36 }
 0x453   : > { %v3738_v11 = vpop.permute.xlu0 %3737  ;;  %v10343_v49 = vpop.eup %8450 }
 0x454   : > { %v3769_v5 = vsel %vm2618_vm11, %v3738_v11, 0.0  ;;  %v10367_v11 = vpop.eup %8452 }
 0x455   : > { %v10353_v10 = vadd.f32 %v3769_v5, %v3631_v33 }
 0x456   : > { %3793 = vmax.xlane.f32.xlu2 %v10297_v7 }
 0x459   : > { %3797 = vmax.xlane.f32.xlu0 %v10302_v3  ;;  %v3636_v5 = vpop.f32.mrf.mxu3 }
 0x45e   : > { %3129 = vadd.xlane.f32.xlu2 %v10310_v23 }
 0x461   : > { %3801 = vmax.xlane.f32.xlu0 %v10314_v41  ;;  %v3638_v36 = vpop.f32.mrf.mxu3 }
 0x466   : > { %3131 = vadd.xlane.f32.xlu2 %v10317_v43 }
 0x469   : > { %3137 = vadd.xlane.f32.xlu0 %v10321_v9 }
 0x46e   : > { %3799 = vmax.xlane.f32.xlu2 %v10333_v59 }
 0x470   : > { %v3070_v27 = vpop.xlane.xlu2 %3069 }
 0x471   : > { %3805 = vmax.xlane.f32.xlu0 %v10337_v63  ;;  %v3088_v33 = vsub.f32 %v10208_v1, %v3070_v27  ;;  %v10385_v1 = vpop.xlane.xlu1 %3073 }
 0x476   : > { %3141 = vadd.xlane.f32.xlu2 %v10340_v50 }
 0x478   : > { %v3746_v61 = vpop.permute.xlu2 %3745 }
 0x479   : > { %3139 = vadd.xlane.f32.xlu0 %v10343_v49  ;;  %v3771_v21 = vsel %vm2620_vm0, %v3746_v61, 0.0  ;;  %v10393_v61 = vpop.xlane.xlu1 %3795 }
 0x47a   : > { %v10374_v8 = vadd.f32 %v3771_v21, %v3636_v5 }
 0x47e   : > { %3811 = vmax.xlane.f32.xlu2 %v10353_v10  ;;  %v3068_v12 = vpop.xlane.xlu0 %3067 }
 0x47f   : > { %v3087_v53 = vsub.f32 %v10227_v60, %v3068_v12  ;;  %v3117_v60 = vmul.f32 1.442695, %v3088_v33 }
 0x481   : > { %3807 = vmax.xlane.f32.xlu0 %v10357_v54  ;;  %v3115_v51 = vmul.f32 1.442695, %v3087_v53  ;;  %v3134_v21 = vpop.xlane.xlu1 %3133 }
 0x483   : > { %8454 = vpow2.f32 %v3115_v51  ;;  %v3692_v51 = vpop.f32.mrf.mxu0 }
 0x484   : > { %8456 = vpow2.f32 %v3117_v60 }
 0x486   : > { %3813 = vmax.xlane.f32.xlu2 %v10364_v30  ;;  %v10377_v38 = vpop.xlane.xlu0 %3791 }
 0x489   : > { %3145 = vadd.xlane.f32.xlu0 %v10367_v11  ;;  %v10379_v62 = vpop.eup %8454 }
 0x48a   : > { %v10382_v35 = vpop.eup %8456 }
 0x48e   : > { %3815 = vmax.xlane.f32.xlu2 %v10374_v8  ;;  %v3128_v12 = vpop.xlane.xlu0 %3127 }
 0x491   : > { %3147 = vadd.xlane.f32.xlu0 %v10379_v62 }
 0x499   : > { %3149 = vadd.xlane.f32.xlu0 %v10382_v35 }
 0x4a1   : > { %v3750_v27 = vpop.permute.xlu0 %3749 }
 0x4a2   : > { %v3772_v58 = vsel %vm2621_vm15, %v3750_v27, 0.0 }
 0x4a3   : > { %v10390_v53 = vadd.f32 %v3772_v58, %v3638_v36  ;;  %v3136_v36 = vpop.xlane.xlu1 %3135 }
 0x4a5   : > { %3817 = vmax.xlane.f32.xlu2 %v10390_v53 }
 0x4ad   : > { %3757 = vrot.lane.b32.xlu0 %v3692_v51, %s9046_s29 }
 0x4b1   : > { %v3072_v33 = vpop.xlane.xlu2 %3071 }
 0x4b2   : > { %v3089_v5 = vsub.f32 %v10277_v44, %v3072_v33  ;;  %v10406_v33 = vpop.xlane.xlu1 %3803 }
 0x4b4   : > { %v3119_v60 = vmul.f32 1.442695, %v3089_v5 }
 0x4b5   : > { %4937 = vrot.lane.b32.xlu0 %v9798_v32, %s9030_s20 }
 0x4b6   : > { %8458 = vpow2.f32 %v3119_v60 }
 0x4b9   : > { %v3124_v27 = vpop.xlane.xlu2 %3123 }
 0x4ba   : > { %8460 = vrcp.f32 %v3124_v27  ;;  %v10418_v31 = vpop.xlane.xlu1 %3809 }
 0x4bc   : > { %v10399_v58 = vpop.eup %8458 }
 0x4bd   : > { %4941 = vrot.lane.b32.xlu2 %v9831_v2, %s9030_s20  ;;  %4943 = vrot.lane.b32.xlu0 %v9847_v42, %s9030_s20 }
 0x4be   : > { %3151 = vadd.xlane.f32.xlu1 %v10399_v58 }
 0x4c0   : > { %v8461_v51 = vpop.eup %8460 }
 0x4c1   : > { %v3126_v44 = vpop.xlane.xlu2 %3125  ;;  %v3171_v5 = vmul.f32 %v8461_v51, %v10281_v25 }
 0x4c2   : > { %8462 = vrcp.f32 %v3126_v44 }
 0x4c3   : > { %v3187_v56 = vpack.c.bf16 %v3171_v5, %v3171_v5  ;;  %8464 = vrcp.f32 %v3128_v12  ;;  %v10423_v12 = vpop.xlane.xlu1 %3143 }
 0x4c5   : > { %v3251_v19 = vunpack.c.l.b16 %v3187_v56 }
 0x4c8   : > { %v8463_v60 = vpop.eup %8462 }
 0x4c9   : > { %v3172_v27 = vmul.f32 %v8463_v60, %v10285_v6  ;;  %v10411_v22 = vpop.xlane.xlu2 %3793  ;;  %v8465_v29 = vpop.eup %8464 }
 0x4cb   : > { %v3188_v26 = vpack.c.bf16 %v3172_v27, %v3172_v27  ;;  %v8102_v34 = vpack.c.bf16 %v3172_v27, %v3171_v5  ;;  %v3173_v5 = vmul.f32 %v8465_v29, %v10254_v52  ;;  %v3754_v0 = vpop.permute.xlu1 %3753 }
 0x4cc   : > { %v3798_v48 = vpop.xlane.xlu0 %3797 }
 0x4cd   : > { %8103 = vst [vmem:[%s10415_s12] sm:$0xff] %v8102_v34   ;;  %v3252_v44 = vunpack.c.l.b16 %v3188_v26  ;;  %v3826_v34 = vsub.f32 %v10302_v3, %v3798_v48  ;;  %v3189_v60 = vpack.c.bf16 %v3173_v5, %v3173_v5 }
 0x4cf   : > { %v3267_v25 = vpack.c.b16 %v3252_v44, %v3251_v19  ;;  %v3253_v29 = vunpack.c.l.b16 %v3189_v60 }
 0x4d1   : > { %3339 = vmatmul.bf16.vlgmr.msrb.gmra.mxu2 %v3267_v25  ;;  %v3130_v51 = vpop.xlane.xlu2 %3129  ;;  %v3845_v25 = vmul.f32 1.442695, %v3826_v34 }
 0x4d2   : > { %8466 = vrcp.f32 %v3130_v51 }
 0x4d3   : > { %8468 = vrcp.f32 %v3134_v21  ;;  %v3090_v21 = vsub.f32 %v10190_v40, %v10385_v1  ;;  %v3641_v40 = vpop.f32.mrf.mxu3 }
 0x4d4   : > { %v10420_v6 = vpop.xlane.xlu0 %3801 }
 0x4d5   : > { %v3121_v1 = vmul.f32 1.442695, %v3090_v21 }
 0x4d7   : > { %4939 = vrot.lane.b32.xlu1 %v9812_v14, %s9030_s20 }
 0x4d8   : > { %v8467_v56 = vpop.eup %8466 }
 0x4d9   : > { %v3132_v26 = vpop.xlane.xlu2 %3131  ;;  %v3174_v19 = vmul.f32 %v8467_v56, %v10310_v23  ;;  %v8469_v47 = vpop.eup %8468 }
 0x4da   : > { %8470 = vrcp.f32 %v3132_v26  ;;  %v3176_v34 = vmul.f32 %v8469_v47, %v10216_v55 }
 0x4db   : > { %8472 = vrcp.f32 %v3136_v36  ;;  %v3190_v27 = vpack.c.bf16 %v3174_v19, %v3174_v19  ;;  %v8107_v44 = vpack.c.bf16 %v3174_v19, %v3173_v5  ;;  %v3773_v36 = vsel %vm2622_vm10, %v3754_v0, 0.0 }
 0x4dc   : > { %v3138_v52 = vpop.xlane.xlu0 %3137  ;;  %v10442_v0 = vadd.f32 %v3773_v36, %v3641_v40  ;;  %v3824_v36 = vsub.f32 %v10297_v7, %v10411_v22 }
 0x4dd   : > { %8474 = vrcp.f32 %v3138_v52  ;;  %8259 = vst [vmem:[%s10415_s12 + $0x8] sm:$0xff] %v8107_v44   ;;  %v3254_v51 = vunpack.c.l.b16 %v3190_v27 }
 0x4de   : > { %8476 = vpow2.f32 %v3845_v25  ;;  %v3841_v40 = vmul.f32 1.442695, %v3824_v36 }
 0x4df   : > { %v3268_v48 = vpack.c.b16 %v3254_v51, %v3253_v29  ;;  %8478 = vpow2.f32 %v3121_v1 }
 0x4e0   : > { %v8471_v3 = vpop.eup %8470 }
 0x4e1   : > { %v8473_v23 = vpop.eup %8472  ;;  %3344 = vmatmul.bf16.gmra.mxu2 %v3268_v48  ;;  %v3800_v5 = vpop.xlane.xlu2 %3799  ;;  %v3175_v56 = vmul.f32 %v8471_v3, %v10317_v43 }
 0x4e2   : > { %v3827_v26 = vsub.f32 %v10333_v59, %v3800_v5  ;;  %v3177_v27 = vmul.f32 %v8473_v23, %v10229_v46  ;;  %v3192_v59 = vpack.c.bf16 %v3176_v34, %v3176_v34 }
 0x4e3   : > { %v8475_v19 = vpop.eup %8474  ;;  %v8112_v60 = vpack.c.bf16 %v3176_v34, %v3175_v56  ;;  %v3191_v55 = vpack.c.bf16 %v3175_v56, %v3175_v56 }
 0x4e4   : > { %v3178_v44 = vmul.f32 %v8475_v19, %v10321_v9  ;;  %v3847_v25 = vmul.f32 1.442695, %v3827_v26  ;;  %v10440_v52 = vpop.xlane.xlu0 %3805  ;;  %v10445_v43 = vpop.eup %8476  ;;  %v3256_v21 = vunpack.c.l.b16 %v3192_v59 }
 0x4e5   : > { %8260 = vst [vmem:[%s10415_s12 + $0x10] sm:$0xff] %v8112_v60   ;;  %v3255_v9 = vunpack.c.l.b16 %v3191_v55  ;;  %v10450_v51 = vpop.eup %8478  ;;  %v3828_v55 = vsub.f32 %v10314_v41, %v10420_v6  ;;  %v3832_v41 = vsub.f32 %v10256_v37, %v10418_v31 }
 0x4e6   : > { %v8117_v47 = vpack.c.bf16 %v3178_v44, %v3177_v27  ;;  %3819 = vmax.xlane.f32.xlu2 %v10442_v0  ;;  %8480 = vpow2.f32 %v3847_v25  ;;  %v3194_v25 = vpack.c.bf16 %v3178_v44, %v3178_v44 }
 0x4e7   : > { %3877 = vadd.xlane.f32.xlu0 %v10445_v43  ;;  %v3269_v3 = vpack.c.b16 %v3256_v21, %v3255_v9 }
 0x4e8   : > { %8261 = vst [vmem:[%s10415_s12 + $0x18] sm:$0xff] %v8117_v47   ;;  %v3193_v47 = vpack.c.bf16 %v3177_v27, %v3177_v27  ;;  %v3258_v22 = vunpack.c.l.b16 %v3194_v25 }
 0x4e9   : > { %v3142_v46 = vpop.xlane.xlu2 %3141 }
 0x4ea   : > { %8482 = vrcp.f32 %v3142_v46 }
 0x4ec   : > { %v3140_v29 = vpop.xlane.xlu0 %3139  ;;  %v10452_v48 = vpop.eup %8480 }
 0x4ed   : > { %8484 = vrcp.f32 %v3140_v29  ;;  %v3857_v29 = vmul.f32 1.442695, %v3832_v41 }
 0x4ee   : > { %3153 = vadd.xlane.f32.xlu2 %v10450_v51 }
 0x4ef   : > { %3879 = vadd.xlane.f32.xlu0 %v10452_v48 }
 0x4f0   : > { %v8483_v23 = vpop.eup %8482 }
 0x4f1   : > { %3349 = vmatmul.bf16.gmra.mxu2 %v3269_v3  ;;  %v3180_v26 = vmul.f32 %v8483_v23, %v10340_v50  ;;  %v3849_v50 = vmul.f32 1.442695, %v3828_v55  ;;  %v3812_v41 = vpop.xlane.xlu2 %3811 }
 0x4f3   : > { %v8485_v5 = vpop.eup %8484  ;;  %v3196_v36 = vpack.c.bf16 %v3180_v26, %v3180_v26 }
 0x4f4   : > { %v3179_v56 = vmul.f32 %v8485_v5, %v10343_v49  ;;  %v3808_v34 = vpop.xlane.xlu0 %3807  ;;  %v3257_v49 = vunpack.c.l.b16 %v3193_v47  ;;  %v3643_v5 = vpop.f32.mrf.mxu3 }
 0x4f5   : > { %v3831_v19 = vsub.f32 %v10357_v54, %v3808_v34 }
 0x4f6   : > { %v8122_v1 = vpack.c.bf16 %v3180_v26, %v3179_v56  ;;  %v3270_v54 = vpack.c.b16 %v3258_v22, %v3257_v49  ;;  %v3195_v3 = vpack.c.bf16 %v3179_v56, %v3179_v56  ;;  %v3823_v22 = vsub.f32 %v10243_v39, %v10377_v38 }
 0x4f7   : > { %v3855_v60 = vmul.f32 1.442695, %v3831_v19 }
 0x4f8   : > { %8262 = vst [vmem:[%s10415_s12 + $0x20] sm:$0xff] %v8122_v1   ;;  %v3259_v31 = vunpack.c.l.b16 %v3195_v3 }
 0x4f9   : > { %8486 = vpow2.f32 %v3855_v60  ;;  %v3814_v3 = vpop.xlane.xlu2 %3813 }
 0x4fa   : > { %8488 = vpow2.f32 %v3841_v40 }
 0x4fb   : > { %8490 = vrcp.f32 %v10423_v12 }
 0x4fc   : > { %v3146_v7 = vpop.xlane.xlu0 %3145  ;;  %v10486_v1 = vpop.f32.mrf.mxu3 }
 0x4fd   : > { %8492 = vrcp.f32 %v3146_v7 }
 0x4fe   : > { %8494 = vpow2.f32 %v3849_v50 }
 0x4ff   : > { %v10465_v46 = vpop.eup %8486  ;;  %8496 = vpow2.f32 %v3857_v29 }
 0x500   : > { %v10467_v59 = vpop.eup %8488  ;;  %3887 = vadd.xlane.f32.xlu0 %v10465_v46 }
 0x501   : > { %v8491_v27 = vpop.eup %8490  ;;  %3873 = vadd.xlane.f32.xlu1 %v10467_v59  ;;  %3354 = vmatmul.bf16.gmra.mxu2 %v3270_v54  ;;  %v3839_v54 = vmul.f32 1.442695, %v3823_v22 }
 0x502   : > { %v3181_v12 = vmul.f32 %v8491_v27, %v10261_v16  ;;  %v3260_v16 = vunpack.c.l.b16 %v3196_v36 }
 0x503   : > { %v8493_v6 = vpop.eup %8492 }
 0x504   : > { %v3182_v44 = vmul.f32 %v8493_v6, %v10367_v11  ;;  %v3148_v9 = vpop.xlane.xlu0 %3147  ;;  %v10475_v23 = vpop.eup %8494  ;;  %v3271_v34 = vpack.c.b16 %v3260_v16, %v3259_v31  ;;  %v3197_v47 = vpack.c.bf16 %v3181_v12, %v3181_v12  ;;  %v3825_v6 = vsub.f32 %v10203_v20, %v10393_v61 }
 0x505   : > { %8498 = vrcp.f32 %v3148_v9  ;;  %v10479_v11 = vpop.eup %8496  ;;  %v10491_v49 = vpop.f32.mrf.mxu3  ;;  %v3834_v20 = vsub.f32 %v10364_v30, %v3814_v3  ;;  %v3833_v30 = vsub.f32 %v10353_v10, %v3812_v41 }
 0x506   : > { %v8127_v21 = vpack.c.bf16 %v3182_v44, %v3181_v12  ;;  %v3198_v25 = vpack.c.bf16 %v3182_v44, %v3182_v44  ;;  %v3261_v7 = vunpack.c.l.b16 %v3197_v47  ;;  %v3843_v38 = vmul.f32 1.442695, %v3825_v6 }
 0x507   : > { %v3861_v16 = vmul.f32 1.442695, %v3834_v20 }
 0x508   : > { %8263 = vst [vmem:[%s10415_s12 + $0x28] sm:$0xff] %v8127_v21   ;;  %v3262_v55 = vunpack.c.l.b16 %v3198_v25  ;;  %v3829_v21 = vsub.f32 %v10246_v24, %v10406_v33 }
 0x509   : > { %3881 = vadd.xlane.f32.xlu1 %v10475_v23 }
 0x50b   : > { %v8499_v19 = vpop.eup %8498 }
 0x50c   : > { %v3150_v37 = vpop.xlane.xlu0 %3149  ;;  %v3183_v40 = vmul.f32 %v8499_v19, %v10379_v62  ;;  %v3272_v62 = vpack.c.b16 %v3262_v55, %v3261_v7 }
 0x50d   : > { %8500 = vrcp.f32 %v3150_v37  ;;  %v4418_v12 = vpop.f32.mrf.mxu3 }
 0x50e   : > { %8502 = vpow2.f32 %v3839_v54  ;;  %v3199_v44 = vpack.c.bf16 %v3183_v40, %v3183_v40 }
 0x50f   : > { %8504 = vpow2.f32 %v3843_v38 }
 0x510   : > { %v3263_v36 = vunpack.c.l.b16 %v3199_v44 }
 0x511   : > { %3889 = vadd.xlane.f32.xlu1 %v10479_v11  ;;  %3359 = vmatmul.bf16.gmra.mxu2 %v3271_v34  ;;  %v3830_v34 = vsub.f32 %v10337_v63, %v10440_v52 }
 0x513   : > { %v8501_v56 = vpop.eup %8500  ;;  %v3853_v24 = vmul.f32 1.442695, %v3830_v34 }
 0x514   : > { %v3184_v26 = vmul.f32 %v8501_v56, %v10382_v35  ;;  %4945 = vrot.lane.b32.xlu0 %v9867_v28, %s9030_s20  ;;  %v10501_v9 = vpop.eup %8502 }
 0x515   : > { %v10509_v31 = vpop.eup %8504  ;;  %v10511_v37 = vpop.f32.mrf.mxu3 }
 0x516   : > { %v8132_v60 = vpack.c.bf16 %v3184_v26, %v3183_v40  ;;  %v3200_v39 = vpack.c.bf16 %v3184_v26, %v3184_v26  ;;  %v3816_v40 = vpop.xlane.xlu2 %3815  ;;  %v3859_v26 = vmul.f32 1.442695, %v3833_v30 }
 0x517   : > { %v3835_v63 = vsub.f32 %v10374_v8, %v3816_v40 }
 0x518   : > { %8264 = vst [vmem:[%s10415_s12 + $0x30] sm:$0xff] %v8132_v60   ;;  %v3264_v29 = vunpack.c.l.b16 %v3200_v39 }
 0x519   : > { %v3863_v47 = vmul.f32 1.442695, %v3835_v63 }
 0x51a   : > { %v3273_v61 = vpack.c.b16 %v3264_v29, %v3263_v36 }
 0x51d   : > { %v4423_v56 = vpop.f32.mrf.mxu3 }
 0x51e   : > { %v3818_v25 = vpop.xlane.xlu2 %3817 }
 0x51f   : > { %v3758_v50 = vpop.permute.xlu0 %3757  ;;  %v3836_v63 = vsub.f32 %v10390_v53, %v3818_v25 }
 0x520   : > { %v3774_v35 = vsel %vm2623_vm14, %v3758_v50, 0.0 }
 0x521   : > { %3364 = vmatmul.bf16.gmra.mxu2 %v3272_v62  ;;  %v10496_v27 = vadd.f32 %v3774_v35, %v3643_v5  ;;  %v3851_v5 = vmul.f32 1.442695, %v3829_v21 }
 0x523   : > { %3821 = vmax.xlane.f32.xlu2 %v10496_v27  ;;  %8506 = vpow2.f32 %v3851_v5 }
 0x524   : > { %8508 = vpow2.f32 %v3861_v16 }
 0x525   : > { %8510 = vpow2.f32 %v3853_v24  ;;  %v10527_v52 = vpop.f32.mrf.mxu3 }
 0x526   : > { %8512 = vpow2.f32 %v3859_v26  ;;  %v10534_v22 = vpop.permute.xlu2 %4941 }
 0x527   : > { %8514 = vpow2.f32 %v3863_v47  ;;  %v10541_v8 = vpop.permute.xlu0 %4937 }
 0x529   : > { %v10516_v33 = vpop.eup %8506 }
 0x52a   : > { %4947 = vrot.lane.b32.xlu1 %v9883_v4, %s9030_s20  ;;  %v10520_v19 = vpop.eup %8508 }
 0x52b   : > { %3871 = vadd.xlane.f32.xlu2 %v10501_v9  ;;  %v10523_v60 = vpop.eup %8510 }
 0x52c   : > { %v10529_v55 = vpop.eup %8512 }
 0x52d   : > { %v10532_v10 = vpop.f32.mrf.mxu3  ;;  %v10538_v7 = vpop.eup %8514 }
 0x52f   : > { %v10545_v38 = vpop.permute.xlu0 %4943 }
 0x531   : > { %3369 = vmatmul.bf16.gmra.mxu2 %v3273_v61  ;;  %v3152_v50 = vpop.xlane.xlu1 %3151 }
 0x532   : > { %8516 = vrcp.f32 %v3152_v50 }
 0x533   : > { %3875 = vadd.xlane.f32.xlu2 %v10509_v31 }
 0x535   : > { %v4430_v35 = vpop.f32.mrf.mxu3 }
 0x538   : > { %v8517_v39 = vpop.eup %8516 }
 0x53b   : > { %3883 = vadd.xlane.f32.xlu2 %v10516_v33 }
 0x53e   : > { %3893 = vadd.xlane.f32.xlu0 %v10520_v19 }
 0x543   : > { %3885 = vadd.xlane.f32.xlu2 %v10523_v60 }
 0x549   : > { %v10560_v16 = vpop.permute.xlu1 %4939 }
 0x54b   : > { %3891 = vadd.xlane.f32.xlu2 %v10529_v55 }
 0x552   : > { %4949 = vrot.lane.b32.xlu0 %v9899_v45, %s9030_s20 }
 0x554   : > { %3895 = vadd.xlane.f32.xlu1 %v10538_v7  ;;  %v10554_v21 = vpop.f32.mrf.mxu2 }
 0x555   : > { %11553 = vst [vmem:[#allocation45_spill] sm:$0xff] %v10554_v21 }
 0x559   : > { %v3820_v62 = vpop.xlane.xlu2 %3819 }
 0x55a   : > { %v3837_v54 = vsub.f32 %v10442_v0, %v3820_v62  ;;  %4463 = vrot.lane.b32.xlu0 %v4418_v12, %s9033_s26  ;;  %v4433_v0 = vpop.f32.mrf.mxu3  ;;  %v3185_v12 = vmul.f32 %v8517_v39, %v10399_v58  ;;  %v10557_v20 = vpop.xlane.xlu0 %3877 }
 0x55c   : > { %v3867_v41 = vmul.f32 1.442695, %v3837_v54  ;;  %v3201_v36 = vpack.c.bf16 %v3185_v12, %v3185_v12 }
 0x55e   : > { %8518 = vpow2.f32 %v3867_v41  ;;  %v3265_v34 = vunpack.c.l.b16 %v3201_v36 }
 0x561   : > { %v3154_v6 = vpop.xlane.xlu2 %3153 }
 0x562   : > { %8520 = vrcp.f32 %v3154_v6  ;;  %4471 = vrot.lane.b32.xlu0 %v4423_v56, %s9035_s21  ;;  %v4435_v58 = vpop.f32.mrf.mxu3  ;;  %v10564_v56 = vpop.f32.mrf.mxu2  ;;  %v8056_v6 = vld [vmem:[#allocation2 + $0x1f8] sm:$0xff] }
 0x563   : > { %4951 = vrot.lane.b32.xlu2 %v9907_v15, %s9030_s20  ;;  %11554 = vst [vmem:[#allocation46_spill] sm:$0xff] %v10564_v56  ;;  %v5103_v53 = vsel %vm11512_vm1, %v8056_v6, 0 }
 0x564   : > { %v10550_v44 = vpop.eup %8518  ;;  %5154 = vmatpush.bf16.xpose.msrb.mxu2 %v5103_v53 }
 0x565   : > { %3899 = vadd.xlane.f32.xlu1 %v10550_v44 }
 0x568   : > { %v8521_v29 = vpop.eup %8520 }
 0x569   : > { %v3186_v3 = vmul.f32 %v8521_v29, %v10450_v51  ;;  %v3880_v51 = vpop.xlane.xlu0 %3879 }
 0x56a   : > { %4483 = vrot.lane.b32.xlu0 %v4430_v35, %s9038_s24  ;;  %8522 = vrcp.f32 %v3880_v51  ;;  %v4438_v26 = vpop.f32.mrf.mxu3  ;;  %v10568_v54 = vpop.f32.mrf.mxu2  ;;  %v3865_v35 = vmul.f32 1.442695, %v3836_v63  ;;  %v8055_v63 = vld [vmem:[#allocation2 + $0x1f0] sm:$0xff] }
 0x56b   : > { %v3202_v61 = vpack.c.bf16 %v3186_v3, %v3186_v3  ;;  %v8137_v5 = vpack.c.bf16 %v3186_v3, %v3185_v12  ;;  %11555 = vst [vmem:[#allocation47_spill] sm:$0xff] %v10568_v54 }
 0x56d   : > { %8265 = vst [vmem:[%s10415_s12 + $0x38] sm:$0xff] %v8137_v5   ;;  %v3266_v24 = vunpack.c.l.b16 %v3202_v61 }
 0x56f   : > { %v3274_v30 = vpack.c.b16 %v3266_v24, %v3265_v34 }
 0x570   : > { %v8523_v62 = vpop.eup %8522 }
 0x571   : > { %3374 = vmatmul.bf16.gmra.mxu2 %v3274_v30  ;;  %v3923_v41 = vmul.f32 %v8523_v62, %v10452_v48 }
 0x572   : > { %4491 = vrot.lane.b32.xlu0 %v4435_v58, %s9040_s30  ;;  %v4440_v62 = vpop.f32.mrf.mxu3 }
 0x573   : > { %v3888_v47 = vpop.xlane.xlu0 %3887  ;;  %v3939_v29 = vpack.c.bf16 %v3923_v41, %v3923_v41 }
 0x574   : > { %v3874_v40 = vpop.xlane.xlu1 %3873 }
 0x575   : > { %v10583_v61 = vunpack.c.l.b16 %v3939_v29 }
 0x57a   : > { %4495 = vrot.lane.b32.xlu0 %v4438_v26, %s9041_s28 }
 0x57c   : > { %v3882_v50 = vpop.xlane.xlu1 %3881 }
 0x57d   : > { %8524 = vrcp.f32 %v3882_v50  ;;  %v5100_v50 = vsel %vm11512_vm1, %v8055_v63, 0 }
 0x57e   : > { %4467 = vrot.lane.b32.xlu1 %v10511_v37, %s9034_s19  ;;  %8526 = vrcp.f32 %v3888_v47  ;;  %5155 = vmatpush.bf16.xpose.msrb.mxu2 %v5100_v50 }
 0x57f   : > { %8528 = vpow2.f32 %v3865_v35 }
 0x581   : > { %7493 = vmatmul.msk.bf16.vlgmr.msra.gmra.mxu2 %vm11512_vm1, %v9798_v32  ;;  %v10579_v32 = vpop.f32.mrf.mxu2 }
 0x582   : > { %11556 = vst [vmem:[#allocation48_spill] sm:$0xff] %v10579_v32 }
 0x583   : > { %v8525_v39 = vpop.eup %8524 }
 0x584   : > { %v3924_v25 = vmul.f32 %v8525_v39, %v10475_v23  ;;  %v3890_v12 = vpop.xlane.xlu1 %3889  ;;  %v8527_v3 = vpop.eup %8526  ;;  %v8054_v39 = vld [vmem:[#allocation2 + $0x1e8] sm:$0xff] }
 0x585   : > { %8530 = vrcp.f32 %v3890_v12  ;;  %v3927_v36 = vmul.f32 %v8527_v3, %v10465_v46  ;;  %v10587_v23 = vpop.eup %8528  ;;  %v5097_v53 = vsel %vm11512_vm1, %v8054_v39, 0 }
 0x586   : > { %v8152_v37 = vpack.c.bf16 %v3924_v25, %v3923_v41  ;;  %4479 = vrot.lane.b32.xlu1 %v10532_v10, %s9037_s11  ;;  %v3940_v48 = vpack.c.bf16 %v3924_v25, %v3924_v25  ;;  %8532 = vrcp.f32 %v3874_v40  ;;  %5156 = vmatpush.bf16.xpose.msrb.mxu2 %v5097_v53  ;;  %v10627_v50 = vpop.permute.xlu0 %4945 }
 0x587   : > { %v3943_v10 = vpack.c.bf16 %v3927_v36, %v3927_v36 }
 0x588   : > { %8268 = vst [vmem:[%s10415_s12 + $0x50] sm:$0xff] %v8152_v37   ;;  %v10585_v5 = vunpack.c.l.b16 %v3940_v48 }
 0x589   : > { %v10595_v51 = vunpack.c.l.b16 %v3943_v10  ;;  %v10601_v47 = vpop.f32.mrf.mxu2 }
 0x58a   : > { %v4019_v34 = vpack.c.b16 %v10585_v5, %v10583_v61  ;;  %11557 = vst [vmem:[#allocation49_spill] sm:$0xff] %v10601_v47 }
 0x58b   : > { %v8531_v24 = vpop.eup %8530 }
 0x58c   : > { %v3928_v58 = vmul.f32 %v8531_v24, %v10479_v11  ;;  %3897 = vadd.xlane.f32.xlu2 %v10587_v23  ;;  %v8533_v6 = vpop.eup %8532 }
 0x58e   : > { %v8162_v30 = vpack.c.bf16 %v3928_v58, %v3927_v36  ;;  %4487 = vrot.lane.b32.xlu1 %v4433_v0, %s9039_s5  ;;  %v3944_v46 = vpack.c.bf16 %v3928_v58, %v3928_v58 }
 0x590   : > { %8270 = vst [vmem:[%s10415_s12 + $0x60] sm:$0xff] %v8162_v30   ;;  %v10597_v26 = vunpack.c.l.b16 %v3944_v46  ;;  %v8053_v30 = vld [vmem:[#allocation2 + $0x1e0] sm:$0xff] }
 0x591   : > { %7494 = vmatmul.msk.bf16.gmra.mxu2 %vm11512_vm1, %v9812_v14  ;;  %v10607_v35 = vpop.f32.mrf.mxu2  ;;  %v3920_v14 = vmul.f32 %v8533_v6, %v10467_v59  ;;  %v5094_v63 = vsel %vm11512_vm1, %v8053_v30, 0 }
 0x592   : > { %v4021_v11 = vpack.c.b16 %v10597_v26, %v10595_v51  ;;  %11558 = vst [vmem:[#allocation50_spill] sm:$0xff] %v10607_v35  ;;  %5157 = vmatpush.bf16.xpose.msrb.mxu2 %v5094_v63 }
 0x593   : > { %v3936_v40 = vpack.c.bf16 %v3920_v14, %v3920_v14 }
 0x595   : > { %v4002_v59 = vunpack.c.l.b16 %v3936_v40 }
 0x596   : > { %4499 = vrot.lane.b32.xlu1 %v4440_v62, %s9042_s25  ;;  %v3822_v0 = vpop.xlane.xlu2 %3821 }
 0x597   : > { %v3838_v40 = vsub.f32 %v10496_v27, %v3822_v0  ;;  %v8051_v0 = vld [vmem:[#allocation2 + $0x1d0] sm:$0xff] }
 0x599   : > { %v10616_v12 = vpop.f32.mrf.mxu2 }
 0x59a   : > { %11559 = vst [vmem:[#allocation51_spill] sm:$0xff] %v10616_v12 }
 0x59c   : > { %v10672_v5 = vpop.permute.xlu1 %4947 }
 0x59e   : > { %v3872_v41 = vpop.xlane.xlu2 %3871 }
 0x59f   : > { %8534 = vrcp.f32 %v3872_v41 }
 0x5a0   : > { %8536 = vrcp.f32 %v10557_v20 }
 0x5a1   : > { %7495 = vmatmul.msk.bf16.gmra.mxu2 %vm11512_vm1, %v9831_v2  ;;  %v10622_v46 = vpop.f32.mrf.mxu2 }
 0x5a2   : > { %11560 = vst [vmem:[#allocation52_spill] sm:$0xff] %v10622_v46 }
 0x5a4   : > { %4455 = vrot.lane.b32.xlu2 %v10486_v1, %s9031_s4 }
 0x5a5   : > { %v8535_v25 = vpop.eup %8534 }
 0x5a6   : > { %v3919_v29 = vmul.f32 %v8535_v25, %v10501_v9  ;;  %v3876_v3 = vpop.xlane.xlu2 %3875  ;;  %v8537_v1 = vpop.eup %8536 }
 0x5a7   : > { %8538 = vrcp.f32 %v3876_v3  ;;  %v3922_v58 = vmul.f32 %v8537_v1, %v10445_v43 }
 0x5a8   : > { %v3935_v2 = vpack.c.bf16 %v3919_v29, %v3919_v29  ;;  %v8142_v37 = vpack.c.bf16 %v3920_v14, %v3919_v29 }
 0x5a9   : > { %v3938_v41 = vpack.c.bf16 %v3922_v58, %v3922_v58 }
 0x5aa   : > { %8266 = vst [vmem:[%s10415_s12 + $0x40] sm:$0xff] %v8142_v37   ;;  %v4001_v48 = vunpack.c.l.b16 %v3935_v2 }
 0x5ab   : > { %v4004_v39 = vunpack.c.l.b16 %v3938_v41 }
 0x5ac   : > { %v4017_v36 = vpack.c.b16 %v4002_v59, %v4001_v48  ;;  %v8052_v59 = vld [vmem:[#allocation2 + $0x1d8] sm:$0xff]  ;;  %v3869_v48 = vmul.f32 1.442695, %v3838_v40 }
 0x5ad   : > { %v8539_v24 = vpop.eup %8538  ;;  %v5091_v1 = vsel %vm11512_vm1, %v8052_v59, 0 }
 0x5ae   : > { %v3884_v20 = vpop.xlane.xlu2 %3883  ;;  %4089 = vmatmul.bf16.vlgmr.msra.gmra.mxu1 %v4017_v36  ;;  %v3921_v10 = vmul.f32 %v8539_v24, %v10509_v31  ;;  %v10630_v31 = vpop.f32.mrf.mxu2  ;;  %5158 = vmatpush.bf16.xpose.msrb.mxu2 %v5091_v1 }
 0x5af   : > { %8540 = vrcp.f32 %v3884_v20  ;;  %11561 = vst [vmem:[#allocation53_spill] sm:$0xff] %v10630_v31  ;;  %v5088_v20 = vsel %vm11512_vm1, %v8051_v0, 0 }
 0x5b0   : > { %v8147_v9 = vpack.c.bf16 %v3922_v58, %v3921_v10  ;;  %v3937_v62 = vpack.c.bf16 %v3921_v10, %v3921_v10 }
 0x5b1   : > { %7496 = vmatmul.msk.bf16.gmra.mxu2 %vm11512_vm1, %v9847_v42  ;;  %v3894_v14 = vpop.xlane.xlu0 %3893 }
 0x5b2   : > { %8267 = vst [vmem:[%s10415_s12 + $0x48] sm:$0xff] %v8147_v9   ;;  %v4003_v6 = vunpack.c.l.b16 %v3937_v62 }
 0x5b4   : > { %v4018_v25 = vpack.c.b16 %v4004_v39, %v4003_v6 }
 0x5b5   : > { %v8541_v53 = vpop.eup %8540 }
 0x5b6   : > { %v3886_v43 = vpop.xlane.xlu2 %3885  ;;  %v3925_v29 = vmul.f32 %v8541_v53, %v10516_v33  ;;  %v10639_v27 = vpop.f32.mrf.mxu2  ;;  %5159 = vmatpush.bf16.xpose.msrb.mxu2 %v5088_v20 }
 0x5b7   : > { %8542 = vrcp.f32 %v3886_v43  ;;  %11562 = vst [vmem:[#allocation54_spill] sm:$0xff] %v10639_v27  ;;  %v8049_v43 = vld [vmem:[#allocation2 + $0x1c0] sm:$0xff] }
 0x5b8   : > { %8544 = vrcp.f32 %v3894_v14  ;;  %v3941_v9 = vpack.c.bf16 %v3925_v29, %v3925_v29  ;;  %v5082_v6 = vsel %vm11512_vm1, %v8049_v43, 0 }
 0x5ba   : > { %v4007_v41 = vunpack.c.l.b16 %v3941_v9 }
 0x5bd   : > { %v8543_v42 = vpop.eup %8542 }
 0x5be   : > { %v3926_v3 = vmul.f32 %v8543_v42, %v10523_v60  ;;  %v3892_v2 = vpop.xlane.xlu2 %3891  ;;  %4094 = vmatmul.bf16.gmra.mxu1 %v4018_v25  ;;  %v8545_v36 = vpop.eup %8544 }
 0x5bf   : > { %8546 = vrcp.f32 %v3892_v2  ;;  %v3930_v60 = vmul.f32 %v8545_v36, %v10520_v19  ;;  %v10648_v10 = vpop.f32.mrf.mxu2  ;;  %v8050_v19 = vld [vmem:[#allocation2 + $0x1c8] sm:$0xff] }
 0x5c0   : > { %v8157_v37 = vpack.c.bf16 %v3926_v3, %v3925_v29  ;;  %8548 = vpow2.f32 %v3869_v48  ;;  %11563 = vst [vmem:[#allocation55_spill] sm:$0xff] %v10648_v10  ;;  %v3942_v30 = vpack.c.bf16 %v3926_v3, %v3926_v3 }
 0x5c1   : > { %7497 = vmatmul.msk.bf16.gmra.mxu2 %vm11512_vm1, %v9867_v28  ;;  %v3946_v39 = vpack.c.bf16 %v3930_v60, %v3930_v60 }
 0x5c2   : > { %8269 = vst [vmem:[%s10415_s12 + $0x58] sm:$0xff] %v8157_v37   ;;  %v4008_v62 = vunpack.c.l.b16 %v3942_v30 }
 0x5c3   : > { %v4012_v42 = vunpack.c.l.b16 %v3946_v39 }
 0x5c4   : > { %v4020_v14 = vpack.c.b16 %v4008_v62, %v4007_v41  ;;  %v10687_v1 = vpop.permute.xlu0 %4949 }
 0x5c5   : > { %v8547_v33 = vpop.eup %8546 }
 0x5c6   : > { %v3929_v24 = vmul.f32 %v8547_v33, %v10529_v55  ;;  %v10645_v28 = vpop.eup %8548  ;;  %v5085_v55 = vsel %vm11512_vm1, %v8050_v19, 0  ;;  %v10676_v53 = vpop.permute.xlu2 %4951 }
 0x5c7   : > { %5160 = vmatpush.bf16.xpose.msrb.mxu2 %v5085_v55  ;;  %v10656_v63 = vpop.f32.mrf.mxu2 }
 0x5c8   : > { %v8167_v58 = vpack.c.bf16 %v3930_v60, %v3929_v24  ;;  %11564 = vst [vmem:[#allocation56_spill] sm:$0xff] %v10656_v63 }
 0x5ca   : > { %8271 = vst [vmem:[%s10415_s12 + $0x68] sm:$0xff] %v8167_v58  }
 0x5cc   : > { %v4464_v9 = vpop.permute.xlu0 %4463 }
 0x5cd   : > { %3901 = vadd.xlane.f32.xlu2 %v10645_v28  ;;  %v4519_v62 = vsel %vm2610_vm2, %v4464_v9, 0.0 }
 0x5ce   : > { %4099 = vmatmul.bf16.gmra.mxu1 %v4019_v34  ;;  %v3945_v34 = vpack.c.bf16 %v3929_v24, %v3929_v24 }
 0x5cf   : > { %5161 = vmatpush.bf16.xpose.msrb.mxu2 %v5082_v6 }
 0x5d0   : > { %v4011_v25 = vunpack.c.l.b16 %v3945_v34 }
 0x5d1   : > { %7498 = vmatmul.msk.bf16.gmra.mxu2 %vm11512_vm1, %v9883_v4  ;;  %v10661_v4 = vpop.f32.mrf.mxu2 }
 0x5d2   : > { %11565 = vst [vmem:[#allocation57_spill] sm:$0xff] %v10661_v4  ;;  %v4022_v29 = vpack.c.b16 %v4012_v42, %v4011_v25 }
 0x5d9   : > { %v10665_v61 = vpop.f32.mrf.mxu2 }
 0x5da   : > { %11566 = vst [vmem:[#allocation58_spill] sm:$0xff] %v10665_v61 }
 0x5de   : > { %4104 = vmatmul.bf16.gmra.mxu1 %v4020_v14  ;;  %v4472_v14 = vpop.permute.xlu0 %4471 }
 0x5df   : > { %v4521_v34 = vsel %vm2612_vm8, %v4472_v14, 0.0 }
 0x5e1   : > { %7499 = vmatmul.msk.bf16.gmra.mxu2 %vm11512_vm1, %v9899_v45 }
 0x5e5   : > { %4459 = vrot.lane.b32.xlu2 %v10491_v49, %s9032_s18  ;;  %v3896_v49 = vpop.xlane.xlu1 %3895 }
 0x5e6   : > { %8550 = vrcp.f32 %v3896_v49 }
 0x5ed   : > { %4475 = vrot.lane.b32.xlu2 %v10527_v52, %s9036_s23  ;;  %v3900_v49 = vpop.xlane.xlu1 %3899 }
 0x5ee   : > { %4109 = vmatmul.bf16.gmra.mxu1 %v4021_v11 }
 0x5f1   : > { %7500 = vmatmul.msk.bf16.gmra.mxu2 %vm11512_vm1, %v9907_v15  ;;  %v8551_v15 = vpop.eup %8550 }
 0x5f2   : > { %v3931_v37 = vmul.f32 %v8551_v15, %v10538_v7 }
 0x5f4   : > { %v3375_v45 = vpop.f32.mrf.mxu2  ;;  %v3947_v0 = vpack.c.bf16 %v3931_v37, %v3931_v37 }
 0x5f5   : > { %v3394_v40 = vpack.c.bf16 %v3375_v45, %v3375_v45 }
 0x5f6   : > { %v4013_v7 = vunpack.c.l.b16 %v3947_v0 }
 0x5f7   : > { %v10678_v51 = vunpack.c.l.b16 %v3394_v40  ;;  %v4468_v40 = vpop.permute.xlu1 %4467 }
 0x5f9   : > { %11567 = vst [vmem:[#allocation59_spill] sm:$0xff] %v10678_v51 }
 0x5fc   : > { %v3377_v52 = vpop.f32.mrf.mxu2 }
 0x5fd   : > { %v3395_v3 = vpack.c.bf16 %v3377_v52, %v3377_v52 }
 0x5fe   : > { %4114 = vmatmul.bf16.gmra.mxu1 %v4022_v29 }
 0x5ff   : > { %v10680_v26 = vunpack.c.l.b16 %v3395_v3  ;;  %v3898_v11 = vpop.xlane.xlu2 %3897  ;;  %v4480_v29 = vpop.permute.xlu1 %4479 }
 0x600   : > { %8552 = vrcp.f32 %v3898_v11  ;;  %v4484_v3 = vpop.permute.xlu0 %4483 }
 0x601   : > { %11568 = vst [vmem:[#allocation60_spill] sm:$0xff] %v10680_v26  ;;  %7629 = vmatmul.msk.bf16.vlgmr.msrb.gmra.mxu2 %vm11512_vm1, %v10541_v8  ;;  %8554 = vrcp.f32 %v3900_v49  ;;  %v4524_v15 = vsel %vm2615_vm9, %v4484_v3, 0.0 }
 0x604   : > { %v4364_v59 = vpop.f32.mrf.mxu2 }
 0x606   : > { %v8553_v48 = vpop.eup %8552 }
 0x607   : > { %v3932_v36 = vmul.f32 %v8553_v48, %v10587_v23  ;;  %v4456_v33 = vpop.permute.xlu2 %4455 }
 0x608   : > { %v4517_v60 = vsel %vm2608_vm3, %v4456_v33, 0.0  ;;  %v4488_v33 = vpop.permute.xlu1 %4487 }
 0x609   : > { %v8172_v24 = vpack.c.bf16 %v3932_v36, %v3931_v37  ;;  %v10693_v58 = vadd.f32 %v4517_v60, %v4364_v59  ;;  %v3948_v20 = vpack.c.bf16 %v3932_v36, %v3932_v36  ;;  %v8555_v36 = vpop.eup %8554 }
 0x60a   : > { %v3933_v0 = vmul.f32 %v8555_v36, %v10550_v44 }
 0x60b   : > { %8272 = vst [vmem:[%s10415_s12 + $0x70] sm:$0xff] %v8172_v24   ;;  %4549 = vmax.xlane.f32.xlu0 %v10693_v58  ;;  %v4014_v19 = vunpack.c.l.b16 %v3948_v20  ;;  %v4525_v24 = vsel %vm2616_vm12, %v4488_v33, 0.0  ;;  %v4520_v33 = vsel %vm2611_vm7, %v4468_v40, 0.0  ;;  %v4523_v40 = vsel %vm2614_vm6, %v4480_v29, 0.0 }
 0x60c   : > { %v4366_v55 = vpop.f32.mrf.mxu2 }
 0x60d   : > { %v4023_v30 = vpack.c.b16 %v4014_v19, %v4013_v7 }
 0x60f   : > { %4119 = vmatmul.bf16.gmra.mxu1 %v4023_v30 }
 0x611   : > { %7630 = vmatmul.msk.bf16.gmra.mxu2 %vm11512_vm1, %v10560_v16 }
 0x614   : > { %v4369_v43 = vpop.f32.mrf.mxu2 }
 0x615   : > { %v10702_v41 = vadd.f32 %v4519_v62, %v4369_v43  ;;  %v3949_v62 = vpack.c.bf16 %v3933_v0, %v3933_v0 }
 0x617   : > { %4553 = vmax.xlane.f32.xlu0 %v10702_v41  ;;  %v4015_v3 = vunpack.c.l.b16 %v3949_v62 }
 0x61c   : > { %v4371_v6 = vpop.f32.mrf.mxu2 }
 0x621   : > { %7631 = vmatmul.msk.bf16.gmra.mxu2 %vm11512_vm1, %v10534_v22 }
 0x624   : > { %v4374_v39 = vpop.f32.mrf.mxu2 }
 0x625   : > { %v10710_v25 = vadd.f32 %v4521_v34, %v4374_v39 }
 0x627   : > { %4557 = vmax.xlane.f32.xlu1 %v10710_v25 }
 0x62c   : > { %v4376_v42 = vpop.f32.mrf.mxu2 }
 0x631   : > { %7632 = vmatmul.msk.bf16.gmra.mxu2 %vm11512_vm1, %v10545_v38 }
 0x634   : > { %v4379_v52 = vpop.f32.mrf.mxu2 }
 0x635   : > { %v10762_v62 = vadd.f32 %v4523_v40, %v4379_v52 }
 0x63c   : > { %v4381_v37 = vpop.f32.mrf.mxu2 }
 0x63d   : > { %v10718_v59 = vadd.f32 %v4524_v15, %v4381_v37 }
 0x63f   : > { %4563 = vmax.xlane.f32.xlu1 %v10718_v59 }
 0x640   : > { %v3902_v48 = vpop.xlane.xlu2 %3901 }
 0x641   : > { %8556 = vrcp.f32 %v3902_v48  ;;  %7633 = vmatmul.msk.bf16.gmra.mxu2 %vm11512_vm1, %v10627_v50  ;;  %v10739_v48 = vpop.f32.mrf.mxu1 }
 0x644   : > { %v4384_v20 = vpop.f32.mrf.mxu2 }
 0x645   : > { %v10727_v7 = vadd.f32 %v4525_v24, %v4384_v20  ;;  %v10749_v24 = vadd.f32 %v4520_v33, %v4371_v6 }
 0x647   : > { %v8557_v19 = vpop.eup %8556 }
 0x648   : > { %v3934_v30 = vmul.f32 %v8557_v19, %v10645_v28  ;;  %v4460_v9 = vpop.permute.xlu2 %4459 }
 0x649   : > { %v4518_v14 = vsel %vm2609_vm4, %v4460_v9, 0.0  ;;  %v10760_v9 = vpop.f32.mrf.mxu1 }
 0x64a   : > { %v8177_v34 = vpack.c.bf16 %v3934_v30, %v3933_v0  ;;  %v10733_v39 = vadd.f32 %v4518_v14, %v4366_v55  ;;  %v3950_v44 = vpack.c.bf16 %v3934_v30, %v3934_v30 }
 0x64c   : > { %8273 = vst [vmem:[%s10415_s12 + $0x78] sm:$0xff] %v8177_v34   ;;  %4551 = vmax.xlane.f32.xlu2 %v10733_v39  ;;  %v10737_v49 = vpop.f32.mrf.mxu2  ;;  %v4016_v15 = vunpack.c.l.b16 %v3950_v44  ;;  %v10775_v34 = vpop.permute.xlu0 %4491 }
 0x64e   : > { %v4024_v37 = vpack.c.b16 %v4016_v15, %v4015_v3 }
 0x650   : > { %v4476_v28 = vpop.permute.xlu2 %4475  ;;  %4124 = vmatmul.bf16.gmra.mxu1 %v4024_v37 }
 0x651   : > { %v4522_v0 = vsel %vm2613_vm5, %v4476_v28, 0.0  ;;  %7634 = vmatmul.msk.bf16.gmra.mxu2 %vm11512_vm1, %v10672_v5  ;;  %v10771_v6 = vpop.f32.mrf.mxu1 }
 0x652   : > { %v10751_v20 = vadd.f32 %v4522_v0, %v4376_v42 }
 0x654   : > { %4559 = vmax.xlane.f32.xlu0 %v10751_v20  ;;  %v10754_v19 = vpop.f32.mrf.mxu2  ;;  %4555 = vmax.xlane.f32.xlu2 %v10749_v24  ;;  %v10787_v44 = vpop.permute.xlu0 %4495 }
 0x659   : > { %v10779_v52 = vpop.f32.mrf.mxu1 }
 0x65c   : > { %v10764_v14 = vpop.f32.mrf.mxu2  ;;  %4561 = vmax.xlane.f32.xlu2 %v10762_v62 }
 0x660   : > { %7621 = vmatmul.msk.bf16.vlgmr.msrb.gmra.mxu1 %vm11512_vm1, %v10541_v8 }
 0x661   : > { %7635 = vmatmul.msk.bf16.gmra.mxu2 %vm11512_vm1, %v10687_v1  ;;  %v10789_v3 = vpop.f32.mrf.mxu1 }
 0x662   : > { %11577 = vst [vmem:[#allocation32_spill] sm:$0xff] %v10789_v3 }
 0x664   : > { %v10773_v42 = vpop.f32.mrf.mxu2 }
 0x669   : > { %v10796_v33 = vpop.f32.mrf.mxu1 }
 0x66a   : > { %11578 = vst [vmem:[#allocation37_spill] sm:$0xff] %v10796_v33 }
 0x66c   : > { %v10777_v29 = vpop.f32.mrf.mxu2 }
 0x670   : > { %7622 = vmatmul.msk.bf16.gmra.mxu1 %vm11512_vm1, %v10560_v16 }
 0x671   : > { %7636 = vmatmul.msk.bf16.gmra.mxu2 %vm11512_vm1, %v10676_v53  ;;  %v10802_v2 = vpop.f32.mrf.mxu1 }
 0x674   : > { %v10785_v8 = vpop.f32.mrf.mxu2 }
 0x67c   : > { %v10791_v15 = vpop.f32.mrf.mxu2 }
 0x67e   : > { %v4550_v37 = vpop.xlane.xlu0 %4549 }
 0x67f   : > { %v4581_v28 = vsub.f32 %v10693_v58, %v4550_v37  ;;  %v10807_v58 = vpop.f32.mrf.mxu1 }
 0x680   : > { %7623 = vmatmul.msk.bf16.gmra.mxu1 %vm11512_vm1, %v10534_v22 }
 0x681   : > { %v4597_v16 = vmul.f32 1.442695, %v4581_v28 }
 0x683   : > { %8558 = vpow2.f32 %v4597_v16 }
 0x684   : > { %v5163_v0 = vpop.f32.mrf.mxu2 }
 0x685   : > { %5205 = vrot.lane.b32.xlu1 %v5163_v0, %s9031_s4  ;;  %s8097_s4 = sshll.u32 %s9014_s16, 8 }
 0x687   : > { %v10810_v28 = vpop.f32.mrf.mxu1 }
 0x688   : > { %11579 = vst [vmem:[#allocation38_spill] sm:$0xff] %v10810_v28 }
 0x689   : > { %v10799_v40 = vpop.eup %8558 }
 0x68a   : > { %4629 = vadd.xlane.f32.xlu2 %v10799_v40 }
 0x68c   : > { %v5165_v51 = vpop.f32.mrf.mxu2 }
 0x68d   : > { %5209 = vrot.lane.b32.xlu0 %v5165_v51, %s9032_s18 }
 0x68f   : > { %v10815_v0 = vpop.f32.mrf.mxu1 }
 0x690   : > { %7624 = vmatmul.msk.bf16.gmra.mxu1 %vm11512_vm1, %v10545_v38  ;;  %11580 = vst [vmem:[#allocation41_spill] sm:$0xff] %v10815_v0 }
 0x694   : > { %v5168_v22 = vpop.f32.mrf.mxu2 }
 0x697   : > { %v10819_v38 = vpop.f32.mrf.mxu1 }
 0x698   : > { %11581 = vst [vmem:[#allocation33_spill] sm:$0xff] %v10819_v38 }
 0x69c   : > { %v5170_v37 = vpop.f32.mrf.mxu2 }
 0x69d   : > { %5217 = vrot.lane.b32.xlu1 %v5170_v37, %s9034_s19  ;;  %s6376_s19 = scalar_lea.hbm %s11468_s10, %s8097_s4 }
 0x69f   : > { %v10821_v61 = vpop.f32.mrf.mxu1 }
 0x6a0   : > { %7625 = vmatmul.msk.bf16.gmra.mxu1 %vm11512_vm1, %v10627_v50  ;;  %11582 = vst [vmem:[#allocation36_spill] sm:$0xff] %v10821_v61 }
 0x6a4   : > { %v5173_v16 = vpop.f32.mrf.mxu2 }
 0x6a5   : > { %5221 = vrot.lane.b32.xlu0 %v5173_v16, %s9035_s21 }
 0x6a7   : > { %v10827_v63 = vpop.f32.mrf.mxu1 }
 0x6a8   : > { %11583 = vst [vmem:[#allocation34_spill] sm:$0xff] %v10827_v63 }
 0x6ac   : > { %v5175_v51 = vpop.f32.mrf.mxu2 }
 0x6b0   : > { %7626 = vmatmul.msk.bf16.gmra.mxu1 %vm11512_vm1, %v10672_v5 }
 0x6b4   : > { %v5178_v26 = vpop.f32.mrf.mxu2 }
 0x6bc   : > { %v5180_v4 = vpop.f32.mrf.mxu2 }
 0x6bf   : > { %v4552_v37 = vpop.xlane.xlu2 %4551 }
 0x6c0   : > { %v4582_v10 = vsub.f32 %v10733_v39, %v4552_v37  ;;  %7627 = vmatmul.msk.bf16.gmra.mxu1 %vm11512_vm1, %v10687_v1  ;;  %v10835_v39 = vpop.f32.mrf.mxu1 }
 0x6c1   : > { %11584 = vst [vmem:[#allocation35_spill] sm:$0xff] %v10835_v39 }
 0x6c2   : > { %v4599_v50 = vmul.f32 1.442695, %v4582_v10 }
 0x6c4   : > { %8560 = vpow2.f32 %v4599_v50  ;;  %v5183_v16 = vpop.f32.mrf.mxu2  ;;  %v10841_v50 = vpop.permute.xlu1 %4499 }
 0x6c5   : > { %5237 = vrot.lane.b32.xlu0 %v5183_v16, %s9039_s5 }
 0x6ca   : > { %v10829_v5 = vpop.eup %8560 }
 0x6cb   : > { %4631 = vadd.xlane.f32.xlu2 %v10829_v5 }
 0x6cc   : > { %v5185_v31 = vpop.f32.mrf.mxu2  ;;  %v10846_v27 = vpop.xlane.xlu1 %4557 }
 0x6cd   : > { %5241 = vrot.lane.b32.xlu0 %v5185_v31, %s9040_s30  ;;  %v10838_v10 = vpop.f32.mrf.mxu1 }
 0x6ce   : > { %11585 = vst [vmem:[#allocation61_spill] sm:$0xff] %v10838_v10 }
 0x6d0   : > { %7628 = vmatmul.msk.bf16.gmra.mxu1 %vm11512_vm1, %v10676_v53 }
 0x6d4   : > { %v5188_v1 = vpop.f32.mrf.mxu2 }
 0x6d5   : > { %5245 = vrot.lane.b32.xlu0 %v5188_v1, %s9041_s28  ;;  %v10843_v16 = vpop.f32.mrf.mxu1  ;;  %v10850_v1 = vpop.xlane.xlu1 %4563 }
 0x6d6   : > { %11586 = vst [vmem:[#allocation62_spill] sm:$0xff] %v10843_v16 }
 0x6dc   : > { %v5190_v37 = vpop.f32.mrf.mxu2 }
 0x6dd   : > { %5249 = vrot.lane.b32.xlu0 %v5190_v37, %s9042_s25  ;;  %v5114_v12 = vpop.f32.mrf.mxu1 }
 0x6e3   : > { %5213 = vrot.lane.b32.xlu2 %v5168_v22, %s9033_s26 }
 0x6e4   : > { %v5193_v31 = vpop.f32.mrf.mxu2 }
 0x6e5   : > { %v5116_v46 = vpop.f32.mrf.mxu1 }
 0x6eb   : > { %5225 = vrot.lane.b32.xlu2 %v5175_v51, %s9036_s23  ;;  %v10861_v51 = vpop.xlane.xlu0 %4553  ;;  %s6377_s23 = sshll.u32 %s10415_s12, 4  ;;  %s6378_s23 = int_to_ptr.vmem [resolvable:$true] %s6377_s23 }
 0x6ec   : > { %v5195_v53 = vpop.f32.mrf.mxu2 }
 0x6ed   : > { %5257 = vrot.lane.b32.xlu0 %v5195_v53, %s9044_s3  ;;  %v5119_v54 = vpop.f32.mrf.mxu1 }
 0x6f3   : > { %5229 = vrot.lane.b32.xlu2 %v5178_v26, %s9037_s11  ;;  %v11587_v26 = vld [vmem:[#allocation39_spill] sm:$0xff]  ;;  %v10872_v13 = vpop.xlane.xlu0 %4559  ;;  %s6379_s11 = sshll.u32 %s6376_s19, 4  ;;  %s6380_s11 = int_to_ptr.hbm [resolvable:$true] %s6379_s11 }
 0x6f4   : > { %v5198_v37 = vpop.f32.mrf.mxu2  ;;  %vm11588_vm1 = vcmp.le.s32.totalorder %v9987_v18, %v11587_v26  ;;  %s8910_s5 = sshra.s32 %s6380_s11, 4  ;;  %s8911_s5 = int_to_ptr.hbm [resolvable:$true] %s8910_s5 }
 0x6f5   : > { %5261 = vrot.lane.b32.xlu0 %v5198_v37, %s9045_s13  ;;  %v4526_v53 = vsel %vm11588_vm1, %v10775_v34, 0.0  ;;  %s8912_s30 = scalar_lea.hbm %s8911_s5, 256  ;;  %p8917_p8 = scmp.lt.s32.totalorder %s8911_s5, %s11468_s10 }
 0x6f6   : > { %v10868_v37 = vadd.f32 %v4526_v53, %v10737_v49  ;;  %p8913_p1 = scmp.ne.s32.totalorder %s8911_s5, %s8912_s30 }
 0x6f7   : > { %v5206_v47 = vpop.permute.xlu1 %5205 }
 0x6f8   : > { %v5267_v22 = vsel %vm2608_vm3, %v5206_v47, 0.0  ;;  %v4443_v47 = vpop.f32.mrf.mxu3  ;;  %p8914_p2 = pnand %p8913_p1, %p9194_p7 }
 0x6f9   : > { %v10857_v35 = vadd.f32 %v5267_v22, %v5114_v12 }
 0x6fa   : > { %p8915_p4 = pneg %p8914_p2 }
 0x6fb   : > { %5233 = vrot.lane.b32.xlu2 %v5180_v4, %s9038_s24  ;;  %5299 = vmax.xlane.f32.xlu1 %v10857_v35  ;;  %v5121_v4 = vpop.f32.mrf.mxu1  ;;  %s6343_s24 = scalar_lea.sflag [#allocation18], %s9271_s1 }
 0x6fc   : > { %v5200_v12 = vpop.f32.mrf.mxu2 }
 0x6ff   : > { %v5210_v22 = vpop.permute.xlu0 %5209 }
 0x700   : > { %v4445_v53 = vpop.f32.mrf.mxu3  ;;  %v5268_v36 = vsel %vm2609_vm4, %v5210_v22, 0.0 }
 0x703   : > { %5253 = vrot.lane.b32.xlu2 %v5193_v31, %s9043_s22  ;;  %4567 = vmax.xlane.f32.xlu1 %v10868_v37  ;;  %v5124_v31 = vpop.f32.mrf.mxu1 }
 0x70b   : > { %5265 = vrot.lane.b32.xlu2 %v5200_v12, %s9046_s29 }
 0x70f   : > { %v5218_v32 = vpop.permute.xlu1 %5217 }
 0x710   : > { %v5270_v34 = vsel %vm2611_vm7, %v5218_v32, 0.0  ;;  %v10891_v32 = vadd.f32 %v5268_v36, %v5116_v46 }
 0x711   : > { %v10878_v49 = vadd.f32 %v5270_v34, %v5121_v4  ;;  %v5126_v4 = vpop.f32.mrf.mxu1  ;;  %v10894_v34 = vpop.xlane.xlu2 %4555 }
 0x713   : > { %4507 = vrot.lane.b32.xlu2 %v4445_v53, %s9044_s3  ;;  %5305 = vmax.xlane.f32.xlu1 %v10878_v49 }
 0x717   : > { %v5222_v10 = vpop.permute.xlu0 %5221 }
 0x718   : > { %v5271_v16 = vsel %vm2612_vm8, %v5222_v10, 0.0 }
 0x719   : > { %v10885_v12 = vadd.f32 %v5271_v16, %v5124_v31  ;;  %v5129_v53 = vpop.f32.mrf.mxu1  ;;  %v10896_v63 = vpop.xlane.xlu2 %4561 }
 0x71b   : > { %5307 = vmax.xlane.f32.xlu1 %v10885_v12 }
 0x71f   : > { %5301 = vmax.xlane.f32.xlu0 %v10891_v32 }
 0x721   : > { %v5131_v45 = vpop.f32.mrf.mxu1  ;;  %v4630_v10 = vpop.xlane.xlu2 %4629 }
 0x722   : > { %8562 = vrcp.f32 %v4630_v10 }
 0x728   : > { %v8563_v31 = vpop.eup %8562 }
 0x729   : > { %v5134_v16 = vpop.f32.mrf.mxu1  ;;  %v4677_v46 = vmul.f32 %v8563_v31, %v10799_v40 }
 0x72b   : > { %v4693_v39 = vpack.c.bf16 %v4677_v46, %v4677_v46 }
 0x72d   : > { %v4759_v28 = vunpack.c.l.b16 %v4693_v39 }
 0x731   : > { %v5136_v21 = vpop.f32.mrf.mxu1 }
 0x733   : > { %4503 = vrot.lane.b32.xlu0 %v4443_v47, %s9043_s22  ;;  %s8916_s22 = scalar_lea.hbm %s11468_s10, 512 }
 0x734   : > { %p8918_p10 = scmp.lt.s32.totalorder %s8916_s22, %s8912_s30 }
 0x736   : > { %p8919_p11 = por %p8918_p10, %p8917_p8 }
 0x737   : > { %v5238_v43 = vpop.permute.xlu0 %5237 }
 0x738   : > { %p8920_p12 = pnand %p8919_p11, %p8915_p4 }
 0x73e   : > { %v4632_v22 = vpop.xlane.xlu2 %4631 }
 0x73f   : > { %8564 = vrcp.f32 %v4632_v22  ;;  %v5242_v3 = vpop.permute.xlu0 %5241 }
 0x740   : > { %v5276_v60 = vsel %vm11588_vm1, %v5242_v3, 0.0 }
 0x745   : > { %v8565_v36 = vpop.eup %8564 }
 0x746   : > { %v4678_v38 = vmul.f32 %v8565_v36, %v10829_v5  ;;  %v5214_v61 = vpop.permute.xlu2 %5213 }
 0x747   : > { %v5269_v47 = vsel %vm2610_vm2, %v5214_v61, 0.0  ;;  %v5139_v61 = vpop.f32.mrf.mxu1  ;;  %v5246_v23 = vpop.permute.xlu0 %5245  ;;  %vm11600_vm2 = vcmask 523264  }
 0x748   : > { %v4694_v56 = vpack.c.bf16 %v4678_v38, %v4678_v38  ;;  %v8182_v10 = vpack.c.bf16 %v4678_v38, %v4677_v46  ;;  %v10904_v33 = vadd.f32 %v5269_v47, %v5119_v54  ;;  %v5277_v38 = vsel %vm2618_vm11, %v5246_v23, 0.0  ;;  %vm11608_vm3 = vmmov %vm11600_vm2 }
 0x749   : > { %v10920_v39 = vadd.f32 %v5277_v38, %v5139_v61  ;;  %vm11611_vm4 = vmmov %vm11600_vm2 }
 0x74a   : > { %8274 = vst [vmem:[%s10415_s12 + $0x80] sm:$0xff] %v8182_v10   ;;  %v4760_v22 = vunpack.c.l.b16 %v4694_v56  ;;  %5303 = vmax.xlane.f32.xlu2 %v10904_v33  ;;  %vm11616_vm7 = vmmov %vm11600_vm2 }
 0x74b   : > { %vm11619_vm8 = vmmov %vm11600_vm2 }
 0x74c   : > { %v4775_v40 = vpack.c.b16 %v4760_v22, %v4759_v28 }
 0x74e   : > { %4847 = vmatmul.bf16.vlgmr.msrb.gmra.mxu0 %v4775_v40  ;;  %v5226_v31 = vpop.permute.xlu2 %5225 }
 0x74f   : > { %v5272_v5 = vsel %vm2613_vm5, %v5226_v31, 0.0  ;;  %v5141_v55 = vpop.f32.mrf.mxu1  ;;  %v5250_v30 = vpop.permute.xlu0 %5249  ;;  %vm11612_vm5 = vmmov %vm11600_vm2 }
 0x750   : > { %v10911_v36 = vadd.f32 %v5272_v5, %v5126_v4  ;;  %v5278_v26 = vsel %vm2619_vm13, %v5250_v30, 0.0 }
 0x752   : > { %5309 = vmax.xlane.f32.xlu2 %v10911_v36 }
 0x756   : > { %v5230_v56 = vpop.permute.xlu2 %5229 }
 0x757   : > { %v5273_v28 = vsel %vm2614_vm6, %v5230_v56, 0.0  ;;  %v5144_v22 = vpop.f32.mrf.mxu1  ;;  %vm11615_vm6 = vmmov %vm11600_vm2 }
 0x758   : > { %v10922_v46 = vadd.f32 %v5273_v28, %v5129_v53  ;;  %v5275_v53 = vsel %vm2616_vm12, %v5238_v43, 0.0  ;;  %v10952_v28 = vadd.f32 %v5276_v60, %v5136_v21  ;;  %vm11627_vm12 = vmmov %vm11600_vm2 }
 0x759   : > { %v10939_v61 = vadd.f32 %v5275_v53, %v5134_v16  ;;  %v10961_v53 = vadd.f32 %v5278_v26, %v5141_v55 }
 0x75a   : > { %5319 = vmax.xlane.f32.xlu2 %v10920_v39  ;;  %5311 = vmax.xlane.f32.xlu1 %v10922_v46 }
 0x75d   : > { %4565 = vmax.xlane.f32.xlu0 %v10727_v7 }
 0x75e   : > { %v5234_v4 = vpop.permute.xlu2 %5233 }
 0x75f   : > { %v5274_v47 = vsel %vm2615_vm9, %v5234_v4, 0.0  ;;  %v5258_v11 = vpop.permute.xlu0 %5257  ;;  %v5146_v56 = vpop.f32.mrf.mxu1  ;;  %vm11620_vm9 = vmmov %vm11600_vm2 }
 0x760   : > { %v10930_v10 = vadd.f32 %v5274_v47, %v5131_v45  ;;  %v5280_v43 = vsel %vm2621_vm15, %v5258_v11, 0.0  ;;  %v4584_v11 = vsub.f32 %v10749_v24, %v10894_v34 }
 0x761   : > { %v10954_v4 = vadd.f32 %v5280_v43, %v5146_v56 }
 0x762   : > { %5313 = vmax.xlane.f32.xlu1 %v10930_v10  ;;  %v4603_v60 = vmul.f32 1.442695, %v4584_v11 }
 0x766   : > { %v5254_v40 = vpop.permute.xlu2 %5253 }
 0x767   : > { %v5279_v5 = vsel %vm2620_vm0, %v5254_v40, 0.0  ;;  %v5262_v21 = vpop.permute.xlu0 %5261  ;;  %v5149_v30 = vpop.f32.mrf.mxu1 }
 0x768   : > { %v10941_v23 = vadd.f32 %v5279_v5, %v5144_v22 }
 0x76a   : > { %5323 = vmax.xlane.f32.xlu2 %v10941_v23  ;;  %5315 = vmax.xlane.f32.xlu1 %v10939_v61 }
 0x76e   : > { %v5300_v38 = vpop.xlane.xlu1 %5299 }
 0x76f   : > { %v5331_v16 = vsub.f32 %v10857_v35, %v5300_v38  ;;  %v5266_v38 = vpop.permute.xlu2 %5265  ;;  %v5151_v34 = vpop.f32.mrf.mxu1 }
 0x770   : > { %v5282_v24 = vsel %vm2623_vm14, %v5266_v38, 0.0 }
 0x771   : > { %v5347_v47 = vmul.f32 1.442695, %v5331_v16 }
 0x772   : > { %5325 = vmax.xlane.f32.xlu2 %v10954_v4  ;;  %5317 = vmax.xlane.f32.xlu1 %v10952_v28 }
 0x773   : > { %8566 = vpow2.f32 %v5347_v47  ;;  %v10987_v47 = vadd.f32 %v5282_v24, %v5151_v34  ;;  %v4583_v34 = vsub.f32 %v10702_v41, %v10861_v51 }
 0x776   : > { %v10985_v16 = vpop.xlane.xlu1 %4567 }
 0x777   : > { %v10989_v26 = vpop.permute.xlu2 %4507 }
 0x779   : > { %v10963_v22 = vpop.eup %8566 }
 0x77a   : > { %5321 = vmax.xlane.f32.xlu1 %v10961_v53  ;;  %5379 = vadd.xlane.f32.xlu2 %v10963_v22 }
 0x792   : > { %v5302_v35 = vpop.xlane.xlu0 %5301 }
 0x793   : > { %v5332_v40 = vsub.f32 %v10891_v32, %v5302_v35  ;;  %v5281_v32 = vsel %vm2622_vm10, %v5262_v21, 0.0  ;;  %v5306_v35 = vpop.xlane.xlu1 %5305 }
 0x794   : > { %v10979_v56 = vadd.f32 %v5281_v32, %v5149_v30  ;;  %v5334_v11 = vsub.f32 %v10878_v49, %v5306_v35 }
 0x795   : > { %v5349_v5 = vmul.f32 1.442695, %v5332_v40 }
 0x797   : > { %8568 = vpow2.f32 %v5349_v5 }
 0x798   : > { %8570 = vpow2.f32 %v4603_v60  ;;  %v5353_v60 = vmul.f32 1.442695, %v5334_v11 }
 0x79b   : > { %v5308_v30 = vpop.xlane.xlu1 %5307 }
 0x79d   : > { %v10970_v43 = vpop.eup %8568 }
 0x79e   : > { %5381 = vadd.xlane.f32.xlu1 %v10970_v43  ;;  %v10973_v55 = vpop.eup %8570 }
 0x7a6   : > { %4635 = vadd.xlane.f32.xlu1 %v10973_v55 }
 0x7ae   : > { %5327 = vmax.xlane.f32.xlu1 %v10979_v56 }
 0x7b6   : > { %5329 = vmax.xlane.f32.xlu1 %v10987_v47 }
 0x7bd   : > { %v5304_v21 = vpop.xlane.xlu2 %5303 }
 0x7be   : > { %v5333_v40 = vsub.f32 %v10904_v33, %v5304_v21  ;;  %v4601_v21 = vmul.f32 1.442695, %v4583_v34 }
 0x7c0   : > { %v5351_v5 = vmul.f32 1.442695, %v5333_v40 }
 0x7c2   : > { %8572 = vpow2.f32 %v5351_v5 }
 0x7c3   : > { %8574 = vpow2.f32 %v5353_v60 }
 0x7c5   : > { %v5310_v32 = vpop.xlane.xlu2 %5309 }
 0x7c6   : > { %v5336_v38 = vsub.f32 %v10911_v36, %v5310_v32  ;;  %v5335_v36 = vsub.f32 %v10885_v12, %v5308_v30  ;;  %v4585_v12 = vsub.f32 %v10710_v25, %v10846_v27 }
 0x7c8   : > { %v10995_v0 = vpop.eup %8572  ;;  %v5357_v24 = vmul.f32 1.442695, %v5336_v38  ;;  %v5355_v11 = vmul.f32 1.442695, %v5335_v36  ;;  %v4448_v38 = vpop.f32.mrf.mxu3  ;;  %v4605_v30 = vmul.f32 1.442695, %v4585_v12 }
 0x7c9   : > { %5383 = vadd.xlane.f32.xlu2 %v10995_v0  ;;  %v11001_v35 = vpop.eup %8574 }
 0x7ca   : > { %8576 = vpow2.f32 %v5357_v24 }
 0x7cb   : > { %8578 = vpow2.f32 %v4601_v21 }
 0x7cd   : > { %v5312_v33 = vpop.xlane.xlu1 %5311 }
 0x7ce   : > { %v5337_v49 = vsub.f32 %v10922_v46, %v5312_v33 }
 0x7d0   : > { %v11003_v40 = vpop.eup %8576  ;;  %v5359_v5 = vmul.f32 1.442695, %v5337_v49  ;;  %v4450_v33 = vpop.f32.mrf.mxu3 }
 0x7d1   : > { %5389 = vadd.xlane.f32.xlu0 %v11003_v40  ;;  %5385 = vadd.xlane.f32.xlu2 %v11001_v35  ;;  %v11009_v60 = vpop.eup %8578 }
 0x7d2   : > { %8580 = vpow2.f32 %v5359_v5  ;;  %v5320_v5 = vpop.xlane.xlu2 %5319 }
 0x7d3   : > { %8582 = vpow2.f32 %v5355_v11  ;;  %v5341_v12 = vsub.f32 %v10920_v39, %v5320_v5  ;;  %v4527_v39 = vsel %vm2618_vm11, %v10787_v44, 0.0  ;;  %vm11624_vm11 = vmmov %vm11600_vm2 }
 0x7d5   : > { %v5314_v41 = vpop.xlane.xlu1 %5313 }
 0x7d6   : > { %v5338_v51 = vsub.f32 %v10930_v10, %v5314_v41  ;;  %v4586_v10 = vsub.f32 %v10751_v20, %v10872_v13 }
 0x7d8   : > { %v5361_v46 = vmul.f32 1.442695, %v5338_v51  ;;  %v11011_v32 = vpop.eup %8580  ;;  %v4607_v27 = vmul.f32 1.442695, %v4586_v10 }
 0x7d9   : > { %4633 = vadd.xlane.f32.xlu2 %v11009_v60  ;;  %5391 = vadd.xlane.f32.xlu1 %v11011_v32  ;;  %v11017_v24 = vpop.eup %8582 }
 0x7da   : > { %8584 = vpow2.f32 %v5361_v46 }
 0x7db   : > { %8586 = vpow2.f32 %v4605_v30 }
 0x7dc   : > { %8588 = vpow2.f32 %v4607_v27 }
 0x7dd   : > { %v5316_v21 = vpop.xlane.xlu1 %5315  ;;  %v5324_v13 = vpop.xlane.xlu2 %5323 }
 0x7de   : > { %v5339_v49 = vsub.f32 %v10939_v61, %v5316_v21  ;;  %v5367_v61 = vmul.f32 1.442695, %v5341_v12 }
 0x7e0   : > { %v11019_v34 = vpop.eup %8584  ;;  %v5363_v36 = vmul.f32 1.442695, %v5339_v49 }
 0x7e1   : > { %5387 = vadd.xlane.f32.xlu2 %v11017_v24  ;;  %5393 = vadd.xlane.f32.xlu1 %v11019_v34  ;;  %v11026_v25 = vpop.eup %8586 }
 0x7e2   : > { %v11030_v41 = vpop.eup %8588  ;;  %8590 = vpow2.f32 %v5363_v36  ;;  %v4504_v36 = vpop.permute.xlu0 %4503 }
 0x7e3   : > { %v4529_v44 = vsel %vm2620_vm0, %v4504_v36, 0.0  ;;  %vm11634_vm0 = vmmov %vm11600_vm2 }
 0x7e4   : > { %vm11635_vm1 = vmmov %vm11634_vm0 }
 0x7e5   : > { %4515 = vrot.lane.b32.xlu0 %v4450_v33, %s9046_s29  ;;  %v5318_v11 = vpop.xlane.xlu1 %5317  ;;  %v5326_v30 = vpop.xlane.xlu2 %5325 }
 0x7e6   : > { %v5340_v20 = vsub.f32 %v10952_v28, %v5318_v11 }
 0x7e8   : > { %v5365_v51 = vmul.f32 1.442695, %v5340_v20  ;;  %v11034_v46 = vpop.eup %8590 }
 0x7e9   : > { %4637 = vadd.xlane.f32.xlu2 %v11026_v25 }
 0x7ea   : > { %8592 = vpow2.f32 %v5365_v51  ;;  %v4588_v51 = vsub.f32 %v10718_v59, %v10850_v1  ;;  %v11072_v59 = vadd.f32 %v4529_v44, %v10773_v42  ;;  %v4587_v42 = vsub.f32 %v10762_v62, %v10896_v63 }
 0x7eb   : > { %8594 = vpow2.f32 %v5367_v61  ;;  %v5344_v63 = vsub.f32 %v10954_v4, %v5326_v30 }
 0x7ec   : > { %v4611_v12 = vmul.f32 1.442695, %v4588_v51 }
 0x7ed   : > { %v5322_v10 = vpop.xlane.xlu1 %5321  ;;  %v5380_v49 = vpop.xlane.xlu2 %5379  ;;  %v5373_v36 = vmul.f32 1.442695, %v5344_v63 }
 0x7ee   : > { %v5342_v28 = vsub.f32 %v10961_v53, %v5322_v10  ;;  %v5343_v53 = vsub.f32 %v10941_v23, %v5324_v13 }
 0x7f0   : > { %v11039_v33 = vpop.eup %8592  ;;  %v5369_v21 = vmul.f32 1.442695, %v5342_v28  ;;  %v5371_v54 = vmul.f32 1.442695, %v5343_v53 }
 0x7f1   : > { %4639 = vadd.xlane.f32.xlu2 %v11030_v41  ;;  %v11043_v27 = vpop.eup %8594 }
 0x7f2   : > { %8596 = vpow2.f32 %v5369_v21 }
 0x7f3   : > { %8598 = vrcp.f32 %v5380_v49 }
 0x7f8   : > { %v11054_v5 = vpop.eup %8596 }
 0x7f9   : > { %5395 = vadd.xlane.f32.xlu2 %v11034_v46  ;;  %v8599_v20 = vpop.eup %8598 }
 0x7fa   : > { %4511 = vrot.lane.b32.xlu1 %v4448_v38, %s9045_s13  ;;  %v11051_v38 = vadd.f32 %v4527_v39, %v10754_v19  ;;  %v4530_v19 = vsel %vm2621_vm15, %v10989_v26, 0.0  ;;  %v5427_v13 = vmul.f32 %v8599_v20, %v10963_v22  ;;  %v4609_v39 = vmul.f32 1.442695, %v4587_v42  ;;  %vm11633_vm15 = vmmov %vm11600_vm2 }
 0x7fb   : > { %v11068_v23 = vadd.f32 %v4530_v19, %v10777_v29 }
 0x7fc   : > { %v5443_v45 = vpack.c.bf16 %v5427_v13, %v5427_v13 }
 0x7fe   : > { %v5509_v29 = vunpack.c.l.b16 %v5443_v45 }
 0x801   : > { %5397 = vadd.xlane.f32.xlu2 %v11039_v33 }
 0x809   : > { %5399 = vadd.xlane.f32.xlu2 %v11043_v27 }
 0x80f   : > { %4569 = vmax.xlane.f32.xlu0 %v11051_v38 }
 0x811   : > { %5401 = vadd.xlane.f32.xlu2 %v11054_v5  ;;  %v5382_v11 = vpop.xlane.xlu1 %5381 }
 0x812   : > { %8600 = vrcp.f32 %v5382_v11  ;;  %v4566_v11 = vpop.xlane.xlu0 %4565 }
 0x813   : > { %8602 = vpow2.f32 %v5371_v54  ;;  %v4589_v51 = vsub.f32 %v10727_v7, %v4566_v11 }
 0x814   : > { %8604 = vpow2.f32 %v4611_v12 }
 0x815   : > { %8606 = vpow2.f32 %v4609_v39 }
 0x816   : > { %8608 = vpow2.f32 %v5373_v36 }
 0x817   : > { %4575 = vmax.xlane.f32.xlu0 %v11068_v23 }
 0x818   : > { %v8601_v1 = vpop.eup %8600 }
 0x819   : > { %v5428_v26 = vmul.f32 %v8601_v1, %v10970_v43  ;;  %4573 = vmax.xlane.f32.xlu2 %v11072_v59  ;;  %v11078_v22 = vpop.eup %8602  ;;  %v4636_v28 = vpop.xlane.xlu1 %4635  ;;  %v4528_v43 = vsel %vm2619_vm13, %v10841_v50, 0.0  ;;  %v4613_v50 = vmul.f32 1.442695, %v4589_v51  ;;  %vm11628_vm13 = vmmov %vm11600_vm2 }
 0x81a   : > { %v11083_v49 = vpop.eup %8604  ;;  %v11091_v53 = vadd.f32 %v4528_v43, %v10764_v14 }
 0x81b   : > { %v5444_v31 = vpack.c.bf16 %v5428_v26, %v5428_v26  ;;  %v8222_v61 = vpack.c.bf16 %v5428_v26, %v5427_v13  ;;  %v11095_v20 = vpop.eup %8606  ;;  %8610 = vpow2.f32 %v4613_v50 }
 0x81c   : > { %v11099_v19 = vpop.eup %8608 }
 0x81d   : > { %8282 = vst [vmem:[%s10415_s12 + $0xc0] sm:$0xff] %v8222_v61   ;;  %v5510_v10 = vunpack.c.l.b16 %v5444_v31 }
 0x81f   : > { %5403 = vadd.xlane.f32.xlu0 %v11078_v22  ;;  %v5525_v21 = vpack.c.b16 %v5510_v10, %v5509_v29 }
 0x821   : > { %4643 = vadd.xlane.f32.xlu2 %v11083_v49  ;;  %5597 = vmatmul.bf16.vlgmr.msrb.gmra.mxu3 %v5525_v21  ;;  %v5328_v62 = vpop.xlane.xlu1 %5327  ;;  %v11103_v30 = vpop.eup %8610 }
 0x824   : > { %4571 = vmax.xlane.f32.xlu1 %v11091_v53 }
 0x829   : > { %v5330_v3 = vpop.xlane.xlu1 %5329 }
 0x82a   : > { %v5346_v14 = vsub.f32 %v10987_v47, %v5330_v3 }
 0x82c   : > { %4641 = vadd.xlane.f32.xlu1 %v11095_v20  ;;  %v5377_v4 = vmul.f32 1.442695, %v5346_v14 }
 0x82e   : > { %8612 = vpow2.f32 %v5377_v4 }
 0x834   : > { %5405 = vadd.xlane.f32.xlu1 %v11099_v19  ;;  %v11106_v54 = vpop.eup %8612 }
 0x83c   : > { %v5384_v44 = vpop.xlane.xlu2 %5383  ;;  %4645 = vadd.xlane.f32.xlu1 %v11103_v30 }
 0x83d   : > { %8614 = vrcp.f32 %v5384_v44 }
 0x843   : > { %v8615_v13 = vpop.eup %8614 }
 0x844   : > { %v5386_v7 = vpop.xlane.xlu2 %5385  ;;  %5409 = vadd.xlane.f32.xlu1 %v11106_v54  ;;  %v5429_v12 = vmul.f32 %v8615_v13, %v10995_v0  ;;  %v5390_v1 = vpop.xlane.xlu0 %5389  ;;  %v5345_v0 = vsub.f32 %v10979_v56, %v5328_v62 }
 0x845   : > { %8616 = vrcp.f32 %v5386_v7 }
 0x846   : > { %8618 = vrcp.f32 %v4636_v28  ;;  %v5445_v29 = vpack.c.bf16 %v5429_v12, %v5429_v12  ;;  %v5375_v14 = vmul.f32 1.442695, %v5345_v0 }
 0x848   : > { %v5511_v43 = vunpack.c.l.b16 %v5445_v29 }
 0x84b   : > { %v8617_v47 = vpop.eup %8616 }
 0x84c   : > { %v4634_v45 = vpop.xlane.xlu2 %4633  ;;  %v8619_v26 = vpop.eup %8618  ;;  %v5430_v31 = vmul.f32 %v8617_v47, %v11001_v35 }
 0x84d   : > { %8620 = vrcp.f32 %v4634_v45  ;;  %v5392_v61 = vpop.xlane.xlu1 %5391  ;;  %v4680_v21 = vmul.f32 %v8619_v26, %v10973_v55 }
 0x84e   : > { %8622 = vrcp.f32 %v5390_v1  ;;  %v8227_v10 = vpack.c.bf16 %v5430_v31, %v5429_v12  ;;  %v5446_v42 = vpack.c.bf16 %v5430_v31, %v5430_v31 }
 0x84f   : > { %8624 = vrcp.f32 %v5392_v61  ;;  %v4696_v11 = vpack.c.bf16 %v4680_v21, %v4680_v21 }
 0x850   : > { %8283 = vst [vmem:[%s10415_s12 + $0xc8] sm:$0xff] %v8227_v10   ;;  %v5512_v39 = vunpack.c.l.b16 %v5446_v42 }
 0x851   : > { %v4762_v62 = vunpack.c.l.b16 %v4696_v11 }
 0x852   : > { %v5526_v63 = vpack.c.b16 %v5512_v39, %v5511_v43 }
 0x853   : > { %v8621_v28 = vpop.eup %8620 }
 0x854   : > { %v4679_v36 = vmul.f32 %v8621_v28, %v11009_v60  ;;  %v5388_v35 = vpop.xlane.xlu2 %5387  ;;  %v8623_v51 = vpop.eup %8622  ;;  %5602 = vmatmul.bf16.gmra.mxu3 %v5526_v63 }
 0x855   : > { %8626 = vrcp.f32 %v5388_v35  ;;  %v5394_v50 = vpop.xlane.xlu1 %5393  ;;  %v5432_v44 = vmul.f32 %v8623_v51, %v11003_v40  ;;  %v8625_v13 = vpop.eup %8624 }
 0x856   : > { %v8187_v3 = vpack.c.bf16 %v4680_v21, %v4679_v36  ;;  %8628 = vrcp.f32 %v5394_v50  ;;  %v4695_v55 = vpack.c.bf16 %v4679_v36, %v4679_v36  ;;  %v5433_v26 = vmul.f32 %v8625_v13, %v11011_v32 }
 0x857   : > { %v4516_v4 = vpop.permute.xlu0 %4515  ;;  %8630 = vpow2.f32 %v5375_v14  ;;  %v5448_v17 = vpack.c.bf16 %v5432_v44, %v5432_v44 }
 0x858   : > { %8275 = vst [vmem:[%s10415_s12 + $0x88] sm:$0xff] %v8187_v3   ;;  %v4532_v56 = vsel %vm2623_vm14, %v4516_v4, 0.0  ;;  %v4761_v60 = vunpack.c.l.b16 %v4695_v55  ;;  %v5449_v51 = vpack.c.bf16 %v5433_v26, %v5433_v26  ;;  %vm11629_vm14 = vmmov %vm11600_vm2 }
 0x859   : > { %v11121_v7 = vadd.f32 %v4532_v56, %v10791_v15  ;;  %v5514_v42 = vunpack.c.l.b16 %v5448_v17 }
 0x85a   : > { %v4776_v12 = vpack.c.b16 %v4762_v62, %v4761_v60 }
 0x85b   : > { %v8627_v47 = vpop.eup %8626  ;;  %4579 = vmax.xlane.f32.xlu0 %v11121_v7 }
 0x85c   : > { %v8629_v1 = vpop.eup %8628  ;;  %v5431_v40 = vmul.f32 %v8627_v47, %v11017_v24  ;;  %v4638_v45 = vpop.xlane.xlu2 %4637  ;;  %4852 = vmatmul.bf16.gmra.mxu0 %v4776_v12 }
 0x85d   : > { %v5434_v31 = vmul.f32 %v8629_v1, %v11019_v34  ;;  %8632 = vrcp.f32 %v4638_v45  ;;  %v11129_v21 = vpop.eup %8630  ;;  %v4590_v34 = vsub.f32 %v10868_v37, %v10985_v16 }
 0x85e   : > { %v8232_v15 = vpack.c.bf16 %v5432_v44, %v5431_v40  ;;  %v5447_v61 = vpack.c.bf16 %v5431_v40, %v5431_v40 }
 0x85f   : > { %v8237_v29 = vpack.c.bf16 %v5434_v31, %v5433_v26  ;;  %v5450_v0 = vpack.c.bf16 %v5434_v31, %v5434_v31  ;;  %v4615_v50 = vmul.f32 1.442695, %v4590_v34 }
 0x860   : > { %8284 = vst [vmem:[%s10415_s12 + $0xd0] sm:$0xff] %v8232_v15   ;;  %v5513_v10 = vunpack.c.l.b16 %v5447_v61 }
 0x861   : > { %8285 = vst [vmem:[%s10415_s12 + $0xd8] sm:$0xff] %v8237_v29   ;;  %v5516_v37 = vunpack.c.l.b16 %v5450_v0 }
 0x862   : > { %v5527_v43 = vpack.c.b16 %v5514_v42, %v5513_v10 }
 0x863   : > { %5407 = vadd.xlane.f32.xlu0 %v11129_v21  ;;  %v8633_v39 = vpop.eup %8632 }
 0x864   : > { %v4640_v24 = vpop.xlane.xlu2 %4639  ;;  %5607 = vmatmul.bf16.gmra.mxu3 %v5527_v43  ;;  %v4681_v32 = vmul.f32 %v8633_v39, %v11026_v25 }
 0x865   : > { %8634 = vrcp.f32 %v4640_v24 }
 0x866   : > { %v4697_v35 = vpack.c.bf16 %v4681_v32, %v4681_v32 }
 0x868   : > { %v4763_v16 = vunpack.c.l.b16 %v4697_v35 }
 0x86b   : > { %v8635_v28 = vpop.eup %8634 }
 0x86c   : > { %v4682_v63 = vmul.f32 %v8635_v28, %v11030_v41  ;;  %v5396_v36 = vpop.xlane.xlu2 %5395  ;;  %v4512_v11 = vpop.permute.xlu1 %4511  ;;  %v5515_v41 = vunpack.c.l.b16 %v5449_v51 }
 0x86d   : > { %v4531_v55 = vsel %vm2622_vm10, %v4512_v11, 0.0  ;;  %8636 = vrcp.f32 %v5396_v36  ;;  %vm11623_vm10 = vmmov %vm11600_vm2 }
 0x86e   : > { %v8192_v3 = vpack.c.bf16 %v4682_v63, %v4681_v32  ;;  %v4698_v14 = vpack.c.bf16 %v4682_v63, %v4682_v63  ;;  %v11140_v25 = vadd.f32 %v4531_v55, %v10785_v8  ;;  %8638 = vpow2.f32 %v4615_v50 }
 0x86f   : > { %v5528_v56 = vpack.c.b16 %v5516_v37, %v5515_v41 }
 0x870   : > { %8276 = vst [vmem:[%s10415_s12 + $0x90] sm:$0xff] %v8192_v3   ;;  %v4764_v4 = vunpack.c.l.b16 %v4698_v14  ;;  %4577 = vmax.xlane.f32.xlu2 %v11140_v25 }
 0x872   : > { %v4777_v44 = vpack.c.b16 %v4764_v4, %v4763_v16  ;;  %v4131_v4 = vpack.c.bf16 %v10760_v9, %v10760_v9 }
 0x873   : > { %v8637_v18 = vpop.eup %8636 }
 0x874   : > { %v5398_v60 = vpop.xlane.xlu2 %5397  ;;  %4857 = vmatmul.bf16.gmra.mxu0 %v4777_v44  ;;  %5612 = vmatmul.bf16.gmra.mxu3 %v5528_v56  ;;  %v11144_v57 = vpop.eup %8638  ;;  %v5435_v8 = vmul.f32 %v8637_v18, %v11034_v46  ;;  %v5711_v56 = vunpack.c.l.b16 %v4131_v4 }
 0x875   : > { %8640 = vrcp.f32 %v5398_v60 }
 0x876   : > { %v5451_v47 = vpack.c.bf16 %v5435_v8, %v5435_v8 }
 0x878   : > { %4647 = vadd.xlane.f32.xlu2 %v11144_v57  ;;  %v5517_v45 = vunpack.c.l.b16 %v5451_v47 }
 0x87b   : > { %v8641_v62 = vpop.eup %8640 }
 0x87c   : > { %v5436_v13 = vmul.f32 %v8641_v62, %v11039_v33  ;;  %v5400_v12 = vpop.xlane.xlu2 %5399 }
 0x87d   : > { %8642 = vrcp.f32 %v5400_v12 }
 0x87e   : > { %v8242_v1 = vpack.c.bf16 %v5436_v13, %v5435_v8  ;;  %v5452_v40 = vpack.c.bf16 %v5436_v13, %v5436_v13 }
 0x880   : > { %8286 = vst [vmem:[%s10415_s12 + $0xe0] sm:$0xff] %v8242_v1   ;;  %v5518_v17 = vunpack.c.l.b16 %v5452_v40 }
 0x882   : > { %v4570_v26 = vpop.xlane.xlu0 %4569  ;;  %v5529_v31 = vpack.c.b16 %v5518_v17, %v5517_v45 }
 0x883   : > { %v4591_v15 = vsub.f32 %v11051_v38, %v4570_v26  ;;  %v8643_v29 = vpop.eup %8642 }
 0x884   : > { %v5402_v61 = vpop.xlane.xlu2 %5401  ;;  %5617 = vmatmul.bf16.gmra.mxu3 %v5529_v31  ;;  %v5437_v33 = vmul.f32 %v8643_v29, %v11043_v27 }
 0x885   : > { %v4617_v46 = vmul.f32 1.442695, %v4591_v15  ;;  %8644 = vrcp.f32 %v5402_v61 }
 0x886   : > { %v5453_v32 = vpack.c.bf16 %v5437_v33, %v5437_v33 }
 0x887   : > { %8646 = vpow2.f32 %v4617_v46 }
 0x888   : > { %v5519_v27 = vunpack.c.l.b16 %v5453_v32 }
 0x88a   : > { %v4576_v10 = vpop.xlane.xlu0 %4575 }
 0x88b   : > { %v8645_v42 = vpop.eup %8644  ;;  %v4594_v43 = vsub.f32 %v11068_v23, %v4576_v10 }
 0x88c   : > { %v5438_v24 = vmul.f32 %v8645_v42, %v11054_v5  ;;  %v4574_v39 = vpop.xlane.xlu2 %4573 }
 0x88d   : > { %v11154_v34 = vpop.eup %8646  ;;  %v4623_v38 = vmul.f32 1.442695, %v4594_v43  ;;  %v4593_v28 = vsub.f32 %v11072_v59, %v4574_v39  ;;  %v7746_v39 = vld [vmem:[#allocation15 + $0x78] sm:$0xf0] }
 0x88e   : > { %v8247_v0 = vpack.c.bf16 %v5438_v24, %v5437_v33  ;;  %4649 = vadd.xlane.f32.xlu2 %v11154_v34  ;;  %v5454_v63 = vpack.c.bf16 %v5438_v24, %v5438_v24  ;;  %v8079_v24 = vld [vmem:[#allocation15 + $0x74] sm:$0xf] }
 0x88f   : > { %8648 = vpow2.f32 %v4623_v38  ;;  %v4621_v36 = vmul.f32 1.442695, %v4593_v28  ;;  %v7749_v32 = vor.u32 %v8079_v24, %v7746_v39 }
 0x890   : > { %8287 = vst [vmem:[%s10415_s12 + $0xe8] sm:$0xff] %v8247_v0   ;;  %v5520_v35 = vunpack.c.l.b16 %v5454_v63  ;;  %v8077_v63 = vld [vmem:[#allocation15 + $0x64] sm:$0xf] }
 0x891   : > { %8650 = vpow2.f32 %v4621_v36  ;;  %6207 = vmatpush.bf16.msra.mxu2 %v7749_v32  ;;  %v7738_v36 = vld [vmem:[#allocation15 + $0x68] sm:$0xf0] }
 0x892   : > { %v5530_v23 = vpack.c.b16 %v5520_v35, %v5519_v27  ;;  %v5404_v55 = vpop.xlane.xlu0 %5403  ;;  %v7741_v35 = vor.u32 %v8077_v63, %v7738_v36 }
 0x894   : > { %5622 = vmatmul.bf16.gmra.mxu3 %v5530_v23  ;;  %v4644_v51 = vpop.xlane.xlu2 %4643  ;;  %v8075_v23 = vld [vmem:[#allocation15 + $0x54] sm:$0xf] }
 0x895   : > { %v11159_v11 = vpop.eup %8648  ;;  %8652 = vrcp.f32 %v4644_v51  ;;  %6208 = vmatpush.bf16.msra.mxu2 %v7741_v35  ;;  %v7730_v51 = vld [vmem:[#allocation15 + $0x58] sm:$0xf0] }
 0x896   : > { %4655 = vadd.xlane.f32.xlu2 %v11159_v11 }
 0x897   : > { %v11162_v5 = vpop.eup %8650  ;;  %v4572_v59 = vpop.xlane.xlu1 %4571 }
 0x898   : > { %4653 = vadd.xlane.f32.xlu1 %v11162_v5  ;;  %v4592_v50 = vsub.f32 %v11091_v53, %v4572_v59  ;;  %v4130_v53 = vpack.c.bf16 %v10739_v48, %v10739_v48 }
 0x89a   : > { %v4619_v3 = vmul.f32 1.442695, %v4592_v50  ;;  %v5710_v13 = vunpack.c.l.b16 %v4130_v53  ;;  %v7733_v50 = vor.u32 %v8075_v23, %v7730_v51  ;;  %v8073_v53 = vld [vmem:[#allocation15 + $0x44] sm:$0xf] }
 0x89b   : > { %v8653_v37 = vpop.eup %8652 }
 0x89c   : > { %8654 = vpow2.f32 %v4619_v3  ;;  %v4684_v41 = vmul.f32 %v8653_v37, %v11083_v49  ;;  %v5726_v47 = vpack.c.b16 %v5711_v56, %v5710_v13  ;;  %6209 = vmatpush.bf16.msra.mxu2 %v7733_v50 }
 0x89e   : > { %v4700_v8 = vpack.c.bf16 %v4684_v41, %v4684_v41 }
 0x89f   : > { %v4642_v14 = vpop.xlane.xlu1 %4641 }
 0x8a0   : > { %8656 = vrcp.f32 %v4642_v14  ;;  %v4766_v40 = vunpack.c.l.b16 %v4700_v8 }
 0x8a1   : > { %8658 = vrcp.f32 %v5404_v55 }
 0x8a2   : > { %v11166_v16 = vpop.eup %8654 }
 0x8a3   : > { %4651 = vadd.xlane.f32.xlu0 %v11166_v16 }
 0x8a6   : > { %v8657_v44 = vpop.eup %8656 }
 0x8a7   : > { %v4683_v60 = vmul.f32 %v8657_v44, %v11095_v20  ;;  %v5406_v18 = vpop.xlane.xlu1 %5405  ;;  %v8659_v62 = vpop.eup %8658  ;;  %v7722_v44 = vld [vmem:[#allocation15 + $0x48] sm:$0xf0] }
 0x8a8   : > { %8660 = vrcp.f32 %v5406_v18  ;;  %v5439_v49 = vmul.f32 %v8659_v62, %v11078_v22  ;;  %v11180_v22 = vpop.f32.mrf.mxu3 }
 0x8a9   : > { %v8197_v12 = vpack.c.bf16 %v4684_v41, %v4683_v60  ;;  %v4699_v9 = vpack.c.bf16 %v4683_v60, %v4683_v60 }
 0x8aa   : > { %v5455_v17 = vpack.c.bf16 %v5439_v49, %v5439_v49 }
 0x8ab   : > { %8277 = vst [vmem:[%s10415_s12 + $0x98] sm:$0xff] %v8197_v12   ;;  %v4765_v1 = vunpack.c.l.b16 %v4699_v9  ;;  %v8071_v9 = vld [vmem:[#allocation15 + $0x34] sm:$0xf] }
 0x8ac   : > { %v5521_v15 = vunpack.c.l.b16 %v5455_v17  ;;  %v8069_v17 = vld [vmem:[#allocation15 + $0x24] sm:$0xf] }
 0x8ad   : > { %v4778_v48 = vpack.c.b16 %v4766_v40, %v4765_v1 }
 0x8ae   : > { %5734 = vrot.lane.b32.xlu2 %v5726_v47, %s9030_s20  ;;  %v8661_v45 = vpop.eup %8660  ;;  %v4137_v47 = vpack.c.bf16 %v10807_v58, %v10807_v58 }
 0x8af   : > { %v5440_v20 = vmul.f32 %v8661_v45, %v11099_v19  ;;  %4862 = vmatmul.bf16.gmra.mxu0 %v4778_v48  ;;  %v4646_v46 = vpop.xlane.xlu1 %4645  ;;  %v4136_v48 = vpack.c.bf16 %v10802_v2, %v10802_v2 }
 0x8b0   : > { %v11183_v43 = vpop.f32.mrf.mxu3  ;;  %v5717_v58 = vunpack.c.l.b16 %v4137_v47  ;;  %v5638_v47 = vpack.c.bf16 %v11180_v22, %v11180_v22  ;;  %v8093_v22 = vld [vmem:[#allocation15 + $0xe4] sm:$0xf] }
 0x8b1   : > { %v8252_v26 = vpack.c.bf16 %v5440_v20, %v5439_v49  ;;  %v5456_v31 = vpack.c.bf16 %v5440_v20, %v5440_v20 }
 0x8b3   : > { %8288 = vst [vmem:[%s10415_s12 + $0xf0] sm:$0xff] %v8252_v26   ;;  %v5522_v61 = vunpack.c.l.b16 %v5456_v31  ;;  %v7706_v26 = vld [vmem:[#allocation15 + $0x28] sm:$0xf0]  ;;  %v4133_v31 = vpack.c.bf16 %v10779_v52, %v10779_v52 }
 0x8b5   : > { %v5531_v29 = vpack.c.b16 %v5522_v61, %v5521_v15  ;;  %v7709_v15 = vor.u32 %v8069_v17, %v7706_v26  ;;  %v5716_v61 = vunpack.c.l.b16 %v4136_v48  ;;  %v5806_v48 = vunpack.c.l.b16 %v5638_v47  ;;  %v11595_v17 = vld [vmem:[#allocation37_spill] sm:$0xff] }
 0x8b6   : > { %v4135_v26 = vpack.c.bf16 %v11595_v17, %v11595_v17 }
 0x8b7   : > { %5627 = vmatmul.bf16.gmra.mxu3 %v5531_v29  ;;  %v5410_v33 = vpop.xlane.xlu1 %5409  ;;  %v8067_v29 = vld [vmem:[#allocation15 + $0x14] sm:$0xf] }
 0x8b8   : > { %8662 = vrcp.f32 %v5410_v33 }
 0x8be   : > { %v8663_v28 = vpop.eup %8662 }
 0x8ce   : > { %v4580_v10 = vpop.xlane.xlu0 %4579 }
 0x8cf   : > { %v4596_v42 = vsub.f32 %v11121_v7, %v4580_v10  ;;  %v5442_v7 = vmul.f32 %v8663_v28, %v11106_v54  ;;  %v7725_v54 = vor.u32 %v8073_v53, %v7722_v44  ;;  %v5713_v10 = vunpack.c.l.b16 %v4133_v31  ;;  %v8080_v44 = vld [vmem:[#allocation15 + $0x74] sm:$0xf0] }
 0x8d1   : > { %v4627_v19 = vmul.f32 1.442695, %v4596_v42  ;;  %v5458_v55 = vpack.c.bf16 %v5442_v7, %v5442_v7  ;;  %6210 = vmatpush.bf16.msra.mxu2 %v7725_v54  ;;  %v5729_v42 = vpack.c.b16 %v5717_v58, %v5716_v61  ;;  %v11593_v54 = vld [vmem:[#allocation41_spill] sm:$0xff]  ;;  %v11596_v58 = vld [vmem:[#allocation32_spill] sm:$0xff] }
 0x8d2   : > { %v7736_v61 = vld [vmem:[#allocation15 + $0x60] sm:$0xf] }
 0x8d3   : > { %8664 = vpow2.f32 %v4627_v19  ;;  %v5524_v18 = vunpack.c.l.b16 %v5458_v55  ;;  %v7810_v55 = vld [vmem:[#allocation15 + $0xf8] sm:$0xf0] }
 0x8d6   : > { %v5408_v38 = vpop.xlane.xlu0 %5407 }
 0x8d7   : > { %8666 = vrcp.f32 %v5408_v38  ;;  %v5603_v0 = vpop.f32.mrf.mxu3  ;;  %v7690_v38 = vld [vmem:[#allocation15 + $0x8] sm:$0xf0] }
 0x8d8   : > { %v5640_v14 = vpack.c.bf16 %v5603_v0, %v5603_v0  ;;  %8668 = vrcp.f32 %v4646_v46  ;;  %v7698_v46 = vld [vmem:[#allocation15 + $0x18] sm:$0xf0] }
 0x8d9   : > { %v11185_v27 = vpop.eup %8664  ;;  %v7701_v19 = vor.u32 %v8067_v29, %v7698_v46  ;;  %v8078_v46 = vld [vmem:[#allocation15 + $0x64] sm:$0xf0] }
 0x8da   : > { %4659 = vadd.xlane.f32.xlu1 %v11185_v27  ;;  %v5808_v8 = vunpack.c.l.b16 %v5640_v14  ;;  %v7744_v14 = vld [vmem:[#allocation15 + $0x70] sm:$0xf] }
 0x8dd   : > { %v8667_v59 = vpop.eup %8666 }
 0x8de   : > { %v5441_v3 = vmul.f32 %v8667_v59, %v11129_v21  ;;  %v7714_v21 = vld [vmem:[#allocation15 + $0x38] sm:$0xf0]  ;;  %v8669_v33 = vpop.eup %8668 }
 0x8df   : > { %v5605_v4 = vpop.f32.mrf.mxu3  ;;  %v7717_v40 = vor.u32 %v8071_v9, %v7714_v21  ;;  %v4685_v52 = vmul.f32 %v8669_v33, %v11103_v30  ;;  %v11594_v9 = vld [vmem:[#allocation38_spill] sm:$0xff]  ;;  %v7800_v33 = vld [vmem:[#allocation15 + $0xe0] sm:$0xf] }
 0x8e0   : > { %v8257_v37 = vpack.c.bf16 %v5442_v7, %v5441_v3  ;;  %v5457_v41 = vpack.c.bf16 %v5441_v3, %v5441_v3  ;;  %v5641_v56 = vpack.c.bf16 %v5605_v4, %v5605_v4  ;;  %v8095_v3 = vld [vmem:[#allocation15 + $0xf4] sm:$0xf]  ;;  %v4138_v21 = vpack.c.bf16 %v11594_v9, %v11594_v9 }
 0x8e1   : > { %6211 = vmatpush.bf16.msra.mxu2 %v7717_v40  ;;  %v4701_v23 = vpack.c.bf16 %v4685_v52, %v4685_v52  ;;  %v7813_v53 = vor.u32 %v8095_v3, %v7810_v55 }
 0x8e2   : > { %8289 = vst [vmem:[%s10415_s12 + $0xf8] sm:$0xff] %v8257_v37   ;;  %v5523_v60 = vunpack.c.l.b16 %v5457_v41  ;;  %v5809_v62 = vunpack.c.l.b16 %v5641_v56  ;;  %v7808_v56 = vld [vmem:[#allocation15 + $0xf0] sm:$0xf]  ;;  %v5718_v40 = vunpack.c.l.b16 %v4138_v21 }
 0x8e3   : > { %v4578_v13 = vpop.xlane.xlu2 %4577  ;;  %v4767_v4 = vunpack.c.l.b16 %v4701_v23  ;;  %6256 = vmatpush.bf16.msra.mxu3 %v7813_v53  ;;  %v7728_v53 = vld [vmem:[#allocation15 + $0x50] sm:$0xf] }
 0x8e4   : > { %v5532_v12 = vpack.c.b16 %v5524_v18, %v5523_v60  ;;  %v5823_v49 = vpack.c.b16 %v5809_v62, %v5808_v8  ;;  %v4595_v1 = vsub.f32 %v11140_v25, %v4578_v13  ;;  %v4132_v25 = vpack.c.bf16 %v10771_v6, %v10771_v6  ;;  %v8065_v6 = vld [vmem:[#allocation15 + $0x4] sm:$0xf]  ;;  %v8096_v8 = vld [vmem:[#allocation15 + $0xf4] sm:$0xf0] }
 0x8e5   : > { %6212 = vmatpush.bf16.msra.mxu2 %v7709_v15  ;;  %v7693_v63 = vor.u32 %v8065_v6, %v7690_v38  ;;  %v4139_v60 = vpack.c.bf16 %v11593_v54, %v11593_v54  ;;  %v7745_v18 = vor.u32 %v8080_v44, %v7744_v14  ;;  %v5639_v62 = vpack.c.bf16 %v11183_v43, %v11183_v43  ;;  %v11599_v44 = vld [vmem:[#allocation36_spill] sm:$0xff] }
 0x8e6   : > { %5632 = vmatmul.bf16.gmra.mxu3 %v5532_v12  ;;  %v4625_v45 = vmul.f32 1.442695, %v4595_v1  ;;  %5832 = vrot.lane.b32.xlu2 %v5823_v49, %s9030_s20  ;;  %v5712_v39 = vunpack.c.l.b16 %v4132_v25  ;;  %v7809_v12 = vor.u32 %v8096_v8, %v7808_v56  ;;  %v4134_v15 = vpack.c.bf16 %v11596_v58, %v11596_v58  ;;  %v7802_v25 = vld [vmem:[#allocation15 + $0xe8] sm:$0xf0] }
 0x8e7   : > { %v5608_v20 = vpop.f32.mrf.mxu3  ;;  %6109 = vmatpush.bf16.msra.mxu0 %v7745_v18  ;;  %v5719_v49 = vunpack.c.l.b16 %v4139_v60  ;;  %v5807_v1 = vunpack.c.l.b16 %v5639_v62  ;;  %v7805_v29 = vor.u32 %v8093_v22, %v7802_v25  ;;  %v4141_v56 = vpack.c.bf16 %v11599_v44, %v11599_v44  ;;  %v7792_v25 = vld [vmem:[#allocation15 + $0xd0] sm:$0xf] }
 0x8e8   : > { %8670 = vpow2.f32 %v4625_v45  ;;  %v5727_v28 = vpack.c.b16 %v5713_v10, %v5712_v39  ;;  %v5642_v35 = vpack.c.bf16 %v5608_v20, %v5608_v20  ;;  %6158 = vmatpush.bf16.msra.mxu1 %v7809_v12  ;;  %v8094_v10 = vld [vmem:[#allocation15 + $0xe4] sm:$0xf0]  ;;  %v11597_v39 = vld [vmem:[#allocation46_spill] sm:$0xff] }
 0x8e9   : > { %6213 = vmatpush.bf16.msra.mxu2 %v7701_v19  ;;  %v5730_v43 = vpack.c.b16 %v5719_v49, %v5718_v40  ;;  %v5822_v31 = vpack.c.b16 %v5807_v1, %v5806_v48  ;;  %v7801_v19 = vor.u32 %v8094_v10, %v7800_v33  ;;  %6257 = vmatpush.bf16.msra.mxu3 %v7805_v29  ;;  %v11601_v49 = vld [vmem:[#allocation33_spill] sm:$0xff]  ;;  %v11602_v40 = vld [vmem:[#allocation35_spill] sm:$0xff] }
 0x8ea   : > { %v5810_v50 = vunpack.c.l.b16 %v5642_v35  ;;  %v4140_v1 = vpack.c.bf16 %v11601_v49, %v11601_v49  ;;  %v4143_v48 = vpack.c.bf16 %v11602_v40, %v11602_v40  ;;  %v7776_v40 = vld [vmem:[#allocation15 + $0xb0] sm:$0xf] }
 0x8eb   : > { %v4648_v2 = vpop.xlane.xlu2 %4647 }
 0x8ec   : > { %8672 = vrcp.f32 %v4648_v2  ;;  %v5715_v2 = vunpack.c.l.b16 %v4135_v26  ;;  %6159 = vmatpush.bf16.msra.mxu1 %v7801_v19  ;;  %v7786_v19 = vld [vmem:[#allocation15 + $0xc8] sm:$0xf0] }
 0x8ed   : > { %6214 = vmatpush.bf16.msra.mxu2 %v7693_v63 }
 0x8ee   : > { %v11201_v24 = vpop.eup %8670  ;;  %5740 = vrot.lane.b32.xlu2 %v5729_v42, %s9030_s20  ;;  %v7737_v42 = vor.u32 %v8078_v46, %v7736_v61  ;;  %v8092_v61 = vld [vmem:[#allocation15 + $0xd4] sm:$0xf0] }
 0x8ef   : > { %v5610_v32 = vpop.f32.mrf.mxu3  ;;  %4657 = vadd.xlane.f32.xlu0 %v11201_v24  ;;  %v7793_v46 = vor.u32 %v8092_v61, %v7792_v25  ;;  %v8086_v25 = vld [vmem:[#allocation15 + $0xa4] sm:$0xf0] }
 0x8f0   : > { %v5643_v0 = vpack.c.bf16 %v5610_v32, %v5610_v32  ;;  %v5714_v32 = vunpack.c.l.b16 %v4134_v15  ;;  %6110 = vmatpush.bf16.msra.mxu0 %v7737_v42  ;;  %v5723_v15 = vunpack.c.l.b16 %v4143_v48  ;;  %v8089_v42 = vld [vmem:[#allocation15 + $0xc4] sm:$0xf]  ;;  %v8088_v48 = vld [vmem:[#allocation15 + $0xb4] sm:$0xf0] }
 0x8f1   : > { %6160 = vmatpush.bf16.msra.mxu1 %v7793_v46  ;;  %v8083_v46 = vld [vmem:[#allocation15 + $0x94] sm:$0xf] }
 0x8f2   : > { %v8673_v36 = vpop.eup %8672  ;;  %v5811_v51 = vunpack.c.l.b16 %v5643_v0  ;;  %v5728_v63 = vpack.c.b16 %v5715_v2, %v5714_v32 }
 0x8f3   : > { %5736 = vrot.lane.b32.xlu1 %v5727_v28, %s9030_s20  ;;  %v4686_v7 = vmul.f32 %v8673_v36, %v11144_v57  ;;  %v11598_v28 = vld [vmem:[#allocation45_spill] sm:$0xff] }
 0x8f4   : > { %v5824_v57 = vpack.c.b16 %v5811_v51, %v5810_v50  ;;  %v3380_v0 = vpack.c.bf16 %v11598_v28, %v11598_v28 }
 0x8f5   : > { %v8202_v59 = vpack.c.bf16 %v4686_v7, %v4685_v52  ;;  %v4702_v30 = vpack.c.bf16 %v4686_v7, %v4686_v7  ;;  %v3381_v52 = vpack.c.bf16 %v11597_v39, %v11597_v39 }
 0x8f6   : > { %v5670_v51 = vunpack.c.l.b16 %v3380_v0 }
 0x8f7   : > { %8278 = vst [vmem:[%s10415_s12 + $0xa0] sm:$0xff] %v8202_v59   ;;  %v11209_v37 = vpop.f32.mrf.mxu3  ;;  %v4768_v41 = vunpack.c.l.b16 %v4702_v30  ;;  %v5671_v7 = vunpack.c.l.b16 %v3381_v52 }
 0x8f8   : > { %v5644_v23 = vpack.c.bf16 %v11209_v37, %v11209_v37  ;;  %v8076_v37 = vld [vmem:[#allocation15 + $0x54] sm:$0xf0] }
 0x8f9   : > { %v4779_v13 = vpack.c.b16 %v4768_v41, %v4767_v4  ;;  %v5686_v3 = vpack.c.b16 %v5671_v7, %v5670_v51  ;;  %v8091_v4 = vld [vmem:[#allocation15 + $0xd4] sm:$0xf]  ;;  %v7794_v41 = vld [vmem:[#allocation15 + $0xd8] sm:$0xf0] }
 0x8fa   : > { %v5812_v55 = vunpack.c.l.b16 %v5644_v23  ;;  %v11604_v23 = vld [vmem:[#allocation62_spill] sm:$0xff] }
 0x8fb   : > { %5834 = vrot.lane.b32.xlu1 %v5824_v57, %s9030_s20  ;;  %4867 = vmatmul.bf16.gmra.mxu0 %v4779_v13  ;;  %v7797_v57 = vor.u32 %v8091_v4, %v7794_v41  ;;  %v7729_v13 = vor.u32 %v8076_v37, %v7728_v53  ;;  %v4145_v51 = vpack.c.bf16 %v11604_v23, %v11604_v23  ;;  %v8090_v53 = vld [vmem:[#allocation15 + $0xc4] sm:$0xf0] }
 0x8fd   : > { %6258 = vmatpush.bf16.msra.mxu3 %v7797_v57  ;;  %6111 = vmatpush.bf16.msra.mxu0 %v7729_v13  ;;  %v5725_v4 = vunpack.c.l.b16 %v4145_v51  ;;  %v8087_v13 = vld [vmem:[#allocation15 + $0xb4] sm:$0xf] }
 0x8ff   : > { %v5615_v45 = vpop.f32.mrf.mxu3 }
 0x900   : > { %v5645_v36 = vpack.c.bf16 %v5615_v45, %v5615_v45 }
 0x901   : > { %v4650_v20 = vpop.xlane.xlu2 %4649 }
 0x902   : > { %v5813_v59 = vunpack.c.l.b16 %v5645_v36 }
 0x903   : > { %5742 = vrot.lane.b32.xlu1 %v5730_v43, %s9030_s20  ;;  %5830 = vrot.lane.b32.xlu0 %v5822_v31, %s9030_s20  ;;  %v5721_v43 = vunpack.c.l.b16 %v4141_v56  ;;  %v5720_v31 = vunpack.c.l.b16 %v4140_v1  ;;  %v8072_v1 = vld [vmem:[#allocation15 + $0x34] sm:$0xf0] }
 0x904   : > { %v5825_v8 = vpack.c.b16 %v5813_v59, %v5812_v55  ;;  %v8074_v55 = vld [vmem:[#allocation15 + $0x44] sm:$0xf0] }
 0x905   : > { %v5731_v22 = vpack.c.b16 %v5721_v43, %v5720_v31  ;;  %v8085_v43 = vld [vmem:[#allocation15 + $0xa4] sm:$0xf] }
 0x907   : > { %v5618_v6 = vpop.f32.mrf.mxu3 }
 0x908   : > { %v5646_v30 = vpack.c.bf16 %v5618_v6, %v5618_v6  ;;  %v7789_v6 = vor.u32 %v8089_v42, %v7786_v19  ;;  %v7762_v42 = vld [vmem:[#allocation15 + $0x98] sm:$0xf0]  ;;  %v7760_v19 = vld [vmem:[#allocation15 + $0x90] sm:$0xf] }
 0x909   : > { %v4656_v38 = vpop.xlane.xlu2 %4655 }
 0x90a   : > { %8674 = vrcp.f32 %v4656_v38  ;;  %v5814_v12 = vunpack.c.l.b16 %v5646_v30  ;;  %6259 = vmatpush.bf16.msra.mxu3 %v7789_v6  ;;  %v11605_v30 = vld [vmem:[#allocation61_spill] sm:$0xff]  ;;  %v7752_v6 = vld [vmem:[#allocation15 + $0x80] sm:$0xf] }
 0x90b   : > { %v4654_v35 = vpop.xlane.xlu1 %4653  ;;  %5738 = vrot.lane.b32.xlu0 %v5728_v63, %s9030_s20 }
 0x90c   : > { %8676 = vrcp.f32 %v4654_v35 }
 0x90d   : > { %8678 = vrcp.f32 %v4650_v20 }
 0x90f   : > { %v5620_v14 = vpop.f32.mrf.mxu3 }
 0x910   : > { %v8675_v50 = vpop.eup %8674  ;;  %v5647_v54 = vpack.c.bf16 %v5620_v14, %v5620_v14  ;;  %v7784_v14 = vld [vmem:[#allocation15 + $0xc0] sm:$0xf] }
 0x911   : > { %v5735_v60 = vpop.permute.xlu2 %5734  ;;  %v11239_v9 = vmul.f32 %v8675_v50, %v11159_v11  ;;  %v4144_v50 = vpack.c.bf16 %v11605_v30, %v11605_v30  ;;  %v7785_v44 = vor.u32 %v8090_v53, %v7784_v14  ;;  %v11607_v30 = vld [vmem:[#allocation47_spill] sm:$0xff] }
 0x912   : > { %v8677_v18 = vpop.eup %8676  ;;  %v11236_v62 = vsel %vm11600_vm2, %v5686_v3, %v5735_v60  ;;  %v5815_v47 = vunpack.c.l.b16 %v5647_v54  ;;  %v7720_v3 = vld [vmem:[#allocation15 + $0x40] sm:$0xf] }
 0x913   : > { %v11242_v21 = vmul.f32 %v8677_v18, %v11162_v5  ;;  %6215 = vmatmul.bf16.vlgmr.msra.gmra.mxu2 %v11236_v62  ;;  %5836 = vrot.lane.b32.xlu0 %v5825_v8, %s9030_s20  ;;  %v11603_v5 = vld [vmem:[#allocation34_spill] sm:$0xff]  ;;  %v8679_v26 = vpop.eup %8678  ;;  %v7721_v41 = vor.u32 %v8074_v55, %v7720_v3  ;;  %v5724_v56 = vunpack.c.l.b16 %v4144_v50  ;;  %v4706_v57 = vpack.c.bf16 %v11239_v9, %v11239_v9  ;;  %v7688_v3 = vld [vmem:[#allocation15] sm:$0xf]  ;;  %v8066_v55 = vld [vmem:[#allocation15 + $0x4] sm:$0xf0] }
 0x914   : > { %v5826_v45 = vpack.c.b16 %v5815_v47, %v5814_v12  ;;  %v4142_v20 = vpack.c.bf16 %v11603_v5, %v11603_v5  ;;  %v4687_v29 = vmul.f32 %v8679_v26, %v11154_v34  ;;  %6161 = vmatpush.bf16.msra.mxu1 %v7785_v44  ;;  %v7778_v12 = vld [vmem:[#allocation15 + $0xb8] sm:$0xf0]  ;;  %v7712_v47 = vld [vmem:[#allocation15 + $0x30] sm:$0xf]  ;;  %v3382_v50 = vpack.c.bf16 %v11607_v30, %v11607_v30 }
 0x915   : > { %v8212_v11 = vpack.c.bf16 %v11239_v9, %v11242_v21  ;;  %6112 = vmatpush.bf16.msra.mxu0 %v7721_v41  ;;  %v5733_v54 = vpack.c.b16 %v5725_v4, %v5724_v56  ;;  %v4705_v60 = vpack.c.bf16 %v11242_v21, %v11242_v21  ;;  %v4772_v18 = vunpack.c.l.b16 %v4706_v57  ;;  %v7770_v21 = vld [vmem:[#allocation15 + $0xa8] sm:$0xf0] }
 0x916   : > { %5838 = vrot.lane.b32.xlu2 %v5826_v45, %s9030_s20  ;;  %v4652_v17 = vpop.xlane.xlu0 %4651  ;;  %v5722_v2 = vunpack.c.l.b16 %v4142_v20  ;;  %v4703_v32 = vpack.c.bf16 %v4687_v29, %v4687_v29  ;;  %v7781_v49 = vor.u32 %v8087_v13, %v7778_v12  ;;  %v7777_v45 = vor.u32 %v8088_v48, %v7776_v40 }
 0x917   : > { %8280 = vst [vmem:[%s10415_s12 + $0xb0] sm:$0xff] %v8212_v11   ;;  %8680 = vrcp.f32 %v4652_v17  ;;  %v5623_v58 = vpop.f32.mrf.mxu3  ;;  %v4771_v37 = vunpack.c.l.b16 %v4705_v60  ;;  %v7713_v11 = vor.u32 %v8072_v1, %v7712_v47  ;;  %v7773_v5 = vor.u32 %v8085_v43, %v7770_v21 }
 0x918   : > { %v5732_v33 = vpack.c.b16 %v5723_v15, %v5722_v2  ;;  %v5648_v52 = vpack.c.bf16 %v5623_v58, %v5623_v58  ;;  %v4769_v35 = vunpack.c.l.b16 %v4703_v32  ;;  %6260 = vmatpush.bf16.msra.mxu3 %v7781_v49  ;;  %6162 = vmatpush.bf16.msra.mxu1 %v7777_v45  ;;  %v7704_v2 = vld [vmem:[#allocation15 + $0x20] sm:$0xf]  ;;  %v7689_v14 = vor.u32 %v8066_v55, %v7688_v3 }
 0x919   : > { %v4781_v8 = vpack.c.b16 %v4772_v18, %v4771_v37  ;;  %6113 = vmatpush.bf16.msra.mxu0 %v7713_v11  ;;  %v5672_v41 = vunpack.c.l.b16 %v3382_v50 }
 0x91a   : > { %v5816_v63 = vunpack.c.l.b16 %v5648_v52  ;;  %v7765_v52 = vor.u32 %v8083_v46, %v7762_v42 }
 0x91b   : > { %5744 = vrot.lane.b32.xlu0 %v5731_v22, %s9030_s20  ;;  %v7768_v22 = vld [vmem:[#allocation15 + $0xa0] sm:$0xf] }
 0x91c   : > { %6261 = vmatpush.bf16.msra.mxu3 %v7773_v5  ;;  %v7769_v61 = vor.u32 %v8086_v25, %v7768_v22 }
 0x91d   : > { %v8681_v10 = vpop.eup %8680 }
 0x91e   : > { %v4688_v39 = vmul.f32 %v8681_v10, %v11166_v16  ;;  %5746 = vrot.lane.b32.xlu2 %v5732_v33, %s9030_s20  ;;  %6163 = vmatpush.bf16.msra.mxu1 %v7769_v61  ;;  %v4848_v33 = vpop.f32.mrf.mxu0  ;;  %v11610_v61 = vld [vmem:[#allocation49_spill] sm:$0xff] }
 0x91f   : > { %v5625_v38 = vpop.f32.mrf.mxu3  ;;  %v4888_v48 = vpack.c.bf16 %v4848_v33, %v4848_v33 }
 0x920   : > { %v8207_v28 = vpack.c.bf16 %v4688_v39, %v4687_v29  ;;  %v5649_v0 = vpack.c.bf16 %v5625_v38, %v5625_v38  ;;  %v4704_v34 = vpack.c.bf16 %v4688_v39, %v4688_v39  ;;  %v8070_v29 = vld [vmem:[#allocation15 + $0x24] sm:$0xf0]  ;;  %v8084_v39 = vld [vmem:[#allocation15 + $0x94] sm:$0xf0]  ;;  %6262 = vmatpush.bf16.msra.mxu3 %v7765_v52 }
 0x921   : > { %v7705_v10 = vor.u32 %v8070_v29, %v7704_v2  ;;  %v7761_v32 = vor.u32 %v8084_v39, %v7760_v19  ;;  %v8082_v38 = vld [vmem:[#allocation15 + $0x84] sm:$0xf0]  ;;  %v3384_v2 = vpack.c.bf16 %v11610_v61, %v11610_v61 }
 0x922   : > { %8279 = vst [vmem:[%s10415_s12 + $0xa8] sm:$0xff] %v8207_v28   ;;  %v5817_v36 = vunpack.c.l.b16 %v5649_v0  ;;  %v4770_v7 = vunpack.c.l.b16 %v4704_v34  ;;  %v8081_v28 = vld [vmem:[#allocation15 + $0x84] sm:$0xf]  ;;  %v7753_v0 = vor.u32 %v8082_v38, %v7752_v6  ;;  %v7754_v34 = vld [vmem:[#allocation15 + $0x88] sm:$0xf0] }
 0x923   : > { %6114 = vmatpush.bf16.msra.mxu0 %v7705_v10  ;;  %6164 = vmatpush.bf16.msra.mxu1 %v7761_v32  ;;  %v5674_v33 = vunpack.c.l.b16 %v3384_v2 }
 0x924   : > { %v5827_v59 = vpack.c.b16 %v5817_v36, %v5816_v63  ;;  %v4780_v16 = vpack.c.b16 %v4770_v7, %v4769_v35  ;;  %v7696_v63 = vld [vmem:[#allocation15 + $0x10] sm:$0xf]  ;;  %v8068_v36 = vld [vmem:[#allocation15 + $0x14] sm:$0xf0]  ;;  %v7757_v35 = vor.u32 %v8081_v28, %v7754_v34 }
 0x925   : > { %v7697_v7 = vor.u32 %v8068_v36, %v7696_v63 }
 0x926   : > { %5840 = vrot.lane.b32.xlu1 %v5827_v59, %s9030_s20  ;;  %4872 = vmatmul.bf16.gmra.mxu0 %v4780_v16  ;;  %v4850_v23 = vpop.f32.mrf.mxu0  ;;  %v11606_v59 = vld [vmem:[#allocation48_spill] sm:$0xff] }
 0x927   : > { %6165 = vmatpush.bf16.msra.mxu1 %v7753_v0  ;;  %6263 = vmatpush.bf16.msra.mxu3 %v7757_v35  ;;  %v3383_v16 = vpack.c.bf16 %v11606_v59, %v11606_v59  ;;  %v4889_v49 = vpack.c.bf16 %v4850_v23, %v4850_v23  ;;  %v11613_v0 = vld [vmem:[#allocation52_spill] sm:$0xff]  ;;  %v11614_v35 = vld [vmem:[#allocation51_spill] sm:$0xff] }
 0x928   : > { %6115 = vmatpush.bf16.msra.mxu0 %v7697_v7  ;;  %v3387_v34 = vpack.c.bf16 %v11613_v0, %v11613_v0  ;;  %v3386_v7 = vpack.c.bf16 %v11614_v35, %v11614_v35 }
 0x929   : > { %v5673_v4 = vunpack.c.l.b16 %v3383_v16  ;;  %v5767_v21 = vunpack.c.l.b16 %v4889_v49 }
 0x92a   : > { %v5676_v59 = vunpack.c.l.b16 %v3386_v7 }
 0x92c   : > { %6116 = vmatpush.bf16.msra.mxu0 %v7689_v14 }
 0x92e   : > { %5748 = vrot.lane.b32.xlu1 %v5733_v54, %s9030_s20  ;;  %v4853_v53 = vpop.f32.mrf.mxu0  ;;  %v5687_v54 = vpack.c.b16 %v5673_v4, %v5672_v41 }
 0x92f   : > { %v4890_v52 = vpack.c.bf16 %v4853_v53, %v4853_v53  ;;  %v11617_v53 = vld [vmem:[#allocation54_spill] sm:$0xff] }
 0x931   : > { %v5768_v28 = vunpack.c.l.b16 %v4890_v52 }
 0x936   : > { %4877 = vmatmul.bf16.gmra.mxu0 %v4781_v8  ;;  %v4855_v47 = vpop.f32.mrf.mxu0 }
 0x937   : > { %v4891_v42 = vpack.c.bf16 %v4855_v47, %v4855_v47 }
 0x939   : > { %v5769_v6 = vunpack.c.l.b16 %v4891_v42 }
 0x93a   : > { %v5628_v9 = vpop.f32.mrf.mxu3 }
 0x93b   : > { %v5650_v20 = vpack.c.bf16 %v5628_v9, %v5628_v9  ;;  %v5783_v63 = vpack.c.b16 %v5769_v6, %v5768_v28 }
 0x93d   : > { %v5818_v31 = vunpack.c.l.b16 %v5650_v20  ;;  %v5766_v20 = vunpack.c.l.b16 %v4888_v48 }
 0x940   : > { %v5833_v38 = vpop.permute.xlu2 %5832 }
 0x941   : > { %v5884_v23 = vsel %vm11615_vm6, %v5783_v63, %v5833_v38 }
 0x942   : > { %v5630_v17 = vpop.f32.mrf.mxu3 }
 0x943   : > { %v5651_v26 = vpack.c.bf16 %v5630_v17, %v5630_v17  ;;  %v4858_v17 = vpop.f32.mrf.mxu0 }
 0x944   : > { %v4892_v3 = vpack.c.bf16 %v4858_v17, %v4858_v17 }
 0x945   : > { %v5819_v58 = vunpack.c.l.b16 %v5651_v26 }
 0x946   : > { %v5770_v41 = vunpack.c.l.b16 %v4892_v3 }
 0x947   : > { %v5828_v15 = vpack.c.b16 %v5819_v58, %v5818_v31 }
 0x948   : > { %v5741_v16 = vpop.permute.xlu2 %5740 }
 0x949   : > { %5842 = vrot.lane.b32.xlu0 %v5828_v15, %s9030_s20  ;;  %v5782_v15 = vpack.c.b16 %v5767_v21, %v5766_v20 }
 0x94b   : > { %v4860_v19 = vpop.f32.mrf.mxu0 }
 0x94c   : > { %v4893_v50 = vpack.c.bf16 %v4860_v19, %v4860_v19  ;;  %v11626_v19 = vld [vmem:[#allocation57_spill] sm:$0xff] }
 0x94d   : > { %v4660_v51 = vpop.xlane.xlu1 %4659 }
 0x94e   : > { %8682 = vrcp.f32 %v4660_v51  ;;  %v5677_v51 = vunpack.c.l.b16 %v3387_v34  ;;  %v5771_v14 = vunpack.c.l.b16 %v4893_v50 }
 0x950   : > { %v5689_v30 = vpack.c.b16 %v5677_v51, %v5676_v59 }
 0x953   : > { %v4863_v36 = vpop.f32.mrf.mxu0 }
 0x954   : > { %v8683_v56 = vpop.eup %8682 }
 0x955   : > { %v4692_v37 = vmul.f32 %v8683_v56, %v11185_v27  ;;  %v5784_v56 = vpack.c.b16 %v5771_v14, %v5770_v41  ;;  %v11631_v14 = vld [vmem:[#allocation59_spill] sm:$0xff] }
 0x957   : > { %v4708_v12 = vpack.c.bf16 %v4692_v37, %v4692_v37 }
 0x959   : > { %v4774_v45 = vunpack.c.l.b16 %v4708_v12 }
 0x95b   : > { %v4865_v55 = vpop.f32.mrf.mxu0 }
 0x95c   : > { %v4895_v49 = vpack.c.bf16 %v4865_v55, %v4865_v55  ;;  %v11630_v55 = vld [vmem:[#allocation60_spill] sm:$0xff] }
 0x962   : > { %v4658_v44 = vpop.xlane.xlu0 %4657 }
 0x963   : > { %8684 = vrcp.f32 %v4658_v44  ;;  %v3389_v44 = vpack.c.bf16 %v11617_v53, %v11617_v53 }
 0x965   : > { %v5737_v60 = vpop.permute.xlu1 %5736 }
 0x966   : > { %v11277_v57 = vsel %vm11608_vm3, %v5687_v54, %v5737_v60  ;;  %v11618_v54 = vld [vmem:[#allocation53_spill] sm:$0xff] }
 0x967   : > { %6220 = vmatmul.bf16.gmra.mxu2 %v11277_v57  ;;  %v3388_v60 = vpack.c.bf16 %v11618_v54, %v11618_v54 }
 0x969   : > { %v5633_v18 = vpop.f32.mrf.mxu3  ;;  %v8685_v8 = vpop.eup %8684 }
 0x96a   : > { %v4691_v13 = vmul.f32 %v8685_v8, %v11201_v24  ;;  %v5652_v43 = vpack.c.bf16 %v5633_v18, %v5633_v18  ;;  %v11609_v24 = vld [vmem:[#allocation50_spill] sm:$0xff]  ;;  %v5679_v8 = vunpack.c.l.b16 %v3389_v44 }
 0x96b   : > { %v3385_v58 = vpack.c.bf16 %v11609_v24, %v11609_v24 }
 0x96c   : > { %v8217_v1 = vpack.c.bf16 %v4692_v37, %v4691_v13  ;;  %v4707_v40 = vpack.c.bf16 %v4691_v13, %v4691_v13  ;;  %v5820_v26 = vunpack.c.l.b16 %v5652_v43  ;;  %v5678_v13 = vunpack.c.l.b16 %v3388_v60  ;;  %v11621_v43 = vld [vmem:[#allocation56_spill] sm:$0xff] }
 0x96d   : > { %v5675_v46 = vunpack.c.l.b16 %v3385_v58  ;;  %v5835_v4 = vpop.permute.xlu1 %5834  ;;  %v3391_v21 = vpack.c.bf16 %v11621_v43, %v11621_v43 }
 0x96e   : > { %8281 = vst [vmem:[%s10415_s12 + $0xb8] sm:$0xff] %v8217_v1   ;;  %v4773_v11 = vunpack.c.l.b16 %v4707_v40  ;;  %v5888_v37 = vsel %vm11619_vm8, %v5784_v56, %v5835_v4  ;;  %v5690_v47 = vpack.c.b16 %v5679_v8, %v5678_v13  ;;  %v4894_v1 = vpack.c.bf16 %v4863_v36, %v4863_v36  ;;  %v7685_v8 = vld [vmem:[%s11465_s7 + $0x3] ss:$4 sm:$0x3] }
 0x96f   : > { %v5688_v10 = vpack.c.b16 %v5675_v46, %v5674_v33  ;;  %v5773_v40 = vunpack.c.l.b16 %v4895_v49  ;;  %v5681_v17 = vunpack.c.l.b16 %v3391_v21  ;;  %v11632_v4 = vpack.c.b16 %v11630_v55, %v11631_v14 }
 0x970   : > { %v4782_v9 = vpack.c.b16 %v4774_v45, %v4773_v11  ;;  %v5772_v45 = vunpack.c.l.b16 %v4894_v1 }
 0x971   : > { %v5635_v5 = vpop.f32.mrf.mxu3 }
 0x972   : > { %v5653_v27 = vpack.c.bf16 %v5635_v5, %v5635_v5  ;;  %4882 = vmatmul.bf16.gmra.mxu0 %v4782_v9  ;;  %v5785_v5 = vpack.c.b16 %v5773_v40, %v5772_v45  ;;  %v11622_v9 = vld [vmem:[#allocation55_spill] sm:$0xff] }
 0x974   : > { %v5821_v31 = vunpack.c.l.b16 %v5653_v27  ;;  %v3390_v27 = vpack.c.bf16 %v11622_v9, %v11622_v9 }
 0x975   : > { %v5831_v25 = vpop.permute.xlu0 %5830  ;;  %v5743_v12 = vpop.permute.xlu1 %5742 }
 0x976   : > { %v5829_v22 = vpack.c.b16 %v5821_v31, %v5820_v26  ;;  %v5880_v29 = vsel %vm11611_vm4, %v5782_v15, %v5831_v25  ;;  %v5680_v31 = vunpack.c.l.b16 %v3390_v27  ;;  %v11328_v27 = vperm.slane %v7685_v8, 0 }
 0x977   : > { %6166 = vmatmul.bf16.vlgmr.msra.gmra.mxu1 %v5880_v29  ;;  %6264 = vmatmul.bf16.vlgmr.msra.gmra.mxu3 %v5880_v29  ;;  %v5839_v29 = vpop.permute.xlu2 %5838 }
 0x978   : > { %5844 = vrot.lane.b32.xlu2 %v5829_v22, %s9030_s20  ;;  %v4868_v18 = vpop.f32.mrf.mxu0  ;;  %v5691_v15 = vpack.c.b16 %v5681_v17, %v5680_v31 }
 0x979   : > { %v4896_v22 = vpack.c.bf16 %v4868_v18, %v4868_v18 }
 0x97b   : > { %v5774_v2 = vunpack.c.l.b16 %v4896_v22 }
 0x97d   : > { %v5739_v39 = vpop.permute.xlu0 %5738 }
 0x97e   : > { %v5856_v32 = vsel %vm11612_vm5, %v5688_v10, %v5739_v39  ;;  %v11625_v10 = vld [vmem:[#allocation58_spill] sm:$0xff]  ;;  %v3392_v39 = vpack.c.bf16 %v11626_v19, %v11626_v19 }
 0x97f   : > { %6225 = vmatmul.bf16.gmra.mxu2 %v5856_v32  ;;  %v3393_v42 = vpack.c.bf16 %v11625_v10, %v11625_v10  ;;  %v5747_v28 = vpop.permute.xlu2 %5746 }
 0x980   : > { %v4870_v48 = vpop.f32.mrf.mxu0  ;;  %v5682_v6 = vunpack.c.l.b16 %v3392_v39 }
 0x981   : > { %v4897_v24 = vpack.c.bf16 %v4870_v48, %v4870_v48 }
 0x982   : > { %6117 = vmatmul.bf16.vlgmr.msra.gmra.mxu0 %v11236_v62  ;;  %v5860_v62 = vsel %vm11616_vm7, %v5689_v30, %v5741_v16 }
 0x983   : > { %v5775_v25 = vunpack.c.l.b16 %v4897_v24 }
 0x985   : > { %v5837_v11 = vpop.permute.xlu0 %5836  ;;  %v5786_v46 = vpack.c.b16 %v5775_v25, %v5774_v2 }
 0x986   : > { %v5892_v20 = vsel %vm11623_vm10, %v5785_v5, %v5837_v11 }
 0x987   : > { %6171 = vmatmul.bf16.gmra.mxu1 %v5884_v23  ;;  %6269 = vmatmul.bf16.gmra.mxu3 %v5884_v23  ;;  %v5896_v52 = vsel %vm11627_vm12, %v5786_v46, %v5839_v29 }
 0x98d   : > { %v5745_v58 = vpop.permute.xlu0 %5744 }
 0x98e   : > { %v5868_v61 = vsel %vm11624_vm11, %v5691_v15, %v5745_v58 }
 0x98f   : > { %6230 = vmatmul.bf16.gmra.mxu2 %v5860_v62 }
 0x992   : > { %6122 = vmatmul.bf16.gmra.mxu0 %v11277_v57  ;;  %v5864_v57 = vsel %vm11620_vm9, %v5690_v47, %v5743_v12  ;;  %v11325_v47 = vperm.slane %v7685_v8, 1 }
 0x996   : > { %v6216_v60 = vpop.f32.mrf.mxu2 }
 0x997   : > { %6176 = vmatmul.bf16.gmra.mxu1 %v5888_v37  ;;  %6274 = vmatmul.bf16.gmra.mxu3 %v5888_v37  ;;  %v6217_v40 = vadd.f32 %v6216_v60, %v11325_v47 }
 0x998   : > { %v5841_v23 = vpop.permute.xlu1 %5840 }
 0x99e   : > { %v6218_v37 = vpop.f32.mrf.mxu2 }
 0x99f   : > { %6235 = vmatmul.bf16.gmra.mxu2 %v5864_v57  ;;  %v6219_v24 = vadd.f32 %v6218_v37, %v11325_v47 }
 0x9a0   : > { %v5749_v50 = vpop.permute.xlu1 %5748 }
 0x9a1   : > { %v5876_v41 = vsel %vm11633_vm15, %v11632_v4, %v5749_v50 }
 0x9a2   : > { %6127 = vmatmul.bf16.gmra.mxu0 %v5856_v32  ;;  %v5683_v32 = vunpack.c.l.b16 %v3393_v42 }
 0x9a3   : > { %v4873_v26 = vpop.f32.mrf.mxu0 }
 0x9a4   : > { %v5692_v0 = vpack.c.b16 %v5683_v32, %v5682_v6  ;;  %v4898_v34 = vpack.c.bf16 %v4873_v26, %v4873_v26 }
 0x9a6   : > { %v5872_v35 = vsel %vm11628_vm13, %v5692_v0, %v5747_v28  ;;  %v5776_v7 = vunpack.c.l.b16 %v4898_v34 }
 0x9a7   : > { %6181 = vmatmul.bf16.gmra.mxu1 %v5892_v20  ;;  %6279 = vmatmul.bf16.gmra.mxu3 %v5892_v20 }
 0x9ab   : > { %v4875_v33 = vpop.f32.mrf.mxu0 }
 0x9ac   : > { %v4899_v38 = vpack.c.bf16 %v4875_v33, %v4875_v33 }
 0x9ae   : > { %v5777_v36 = vunpack.c.l.b16 %v4899_v38 }
 0x9af   : > { %6240 = vmatmul.bf16.gmra.mxu2 %v5868_v61 }
 0x9b0   : > { %v5787_v51 = vpack.c.b16 %v5777_v36, %v5776_v7 }
 0x9b2   : > { %6132 = vmatmul.bf16.gmra.mxu0 %v5860_v62  ;;  %v5900_v59 = vsel %vm11629_vm14, %v5787_v51, %v5841_v23 }
 0x9b3   : > { %v4878_v63 = vpop.f32.mrf.mxu0 }
 0x9b4   : > { %v4900_v3 = vpack.c.bf16 %v4878_v63, %v4878_v63 }
 0x9b6   : > { %v5778_v53 = vunpack.c.l.b16 %v4900_v3 }
 0x9b7   : > { %6186 = vmatmul.bf16.gmra.mxu1 %v5896_v52  ;;  %6284 = vmatmul.bf16.gmra.mxu3 %v5896_v52 }
 0x9bb   : > { %v4880_v16 = vpop.f32.mrf.mxu0  ;;  %v5843_v56 = vpop.permute.xlu0 %5842 }
 0x9bc   : > { %v4901_v30 = vpack.c.bf16 %v4880_v16, %v4880_v16 }
 0x9be   : > { %v5779_v62 = vunpack.c.l.b16 %v4901_v30 }
 0x9bf   : > { %6245 = vmatmul.bf16.gmra.mxu2 %v5872_v35 }
 0x9c0   : > { %v5788_v44 = vpack.c.b16 %v5779_v62, %v5778_v53 }
 0x9c2   : > { %6137 = vmatmul.bf16.gmra.mxu0 %v5864_v57  ;;  %v5904_v54 = vsel %vm11634_vm0, %v5788_v44, %v5843_v56 }
 0x9c7   : > { %6191 = vmatmul.bf16.gmra.mxu1 %v5900_v59  ;;  %6289 = vmatmul.bf16.gmra.mxu3 %v5900_v59 }
 0x9cf   : > { %6250 = vmatmul.bf16.gmra.mxu2 %v5876_v41 }
 0x9d2   : > { %6142 = vmatmul.bf16.gmra.mxu0 %v5868_v61  ;;  %v5845_v20 = vpop.permute.xlu2 %5844 }
 0x9d7   : > { %6196 = vmatmul.bf16.gmra.mxu1 %v5904_v54  ;;  %6294 = vmatmul.bf16.gmra.mxu3 %v5904_v54 }
 0x9e2   : > { %6147 = vmatmul.bf16.gmra.mxu0 %v5872_v35 }
 0x9ea   : > { %v6221_v13 = vpop.f32.mrf.mxu2 }
 0x9eb   : > { %v6222_v46 = vadd.f32 %v6221_v13, %v11325_v47 }
 0x9ef   : > { %v4883_v18 = vpop.f32.mrf.mxu0 }
 0x9f0   : > { %v4902_v49 = vpack.c.bf16 %v4883_v18, %v4883_v18 }
 0x9f2   : > { %6152 = vmatmul.bf16.gmra.mxu0 %v5876_v41  ;;  %v5780_v48 = vunpack.c.l.b16 %v4902_v49  ;;  %v6223_v21 = vpop.f32.mrf.mxu2 }
 0x9f3   : > { %v6224_v6 = vadd.f32 %v6223_v21, %v11325_v47 }
 0x9f4   : > { %v6167_v12 = vpop.f32.mrf.mxu1 }
 0x9f7   : > { %v4885_v1 = vpop.f32.mrf.mxu0 }
 0x9f8   : > { %v4903_v57 = vpack.c.bf16 %v4885_v1, %v4885_v1 }
 0x9fa   : > { %v5781_v11 = vunpack.c.l.b16 %v4903_v57  ;;  %v6265_v45 = vpop.f32.mrf.mxu3 }
 0x9fb   : > { %v6266_v43 = vadd.f32 %v6265_v45, %v6217_v40 }
 0x9fc   : > { %v5789_v5 = vpack.c.b16 %v5781_v11, %v5780_v48  ;;  %v6169_v9 = vpop.f32.mrf.mxu1 }
 0x9fd   : > { %6306 = vst [vmem:[%s11332_s0 + $0x8] sm:$0xff] %v6266_v43 }
 0x9fe   : > { %v5908_v17 = vsel %vm11635_vm1, %v5789_v5, %v5845_v20 }
 0x9ff   : > { %v6118_v26 = vpop.f32.mrf.mxu0  ;;  %6201 = vmatmul.bf16.gmra.mxu1 %v5908_v17  ;;  %6299 = vmatmul.bf16.gmra.mxu3 %v5908_v17 }
 0xa00   : > { %v6119_v31 = vadd.f32 %v6118_v26, %v11328_v27 }
 0xa02   : > { %v6168_v58 = vadd.f32 %v6167_v12, %v6119_v31  ;;  %v6267_v15 = vpop.f32.mrf.mxu3  ;;  %v6226_v25 = vpop.f32.mrf.mxu2 }
 0xa03   : > { %v6268_v22 = vadd.f32 %v6267_v15, %v6219_v24 }
 0xa04   : > { %6305 = vst [vmem:[%s11332_s0] sm:$0xff] %v6168_v58  ;;  %v6172_v61 = vpop.f32.mrf.mxu1 }
 0xa05   : > { %6308 = vst [vmem:[%s11332_s0 + $0x18] sm:$0xff] %v6268_v22 }
 0xa07   : > { %v6120_v2 = vpop.f32.mrf.mxu0 }
 0xa08   : > { %v6121_v29 = vadd.f32 %v6120_v2, %v11328_v27 }
 0xa0a   : > { %v6170_v33 = vadd.f32 %v6169_v9, %v6121_v29  ;;  %v6270_v10 = vpop.f32.mrf.mxu3  ;;  %v6228_v39 = vpop.f32.mrf.mxu2 }
 0xa0b   : > { %v6271_v42 = vadd.f32 %v6270_v10, %v6222_v46 }
 0xa0c   : > { %6307 = vst [vmem:[%s11332_s0 + $0x10] sm:$0xff] %v6170_v33  ;;  %v6174_v19 = vpop.f32.mrf.mxu1 }
 0xa0d   : > { %6310 = vst [vmem:[%s11332_s0 + $0x28] sm:$0xff] %v6271_v42 }
 0xa0f   : > { %v6123_v52 = vpop.f32.mrf.mxu0 }
 0xa10   : > { %v6124_v32 = vadd.f32 %v6123_v52, %v11328_v27 }
 0xa12   : > { %v6173_v38 = vadd.f32 %v6172_v61, %v6124_v32  ;;  %v6272_v28 = vpop.f32.mrf.mxu3 }
 0xa13   : > { %v6273_v0 = vadd.f32 %v6272_v28, %v6224_v6 }
 0xa14   : > { %6309 = vst [vmem:[%s11332_s0 + $0x20] sm:$0xff] %v6173_v38  ;;  %v6177_v34 = vpop.f32.mrf.mxu1 }
 0xa15   : > { %6312 = vst [vmem:[%s11332_s0 + $0x38] sm:$0xff] %v6273_v0 }
 0xa16   : > { %8923 = shalt.err (!%p8920_p12)
}
 0xa17   : > { %s9047_s29 = smov 4   ;;  %v6125_v63 = vpop.f32.mrf.mxu0  ;;  %v6231_v36 = vpop.f32.mrf.mxu2  ;;  %v6227_v7 = vadd.f32 %v6226_v25, %v11325_v47  ;;  %v6229_v3 = vadd.f32 %v6228_v39, %v11325_v47  ;;  %s11637_s12 = sld [smem:[#allocation68_spill]] }
 0xa18   : > { %8313 = dma.vmem_to_hbm [thread:$0]  (%p9194_p7), %s6378_s23, 4096, %s6380_s11, %s6343_s24, %s9030_s20, %s9030_s20, %s9047_s29   ;;  %v6126_v35 = vadd.f32 %v6125_v63, %v11328_v27  ;;  %v6232_v56 = vadd.f32 %v6231_v36, %v11325_v47 }
 0xa19   : > { %s6358_s9 = sshll.u32 %s11332_s0, 4  ;;  %s6338_s26 = scalar_lea.sflag [#allocation6], %s9271_s1  ;;  %s6359_s9 = int_to_ptr.vmem [resolvable:$true] %s6358_s9 }
 0xa1a   : > { %v6175_v23 = vadd.f32 %v6174_v19, %v6126_v35  ;;  %v6275_v51 = vpop.f32.mrf.mxu3 }
 0xa1b   : > { %v6276_v59 = vadd.f32 %v6275_v51, %v6227_v7 }
 0xa1c   : > { %6311 = vst [vmem:[%s11332_s0 + $0x30] sm:$0xff] %v6175_v23  ;;  %v6179_v16 = vpop.f32.mrf.mxu1 }
 0xa1d   : > { %6314 = vst [vmem:[%s11332_s0 + $0x48] sm:$0xff] %v6276_v59  ;;  %s6357_s27 = scalar_lea.hbm %s11637_s12, %s8097_s4  ;;  %s8944_s11 = scalar_lea.hbm %s11637_s12, 512 }
 0xa1e   : > { %s6360_s18 = sshll.u32 %s6357_s27, 4  ;;  %s6361_s18 = int_to_ptr.hbm [resolvable:$true] %s6360_s18 }
 0xa1f   : > { %v6128_v30 = vpop.f32.mrf.mxu0  ;;  %v6233_v62 = vpop.f32.mrf.mxu2  ;;  %s8938_s16 = sshra.s32 %s6361_s18, 4  ;;  %s8939_s16 = int_to_ptr.hbm [resolvable:$true] %s8938_s16 }
 0xa20   : > { %v6129_v50 = vadd.f32 %v6128_v30, %v11328_v27  ;;  %v6234_v49 = vadd.f32 %v6233_v62, %v11325_v47  ;;  %s8940_s19 = scalar_lea.hbm %s8939_s16, 256  ;;  %p8945_p5 = scmp.lt.s32.totalorder %s8939_s16, %s11637_s12 }
 0xa21   : > { %p8941_p13 = scmp.ne.s32.totalorder %s8939_s16, %s8940_s19  ;;  %p8946_p9 = scmp.lt.s32.totalorder %s8944_s11, %s8940_s19 }
 0xa22   : > { %v6178_v55 = vadd.f32 %v6177_v34, %v6129_v50  ;;  %v6277_v14 = vpop.f32.mrf.mxu3 }
 0xa23   : > { %v6278_v4 = vadd.f32 %v6277_v14, %v6229_v3  ;;  %p8942_p0 = pnand %p8941_p13, %p9194_p7  ;;  %p8947_p1 = por %p8946_p9, %p8945_p5 }
 0xa24   : > { %6313 = vst [vmem:[%s11332_s0 + $0x40] sm:$0xff] %v6178_v55  ;;  %v6182_v41 = vpop.f32.mrf.mxu1 }
 0xa25   : > { %6316 = vst [vmem:[%s11332_s0 + $0x58] sm:$0xff] %v6278_v4  ;;  %p8943_p3 = pneg %p8942_p0 }
 0xa27   : > { %v6130_v53 = vpop.f32.mrf.mxu0  ;;  %v6236_v18 = vpop.f32.mrf.mxu2  ;;  %p8948_p2 = pnand %p8947_p1, %p8943_p3 }
 0xa28   : > { %v6131_v44 = vadd.f32 %v6130_v53, %v11328_v27  ;;  %v6237_v21 = vadd.f32 %v6236_v18, %v11325_v47 }
 0xa2a   : > { %v6180_v54 = vadd.f32 %v6179_v16, %v6131_v44  ;;  %v6280_v60 = vpop.f32.mrf.mxu3 }
 0xa2b   : > { %v6281_v37 = vadd.f32 %v6280_v60, %v6232_v56 }
 0xa2c   : > { %6315 = vst [vmem:[%s11332_s0 + $0x50] sm:$0xff] %v6180_v54  ;;  %v6184_v8 = vpop.f32.mrf.mxu1 }
 0xa2d   : > { %6318 = vst [vmem:[%s11332_s0 + $0x68] sm:$0xff] %v6281_v37 }
 0xa2f   : > { %v6133_v13 = vpop.f32.mrf.mxu0  ;;  %v6238_v48 = vpop.f32.mrf.mxu2 }
 0xa30   : > { %v6134_v12 = vadd.f32 %v6133_v13, %v11328_v27  ;;  %v6239_v24 = vadd.f32 %v6238_v48, %v11325_v47 }
 0xa32   : > { %v6183_v1 = vadd.f32 %v6182_v41, %v6134_v12  ;;  %v6282_v57 = vpop.f32.mrf.mxu3 }
 0xa33   : > { %v6283_v40 = vadd.f32 %v6282_v57, %v6234_v49 }
 0xa34   : > { %6317 = vst [vmem:[%s11332_s0 + $0x60] sm:$0xff] %v6183_v1  ;;  %v6187_v11 = vpop.f32.mrf.mxu1 }
 0xa35   : > { %6320 = vst [vmem:[%s11332_s0 + $0x78] sm:$0xff] %v6283_v40 }
 0xa37   : > { %v6135_v45 = vpop.f32.mrf.mxu0  ;;  %v6241_v26 = vpop.f32.mrf.mxu2 }
 0xa38   : > { %v6136_v43 = vadd.f32 %v6135_v45, %v11328_v27  ;;  %v6242_v29 = vadd.f32 %v6241_v26, %v11325_v47 }
 0xa3a   : > { %v6185_v5 = vadd.f32 %v6184_v8, %v6136_v43  ;;  %v6285_v9 = vpop.f32.mrf.mxu3 }
 0xa3b   : > { %v6286_v20 = vadd.f32 %v6285_v9, %v6237_v21 }
 0xa3c   : > { %6319 = vst [vmem:[%s11332_s0 + $0x70] sm:$0xff] %v6185_v5  ;;  %v6189_v58 = vpop.f32.mrf.mxu1 }
 0xa3d   : > { %6322 = vst [vmem:[%s11332_s0 + $0x88] sm:$0xff] %v6286_v20 }
 0xa3f   : > { %v6138_v17 = vpop.f32.mrf.mxu0  ;;  %v6243_v46 = vpop.f32.mrf.mxu2 }
 0xa40   : > { %v6139_v31 = vadd.f32 %v6138_v17, %v11328_v27  ;;  %v6244_v32 = vadd.f32 %v6243_v46, %v11325_v47 }
 0xa42   : > { %v6188_v15 = vadd.f32 %v6187_v11, %v6139_v31  ;;  %v6287_v22 = vpop.f32.mrf.mxu3 }
 0xa43   : > { %v6288_v25 = vadd.f32 %v6287_v22, %v6239_v24 }
 0xa44   : > { %6321 = vst [vmem:[%s11332_s0 + $0x80] sm:$0xff] %v6188_v15  ;;  %v6192_v42 = vpop.f32.mrf.mxu1 }
 0xa45   : > { %6324 = vst [vmem:[%s11332_s0 + $0x98] sm:$0xff] %v6288_v25 }
 0xa47   : > { %v6140_v61 = vpop.f32.mrf.mxu0  ;;  %v6246_v0 = vpop.f32.mrf.mxu2 }
 0xa48   : > { %v6141_v2 = vadd.f32 %v6140_v61, %v11328_v27  ;;  %v6247_v35 = vadd.f32 %v6246_v0, %v11325_v47 }
 0xa4a   : > { %v6190_v33 = vadd.f32 %v6189_v58, %v6141_v2  ;;  %v6290_v10 = vpop.f32.mrf.mxu3 }
 0xa4b   : > { %v6291_v19 = vadd.f32 %v6290_v10, %v6242_v29 }
 0xa4c   : > { %6323 = vst [vmem:[%s11332_s0 + $0x90] sm:$0xff] %v6190_v33  ;;  %v6194_v34 = vpop.f32.mrf.mxu1 }
 0xa4d   : > { %6326 = vst [vmem:[%s11332_s0 + $0xa8] sm:$0xff] %v6291_v19 }
 0xa4f   : > { %v6143_v39 = vpop.f32.mrf.mxu0  ;;  %v6248_v59 = vpop.f32.mrf.mxu2 }
 0xa50   : > { %v6144_v52 = vadd.f32 %v6143_v39, %v11328_v27  ;;  %v6249_v3 = vadd.f32 %v6248_v59, %v11325_v47 }
 0xa52   : > { %v6193_v6 = vadd.f32 %v6192_v42, %v6144_v52  ;;  %v6292_v38 = vpop.f32.mrf.mxu3 }
 0xa53   : > { %v6293_v28 = vadd.f32 %v6292_v38, %v6244_v32 }
 0xa54   : > { %6325 = vst [vmem:[%s11332_s0 + $0xa0] sm:$0xff] %v6193_v6  ;;  %v6197_v16 = vpop.f32.mrf.mxu1 }
 0xa55   : > { %6328 = vst [vmem:[%s11332_s0 + $0xb8] sm:$0xff] %v6293_v28 }
 0xa57   : > { %v6145_v63 = vpop.f32.mrf.mxu0  ;;  %v6251_v60 = vpop.f32.mrf.mxu2 }
 0xa58   : > { %v6146_v36 = vadd.f32 %v6145_v63, %v11328_v27  ;;  %v6252_v13 = vadd.f32 %v6251_v60, %v11325_v47 }
 0xa5a   : > { %v6195_v7 = vadd.f32 %v6194_v34, %v6146_v36  ;;  %v6295_v23 = vpop.f32.mrf.mxu3 }
 0xa5b   : > { %v6296_v51 = vadd.f32 %v6295_v23, %v6247_v35 }
 0xa5c   : > { %6327 = vst [vmem:[%s11332_s0 + $0xb0] sm:$0xff] %v6195_v7  ;;  %v6199_v53 = vpop.f32.mrf.mxu1 }
 0xa5d   : > { %6330 = vst [vmem:[%s11332_s0 + $0xc8] sm:$0xff] %v6296_v51 }
 0xa5f   : > { %v6148_v30 = vpop.f32.mrf.mxu0  ;;  %v6253_v48 = vpop.f32.mrf.mxu2 }
 0xa60   : > { %v6149_v50 = vadd.f32 %v6148_v30, %v11328_v27  ;;  %v6254_v11 = vadd.f32 %v6253_v48, %v11325_v47 }
 0xa62   : > { %v6198_v62 = vadd.f32 %v6197_v16, %v6149_v50  ;;  %v6297_v55 = vpop.f32.mrf.mxu3 }
 0xa63   : > { %v6298_v14 = vadd.f32 %v6297_v55, %v6249_v3 }
 0xa64   : > { %6329 = vst [vmem:[%s11332_s0 + $0xc0] sm:$0xff] %v6198_v62 }
 0xa65   : > { %6332 = vst [vmem:[%s11332_s0 + $0xd8] sm:$0xff] %v6298_v14 }
 0xa67   : > { %v6150_v4 = vpop.f32.mrf.mxu0 }
 0xa68   : > { %v6151_v41 = vadd.f32 %v6150_v4, %v11328_v27 }
 0xa6a   : > { %v6200_v44 = vadd.f32 %v6199_v53, %v6151_v41 }
 0xa6c   : > { %6331 = vst [vmem:[%s11332_s0 + $0xd0] sm:$0xff] %v6200_v44 }
 0xa6f   : > { %v6153_v56 = vpop.f32.mrf.mxu0 }
 0xa70   : > { %v6154_v54 = vadd.f32 %v6153_v56, %v11328_v27 }
 0xa77   : > { %v6155_v8 = vpop.f32.mrf.mxu0 }
 0xa78   : > { %v6156_v49 = vadd.f32 %v6155_v8, %v11328_v27 }
 0xa7c   : > { %v6202_v37 = vpop.f32.mrf.mxu1 }
 0xa7d   : > { %v6203_v18 = vadd.f32 %v6202_v37, %v6154_v54 }
 0xa7f   : > { %6333 = vst [vmem:[%s11332_s0 + $0xe0] sm:$0xff] %v6203_v18 }
 0xa82   : > { %v6300_v12 = vpop.f32.mrf.mxu3 }
 0xa83   : > { %v6301_v1 = vadd.f32 %v6300_v12, %v6252_v13 }
 0xa84   : > { %v6204_v57 = vpop.f32.mrf.mxu1 }
 0xa85   : > { %6334 = vst [vmem:[%s11332_s0 + $0xe8] sm:$0xff] %v6301_v1  ;;  %v6205_v40 = vadd.f32 %v6204_v57, %v6156_v49 }
 0xa87   : > { %6335 = vst [vmem:[%s11332_s0 + $0xf0] sm:$0xff] %v6205_v40 }
 0xa8a   : > { %v6302_v45 = vpop.f32.mrf.mxu3 }
 0xa8b   : > { %v6303_v27 = vadd.f32 %v6302_v45, %v6254_v11 }
 0xa8d   : > { %6336 = vst [vmem:[%s11332_s0 + $0xf8] sm:$0xff] %v6303_v27 }
 0xa8e   : > { %8951 = shalt.err (!%p8948_p2)
}
 0xa8f   : > { %s9048_s1 = smov 256   ;;  %s9049_s0 = smov 16  }
 0xa90   : > { %8312 = dma.vmem_to_hbm [thread:$0]  (%p9194_p7), %s6359_s9, 4096, %s6361_s18, %s6338_s26, %s9048_s1, %s9048_s1, %s9049_s0  }
 0xa91 PF: > { %s11638_s30 = sld [smem:[#allocation25_spill]] }
 0xa92   : > { %s11640_s25 = sld [smem:[#allocation27_spill]] }
 0xa97   : > { %s6394_s22 = sand.u32 1, %s11638_s30  }
 0xa98   : > { %p11641_p4 = scmp.ge.s32.totalorder %s11640_s25, 2  ;;  %s6395_s3 = scalar_lea.sflag [#allocation6], %s6394_s22 }
 0xa9a   : > { %p8340_p8 = pnand %p11641_p4, %p9150_p6 }
 0xa9c   : > { %p8341_p10 = pneg %p8340_p8 }
 0xa9e   : > { %8993 = dma.done.wait (%p8341_p10), %s6395_s3, 4096  }
 0xa9f   : > { %8995 = vsyncadd (%p8341_p10), %s6395_s3, 4294963200  ;;  %s6405_s13 = scalar_lea.sflag [#allocation18], %s6394_s22 }
 0xaa0   : > { %8997 = dma.done.wait (%p8341_p10), %s6405_s13, 4096  }
 0xaa1   : > { %8999 = vsyncadd (%p8341_p10), %s6405_s13, 4294963200  ;;  %s35_s18 = sadd.s32 1, %s11640_s25   ;;  %s11642_s21 = sld [smem:[#allocation31_spill]] }
 0xaa2   : > { %p32_p11 = scmp.ge.s32.totalorder %s35_s18, 4   ;;  %s11643_s16 = sld [smem:[#allocation26_spill]] }
 0xaa3   : > { %s11644_s17 = sld [smem:[#allocation29_spill]]  ;;  %s11645_s13 = smov %s9006_s14 }
 0xaa4   : > { %s11646_s14 = smov %s9010_s15  ;;  %34 = sbr.rel (!%p32_p11) target bundleno = 19 (0x13), region = 180 }
 0xaa7   : > { %s11647_s15 = smov %s11642_s21 }
 0xaa9   :  { %6411 = vsyncpa [#allocation5], 1 }
 0xaaa   :  { %6413 = vsyncpa [#allocation5 + $0x1], 1 }
 0xaab   :  { %6414 = vsyncpa [#allocation8], 1 }
 0xaac   :  { %6416 = vsyncpa [#allocation8 + $0x1], 1 }
 0xaad   :  { %6417 = vsyncpa [#allocation11], 1 }
 0xaae   :  { %6418 = vsyncpa [#allocation14], 1 }
 0xaaf   :  { %6419 = vsyncpa [#allocation6], 1 }
 0xab0   :  { %6421 = vsyncpa [#allocation6 + $0x1], 1 }
 0xab1   :  { %6422 = vsyncpa [#allocation18], 1 }
 0xab2   :  { %6424 = vsyncpa [#allocation18 + $0x1], 1 }

</bundles_post_ra>
